<compile_context>
chip_gen: v5e
topology: v5e:2x2
jax: 0.10.0
libtpu: 0.0.40
codegen_flags: <defaults>
</compile_context>

<pallas_src>
import functools

import jax
import jax.numpy as jnp
from jax import lax
from jax.experimental import pallas as pl
from jax.experimental.pallas import tpu as pltpu


def _flow_kernel(x_ref, m1_ref, ab1_ref, w1_ref, cb1_ref, w2t_ref, cb2_ref,
                 w3_ref, cb3_ref, y_ref, ld_ref, pad1_ref, pad2_ref,
                 *, H, W, C, F, ROWS):
    Ch = C // 2
    Wp = W + 2
    M = ROWS * W
    NBLK = H // ROWS
    cdt = pad1_ref.dtype  # bf16 compute dtype for coupling-net matmul operands

    # ---- halo init (top/bottom rows and the two leftmost/rightmost columns) ----
    # conv1 uses zero padding; ZeroConv2d pads its input with value 1.0.
    # The interior is fully rewritten below, so only the halo needs (re)filling.
    pad1_ref[0] = jnp.zeros((Wp, 3 * Ch), cdt)
    pad1_ref[H + 1] = jnp.zeros((Wp, 3 * Ch), cdt)
    pad1_ref[:, 0:2, :] = jnp.zeros((H + 2, 2, 3 * Ch), cdt)
    pad1_ref[:, W:W + 2, :] = jnp.zeros((H + 2, 2, 3 * Ch), cdt)
    pad2_ref[0] = jnp.ones((Wp, 3 * F), cdt)
    pad2_ref[H + 1] = jnp.ones((Wp, 3 * F), cdt)
    pad2_ref[:, 0:2, :] = jnp.ones((H + 2, 2, 3 * F), cdt)
    pad2_ref[:, W:W + 2, :] = jnp.ones((H + 2, 2, 3 * F), cdt)

    # ---- stage 1: ActNorm + InvConv2dLU folded into a single (HW, C) x (C, C) dot ----
    y1 = jnp.dot(x_ref[0], m1_ref[...],
                 preferred_element_type=jnp.float32) + ab1_ref[...]
    # lanes [:Ch] = in_a (final output), lanes [Ch:] = in_b (consumed/overwritten in stage 3)
    y_ref[0] = y1
    a_hwc = y1[:, :Ch].astype(cdt).reshape(H, W, Ch)
    for dx in range(3):   # fold the dx taps into the lane dim via 3 column-shifted stores
        pad1_ref[1:H + 1, 2 - dx:2 - dx + W, dx * Ch:(dx + 1) * Ch] = a_hwc

    # ---- stage 2: conv3x3(zero pad) -> relu -> conv1x1 -> relu, ROWS rows per dot ----
    def stage2(blk, carry):
        r0 = blk * ROWS
        acc = jnp.zeros((M, F), jnp.float32)
        for dy in range(3):          # 3 dots, K = 3*Ch (dx already folded into lanes)
            p = pad1_ref[pl.ds(r0 + dy, ROWS), 1:W + 1, :].reshape(M, 3 * Ch)
            acc = acc + jnp.dot(p, w1_ref[dy], preferred_element_type=jnp.float32)
        h1 = jnp.maximum(acc + cb1_ref[...], 0.0)
        h2 = jnp.maximum(
            jnp.dot(h1.astype(cdt), w2t_ref[...],
                    preferred_element_type=jnp.float32) + cb2_ref[...], 0.0)
        h2w = h2.astype(cdt).reshape(ROWS, W, F)
        for dx in range(3):
            pad2_ref[pl.ds(r0 + 1, ROWS), 2 - dx:2 - dx + W, dx * F:(dx + 1) * F] = h2w
        return carry

    lax.fori_loop(0, NBLK, stage2, 0)

    # ---- stage 3: ZeroConv2d (pad value 1, gain folded into weights) + affine ----
    def stage3(blk, ld_acc):
        r0 = blk * ROWS
        acc = jnp.zeros((M, C), jnp.float32)
        for dy in range(3):          # 3 dots, K = 3*F; log_s and t share a single dot
            p = pad2_ref[pl.ds(r0 + dy, ROWS), 1:W + 1, :].reshape(M, 3 * F)
            acc = acc + jnp.dot(p, w3_ref[dy], preferred_element_type=jnp.float32)
        net = acc + cb3_ref[...]
        z = net[:, :Ch] + 2.0
        log_s = jnp.minimum(z, 0.0) - jnp.log(1.0 + jnp.exp(-jnp.abs(z)))  # log(sigmoid(z))
        s = jnp.exp(log_s)
        t = net[:, Ch:]
        row0 = pl.multiple_of(r0 * W, 8)
        in_b = y_ref[0, pl.ds(row0, M), Ch:]
        y_ref[0, pl.ds(row0, M), Ch:] = (in_b + t) * s
        return ld_acc + jnp.sum(log_s, keepdims=True)

    ld_ref[0] = lax.fori_loop(0, NBLK, stage3, jnp.zeros((1, 1), jnp.float32))


def flow_forward(x_nchw, params):
    """Forward pass of Flow.  x_nchw: (B, C, H, W) float32 -> (y_nchw, log_det[B])."""
    B, C, H, W = x_nchw.shape
    F = params["w1"].shape[0]
    Ch = C // 2
    HW = H * W

    # Kernel works on a lane-packed (B, H*W, C) view (same HBM layout as NHWC).
    x = jnp.transpose(x_nchw, (0, 2, 3, 1)).astype(jnp.float32).reshape(B, HW, C)

    # InvConv2dLU weight reconstruction from its LU parameterization (parameter glue).
    l_mask = jnp.tril(jnp.ones((C, C), jnp.float32), -1)
    u_mask = l_mask.T
    eye = jnp.eye(C, dtype=jnp.float32)
    w_mat = params["w_p"] @ (params["w_l"] * l_mask + eye) @ (
        params["w_u"] * u_mask + jnp.diag(params["s_sign"] * jnp.exp(params["w_s"])))
    # Fold ActNorm (y = scale*(x+loc)) into the 1x1 conv: y1 = x @ m1 + ab1.
    m1 = params["scale"][:, None] * w_mat.T                          # (C, C)
    ab1 = (params["loc"] * params["scale"])[None, :] @ w_mat.T       # (1, C)

    # conv1 3x3 taps regrouped per-dy as (3, 3*Ch, F): each dy is ONE dot with K = 3*Ch.
    w1e = jnp.transpose(params["w1"], (2, 3, 1, 0)).reshape(3, 3 * Ch, F)
    w2t = params["w2"][:, :, 0, 0].T                                 # (F, F)
    # ZeroConv2d: fold the exp(3*scale) per-output-channel gain into weight+bias and keep
    # the log_s | t output halves together as a single (3, 3*F, C) weight.
    gain = jnp.exp(params["zscale"] * 3.0)                           # (C,)
    w3e = jnp.transpose(params["w3"], (2, 3, 1, 0)).reshape(3, 3 * F, C) * gain[None, None, :]
    cb3 = (params["b3"] * gain)[None, :]                             # (1, C)

    # Rows per block so each conv dot has M = ROWS*W ~ 256 (MXU height on v6e/v7x).
    rows = max(1, min(H, 256 // W))
    while H % rows:
        rows -= 1

    kernel = functools.partial(_flow_kernel, H=H, W=W, C=C, F=F, ROWS=rows)

    full2 = lambda b: (0, 0)
    full3 = lambda b: (0, 0, 0)
    in_specs = [
        pl.BlockSpec((1, HW, C), lambda b: (b, 0, 0)),   # x (one image, lane-packed)
        pl.BlockSpec((C, C), full2),                     # fused actnorm+invconv matrix
        pl.BlockSpec((1, C), full2),                     # fused actnorm+invconv bias
        pl.BlockSpec((3, 3 * Ch, F), full3),             # conv1 taps, grouped per dy
        pl.BlockSpec((1, F), full2),                     # conv1 bias
        pl.BlockSpec((F, F), full2),                     # conv2 (1x1) weight
        pl.BlockSpec((1, F), full2),                     # conv2 bias
        pl.BlockSpec((3, 3 * F, C), full3),              # zero-conv taps (s|t + gain folded)
        pl.BlockSpec((1, C), full2),                     # zero-conv bias (gain folded)
    ]
    out_specs = (
        pl.BlockSpec((1, HW, C), lambda b: (b, 0, 0)),   # combined output: in_a || out_b
        pl.BlockSpec((1, 1, 1), lambda b: (b, 0, 0)),    # per-batch coupling log-det
    )
    out_shape = (
        jax.ShapeDtypeStruct((B, HW, C), jnp.float32),
        jax.ShapeDtypeStruct((B, 1, 1), jnp.float32),
    )

    y_flat, ld_cpl = pl.pallas_call(
        kernel,
        grid=(B,),
        in_specs=in_specs,
        out_specs=out_specs,
        out_shape=out_shape,
        scratch_shapes=[
            # dx-expanded padded activations: (H+2, W+2, 3*Cin), bf16 matmul operands
            pltpu.VMEM((H + 2, W + 2, 3 * Ch), jnp.bfloat16),
            pltpu.VMEM((H + 2, W + 2, 3 * F), jnp.bfloat16),
        ],
        compiler_params=pltpu.CompilerParams(
            # batch images are independent -> shard across TensorCores on v7x
            dimension_semantics=("parallel",)),
    )(x, m1, ab1,
      w1e.astype(jnp.bfloat16), params["b1"][None, :],
      w2t.astype(jnp.bfloat16), params["b2"][None, :],
      w3e.astype(jnp.bfloat16), cb3)

    y = jnp.transpose(y_flat.reshape(B, H, W, C), (0, 3, 1, 2))      # back to NCHW
    # Data-independent log-det terms (ActNorm + InvConv2dLU) hoisted out of the kernel.
    ld_const = (H * W) * (jnp.sum(jnp.log(jnp.abs(params["scale"])))
                          + jnp.sum(params["w_s"]))
    log_det = ld_cpl[:, 0, 0] + ld_const
    return y, log_det


def flow_reference(x_nchw, params):
    """Pure-JAX reference mirroring the PyTorch Flow forward (NCHW)."""
    B, C, H, W = x_nchw.shape
    Ch = C // 2
    # ActNorm
    y = params["scale"].reshape(1, C, 1, 1) * (x_nchw + params["loc"].reshape(1, C, 1, 1))
    log_det = H * W * jnp.sum(jnp.log(jnp.abs(params["scale"])))
    # InvConv2dLU
    l_mask = jnp.tril(jnp.ones((C, C), jnp.float32), -1)
    u_mask = l_mask.T
    eye = jnp.eye(C, dtype=jnp.float32)
    w_mat = params["w_p"] @ (params["w_l"] * l_mask + eye) @ (
        params["w_u"] * u_mask + jnp.diag(params["s_sign"] * jnp.exp(params["w_s"])))
    y = jnp.einsum("oc,bchw->bohw", w_mat, y)
    log_det = log_det + H * W * jnp.sum(params["w_s"])
    # AffineCoupling
    in_a, in_b = y[:, :Ch], y[:, Ch:]
    dn = ("NCHW", "OIHW", "NCHW")
    h = lax.conv_general_dilated(in_a, params["w1"], (1, 1), ((1, 1), (1, 1)),
                                 dimension_numbers=dn) + params["b1"].reshape(1, -1, 1, 1)
    h = jnp.maximum(h, 0.0)
    h = lax.conv_general_dilated(h, params["w2"], (1, 1), "VALID",
                                 dimension_numbers=dn) + params["b2"].reshape(1, -1, 1, 1)
    h = jnp.maximum(h, 0.0)
    hp = jnp.pad(h, ((0, 0), (0, 0), (1, 1), (1, 1)), constant_values=1.0)
    net = lax.conv_general_dilated(hp, params["w3"], (1, 1), "VALID",
                                   dimension_numbers=dn) + params["b3"].reshape(1, -1, 1, 1)
    net = net * jnp.exp(params["zscale"].reshape(1, -1, 1, 1) * 3.0)
    log_s, t = net[:, :Ch], net[:, Ch:]
    s = jax.nn.sigmoid(log_s + 2.0)
    out_b = (in_b + t) * s
    det2 = jnp.sum(jnp.log(s).reshape(B, -1), axis=1)
    y_out = jnp.concatenate([in_a, out_b], axis=1)
    return y_out, log_det + det2


if __name__ == "__main__":
    key = jax.random.PRNGKey(0)
    B, C, H, W = 2, 4, 16, 16      # in_channels=4 (must be even for the coupling split)
    F = 32                          # filter_size (small stand-in for 512)
    Ch = C // 2
    ks = jax.random.split(key, 16)

    x = jax.random.normal(ks[0], (B, C, H, W), jnp.float32)

    perm = jax.random.permutation(ks[1], C)
    w_p = jnp.eye(C, dtype=jnp.float32)[perm]                       # permutation matrix

    params = dict(
        loc=0.1 * jax.random.normal(ks[2], (C,), jnp.float32),
        scale=1.0 + 0.1 * jax.random.normal(ks[3], (C,), jnp.float32),
        w_p=w_p,
        w_l=0.1 * jax.random.normal(ks[4], (C, C), jnp.float32),
        w_u=0.1 * jax.random.normal(ks[5], (C, C), jnp.float32),
        w_s=0.1 * jax.random.normal(ks[6], (C,), jnp.float32),
        s_sign=jnp.where(jax.random.bernoulli(ks[7], 0.5, (C,)), 1.0, -1.0).astype(jnp.float32),
        w1=0.1 * jax.random.normal(ks[8], (F, Ch, 3, 3), jnp.float32),
        b1=0.05 * jax.random.normal(ks[9], (F,), jnp.float32),
        w2=0.05 * jax.random.normal(ks[10], (F, F, 1, 1), jnp.float32),
        b2=0.05 * jax.random.normal(ks[11], (F,), jnp.float32),
        # NOTE: PyTorch ZeroConv2d zero-initializes these; small deterministic values
        # are used here so the kernel's zero-conv path is numerically exercised.
        w3=0.02 * jax.random.normal(ks[12], (C, F, 3, 3), jnp.float32),
        b3=0.02 * jax.random.normal(ks[13], (C,), jnp.float32),
        zscale=0.1 * jax.random.normal(ks[14], (C,), jnp.float32),
    )

    y, log_det = jax.jit(flow_forward)(x, params)
    jax.block_until_ready((y, log_det))

    y_ref, ld_ref = flow_reference(x, params)

    assert y.shape == (B, C, H, W) and log_det.shape == (B,)
    assert jnp.allclose(y, y_ref, rtol=1e-2, atol=1e-2), float(jnp.max(jnp.abs(y - y_ref)))
    assert jnp.allclose(log_det, ld_ref, rtol=1e-2, atol=1e-2), (log_det, ld_ref)

    print("KERNEL_OK")
</pallas_src>

<mosaic_0001>
module attributes {stable_mosaic.version = 11 : i64} {
  func.func @_flow_kernel(%arg0: i32, %arg1: memref<1x256x4xf32, #tpu.memory_space<vmem>>, %arg2: memref<4x4xf32, #tpu.memory_space<vmem>>, %arg3: memref<1x4xf32, #tpu.memory_space<vmem>>, %arg4: memref<3x6x32xbf16, #tpu.memory_space<vmem>>, %arg5: memref<1x32xf32, #tpu.memory_space<vmem>>, %arg6: memref<32x32xbf16, #tpu.memory_space<vmem>>, %arg7: memref<1x32xf32, #tpu.memory_space<vmem>>, %arg8: memref<3x96x4xbf16, #tpu.memory_space<vmem>>, %arg9: memref<1x4xf32, #tpu.memory_space<vmem>>, %arg10: memref<1x256x4xf32, #tpu.memory_space<vmem>>, %arg11: memref<1x1x1xf32, #tpu.memory_space<vmem>>, %arg12: memref<18x18x6xbf16, #tpu.memory_space<vmem>>, %arg13: memref<18x18x96xbf16, #tpu.memory_space<vmem>>) attributes {dimension_semantics = [#tpu.dimension_semantics<parallel>], iteration_bounds = array<i64: 2>, scalar_prefetch = 0 : i64, scratch_operands = 2 : i64, tpu.core_type = #tpu.core_type<tc>, window_params = [{transform_indices = @transform_0, window_bounds = array<i64: 1, 256, 4>}, {pipeline_mode = #tpu.pipeline_mode<synchronous>, transform_indices = @transform_1, window_bounds = array<i64: 4, 4>}, {pipeline_mode = #tpu.pipeline_mode<synchronous>, transform_indices = @transform_2, window_bounds = array<i64: 1, 4>}, {pipeline_mode = #tpu.pipeline_mode<synchronous>, transform_indices = @transform_3, window_bounds = array<i64: 3, 6, 32>}, {pipeline_mode = #tpu.pipeline_mode<synchronous>, transform_indices = @transform_4, window_bounds = array<i64: 1, 32>}, {pipeline_mode = #tpu.pipeline_mode<synchronous>, transform_indices = @transform_5, window_bounds = array<i64: 32, 32>}, {pipeline_mode = #tpu.pipeline_mode<synchronous>, transform_indices = @transform_6, window_bounds = array<i64: 1, 32>}, {pipeline_mode = #tpu.pipeline_mode<synchronous>, transform_indices = @transform_7, window_bounds = array<i64: 3, 96, 4>}, {pipeline_mode = #tpu.pipeline_mode<synchronous>, transform_indices = @transform_8, window_bounds = array<i64: 1, 4>}, {transform_indices = @transform_9, window_bounds = array<i64: 1, 256, 4>}, {transform_indices = @transform_10, window_bounds = array<i64: 1, 1, 1>}]} {
    %cst = arith.constant 0.000000e+00 : bf16
    %0 = vector.broadcast %cst : bf16 to vector<18x6xbf16>
    %c0 = arith.constant 0 : index
    %c0_0 = arith.constant 0 : index
    %c0_1 = arith.constant 0 : index
    %1 = vector.load %arg12[%c0, %c0_0, %c0_1] : memref<18x18x6xbf16, #tpu.memory_space<vmem>>, vector<1x18x6xbf16>
    %2 = vector.shape_cast %1 : vector<1x18x6xbf16> to vector<18x6xbf16>
    %3 = vector.shape_cast %0 : vector<18x6xbf16> to vector<1x18x6xbf16>
    tpu.vector_store %arg12[%c0, %c0_0, %c0_1], %3 {strides = array<i32>} : memref<18x18x6xbf16, #tpu.memory_space<vmem>>, vector<1x18x6xbf16>,
    %cst_2 = arith.constant 0.000000e+00 : bf16
    %4 = vector.broadcast %cst_2 : bf16 to vector<18x6xbf16>
    %c17 = arith.constant 17 : index
    %c0_3 = arith.constant 0 : index
    %c0_4 = arith.constant 0 : index
    %5 = vector.load %arg12[%c17, %c0_3, %c0_4] : memref<18x18x6xbf16, #tpu.memory_space<vmem>>, vector<1x18x6xbf16>
    %6 = vector.shape_cast %5 : vector<1x18x6xbf16> to vector<18x6xbf16>
    %7 = vector.shape_cast %4 : vector<18x6xbf16> to vector<1x18x6xbf16>
    tpu.vector_store %arg12[%c17, %c0_3, %c0_4], %7 {strides = array<i32>} : memref<18x18x6xbf16, #tpu.memory_space<vmem>>, vector<1x18x6xbf16>,
    %cst_5 = arith.constant 0.000000e+00 : bf16
    %8 = vector.broadcast %cst_5 : bf16 to vector<18x2x6xbf16>
    %c0_6 = arith.constant 0 : index
    %c0_7 = arith.constant 0 : index
    %c0_8 = arith.constant 0 : index
    %9 = vector.load %arg12[%c0_6, %c0_7, %c0_8] : memref<18x18x6xbf16, #tpu.memory_space<vmem>>, vector<18x2x6xbf16>
    tpu.vector_store %arg12[%c0_6, %c0_7, %c0_8], %8 {strides = array<i32>} : memref<18x18x6xbf16, #tpu.memory_space<vmem>>, vector<18x2x6xbf16>,
    %cst_9 = arith.constant 0.000000e+00 : bf16
    %10 = vector.broadcast %cst_9 : bf16 to vector<18x2x6xbf16>
    %c0_10 = arith.constant 0 : index
    %c16 = arith.constant 16 : index
    %c0_11 = arith.constant 0 : index
    %11 = vector.load %arg12[%c0_10, %c16, %c0_11] : memref<18x18x6xbf16, #tpu.memory_space<vmem>>, vector<18x2x6xbf16>
    tpu.vector_store %arg12[%c0_10, %c16, %c0_11], %10 {strides = array<i32>} : memref<18x18x6xbf16, #tpu.memory_space<vmem>>, vector<18x2x6xbf16>,
    %cst_12 = arith.constant 1.000000e+00 : bf16
    %12 = vector.broadcast %cst_12 : bf16 to vector<18x96xbf16>
    %c0_13 = arith.constant 0 : index
    %c0_14 = arith.constant 0 : index
    %c0_15 = arith.constant 0 : index
    %13 = vector.load %arg13[%c0_13, %c0_14, %c0_15] : memref<18x18x96xbf16, #tpu.memory_space<vmem>>, vector<1x18x96xbf16>
    %14 = vector.shape_cast %13 : vector<1x18x96xbf16> to vector<18x96xbf16>
    %15 = vector.shape_cast %12 : vector<18x96xbf16> to vector<1x18x96xbf16>
    tpu.vector_store %arg13[%c0_13, %c0_14, %c0_15], %15 {strides = array<i32>} : memref<18x18x96xbf16, #tpu.memory_space<vmem>>, vector<1x18x96xbf16>,
    %cst_16 = arith.constant 1.000000e+00 : bf16
    %16 = vector.broadcast %cst_16 : bf16 to vector<18x96xbf16>
    %c17_17 = arith.constant 17 : index
    %c0_18 = arith.constant 0 : index
    %c0_19 = arith.constant 0 : index
    %17 = vector.load %arg13[%c17_17, %c0_18, %c0_19] : memref<18x18x96xbf16, #tpu.memory_space<vmem>>, vector<1x18x96xbf16>
    %18 = vector.shape_cast %17 : vector<1x18x96xbf16> to vector<18x96xbf16>
    %19 = vector.shape_cast %16 : vector<18x96xbf16> to vector<1x18x96xbf16>
    tpu.vector_store %arg13[%c17_17, %c0_18, %c0_19], %19 {strides = array<i32>} : memref<18x18x96xbf16, #tpu.memory_space<vmem>>, vector<1x18x96xbf16>,
    %cst_20 = arith.constant 1.000000e+00 : bf16
    %20 = vector.broadcast %cst_20 : bf16 to vector<18x2x96xbf16>
    %c0_21 = arith.constant 0 : index
    %c0_22 = arith.constant 0 : index
    %c0_23 = arith.constant 0 : index
    %21 = vector.load %arg13[%c0_21, %c0_22, %c0_23] : memref<18x18x96xbf16, #tpu.memory_space<vmem>>, vector<18x2x96xbf16>
    tpu.vector_store %arg13[%c0_21, %c0_22, %c0_23], %20 {strides = array<i32>} : memref<18x18x96xbf16, #tpu.memory_space<vmem>>, vector<18x2x96xbf16>,
    %cst_24 = arith.constant 1.000000e+00 : bf16
    %22 = vector.broadcast %cst_24 : bf16 to vector<18x2x96xbf16>
    %c0_25 = arith.constant 0 : index
    %c16_26 = arith.constant 16 : index
    %c0_27 = arith.constant 0 : index
    %23 = vector.load %arg13[%c0_25, %c16_26, %c0_27] : memref<18x18x96xbf16, #tpu.memory_space<vmem>>, vector<18x2x96xbf16>
    tpu.vector_store %arg13[%c0_25, %c16_26, %c0_27], %22 {strides = array<i32>} : memref<18x18x96xbf16, #tpu.memory_space<vmem>>, vector<18x2x96xbf16>,
    %c0_28 = arith.constant 0 : index
    %c0_29 = arith.constant 0 : index
    %c0_30 = arith.constant 0 : index
    %24 = vector.load %arg1[%c0_28, %c0_29, %c0_30] : memref<1x256x4xf32, #tpu.memory_space<vmem>>, vector<1x256x4xf32>
    %25 = vector.shape_cast %24 : vector<1x256x4xf32> to vector<256x4xf32>
    %c0_31 = arith.constant 0 : index
    %c0_32 = arith.constant 0 : index
    %26 = vector.load %arg2[%c0_31, %c0_32] : memref<4x4xf32, #tpu.memory_space<vmem>>, vector<4x4xf32>
    %cst_33 = arith.constant dense<0.000000e+00> : vector<256x4xf32>
    %27 = tpu.matmul %25, %26, %cst_33 {dimension_numbers = #tpu.dot_dimension_numbers<[1], [0], [0], [1], [0, 0, 1, 1], [], []>} : vector<256x4xf32>, vector<4x4xf32>, vector<256x4xf32> -> vector<256x4xf32>
    %c0_34 = arith.constant 0 : index
    %c0_35 = arith.constant 0 : index
    %28 = vector.load %arg3[%c0_34, %c0_35] : memref<1x4xf32, #tpu.memory_space<vmem>>, vector<1x4xf32>
    %29 = vector.broadcast %28 : vector<1x4xf32> to vector<256x4xf32>
    %30 = arith.addf %27, %29 : vector<256x4xf32>
    %c0_36 = arith.constant 0 : index
    %c0_37 = arith.constant 0 : index
    %c0_38 = arith.constant 0 : index
    %31 = vector.load %arg10[%c0_36, %c0_37, %c0_38] : memref<1x256x4xf32, #tpu.memory_space<vmem>>, vector<1x256x4xf32>
    %32 = vector.shape_cast %31 : vector<1x256x4xf32> to vector<256x4xf32>
    %33 = vector.shape_cast %30 : vector<256x4xf32> to vector<1x256x4xf32>
    tpu.vector_store %arg10[%c0_36, %c0_37, %c0_38], %33 {strides = array<i32>} : memref<1x256x4xf32, #tpu.memory_space<vmem>>, vector<1x256x4xf32>,
    %34 = vector.extract_strided_slice %30 {offsets = [0, 0], sizes = [256, 2], strides = [1, 1]} : vector<256x4xf32> to vector<256x2xf32>
    %35 = arith.truncf %34 : vector<256x2xf32> to vector<256x2xbf16>
    %36 = vector.shape_cast %35 : vector<256x2xbf16> to vector<16x16x2xbf16>
    %c1 = arith.constant 1 : index
    %c2 = arith.constant 2 : index
    %c0_39 = arith.constant 0 : index
    %37 = vector.load %arg12[%c1, %c2, %c0_39] : memref<18x18x6xbf16, #tpu.memory_space<vmem>>, vector<16x16x2xbf16>
    tpu.vector_store %arg12[%c1, %c2, %c0_39], %36 {strides = array<i32>} : memref<18x18x6xbf16, #tpu.memory_space<vmem>>, vector<16x16x2xbf16>,
    %c1_40 = arith.constant 1 : index
    %c1_41 = arith.constant 1 : index
    %c2_42 = arith.constant 2 : index
    %38 = vector.load %arg12[%c1_40, %c1_41, %c2_42] : memref<18x18x6xbf16, #tpu.memory_space<vmem>>, vector<16x16x2xbf16>
    tpu.vector_store %arg12[%c1_40, %c1_41, %c2_42], %36 {strides = array<i32>} : memref<18x18x6xbf16, #tpu.memory_space<vmem>>, vector<16x16x2xbf16>,
    %c1_43 = arith.constant 1 : index
    %c0_44 = arith.constant 0 : index
    %c4 = arith.constant 4 : index
    %39 = vector.load %arg12[%c1_43, %c0_44, %c4] : memref<18x18x6xbf16, #tpu.memory_space<vmem>>, vector<16x16x2xbf16>
    tpu.vector_store %arg12[%c1_43, %c0_44, %c4], %36 {strides = array<i32>} : memref<18x18x6xbf16, #tpu.memory_space<vmem>>, vector<16x16x2xbf16>,
    %c0_i32 = arith.constant 0 : i32
    %c16_i32 = arith.constant 16 : i32
    %40 = arith.muli %c0_i32, %c16_i32 : i32
    %cst_45 = arith.constant 0.000000e+00 : f32
    %41 = vector.broadcast %cst_45 : f32 to vector<256x32xf32>
    %c0_i32_46 = arith.constant 0 : i32
    %42 = arith.addi %40, %c0_i32_46 : i32
    %43 = arith.index_cast %42 : i32 to index
    %c1_47 = arith.constant 1 : index
    %c0_48 = arith.constant 0 : index
    %44 = vector.load %arg12[%43, %c1_47, %c0_48] : memref<18x18x6xbf16, #tpu.memory_space<vmem>>, vector<16x16x6xbf16>
    %45 = vector.shape_cast %44 : vector<16x16x6xbf16> to vector<256x6xbf16>
    %c0_49 = arith.constant 0 : index
    %c0_50 = arith.constant 0 : index
    %c0_51 = arith.constant 0 : index
    %46 = vector.load %arg4[%c0_49, %c0_50, %c0_51] : memref<3x6x32xbf16, #tpu.memory_space<vmem>>, vector<1x6x32xbf16>
    %47 = vector.shape_cast %46 : vector<1x6x32xbf16> to vector<6x32xbf16>
    %cst_52 = arith.constant dense<0.000000e+00> : vector<256x32xf32>
    %48 = tpu.matmul %45, %47, %cst_52 {dimension_numbers = #tpu.dot_dimension_numbers<[1], [0], [0], [1], [0, 0, 1, 1], [], []>} : vector<256x6xbf16>, vector<6x32xbf16>, vector<256x32xf32> -> vector<256x32xf32>
    %49 = arith.addf %41, %48 : vector<256x32xf32>
    %c1_i32 = arith.constant 1 : i32
    %50 = arith.addi %40, %c1_i32 : i32
    %51 = arith.index_cast %50 : i32 to index
    %c1_53 = arith.constant 1 : index
    %c0_54 = arith.constant 0 : index
    %52 = vector.load %arg12[%51, %c1_53, %c0_54] : memref<18x18x6xbf16, #tpu.memory_space<vmem>>, vector<16x16x6xbf16>
    %53 = vector.shape_cast %52 : vector<16x16x6xbf16> to vector<256x6xbf16>
    %c1_55 = arith.constant 1 : index
    %c0_56 = arith.constant 0 : index
    %c0_57 = arith.constant 0 : index
    %54 = vector.load %arg4[%c1_55, %c0_56, %c0_57] : memref<3x6x32xbf16, #tpu.memory_space<vmem>>, vector<1x6x32xbf16>
    %55 = vector.shape_cast %54 : vector<1x6x32xbf16> to vector<6x32xbf16>
    %cst_58 = arith.constant dense<0.000000e+00> : vector<256x32xf32>
    %56 = tpu.matmul %53, %55, %cst_58 {dimension_numbers = #tpu.dot_dimension_numbers<[1], [0], [0], [1], [0, 0, 1, 1], [], []>} : vector<256x6xbf16>, vector<6x32xbf16>, vector<256x32xf32> -> vector<256x32xf32>
    %57 = arith.addf %49, %56 : vector<256x32xf32>
    %c2_i32 = arith.constant 2 : i32
    %58 = arith.addi %40, %c2_i32 : i32
    %59 = arith.index_cast %58 : i32 to index
    %c1_59 = arith.constant 1 : index
    %c0_60 = arith.constant 0 : index
    %60 = vector.load %arg12[%59, %c1_59, %c0_60] : memref<18x18x6xbf16, #tpu.memory_space<vmem>>, vector<16x16x6xbf16>
    %61 = vector.shape_cast %60 : vector<16x16x6xbf16> to vector<256x6xbf16>
    %c2_61 = arith.constant 2 : index
    %c0_62 = arith.constant 0 : index
    %c0_63 = arith.constant 0 : index
    %62 = vector.load %arg4[%c2_61, %c0_62, %c0_63] : memref<3x6x32xbf16, #tpu.memory_space<vmem>>, vector<1x6x32xbf16>
    %63 = vector.shape_cast %62 : vector<1x6x32xbf16> to vector<6x32xbf16>
    %cst_64 = arith.constant dense<0.000000e+00> : vector<256x32xf32>
    %64 = tpu.matmul %61, %63, %cst_64 {dimension_numbers = #tpu.dot_dimension_numbers<[1], [0], [0], [1], [0, 0, 1, 1], [], []>} : vector<256x6xbf16>, vector<6x32xbf16>, vector<256x32xf32> -> vector<256x32xf32>
    %65 = arith.addf %57, %64 : vector<256x32xf32>
    %c0_65 = arith.constant 0 : index
    %c0_66 = arith.constant 0 : index
    %66 = vector.load %arg5[%c0_65, %c0_66] : memref<1x32xf32, #tpu.memory_space<vmem>>, vector<1x32xf32>
    %67 = vector.broadcast %66 : vector<1x32xf32> to vector<256x32xf32>
    %68 = arith.addf %65, %67 : vector<256x32xf32>
    %cst_67 = arith.constant 0.000000e+00 : f32
    %69 = vector.broadcast %cst_67 : f32 to vector<256x32xf32>
    %70 = arith.maximumf %68, %69 : vector<256x32xf32>
    %71 = arith.truncf %70 : vector<256x32xf32> to vector<256x32xbf16>
    %c0_68 = arith.constant 0 : index
    %c0_69 = arith.constant 0 : index
    %72 = vector.load %arg6[%c0_68, %c0_69] : memref<32x32xbf16, #tpu.memory_space<vmem>>, vector<32x32xbf16>
    %cst_70 = arith.constant dense<0.000000e+00> : vector<256x32xf32>
    %73 = tpu.matmul %71, %72, %cst_70 {dimension_numbers = #tpu.dot_dimension_numbers<[1], [0], [0], [1], [0, 0, 1, 1], [], []>} : vector<256x32xbf16>, vector<32x32xbf16>, vector<256x32xf32> -> vector<256x32xf32>
    %c0_71 = arith.constant 0 : index
    %c0_72 = arith.constant 0 : index
    %74 = vector.load %arg7[%c0_71, %c0_72] : memref<1x32xf32, #tpu.memory_space<vmem>>, vector<1x32xf32>
    %75 = vector.broadcast %74 : vector<1x32xf32> to vector<256x32xf32>
    %76 = arith.addf %73, %75 : vector<256x32xf32>
    %cst_73 = arith.constant 0.000000e+00 : f32
    %77 = vector.broadcast %cst_73 : f32 to vector<256x32xf32>
    %78 = arith.maximumf %76, %77 : vector<256x32xf32>
    %79 = arith.truncf %78 : vector<256x32xf32> to vector<256x32xbf16>
    %80 = vector.shape_cast %79 : vector<256x32xbf16> to vector<16x16x32xbf16>
    %c1_i32_74 = arith.constant 1 : i32
    %81 = arith.addi %40, %c1_i32_74 : i32
    %82 = arith.index_cast %81 : i32 to index
    %c2_75 = arith.constant 2 : index
    %c0_76 = arith.constant 0 : index
    %83 = vector.load %arg13[%82, %c2_75, %c0_76] : memref<18x18x96xbf16, #tpu.memory_space<vmem>>, vector<16x16x32xbf16>
    tpu.vector_store %arg13[%82, %c2_75, %c0_76], %80 {strides = array<i32>} : memref<18x18x96xbf16, #tpu.memory_space<vmem>>, vector<16x16x32xbf16>,
    %c1_i32_77 = arith.constant 1 : i32
    %84 = arith.addi %40, %c1_i32_77 : i32
    %85 = arith.index_cast %84 : i32 to index
    %c1_78 = arith.constant 1 : index
    %c32 = arith.constant 32 : index
    %86 = vector.load %arg13[%85, %c1_78, %c32] : memref<18x18x96xbf16, #tpu.memory_space<vmem>>, vector<16x16x32xbf16>
    tpu.vector_store %arg13[%85, %c1_78, %c32], %80 {strides = array<i32>} : memref<18x18x96xbf16, #tpu.memory_space<vmem>>, vector<16x16x32xbf16>,
    %c1_i32_79 = arith.constant 1 : i32
    %87 = arith.addi %40, %c1_i32_79 : i32
    %88 = arith.index_cast %87 : i32 to index
    %c0_80 = arith.constant 0 : index
    %c64 = arith.constant 64 : index
    %89 = vector.load %arg13[%88, %c0_80, %c64] : memref<18x18x96xbf16, #tpu.memory_space<vmem>>, vector<16x16x32xbf16>
    tpu.vector_store %arg13[%88, %c0_80, %c64], %80 {strides = array<i32>} : memref<18x18x96xbf16, #tpu.memory_space<vmem>>, vector<16x16x32xbf16>,
    %c1_i32_81 = arith.constant 1 : i32
    %cst_82 = arith.constant 0.000000e+00 : f32
    %90 = vector.broadcast %cst_82 : f32 to vector<1x1xf32>
    %c0_i32_83 = arith.constant 0 : i32
    %c16_i32_84 = arith.constant 16 : i32
    %91 = arith.muli %c0_i32_83, %c16_i32_84 : i32
    %cst_85 = arith.constant 0.000000e+00 : f32
    %92 = vector.broadcast %cst_85 : f32 to vector<256x4xf32>
    %c0_i32_86 = arith.constant 0 : i32
    %93 = arith.addi %91, %c0_i32_86 : i32
    %94 = arith.index_cast %93 : i32 to index
    %c1_87 = arith.constant 1 : index
    %c0_88 = arith.constant 0 : index
    %95 = vector.load %arg13[%94, %c1_87, %c0_88] : memref<18x18x96xbf16, #tpu.memory_space<vmem>>, vector<16x16x96xbf16>
    %96 = vector.shape_cast %95 : vector<16x16x96xbf16> to vector<256x96xbf16>
    %c0_89 = arith.constant 0 : index
    %c0_90 = arith.constant 0 : index
    %c0_91 = arith.constant 0 : index
    %97 = vector.load %arg8[%c0_89, %c0_90, %c0_91] : memref<3x96x4xbf16, #tpu.memory_space<vmem>>, vector<1x96x4xbf16>
    %98 = vector.shape_cast %97 : vector<1x96x4xbf16> to vector<96x4xbf16>
    %cst_92 = arith.constant dense<0.000000e+00> : vector<256x4xf32>
    %99 = tpu.matmul %96, %98, %cst_92 {dimension_numbers = #tpu.dot_dimension_numbers<[1], [0], [0], [1], [0, 0, 1, 1], [], []>} : vector<256x96xbf16>, vector<96x4xbf16>, vector<256x4xf32> -> vector<256x4xf32>
    %100 = arith.addf %92, %99 : vector<256x4xf32>
    %c1_i32_93 = arith.constant 1 : i32
    %101 = arith.addi %91, %c1_i32_93 : i32
    %102 = arith.index_cast %101 : i32 to index
    %c1_94 = arith.constant 1 : index
    %c0_95 = arith.constant 0 : index
    %103 = vector.load %arg13[%102, %c1_94, %c0_95] : memref<18x18x96xbf16, #tpu.memory_space<vmem>>, vector<16x16x96xbf16>
    %104 = vector.shape_cast %103 : vector<16x16x96xbf16> to vector<256x96xbf16>
    %c1_96 = arith.constant 1 : index
    %c0_97 = arith.constant 0 : index
    %c0_98 = arith.constant 0 : index
    %105 = vector.load %arg8[%c1_96, %c0_97, %c0_98] : memref<3x96x4xbf16, #tpu.memory_space<vmem>>, vector<1x96x4xbf16>
    %106 = vector.shape_cast %105 : vector<1x96x4xbf16> to vector<96x4xbf16>
    %cst_99 = arith.constant dense<0.000000e+00> : vector<256x4xf32>
    %107 = tpu.matmul %104, %106, %cst_99 {dimension_numbers = #tpu.dot_dimension_numbers<[1], [0], [0], [1], [0, 0, 1, 1], [], []>} : vector<256x96xbf16>, vector<96x4xbf16>, vector<256x4xf32> -> vector<256x4xf32>
    %108 = arith.addf %100, %107 : vector<256x4xf32>
    %c2_i32_100 = arith.constant 2 : i32
    %109 = arith.addi %91, %c2_i32_100 : i32
    %110 = arith.index_cast %109 : i32 to index
    %c1_101 = arith.constant 1 : index
    %c0_102 = arith.constant 0 : index
    %111 = vector.load %arg13[%110, %c1_101, %c0_102] : memref<18x18x96xbf16, #tpu.memory_space<vmem>>, vector<16x16x96xbf16>
    %112 = vector.shape_cast %111 : vector<16x16x96xbf16> to vector<256x96xbf16>
    %c2_103 = arith.constant 2 : index
    %c0_104 = arith.constant 0 : index
    %c0_105 = arith.constant 0 : index
    %113 = vector.load %arg8[%c2_103, %c0_104, %c0_105] : memref<3x96x4xbf16, #tpu.memory_space<vmem>>, vector<1x96x4xbf16>
    %114 = vector.shape_cast %113 : vector<1x96x4xbf16> to vector<96x4xbf16>
    %cst_106 = arith.constant dense<0.000000e+00> : vector<256x4xf32>
    %115 = tpu.matmul %112, %114, %cst_106 {dimension_numbers = #tpu.dot_dimension_numbers<[1], [0], [0], [1], [0, 0, 1, 1], [], []>} : vector<256x96xbf16>, vector<96x4xbf16>, vector<256x4xf32> -> vector<256x4xf32>
    %116 = arith.addf %108, %115 : vector<256x4xf32>
    %c0_107 = arith.constant 0 : index
    %c0_108 = arith.constant 0 : index
    %117 = vector.load %arg9[%c0_107, %c0_108] : memref<1x4xf32, #tpu.memory_space<vmem>>, vector<1x4xf32>
    %118 = vector.broadcast %117 : vector<1x4xf32> to vector<256x4xf32>
    %119 = arith.addf %116, %118 : vector<256x4xf32>
    %120 = vector.extract_strided_slice %119 {offsets = [0, 0], sizes = [256, 2], strides = [1, 1]} : vector<256x4xf32> to vector<256x2xf32>
    %cst_109 = arith.constant 2.000000e+00 : f32
    %121 = vector.broadcast %cst_109 : f32 to vector<256x2xf32>
    %122 = arith.addf %120, %121 : vector<256x2xf32>
    %cst_110 = arith.constant 0.000000e+00 : f32
    %123 = vector.broadcast %cst_110 : f32 to vector<256x2xf32>
    %124 = arith.minimumf %122, %123 : vector<256x2xf32>
    %125 = math.absf %122 : vector<256x2xf32>
    %cst_111 = arith.constant 0.000000e+00 : f32
    %126 = vector.broadcast %cst_111 : f32 to vector<256x2xf32>
    %127 = arith.subf %126, %125 : vector<256x2xf32>
    %128 = math.exp %127 : vector<256x2xf32>
    %cst_112 = arith.constant 1.000000e+00 : f32
    %129 = vector.broadcast %cst_112 : f32 to vector<256x2xf32>
    %130 = arith.addf %129, %128 : vector<256x2xf32>
    %131 = math.log %130 : vector<256x2xf32>
    %132 = arith.subf %124, %131 : vector<256x2xf32>
    %133 = math.exp %132 : vector<256x2xf32>
    %134 = vector.extract_strided_slice %119 {offsets = [0, 2], sizes = [256, 2], strides = [1, 1]} : vector<256x4xf32> to vector<256x2xf32>
    %c16_i32_113 = arith.constant 16 : i32
    %135 = arith.muli %91, %c16_i32_113 : i32
    %136 = tpu.assume_multiple %135, 8 : i32
    %c0_114 = arith.constant 0 : index
    %137 = arith.index_cast %136 : i32 to index
    %c2_115 = arith.constant 2 : index
    %138 = vector.load %arg10[%c0_114, %137, %c2_115] : memref<1x256x4xf32, #tpu.memory_space<vmem>>, vector<1x256x2xf32>
    %139 = vector.shape_cast %138 : vector<1x256x2xf32> to vector<256x2xf32>
    %140 = arith.addf %139, %134 : vector<256x2xf32>
    %141 = arith.mulf %140, %133 : vector<256x2xf32>
    %c0_116 = arith.constant 0 : index
    %142 = arith.index_cast %136 : i32 to index
    %c2_117 = arith.constant 2 : index
    %143 = vector.load %arg10[%c0_116, %142, %c2_117] : memref<1x256x4xf32, #tpu.memory_space<vmem>>, vector<1x256x2xf32>
    %144 = vector.shape_cast %143 : vector<1x256x2xf32> to vector<256x2xf32>
    %145 = vector.shape_cast %141 : vector<256x2xf32> to vector<1x256x2xf32>
    tpu.vector_store %arg10[%c0_116, %142, %c2_117], %145 {strides = array<i32>} : memref<1x256x4xf32, #tpu.memory_space<vmem>>, vector<1x256x2xf32>,
    %146 = vector.shape_cast %132 : vector<256x2xf32> to vector<1x256x2xf32>
    %cst_118 = arith.constant dense<0.000000e+00> : vector<1xf32>
    %147 = vector.multi_reduction <add>, %146, %cst_118 [1, 2] : vector<1x256x2xf32> to vector<1xf32>
    %148 = vector.shape_cast %147 : vector<1xf32> to vector<1x1x1xf32>
    %149 = vector.extract %148[0, 0, 0] : f32 from vector<1x1x1xf32>
    %150 = vector.broadcast %149 : f32 to vector<1x1xf32>
    %151 = arith.addf %90, %150 : vector<1x1xf32>
    %c1_i32_119 = arith.constant 1 : i32
    %c0_120 = arith.constant 0 : index
    %c0_121 = arith.constant 0 : index
    %c0_122 = arith.constant 0 : index
    %152 = vector.load %arg11[%c0_120, %c0_121, %c0_122] : memref<1x1x1xf32, #tpu.memory_space<vmem>>, vector<1x1x1xf32>
    %153 = vector.shape_cast %152 : vector<1x1x1xf32> to vector<1x1xf32>
    %154 = vector.shape_cast %151 : vector<1x1xf32> to vector<1x1x1xf32>
    tpu.vector_store %arg11[%c0_120, %c0_121, %c0_122], %154 {strides = array<i32>} : memref<1x1x1xf32, #tpu.memory_space<vmem>>, vector<1x1x1xf32>,
    return
  }
  func.func @transform_0(%arg0: i32) -> (i32, i32, i32) {
    %c0_i32 = arith.constant 0 : i32
    %c0_i32_0 = arith.constant 0 : i32
    %c0_i32_1 = arith.constant 0 : i32
    return %arg0, %c0_i32, %c0_i32_0 : i32, i32, i32
  }
  func.func @transform_1(%arg0: i32) -> (i32, i32) {
    %c0_i32 = arith.constant 0 : i32
    %c0_i32_0 = arith.constant 0 : i32
    %c0_i32_1 = arith.constant 0 : i32
    return %c0_i32, %c0_i32_0 : i32, i32
  }
  func.func @transform_2(%arg0: i32) -> (i32, i32) {
    %c0_i32 = arith.constant 0 : i32
    %c0_i32_0 = arith.constant 0 : i32
    %c0_i32_1 = arith.constant 0 : i32
    return %c0_i32, %c0_i32_0 : i32, i32
  }
  func.func @transform_3(%arg0: i32) -> (i32, i32, i32) {
    %c0_i32 = arith.constant 0 : i32
    %c0_i32_0 = arith.constant 0 : i32
    %c0_i32_1 = arith.constant 0 : i32
    %c0_i32_2 = arith.constant 0 : i32
    return %c0_i32, %c0_i32_0, %c0_i32_1 : i32, i32, i32
  }
  func.func @transform_4(%arg0: i32) -> (i32, i32) {
    %c0_i32 = arith.constant 0 : i32
    %c0_i32_0 = arith.constant 0 : i32
    %c0_i32_1 = arith.constant 0 : i32
    return %c0_i32, %c0_i32_0 : i32, i32
  }
  func.func @transform_5(%arg0: i32) -> (i32, i32) {
    %c0_i32 = arith.constant 0 : i32
    %c0_i32_0 = arith.constant 0 : i32
    %c0_i32_1 = arith.constant 0 : i32
    return %c0_i32, %c0_i32_0 : i32, i32
  }
  func.func @transform_6(%arg0: i32) -> (i32, i32) {
    %c0_i32 = arith.constant 0 : i32
    %c0_i32_0 = arith.constant 0 : i32
    %c0_i32_1 = arith.constant 0 : i32
    return %c0_i32, %c0_i32_0 : i32, i32
  }
  func.func @transform_7(%arg0: i32) -> (i32, i32, i32) {
    %c0_i32 = arith.constant 0 : i32
    %c0_i32_0 = arith.constant 0 : i32
    %c0_i32_1 = arith.constant 0 : i32
    %c0_i32_2 = arith.constant 0 : i32
    return %c0_i32, %c0_i32_0, %c0_i32_1 : i32, i32, i32
  }
  func.func @transform_8(%arg0: i32) -> (i32, i32) {
    %c0_i32 = arith.constant 0 : i32
    %c0_i32_0 = arith.constant 0 : i32
    %c0_i32_1 = arith.constant 0 : i32
    return %c0_i32, %c0_i32_0 : i32, i32
  }
  func.func @transform_9(%arg0: i32) -> (i32, i32, i32) {
    %c0_i32 = arith.constant 0 : i32
    %c0_i32_0 = arith.constant 0 : i32
    %c0_i32_1 = arith.constant 0 : i32
    return %arg0, %c0_i32, %c0_i32_0 : i32, i32, i32
  }
  func.func @transform_10(%arg0: i32) -> (i32, i32, i32) {
    %c0_i32 = arith.constant 0 : i32
    %c0_i32_0 = arith.constant 0 : i32
    %c0_i32_1 = arith.constant 0 : i32
    return %arg0, %c0_i32, %c0_i32_0 : i32, i32, i32
  }
}

</mosaic_0001>

<bundles_post_ra>
// kernel: flow_forward.1
= control target key start
LH: loop header
LB: loop body
LE: loop exit
PB: predicated region body
PF: predicated region fallthrough
CT: control target
= control target key end

     0   :  { %s8176_s13 = smov 0   ;;  %s11187_s0 = inlined_call_operand.vmem [shape: f32[2,256,4], index: 0, kind: input, shape index: {}]   ;;  %s11188_s1 = inlined_call_operand.vmem [shape: f32[4,4], index: 1, kind: input, shape index: {}]   ;;  %s11189_s2 = inlined_call_operand.vmem [shape: f32[1,4], index: 2, kind: input, shape index: {}]   ;;  %s11190_s3 = inlined_call_operand.vmem [shape: bf16[3,6,32], index: 3, kind: input, shape index: {}]   ;;  %s11191_s4 = inlined_call_operand.vmem [shape: f32[1,32], index: 4, kind: input, shape index: {}]   ;;  %s11192_s5 = inlined_call_operand.vmem [shape: bf16[32,32], index: 5, kind: input, shape index: {}]   ;;  %s11193_s6 = inlined_call_operand.vmem [shape: f32[1,32], index: 6, kind: input, shape index: {}]   ;;  %s11194_s7 = inlined_call_operand.vmem [shape: bf16[3,96,4], index: 7, kind: input, shape index: {}]   ;;  %s11195_s8 = inlined_call_operand.vmem [shape: f32[1,4], index: 8, kind: input, shape index: {}]   ;;  %s11196_s9 = inlined_call_operand.vmem [shape: f32[2,256,4], index: 9, kind: output, shape index: {0}]   ;;  %s11197_s10 = inlined_call_operand.vmem [shape: f32[2,1,1], index: 10, kind: output, shape index: {1}]  }
   0x1 LB: > { %s7605_s14 = sadd.s32 4294967295, %s8113_s13   ;;  %p7609_p0 = scmp.ge.s32.totalorder %s8113_s13, 1  ;;  %s8113_s13 = sphi %s8176_s13, %s21_s13  }
   0x2   : > { %p315_p1 = scmp.lt.s32.totalorder %s8113_s13, 3 }
   0x4   : > { %p316_p2 = pnand %p7609_p0, %p315_p1 }
   0x5   : > { %p356_p3 = scmp.lt.s32.totalorder (!%p316_p2), %s7605_s14, 1  ;;  %s8116_s26 = smov (!%p316_p2), 4  }
   0x6   : > { %319 = sbr.rel (%p316_p2) target bundleno = 1447 (0x5a7), region = 56  ;;  %s8117_s27 = smov (!%p316_p2), 2  }
   0x7   : > { %s8118_s12 = smov (!%p316_p2), 32   ;;  %s8119_s15 = smov (!%p316_p2), 64  }
   0xb   : > { %v493_v0 = vld [vmem:[%s11188_s1] sm:$0xf]  ;;  %vm595_vm0 = vcmask 1043456   ;;  %s11213_s14 = smov (!%p356_p3, %s7605_s14), 1  ;;  %vm498_vm1 = vcmask 31744   ;;  %vm374_vm2 = vcmask 40960  }
   0xc   : > { %7614 = vmatpush.msk.msra.mxu0 %vm595_vm0, %v493_v0  ;;  %s7867_s17 = sshll.u32 %s11213_s14, 8  ;;  %v8115_v15 = vmov 0   ;;  %v8274_v18 = vld [vmem:[%s11189_s2] ss:$0 sm:$0xff]  ;;  %vm940_vm3 = vcmask 11265   ;;  %vm808_vm4 = vcmask 1040384   ;;  %s368_s11 = scalar_lea.vmem %s11197_s10, %s11213_s14 }
   0xd   : > { %s8195_s20 = scalar_lea.vmem %s11187_s0, %s7867_s17  ;;  %381 = vst.msk [vmem:[#allocation2 + $0xc] sm:$0x1] %vm374_vm2, %v8115_v15  ;;  %s8287_s25 = scalar_lea.vmem %s11196_s9, %s7867_s17  ;;  %vm809_vm5 = vcmask 1044484   ;;  %vm942_vm7 = vcmask 11264   ;;  %vm944_vm8 = vcmask 8192   ;;  %vm1410_vm12 = vcmask 27664  }
   0xe   : > { %v461_v1 = vld [vmem:[%s8195_s20] sm:$0xff]  ;;  %v462_v2 = vld [vmem:[%s8195_s20 + $0x8] sm:$0xff]  ;;  %v463_v3 = vld [vmem:[%s8195_s20 + $0x10] sm:$0xff]  ;;  %375 = vst.msk [vmem:[#allocation2 + $0x8] sm:$0x1] %vm374_vm2, %v8115_v15  ;;  %vm371_vm15 = vcmask 44032  }
   0xf   : > { %7615 = vmatmul.msk.f32.vlgmr.msra.gmra.mxu0 %vm498_vm1, %v461_v1  ;;  %v464_v4 = vld [vmem:[%s8195_s20 + $0x18] sm:$0xff]  ;;  %v465_v5 = vld [vmem:[%s8195_s20 + $0x20] sm:$0xff]  ;;  %v466_v6 = vld [vmem:[%s8195_s20 + $0x28] sm:$0xff]  ;;  %379 = vst.msk [vmem:[#allocation2 + $0xd4] sm:$0x1] %vm374_vm2, %v8115_v15  ;;  %vm1624_vm0 = vcmask 44064  }
  0x10   : > { %v467_v7 = vld [vmem:[%s8195_s20 + $0x30] sm:$0xff]  ;;  %v468_v8 = vld [vmem:[%s8195_s20 + $0x38] sm:$0xff]  ;;  %v469_v9 = vld [vmem:[%s8195_s20 + $0x40] sm:$0xff]  ;;  %382 = vst.msk [vmem:[#allocation2 + $0x18] sm:$0x1] %vm374_vm2, %v8115_v15 }
  0x11   : > { %v470_v10 = vld [vmem:[%s8195_s20 + $0x48] sm:$0xff]  ;;  %v471_v11 = vld [vmem:[%s8195_s20 + $0x50] sm:$0xff]  ;;  %v472_v12 = vld [vmem:[%s8195_s20 + $0x58] sm:$0xff]  ;;  %383 = vst.msk [vmem:[#allocation2 + $0x24] sm:$0x1] %vm374_vm2, %v8115_v15 }
  0x12   : > { %v473_v13 = vld [vmem:[%s8195_s20 + $0x60] sm:$0xff]  ;;  %v474_v14 = vld [vmem:[%s8195_s20 + $0x68] sm:$0xff]  ;;  %384 = vst.msk [vmem:[#allocation2 + $0x30] sm:$0x1] %vm374_vm2, %v8115_v15  ;;  %v475_v16 = vld [vmem:[%s8195_s20 + $0x70] sm:$0xff] }
  0x13   : > { %385 = vst.msk [vmem:[#allocation2 + $0x3c] sm:$0x1] %vm374_vm2, %v8115_v15  ;;  %v476_v17 = vld [vmem:[%s8195_s20 + $0x78] sm:$0xff]  ;;  %v477_v20 = vld [vmem:[%s8195_s20 + $0x80] sm:$0xff]  ;;  %v478_v28 = vld [vmem:[%s8195_s20 + $0x88] sm:$0xff] }
  0x14   : > { %386 = vst.msk [vmem:[#allocation2 + $0x48] sm:$0x1] %vm374_vm2, %v8115_v15  ;;  %vm8322_vm6 = vmor %vm808_vm4, %vm809_vm5  ;;  %v479_v39 = vld [vmem:[%s8195_s20 + $0x90] sm:$0xff]  ;;  %vm991_vm9 = vsmask.f32 256  ;;  %v480_v50 = vld [vmem:[%s8195_s20 + $0x98] sm:$0xff] }
  0x15   : > { %387 = vst.msk [vmem:[#allocation2 + $0x54] sm:$0x1] %vm374_vm2, %v8115_v15  ;;  %vm992_vm10 = vsmask.f32 4368  ;;  %v481_v0 = vld [vmem:[%s8195_s20 + $0xa0] sm:$0xff]  ;;  %vm2624_vm5 = vcmask 1042432  }
  0x16   : > { %388 = vst.msk [vmem:[#allocation2 + $0x60] sm:$0x1] %vm374_vm2, %v8115_v15  ;;  %vm8347_vm11 = vmor %vm991_vm9, %vm992_vm10  ;;  %vm1411_vm13 = vsmask.f32 7938  ;;  %vm1705_vm4 = vsmask.f32 3328 }
  0x17   : > { %7616 = vmatmul.msk.f32.gmra.mxu0 %vm498_vm1, %v462_v2  ;;  %389 = vst.msk [vmem:[#allocation2 + $0x6c] sm:$0x1] %vm374_vm2, %v8115_v15  ;;  %vm8464_vm14 = vmand %vm1410_vm12, %vm1411_vm13 }
  0x18   : > { %390 = vst.msk [vmem:[#allocation2 + $0x78] sm:$0x1] %vm374_vm2, %v8115_v15 }
  0x19   : > { %391 = vst.msk [vmem:[#allocation2 + $0x84] sm:$0x1] %vm374_vm2, %v8115_v15 }
  0x1a   : > { %392 = vst.msk [vmem:[#allocation2 + $0x90] sm:$0x1] %vm374_vm2, %v8115_v15 }
  0x1b   : > { %393 = vst.msk [vmem:[#allocation2 + $0x9c] sm:$0x1] %vm374_vm2, %v8115_v15 }
  0x1c   : > { %394 = vst.msk [vmem:[#allocation2 + $0xa8] sm:$0x1] %vm374_vm2, %v8115_v15 }
  0x1d   : > { %395 = vst.msk [vmem:[#allocation2 + $0xb4] sm:$0x1] %vm374_vm2, %v8115_v15 }
  0x1e   : > { %396 = vst.msk [vmem:[#allocation2 + $0xc0] sm:$0x1] %vm374_vm2, %v8115_v15 }
  0x1f   : > { %7617 = vmatmul.msk.f32.gmra.mxu0 %vm498_vm1, %v463_v3  ;;  %399 = vst.msk [vmem:[#allocation2 + $0x14] sm:$0x1] %vm374_vm2, %v8115_v15 }
  0x20   : > { %400 = vst.msk [vmem:[#allocation2 + $0x20] sm:$0x1] %vm374_vm2, %v8115_v15 }
  0x21   : > { %401 = vst.msk [vmem:[#allocation2 + $0x2c] sm:$0x1] %vm374_vm2, %v8115_v15 }
  0x22   : > { %402 = vst.msk [vmem:[#allocation2 + $0x38] sm:$0x1] %vm374_vm2, %v8115_v15 }
  0x23   : > { %403 = vst.msk [vmem:[#allocation2 + $0x44] sm:$0x1] %vm374_vm2, %v8115_v15 }
  0x24   : > { %404 = vst.msk [vmem:[#allocation2 + $0x50] sm:$0x1] %vm374_vm2, %v8115_v15 }
  0x25   : > { %405 = vst.msk [vmem:[#allocation2 + $0x5c] sm:$0x1] %vm374_vm2, %v8115_v15 }
  0x26   : > { %406 = vst.msk [vmem:[#allocation2 + $0x68] sm:$0x1] %vm374_vm2, %v8115_v15 }
  0x27   : > { %7618 = vmatmul.msk.f32.gmra.mxu0 %vm498_vm1, %v464_v4  ;;  %407 = vst.msk [vmem:[#allocation2 + $0x74] sm:$0x1] %vm374_vm2, %v8115_v15 }
  0x28   : > { %408 = vst.msk [vmem:[#allocation2 + $0x80] sm:$0x1] %vm374_vm2, %v8115_v15 }
  0x29   : > { %409 = vst.msk [vmem:[#allocation2 + $0x8c] sm:$0x1] %vm374_vm2, %v8115_v15 }
  0x2a   : > { %410 = vst.msk [vmem:[#allocation2 + $0x98] sm:$0x1] %vm374_vm2, %v8115_v15 }
  0x2b   : > { %411 = vst.msk [vmem:[#allocation2 + $0xa4] sm:$0x1] %vm374_vm2, %v8115_v15 }
  0x2c   : > { %412 = vst.msk [vmem:[#allocation2 + $0xb0] sm:$0x1] %vm374_vm2, %v8115_v15 }
  0x2d   : > { %413 = vst.msk [vmem:[#allocation2 + $0xbc] sm:$0x1] %vm374_vm2, %v8115_v15 }
  0x2e   : > { %414 = vst.msk [vmem:[#allocation2 + $0xc8] sm:$0x1] %vm374_vm2, %v8115_v15 }
  0x2f   : > { %7619 = vmatmul.msk.f32.gmra.mxu0 %vm498_vm1, %v465_v5  ;;  %398 = vst.msk [vmem:[#allocation2 + $0x8] sm:$0x1] %vm374_vm2, %v8115_v15 }
  0x30   : > { %415 = vst.msk [vmem:[#allocation2 + $0xd4] sm:$0x1] %vm374_vm2, %v8115_v15 }
  0x31   : > { %372 = vst.msk [vmem:[#allocation2] sm:$0xf] %vm371_vm15, %v8115_v15 }
  0x32   : > { %373 = vst.msk [vmem:[#allocation2 + $0x4] sm:$0xf] %vm371_vm15, %v8115_v15 }
  0x33   : > { %380 = vst.msk [vmem:[#allocation2] sm:$0x1] %vm374_vm2, %v8115_v15 }
  0x34   : > { %377 = vst.msk [vmem:[#allocation2 + $0xcc] sm:$0xf] %vm371_vm15, %v8115_v15 }
  0x35   : > { %378 = vst.msk [vmem:[#allocation2 + $0xd0] sm:$0xf] %vm371_vm15, %v8115_v15  ;;  %vm1418_vm15 = vcmask 24592  }
  0x36   : > { %397 = vst.msk [vmem:[#allocation2 + $0xcc] sm:$0x1] %vm374_vm2, %v8115_v15  ;;  %vm1706_vm2 = vsmask.f32 7440 }
  0x37   : > { %7620 = vmatmul.msk.f32.gmra.mxu0 %vm498_vm1, %v466_v6  ;;  %vm8551_vm10 = vmor %vm1705_vm4, %vm1706_vm2  ;;  %vm2575_vm4 = vcmask 48128  }
  0x38   : > { %vm8601_vm2 = vmand %vm1418_vm15, %vm991_vm9  ;;  %vm416_vm15 = vcmask 781312  }
  0x3a   : > { %v1657_v15 = vld [vmem:[#allocation2] sm:$0xf] }
  0x3f   : > { %7621 = vmatmul.msk.f32.gmra.mxu0 %vm498_vm1, %v467_v7 }
  0x47   : > { %7622 = vmatmul.msk.f32.gmra.mxu0 %vm498_vm1, %v468_v8 }
  0x4f   : > { %7623 = vmatmul.msk.f32.gmra.mxu0 %vm498_vm1, %v469_v9 }
  0x57   : > { %7624 = vmatmul.msk.f32.gmra.mxu0 %vm498_vm1, %v470_v10 }
  0x5f   : > { %7625 = vmatmul.msk.f32.gmra.mxu0 %vm498_vm1, %v471_v11 }
  0x67   : > { %7626 = vmatmul.msk.f32.gmra.mxu0 %vm498_vm1, %v472_v12  ;;  %v482_v12 = vld [vmem:[%s8195_s20 + $0xa8] sm:$0xff] }
  0x6f   : > { %7627 = vmatmul.msk.f32.gmra.mxu0 %vm498_vm1, %v473_v13 }
  0x77   : > { %7628 = vmatmul.msk.f32.gmra.mxu0 %vm498_vm1, %v474_v14 }
  0x7f   : > { %7629 = vmatmul.msk.f32.gmra.mxu0 %vm498_vm1, %v475_v16 }
  0x87   : > { %7630 = vmatmul.msk.f32.gmra.mxu0 %vm498_vm1, %v476_v17 }
  0x8c   : > { %v616_v19 = vpop.f32.mrf.mxu0 }
  0x8d   : > { %v617_v21 = vadd.f32 %v8274_v18, %v616_v19  ;;  %v7870_v19 = vld [vmem:[%s11192_s5 + $0x8] sm:$0xff] }
  0x8e   : > { %3719 = vmatpush.bf16.msrb.mxu0 %v7870_v19 }
  0x8f   : > { %712 = vst.msk [vmem:[%s8287_s25] sm:$0xff] %vm498_vm1, %v617_v21  ;;  %v744_v22 = vpack.c.bf16 %v617_v21, %v617_v21  ;;  %7631 = vmatmul.msk.f32.gmra.mxu0 %vm498_vm1, %v477_v20 }
  0x91   : > { %1528 = vrot.lane.b32.xlu1 %v744_v22, %s8116_s26  ;;  %v995_v23 = vshrl.u32 %v744_v22, 16  ;;  %v811_v24 = vrot.slane %v744_v22, 7  ;;  %v998_v26 = vshll.u32 %v744_v22, 16 }
  0x93   : > { %v997_v25 = vrot.slane %v995_v23, 7  ;;  %941 = vst.msk [vmem:[#allocation2 + $0xc] sm:$0xe] %vm940_vm3, %v811_v24  ;;  %v812_v34 = vrot.slane %v811_v24, 4 }
  0x94   : > { %v619_v27 = vpop.f32.mrf.mxu0 }
  0x95   : > { %v620_v29 = vadd.f32 %v8274_v18, %v619_v27  ;;  %v1000_v30 = vor.u32 %v998_v26, %v997_v25  ;;  %v1001_v52 = vrot.slane %v997_v25, 4 }
  0x97   : > { %713 = vst.msk [vmem:[%s8287_s25 + $0x8] sm:$0xff] %vm498_vm1, %v620_v29  ;;  %v745_v31 = vpack.c.bf16 %v620_v29, %v620_v29  ;;  %7632 = vmatmul.msk.f32.gmra.mxu0 %vm498_vm1, %v478_v28  ;;  %1266 = vrot.lane.b32.xlu2 %v1000_v30, %s8117_s27  ;;  %v483_v28 = vld [vmem:[%s8195_s20 + $0xb0] sm:$0xff] }
  0x99   : > { %v813_v33 = vrot.slane %v745_v31, 7  ;;  %v1003_v35 = vshrl.u32 %v745_v31, 16  ;;  %v1006_v44 = vshll.u32 %v745_v31, 16 }
  0x9b   : > { %v814_v36 = vsel %vm8322_vm6, %v812_v34, %v813_v33  ;;  %v815_v37 = vrot.slane %v813_v33, 4  ;;  %v8340_v42 = vrot.slane %v1003_v35, 7 }
  0x9c   : > { %v622_v38 = vpop.f32.mrf.mxu0  ;;  %943 = vst.msk [vmem:[#allocation2 + $0x10] sm:$0xf] %vm942_vm7, %v814_v36 }
  0x9d   : > { %v623_v40 = vadd.f32 %v8274_v18, %v622_v38  ;;  %945 = vst.msk [vmem:[#allocation2 + $0x14] sm:$0x1] %vm944_vm8, %v815_v37  ;;  %v1008_v48 = vor.u32 %v1006_v44, %v8340_v42  ;;  %v1010_v30 = vrot.slane %v8340_v42, 4  ;;  %v484_v38 = vld [vmem:[%s8195_s20 + $0xb8] sm:$0xff] }
  0x9f   : > { %714 = vst.msk [vmem:[%s8287_s25 + $0x10] sm:$0xff] %vm498_vm1, %v623_v40  ;;  %v746_v41 = vpack.c.bf16 %v623_v40, %v623_v40  ;;  %7633 = vmatmul.msk.f32.gmra.mxu0 %vm498_vm1, %v479_v39  ;;  %1530 = vrot.lane.b32.xlu2 %v745_v31, %s8116_s26  ;;  %v1009_v56 = vsel %vm8347_vm11, %v1001_v52, %v1008_v48 }
  0xa1   : > { %1532 = vrot.lane.b32.xlu1 %v746_v41, %s8116_s26  ;;  %v1012_v43 = vshrl.u32 %v746_v41, 16  ;;  %v816_v45 = vrot.slane %v746_v41, 7  ;;  %v1015_v47 = vshll.u32 %v746_v41, 16 }
  0xa3   : > { %v1014_v46 = vrot.slane %v1012_v43, 7  ;;  %946 = vst.msk [vmem:[#allocation2 + $0x18] sm:$0xe] %vm940_vm3, %v816_v45  ;;  %v817_v59 = vrot.slane %v816_v45, 4 }
  0xa4   : > { %v625_v49 = vpop.f32.mrf.mxu0 }
  0xa5   : > { %v626_v53 = vadd.f32 %v8274_v18, %v625_v49  ;;  %v1017_v54 = vor.u32 %v1015_v47, %v1014_v46  ;;  %v1018_v10 = vrot.slane %v1014_v46, 4 }
  0xa7   : > { %715 = vst.msk [vmem:[%s8287_s25 + $0x18] sm:$0xff] %vm498_vm1, %v626_v53  ;;  %v747_v55 = vpack.c.bf16 %v626_v53, %v626_v53  ;;  %7634 = vmatmul.msk.f32.gmra.mxu0 %vm498_vm1, %v480_v50  ;;  %1272 = vrot.lane.b32.xlu0 %v1017_v54, %s8117_s27  ;;  %v485_v54 = vld [vmem:[%s8195_s20 + $0xc0] sm:$0xff] }
  0xa8   : > { %1268 = vrot.lane.b32.xlu2 %v1009_v56, %s8117_s27 }
  0xa9   : > { %v818_v57 = vrot.slane %v747_v55, 7  ;;  %1534 = vrot.lane.b32.xlu1 %v747_v55, %s8116_s26  ;;  %v1020_v58 = vshrl.u32 %v747_v55, 16  ;;  %v1023_v4 = vshll.u32 %v747_v55, 16 }
  0xab   : > { %v1022_v60 = vrot.slane %v1020_v58, 7  ;;  %v820_v61 = vrot.slane %v818_v57, 4  ;;  %v819_v62 = vsel %vm8322_vm6, %v817_v59, %v818_v57 }
  0xac   : > { %v628_v63 = vpop.f32.mrf.mxu0  ;;  %947 = vst.msk [vmem:[#allocation2 + $0x1c] sm:$0xf] %vm942_vm7, %v819_v62 }
  0xad   : > { %v629_v1 = vadd.f32 %v8274_v18, %v628_v63  ;;  %v1027_v2 = vrot.slane %v1022_v60, 4  ;;  %948 = vst.msk [vmem:[#allocation2 + $0x20] sm:$0x1] %vm944_vm8, %v820_v61  ;;  %v1025_v8 = vor.u32 %v1023_v4, %v1022_v60 }
  0xaf   : > { %716 = vst.msk [vmem:[%s8287_s25 + $0x20] sm:$0xff] %vm498_vm1, %v629_v1  ;;  %v748_v3 = vpack.c.bf16 %v629_v1, %v629_v1  ;;  %7635 = vmatmul.msk.f32.gmra.mxu0 %vm498_vm1, %v481_v0  ;;  %1276 = vrot.lane.b32.xlu0 %v1027_v2, %s8117_s27  ;;  %v1026_v16 = vsel %vm8347_vm11, %v1018_v10, %v1025_v8  ;;  %v486_v2 = vld [vmem:[%s8195_s20 + $0xc8] sm:$0xff] }
  0xb1   : > { %v1029_v5 = vshrl.u32 %v748_v3, 16  ;;  %v1032_v6 = vshll.u32 %v748_v3, 16  ;;  %v821_v7 = vrot.slane %v748_v3, 7 }
  0xb3   : > { %v1031_v9 = vrot.slane %v1029_v5, 7  ;;  %949 = vst.msk [vmem:[#allocation2 + $0x24] sm:$0xe] %vm940_vm3, %v821_v7  ;;  %v822_v20 = vrot.slane %v821_v7, 4 }
  0xb4   : > { %v631_v11 = vpop.f32.mrf.mxu0 }
  0xb5   : > { %v632_v13 = vadd.f32 %v8274_v18, %v631_v11  ;;  %v1034_v14 = vor.u32 %v1032_v6, %v1031_v9  ;;  %v1035_v31 = vrot.slane %v1031_v9, 4 }
  0xb7   : > { %717 = vst.msk [vmem:[%s8287_s25 + $0x28] sm:$0xff] %vm498_vm1, %v632_v13  ;;  %v749_v17 = vpack.c.bf16 %v632_v13, %v632_v13  ;;  %7636 = vmatmul.msk.f32.gmra.mxu0 %vm498_vm1, %v482_v12  ;;  %1274 = vrot.lane.b32.xlu0 %v1026_v16, %s8117_s27  ;;  %v487_v16 = vld [vmem:[%s8195_s20 + $0xd0] sm:$0xff] }
  0xb8   : > { %1278 = vrot.lane.b32.xlu1 %v1034_v14, %s8117_s27 }
  0xb9   : > { %v1037_v21 = vshrl.u32 %v749_v17, 16  ;;  %v1040_v22 = vshll.u32 %v749_v17, 16  ;;  %v823_v23 = vrot.slane %v749_v17, 7 }
  0xbb   : > { %v1039_v24 = vrot.slane %v1037_v21, 7  ;;  %v824_v25 = vsel %vm8322_vm6, %v822_v20, %v823_v23  ;;  %v825_v26 = vrot.slane %v823_v23, 4 }
  0xbc   : > { %v634_v27 = vpop.f32.mrf.mxu0  ;;  %950 = vst.msk [vmem:[#allocation2 + $0x28] sm:$0xf] %vm942_vm7, %v824_v25 }
  0xbd   : > { %v635_v29 = vadd.f32 %v8274_v18, %v634_v27  ;;  %v1042_v33 = vor.u32 %v1040_v22, %v1039_v24  ;;  %951 = vst.msk [vmem:[#allocation2 + $0x2c] sm:$0x1] %vm944_vm8, %v825_v26  ;;  %v1044_v41 = vrot.slane %v1039_v24, 4 }
  0xbf   : > { %718 = vst.msk [vmem:[%s8287_s25 + $0x30] sm:$0xff] %vm498_vm1, %v635_v29  ;;  %v750_v34 = vpack.c.bf16 %v635_v29, %v635_v29  ;;  %7637 = vmatmul.msk.f32.gmra.mxu0 %vm498_vm1, %v483_v28  ;;  %1270 = vrot.lane.b32.xlu0 %v1010_v30, %s8117_s27  ;;  %v1043_v35 = vsel %vm8347_vm11, %v1035_v31, %v1042_v33  ;;  %v488_v28 = vld [vmem:[%s8195_s20 + $0xd8] sm:$0xff] }
  0xc0   : > { %1538 = vrot.lane.b32.xlu1 %v749_v17, %s8116_s26  ;;  %1280 = vrot.lane.b32.xlu2 %v1043_v35, %s8117_s27 }
  0xc1   : > { %v826_v36 = vrot.slane %v750_v34, 7  ;;  %v1046_v40 = vshrl.u32 %v750_v34, 16  ;;  %v1049_v44 = vshll.u32 %v750_v34, 16 }
  0xc3   : > { %952 = vst.msk [vmem:[#allocation2 + $0x30] sm:$0xe] %vm940_vm3, %v826_v36  ;;  %v827_v43 = vrot.slane %v826_v36, 4  ;;  %v1048_v45 = vrot.slane %v1046_v40, 7 }
  0xc4   : > { %v637_v37 = vpop.f32.mrf.mxu0 }
  0xc5   : > { %v638_v39 = vadd.f32 %v8274_v18, %v637_v37  ;;  %v1051_v56 = vor.u32 %v1049_v44, %v1048_v45  ;;  %v1052_v57 = vrot.slane %v1048_v45, 4 }
  0xc7   : > { %719 = vst.msk [vmem:[%s8287_s25 + $0x38] sm:$0xff] %vm498_vm1, %v638_v39  ;;  %v751_v42 = vpack.c.bf16 %v638_v39, %v638_v39  ;;  %7638 = vmatmul.msk.f32.gmra.mxu0 %vm498_vm1, %v484_v38  ;;  %1536 = vrot.lane.b32.xlu0 %v748_v3, %s8116_s26 }
  0xc8   : > { %1282 = vrot.lane.b32.xlu2 %v1044_v41, %s8117_s27 }
  0xc9   : > { %v1054_v46 = vshrl.u32 %v751_v42, 16  ;;  %v1057_v47 = vshll.u32 %v751_v42, 16  ;;  %v828_v48 = vrot.slane %v751_v42, 7 }
  0xcb   : > { %v1056_v49 = vrot.slane %v1054_v46, 7  ;;  %v829_v50 = vsel %vm8322_vm6, %v827_v43, %v828_v48  ;;  %v830_v52 = vrot.slane %v828_v48, 4 }
  0xcc   : > { %v640_v53 = vpop.f32.mrf.mxu0  ;;  %953 = vst.msk [vmem:[#allocation2 + $0x34] sm:$0xf] %vm942_vm7, %v829_v50 }
  0xcd   : > { %v641_v55 = vadd.f32 %v8274_v18, %v640_v53  ;;  %v1059_v58 = vor.u32 %v1057_v47, %v1056_v49  ;;  %954 = vst.msk [vmem:[#allocation2 + $0x38] sm:$0x1] %vm944_vm8, %v830_v52  ;;  %v1061_v5 = vrot.slane %v1056_v49, 4  ;;  %v1413_v52 = vld [vmem:[#allocation2 + $0xc] sm:$0xf] }
  0xcf   : > { %720 = vst.msk [vmem:[%s8287_s25 + $0x40] sm:$0xff] %vm498_vm1, %v641_v55  ;;  %v752_v59 = vpack.c.bf16 %v641_v55, %v641_v55  ;;  %7639 = vmatmul.msk.f32.gmra.mxu0 %vm498_vm1, %v485_v54  ;;  %1284 = vrot.lane.b32.xlu0 %v1051_v56, %s8117_s27  ;;  %v1060_v60 = vsel %vm8347_vm11, %v1052_v57, %v1059_v58  ;;  %v490_v58 = vld [vmem:[%s8195_s20 + $0xe8] sm:$0xff] }
  0xd0   : > { %1286 = vrot.lane.b32.xlu1 %v1060_v60, %s8117_s27  ;;  %1540 = vrot.lane.b32.xlu2 %v750_v34, %s8116_s26 }
  0xd1   : > { %v831_v61 = vrot.slane %v752_v59, 7  ;;  %v1063_v62 = vshrl.u32 %v752_v59, 16  ;;  %v1066_v63 = vshll.u32 %v752_v59, 16 }
  0xd3   : > { %v1065_v0 = vrot.slane %v1063_v62, 7  ;;  %955 = vst.msk [vmem:[#allocation2 + $0x3c] sm:$0xe] %vm940_vm3, %v831_v61  ;;  %v832_v7 = vrot.slane %v831_v61, 4 }
  0xd4   : > { %v643_v1 = vpop.f32.mrf.mxu0 }
  0xd5   : > { %v644_v3 = vadd.f32 %v8274_v18, %v643_v1  ;;  %v1068_v4 = vor.u32 %v1066_v63, %v1065_v0  ;;  %v1069_v19 = vrot.slane %v1065_v0, 4 }
  0xd7   : > { %721 = vst.msk [vmem:[%s8287_s25 + $0x48] sm:$0xff] %vm498_vm1, %v644_v3  ;;  %v753_v6 = vpack.c.bf16 %v644_v3, %v644_v3  ;;  %7640 = vmatmul.msk.f32.gmra.mxu0 %vm498_vm1, %v486_v2  ;;  %1542 = vrot.lane.b32.xlu0 %v751_v42, %s8116_s26  ;;  %v489_v42 = vld [vmem:[%s8195_s20 + $0xe0] sm:$0xff] }
  0xd8   : > { %1288 = vrot.lane.b32.xlu1 %v1061_v5, %s8117_s27  ;;  %1290 = vrot.lane.b32.xlu2 %v1068_v4, %s8117_s27 }
  0xd9   : > { %v1071_v8 = vshrl.u32 %v753_v6, 16  ;;  %v1074_v9 = vshll.u32 %v753_v6, 16  ;;  %v833_v10 = vrot.slane %v753_v6, 7 }
  0xdb   : > { %v1073_v11 = vrot.slane %v1071_v8, 7  ;;  %v834_v12 = vsel %vm8322_vm6, %v832_v7, %v833_v10  ;;  %v835_v13 = vrot.slane %v833_v10, 4  ;;  %v491_v7 = vld [vmem:[%s8195_s20 + $0xf0] sm:$0xff] }
  0xdc   : > { %v646_v14 = vpop.f32.mrf.mxu0  ;;  %956 = vst.msk [vmem:[#allocation2 + $0x40] sm:$0xf] %vm942_vm7, %v834_v12 }
  0xdd   : > { %v647_v17 = vadd.f32 %v8274_v18, %v646_v14  ;;  %v1076_v20 = vor.u32 %v1074_v9, %v1073_v11  ;;  %957 = vst.msk [vmem:[#allocation2 + $0x44] sm:$0x1] %vm944_vm8, %v835_v13  ;;  %v1078_v31 = vrot.slane %v1073_v11, 4 }
  0xdf   : > { %722 = vst.msk [vmem:[%s8287_s25 + $0x50] sm:$0xff] %vm498_vm1, %v647_v17  ;;  %v754_v21 = vpack.c.bf16 %v647_v17, %v647_v17  ;;  %7641 = vmatmul.msk.f32.gmra.mxu0 %vm498_vm1, %v487_v16  ;;  %v1077_v22 = vsel %vm8347_vm11, %v1069_v19, %v1076_v20 }
  0xe0   : > { %1292 = vrot.lane.b32.xlu0 %v1077_v22, %s8117_s27  ;;  %1544 = vrot.lane.b32.xlu1 %v752_v59, %s8116_s26  ;;  %v492_v22 = vld [vmem:[%s8195_s20 + $0xf8] sm:$0xff] }
  0xe1   : > { %v836_v23 = vrot.slane %v754_v21, 7  ;;  %1546 = vrot.lane.b32.xlu2 %v753_v6, %s8116_s26  ;;  %v1080_v24 = vshrl.u32 %v754_v21, 16  ;;  %v1083_v25 = vshll.u32 %v754_v21, 16 }
  0xe3   : > { %v1082_v26 = vrot.slane %v1080_v24, 7  ;;  %958 = vst.msk [vmem:[#allocation2 + $0x48] sm:$0xe] %vm940_vm3, %v836_v23  ;;  %v837_v34 = vrot.slane %v836_v23, 4 }
  0xe4   : > { %v649_v27 = vpop.f32.mrf.mxu0 }
  0xe5   : > { %v650_v29 = vadd.f32 %v8274_v18, %v649_v27  ;;  %v1085_v30 = vor.u32 %v1083_v25, %v1082_v26  ;;  %v1086_v44 = vrot.slane %v1082_v26, 4 }
  0xe7   : > { %723 = vst.msk [vmem:[%s8287_s25 + $0x58] sm:$0xff] %vm498_vm1, %v650_v29  ;;  %v755_v33 = vpack.c.bf16 %v650_v29, %v650_v29  ;;  %7642 = vmatmul.msk.f32.gmra.mxu0 %vm498_vm1, %v488_v28  ;;  %v1658_v29 = vld [vmem:[#allocation2 + $0x4] sm:$0xf] }
  0xe8   : > { %1294 = vrot.lane.b32.xlu0 %v1078_v31, %s8117_s27  ;;  %1296 = vrot.lane.b32.xlu1 %v1085_v30, %s8117_s27  ;;  %v1718_v30 = vshll.u32 %v1658_v29, 16  ;;  %v1722_v31 = vshrl.u32 %v1658_v29, 16 }
  0xe9   : > { %v1088_v35 = vshrl.u32 %v755_v33, 16  ;;  %v1091_v36 = vshll.u32 %v755_v33, 16  ;;  %v838_v37 = vrot.slane %v755_v33, 7 }
  0xeb   : > { %v1090_v38 = vrot.slane %v1088_v35, 7  ;;  %v839_v39 = vsel %vm8322_vm6, %v837_v34, %v838_v37  ;;  %v840_v40 = vrot.slane %v838_v37, 4  ;;  %v1720_v35 = vrot.slane %v1718_v30, 5 }
  0xec   : > { %v652_v41 = vpop.f32.mrf.mxu0  ;;  %959 = vst.msk [vmem:[#allocation2 + $0x4c] sm:$0xf] %vm942_vm7, %v839_v39 }
  0xed   : > { %v653_v43 = vadd.f32 %v8274_v18, %v652_v41  ;;  %v1093_v45 = vor.u32 %v1091_v36, %v1090_v38  ;;  %960 = vst.msk [vmem:[#allocation2 + $0x50] sm:$0x1] %vm944_vm8, %v840_v40  ;;  %v1095_v62 = vrot.slane %v1090_v38, 4  ;;  %v1724_v36 = vrot.slane %v1722_v31, 4  ;;  %v1659_v41 = vld [vmem:[#allocation2 + $0x8] sm:$0x1] }
  0xef   : > { %724 = vst.msk [vmem:[%s8287_s25 + $0x60] sm:$0xff] %vm498_vm1, %v653_v43  ;;  %v756_v46 = vpack.c.bf16 %v653_v43, %v653_v43  ;;  %7643 = vmatmul.msk.f32.gmra.mxu0 %vm498_vm1, %v489_v42  ;;  %v1094_v47 = vsel %vm8347_vm11, %v1086_v44, %v1093_v45  ;;  %v1725_v42 = vor.u32 %v1724_v36, %v1720_v35  ;;  %v1728_v43 = vshll.u32 %v1659_v41, 16 }
  0xf0   : > { %1548 = vrot.lane.b32.xlu0 %v754_v21, %s8116_s26  ;;  %1550 = vrot.lane.b32.xlu1 %v755_v33, %s8116_s26 }
  0xf1   : > { %v841_v49 = vrot.slane %v756_v46, 7  ;;  %1298 = vrot.lane.b32.xlu2 %v1094_v47, %s8117_s27  ;;  %v1267_v50 = vpop.permute.xlu2 %1266  ;;  %v1097_v53 = vshrl.u32 %v756_v46, 16  ;;  %v1100_v54 = vshll.u32 %v756_v46, 16  ;;  %v1712_v47 = vshll.u32 %v1657_v15, 16 }
  0xf2   : > { %v1414_v55 = vsel %vm8464_vm14, %v1267_v50, %v1413_v52  ;;  %v1730_v50 = vrot.slane %v1728_v43, 5 }
  0xf3   : > { %1415 = vst [vmem:[#allocation2 + $0xc] sm:$0xf] %v1414_v55  ;;  %v1099_v56 = vrot.slane %v1097_v53, 7  ;;  %v842_v63 = vrot.slane %v841_v49, 4  ;;  %v2092_v55 = vld [vmem:[%s11190_s3] sm:$0x7] }
  0xf4   : > { %961 = vst.msk [vmem:[#allocation2 + $0x54] sm:$0xe] %vm940_vm3, %v841_v49  ;;  %v655_v57 = vpop.f32.mrf.mxu0  ;;  %v1726_v49 = vrot.slane %v1725_v42, 4 }
  0xf5   : > { %v656_v59 = vadd.f32 %v8274_v18, %v655_v57  ;;  %v1102_v60 = vor.u32 %v1100_v54, %v1099_v56  ;;  %v1103_v9 = vrot.slane %v1099_v56, 4  ;;  %v2814_v56 = vsel %vm2624_vm5, %v2092_v55, 0 }
  0xf6   : > { %2823 = vmatpush.bf16.msra.mxu2 %v2814_v56 }
  0xf7   : > { %725 = vst.msk [vmem:[%s8287_s25 + $0x68] sm:$0xff] %vm498_vm1, %v656_v59  ;;  %v757_v61 = vpack.c.bf16 %v656_v59, %v656_v59  ;;  %7644 = vmatmul.msk.f32.gmra.mxu0 %vm498_vm1, %v490_v58  ;;  %v1714_v58 = vrot.slane %v1712_v47, 5  ;;  %v1427_v47 = vld [vmem:[#allocation2 + $0x20] sm:$0x1] }
  0xf8   : > { %1302 = vrot.lane.b32.xlu0 %v1102_v60, %s8117_s27 }
  0xf9   : > { %1300 = vrot.lane.b32.xlu2 %v1095_v62, %s8117_s27  ;;  %v1531_v0 = vpop.permute.xlu2 %1530  ;;  %v1105_v1 = vshrl.u32 %v757_v61, 16  ;;  %v1108_v2 = vshll.u32 %v757_v61, 16  ;;  %v843_v3 = vrot.slane %v757_v61, 7 }
  0xfb   : > { %v1107_v4 = vrot.slane %v1105_v1, 7  ;;  %v844_v5 = vsel %vm8322_vm6, %v842_v63, %v843_v3  ;;  %v845_v37 = vrot.slane %v843_v3, 4  ;;  %v1731_v63 = vsel %vm8551_vm10, %v1726_v49, %v1730_v50 }
  0xfc   : > { %v658_v6 = vpop.f32.mrf.mxu0  ;;  %962 = vst.msk [vmem:[#allocation2 + $0x58] sm:$0xf] %vm942_vm7, %v844_v5 }
  0xfd   : > { %v659_v8 = vadd.f32 %v8274_v18, %v658_v6  ;;  %v1110_v10 = vor.u32 %v1108_v2, %v1107_v4  ;;  %v1112_v25 = vrot.slane %v1107_v4, 4  ;;  %963 = vst.msk [vmem:[#allocation2 + $0x5c] sm:$0x1] %vm944_vm8, %v845_v37  ;;  %v2718_v6 = vunpack.c.l.b16 %v1731_v63 }
  0xff   : > { %726 = vst.msk [vmem:[%s8287_s25 + $0x70] sm:$0xff] %vm498_vm1, %v659_v8  ;;  %v8488_v11 = vpack.c.bf16 %v659_v8, %v659_v8  ;;  %7645 = vmatmul.msk.f32.gmra.mxu0 %vm498_vm1, %v491_v7  ;;  %v1111_v12 = vsel %vm8347_vm11, %v1103_v9, %v1110_v10  ;;  %v1423_v9 = vld [vmem:[#allocation2 + $0x18] sm:$0xf] }
 0x100   : > { %1554 = vrot.lane.b32.xlu0 %v757_v61, %s8116_s26  ;;  %1304 = vrot.lane.b32.xlu1 %v1111_v12, %s8117_s27 }
 0x101   : > { %v846_v13 = vrot.slane %v8488_v11, 7  ;;  %1552 = vrot.lane.b32.xlu2 %v756_v46, %s8116_s26  ;;  %v1114_v14 = vshrl.u32 %v8488_v11, 16  ;;  %v1117_v16 = vshll.u32 %v8488_v11, 16  ;;  %v1709_v46 = vshrl.u32 %v1657_v15, 16 }
 0x102   : > { %v1269_v17 = vpop.permute.xlu2 %1268 }
 0x103   : > { %964 = vst.msk [vmem:[#allocation2 + $0x60] sm:$0xe] %vm940_vm3, %v846_v13  ;;  %v1529_v19 = vpop.permute.xlu1 %1528  ;;  %v1116_v20 = vrot.slane %v1114_v14, 7  ;;  %v1711_v57 = vrot.slane %v1709_v46, 4  ;;  %v847_v14 = vrot.slane %v846_v13, 4 }
 0x104   : > { %1417 = vst.msk [vmem:[#allocation2 + $0x10] sm:$0xf] %vm1410_vm12, %v1269_v17  ;;  %v661_v21 = vpop.f32.mrf.mxu0 }
 0x105   : > { %1626 = vst.msk [vmem:[#allocation2 + $0x10] sm:$0xf] %vm1624_vm0, %v1531_v0  ;;  %v662_v23 = vadd.f32 %v8274_v18, %v661_v21  ;;  %v1119_v24 = vor.u32 %v1117_v16, %v1116_v20  ;;  %v1120_v39 = vrot.slane %v1116_v20, 4  ;;  %v1715_v62 = vor.u32 %v1714_v58, %v1711_v57 }
 0x106   : > { %1625 = vst.msk [vmem:[#allocation2 + $0xc] sm:$0xf] %vm1624_vm0, %v1529_v19 }
 0x107   : > { %727 = vst.msk [vmem:[%s8287_s25 + $0x78] sm:$0xff] %vm498_vm1, %v662_v23  ;;  %v8513_v26 = vpack.c.bf16 %v662_v23, %v662_v23  ;;  %7646 = vmatmul.msk.f32.gmra.mxu0 %vm498_vm1, %v492_v22  ;;  %v1716_v4 = vrot.slane %v1715_v62, 4 }
 0x108   : > { %1306 = vrot.lane.b32.xlu1 %v1112_v25, %s8117_s27 }
 0x109   : > { %1308 = vrot.lane.b32.xlu2 %v1119_v24, %s8117_s27  ;;  %v1122_v27 = vshrl.u32 %v8513_v26, 16  ;;  %v1125_v28 = vshll.u32 %v8513_v26, 16  ;;  %v1721_v10 = vsel %vm8551_vm10, %v1716_v4, %v1720_v35  ;;  %v848_v16 = vrot.slane %v8513_v26, 7 }
 0x10a   : > { %v2717_v21 = vunpack.c.l.b16 %v1721_v10 }
 0x10b   : > { %v1124_v33 = vrot.slane %v1122_v27, 7  ;;  %v849_v35 = vsel %vm8322_vm6, %v847_v14, %v848_v16 }
 0x10c   : > { %v664_v34 = vpop.f32.mrf.mxu0  ;;  %v8558_v2 = vld [vmem:[#allocation2 + $0x10] sm:$0xf]  ;;  %v2749_v13 = vpack.c.b16 %v2718_v6, %v2717_v21  ;;  %965 = vst.msk [vmem:[#allocation2 + $0x64] sm:$0xf] %vm942_vm7, %v849_v35 }
 0x10d   : > { %v665_v38 = vadd.f32 %v8274_v18, %v664_v34  ;;  %v1127_v40 = vor.u32 %v1125_v28, %v1124_v33  ;;  %v1129_v3 = vrot.slane %v1124_v33, 4  ;;  %v2093_v7 = vld [vmem:[#allocation2 + $0xc] sm:$0xf]  ;;  %v2151_v12 = vshll.u32 %v8558_v2, 16  ;;  %v8572_v27 = vld [vmem:[#allocation2 + $0x10] sm:$0xf] }
 0x10e   : > { %v1660_v22 = vld [vmem:[#allocation2 + $0xc] sm:$0xf]  ;;  %v2142_v25 = vshrl.u32 %v2093_v7, 16  ;;  %7664 = vmatmul.msk.bf16.vlgmr.msra.gmra.mxu2 %vm2575_vm4, %v2749_v13  ;;  %v2155_v41 = vshrl.u32 %v8558_v2, 16  ;;  %v1742_v42 = vshll.u32 %v8572_v27, 16 }
 0x10f   : > { %728 = vst.msk [vmem:[%s8287_s25 + $0x80] sm:$0xff] %vm498_vm1, %v665_v38  ;;  %v8531_v44 = vpack.c.bf16 %v665_v38, %v665_v38  ;;  %v1128_v45 = vsel %vm8347_vm11, %v1120_v39, %v1127_v40  ;;  %v8577_v31 = vrot.slane %v2151_v12, 5  ;;  %v1733_v33 = vshrl.u32 %v1660_v22, 16  ;;  %v7680_v40 = vld [vmem:[%s11190_s3 + $0x8] sm:$0x7] }
 0x110   : > { %1310 = vrot.lane.b32.xlu0 %v1128_v45, %s8117_s27  ;;  %1556 = vrot.lane.b32.xlu1 %v8488_v11, %s8116_s26  ;;  %v1736_v34 = vshll.u32 %v1660_v22, 16  ;;  %v850_v39 = vrot.slane %v848_v16, 4  ;;  %v3437_v49 = vsel %vm2624_vm5, %v7680_v40, 0  ;;  %v2144_v50 = vrot.slane %v2142_v25, 4 }
 0x111   : > { %v851_v52 = vrot.slane %v8531_v44, 7  ;;  %1558 = vrot.lane.b32.xlu2 %v8513_v26, %s8116_s26  ;;  %v1131_v53 = vshrl.u32 %v8531_v44, 16  ;;  %v1134_v54 = vshll.u32 %v8531_v44, 16  ;;  %v2145_v26 = vshll.u32 %v2093_v7, 16  ;;  %3446 = vmatpush.bf16.msra.mxu3 %v3437_v49 }
 0x112   : > { %v1738_v55 = vrot.slane %v1736_v34, 5  ;;  %966 = vst.msk [vmem:[#allocation2 + $0x68] sm:$0x1] %vm944_vm8, %v850_v39  ;;  %v2157_v2 = vrot.slane %v2155_v41, 4 }
 0x113   : > { %967 = vst.msk [vmem:[#allocation2 + $0x6c] sm:$0xe] %vm940_vm3, %v851_v52  ;;  %v1133_v59 = vrot.slane %v1131_v53, 7  ;;  %v1533_v8 = vpop.permute.xlu1 %1532  ;;  %v852_v28 = vrot.slane %v851_v52, 4  ;;  %v1434_v52 = vld [vmem:[#allocation2 + $0x2c] sm:$0x1] }
 0x114   : > { %v667_v61 = vpop.f32.mrf.mxu0  ;;  %v2147_v53 = vrot.slane %v2145_v26, 5 }
 0x115   : > { %v668_v0 = vadd.f32 %v8274_v18, %v667_v61  ;;  %v1136_v1 = vor.u32 %v1134_v54, %v1133_v59  ;;  %v1137_v37 = vrot.slane %v1133_v59, 4  ;;  %v1735_v54 = vrot.slane %v1733_v33, 4 }
 0x116   : > { %v2148_v12 = vor.u32 %v2147_v53, %v2144_v50 }
 0x117   : > { %729 = vst.msk [vmem:[%s8287_s25 + $0x88] sm:$0xff] %vm498_vm1, %v668_v0  ;;  %v761_v5 = vpack.c.bf16 %v668_v0, %v668_v0  ;;  %v1739_v14 = vor.u32 %v1738_v55, %v1735_v54 }
 0x118   : > { %1312 = vrot.lane.b32.xlu0 %v1129_v3, %s8117_s27  ;;  %1314 = vrot.lane.b32.xlu1 %v1136_v1, %s8117_s27  ;;  %v7647_v1 = vld [vmem:[%s11190_s3 + $0x4] sm:$0x7]  ;;  %v8621_v3 = vrot.slane %v1742_v42, 5 }
 0x119   : > { %v1273_v17 = vpop.permute.xlu0 %1272  ;;  %v1139_v19 = vshrl.u32 %v761_v5, 16  ;;  %v1142_v20 = vshll.u32 %v761_v5, 16  ;;  %v853_v29 = vrot.slane %v761_v5, 7  ;;  %v2626_v7 = vsel %vm2624_vm5, %v7647_v1, 0 }
 0x11a   : > { %v1424_v23 = vsel %vm8464_vm14, %v1273_v17, %v1423_v9  ;;  %v1281_v24 = vpop.permute.xlu2 %1280  ;;  %2635 = vmatpush.bf16.msra.mxu1 %v2626_v7  ;;  %v1420_v7 = vld [vmem:[#allocation2 + $0x14] sm:$0x1]  ;;  %vm4501_vm5 = vcmask 516352  }
 0x11b   : > { %1425 = vst [vmem:[#allocation2 + $0x18] sm:$0xf] %v1424_v23  ;;  %v8574_v11 = vrot.slane %v1139_v19, 7  ;;  %v854_v43 = vsel %vm8322_vm6, %v852_v28, %v853_v29  ;;  %v855_v56 = vrot.slane %v853_v29, 4  ;;  %v1535_v62 = vpop.permute.xlu1 %1534 }
 0x11c   : > { %1627 = vst.msk [vmem:[#allocation2 + $0x18] sm:$0xf] %vm1624_vm0, %v1533_v8  ;;  %v670_v30 = vpop.f32.mrf.mxu0 }
 0x11d   : > { %1433 = vst.msk [vmem:[#allocation2 + $0x28] sm:$0xf] %vm1410_vm12, %v1281_v24  ;;  %v671_v36 = vadd.f32 %v8274_v18, %v670_v30  ;;  %v1144_v38 = vor.u32 %v1142_v20, %v8574_v11  ;;  %v1146_v13 = vrot.slane %v8574_v11, 4  ;;  %v2158_v30 = vor.u32 %v2157_v2, %v8577_v31  ;;  %v1430_v11 = vld [vmem:[#allocation2 + $0x24] sm:$0xf] }
 0x11e   : > { %968 = vst.msk [vmem:[#allocation2 + $0x70] sm:$0xf] %vm942_vm7, %v854_v43  ;;  %v1740_v43 = vrot.slane %v1739_v14, 4 }
 0x11f   : > { %730 = vst.msk [vmem:[%s8287_s25 + $0x90] sm:$0xff] %vm498_vm1, %v671_v36  ;;  %v8595_v45 = vpack.c.bf16 %v671_v36, %v671_v36  ;;  %v1145_v15 = vsel %vm8347_vm11, %v1137_v37, %v1144_v38  ;;  %v2149_v38 = vrot.slane %v2148_v12, 4  ;;  %v8653_v55 = vrot.slane %v2158_v30, 4 }
 0x120   : > { %1560 = vrot.lane.b32.xlu0 %v8531_v44, %s8116_s26  ;;  %1562 = vrot.lane.b32.xlu1 %v761_v5, %s8116_s26  ;;  %v1746_v44 = vshrl.u32 %v8572_v27, 16  ;;  %969 = vst.msk [vmem:[#allocation2 + $0x74] sm:$0x1] %vm944_vm8, %v855_v56  ;;  %v1745_v2 = vsel %vm8551_vm10, %v1740_v43, %v8621_v3  ;;  %v8715_v43 = vld [vmem:[%s11189_s2] ss:$0 sm:$0xff] }
 0x121   : > { %v856_v57 = vrot.slane %v8595_v45, 7  ;;  %1316 = vrot.lane.b32.xlu2 %v1145_v15, %s8117_s27  ;;  %v1277_v58 = vpop.permute.xlu0 %1276  ;;  %v1148_v59 = vshrl.u32 %v8595_v45, 16  ;;  %v1151_v61 = vshll.u32 %v8595_v45, 16 }
 0x122   : > { %v1428_v63 = vsel %vm8601_vm2, %v1277_v58, %v1427_v47  ;;  %v1283_v0 = vpop.permute.xlu2 %1282  ;;  %v1748_v20 = vrot.slane %v1746_v44, 4 }
 0x123   : > { %970 = vst.msk [vmem:[#allocation2 + $0x78] sm:$0xe] %vm940_vm3, %v856_v57  ;;  %v1435_v4 = vsel %vm8601_vm2, %v1283_v0, %v1434_v52  ;;  %v8629_v5 = vrot.slane %v1148_v59, 7  ;;  %v2906_v6 = vld [vmem:[#allocation2 + $0x18] sm:$0xf] }
 0x124   : > { %1429 = vst [vmem:[#allocation2 + $0x20] sm:$0x1] %v1428_v63  ;;  %v673_v8 = vpop.f32.mrf.mxu0  ;;  %v2955_v9 = vshrl.u32 %v2906_v6, 16  ;;  %v2958_v10 = vshll.u32 %v2906_v6, 16  ;;  %v2096_v16 = vld [vmem:[#allocation2 + $0x18] sm:$0xf]  ;;  %v1749_v15 = vor.u32 %v1748_v20, %v8621_v3 }
 0x125   : > { %1436 = vst [vmem:[#allocation2 + $0x2c] sm:$0x1] %v1435_v4  ;;  %v674_v17 = vadd.f32 %v8274_v18, %v673_v8  ;;  %v1153_v19 = vor.u32 %v1151_v61, %v8629_v5  ;;  %v2166_v21 = vshrl.u32 %v2096_v16, 16  ;;  %v1663_v22 = vld [vmem:[#allocation2 + $0x18] sm:$0xf]  ;;  %v2169_v25 = vshll.u32 %v2096_v16, 16 }
 0x126   : > { %v2957_v23 = vrot.slane %v2955_v9, 4  ;;  %v2960_v24 = vrot.slane %v2958_v10, 5  ;;  %v1757_v27 = vshrl.u32 %v1663_v22, 16  ;;  %v1760_v29 = vshll.u32 %v1663_v22, 16  ;;  %v1444_v3 = vld [vmem:[#allocation2 + $0x3c] sm:$0xf] }
 0x127   : > { %731 = vst.msk [vmem:[%s8287_s25 + $0x98] sm:$0xff] %vm498_vm1, %v674_v17  ;;  %v8636_v28 = vpack.c.bf16 %v674_v17, %v674_v17  ;;  %v2168_v26 = vrot.slane %v2166_v21, 4  ;;  %v2171_v33 = vrot.slane %v2169_v25, 5  ;;  %v1154_v61 = vrot.slane %v8629_v5, 4 }
 0x128   : > { %1320 = vrot.lane.b32.xlu0 %v1153_v19, %s8117_s27  ;;  %v1759_v34 = vrot.slane %v1757_v27, 4  ;;  %v1762_v39 = vrot.slane %v1760_v29, 5  ;;  %v2961_v42 = vor.u32 %v2960_v24, %v2957_v23  ;;  %v8670_v4 = vrot.slane %v1749_v15, 4 }
 0x129   : > { %1318 = vrot.lane.b32.xlu2 %v1146_v13, %s8117_s27  ;;  %v1275_v35 = vpop.permute.xlu0 %1274  ;;  %v1156_v36 = vshrl.u32 %v8636_v28, 16  ;;  %v1159_v37 = vshll.u32 %v8636_v28, 16  ;;  %v2172_v47 = vor.u32 %v2171_v33, %v2168_v26  ;;  %v8702_v29 = vunpack.c.l.b16 %v1745_v2 }
 0x12a   : > { %1426 = vst.msk [vmem:[#allocation2 + $0x1c] sm:$0xf] %vm1410_vm12, %v1275_v35  ;;  %v1279_v40 = vpop.permute.xlu1 %1278  ;;  %v8645_v41 = vpop.permute.xlu2 %1540  ;;  %v1763_v58 = vor.u32 %v1762_v39, %v1759_v34  ;;  %v8665_v1 = vrot.slane %v2961_v42, 4 }
 0x12b   : > { %1628 = vst.msk [vmem:[#allocation2 + $0x1c] sm:$0xf] %vm1624_vm0, %v1535_v62  ;;  %v1431_v49 = vsel %vm8464_vm14, %v1279_v40, %v1430_v11  ;;  %v8651_v50 = vrot.slane %v1156_v36, 7  ;;  %v2908_v52 = vld [vmem:[#allocation2 + $0x20] sm:$0x1]  ;;  %v2154_v62 = vsel %vm8551_vm10, %v2149_v38, %v8577_v31 }
 0x12c   : > { %1432 = vst [vmem:[#allocation2 + $0x24] sm:$0xf] %v1431_v49  ;;  %v676_v53 = vpop.f32.mrf.mxu0  ;;  %v2974_v54 = vshll.u32 %v2908_v52, 16  ;;  %v8655_v56 = vld [vmem:[#allocation2 + $0x2c] sm:$0x1]  ;;  %v8689_v14 = vrot.slane %v1763_v58, 4  ;;  %v8700_v26 = vunpack.c.l.b16 %v2154_v62 }
 0x12d   : > { %v677_v59 = vadd.f32 %v8274_v18, %v676_v53  ;;  %v1161_v44 = vor.u32 %v1159_v37, %v8651_v50  ;;  %v2098_v63 = vld [vmem:[#allocation2 + $0x20] sm:$0x1]  ;;  %v8672_v18 = vrot.slane %v2172_v47, 4  ;;  %v8674_v5 = vld [vmem:[#allocation2 + $0x2c] sm:$0x1]  ;;  %v1163_v8 = vrot.slane %v8651_v50, 4 }
 0x12e   : > { %v8663_v0 = vld [vmem:[#allocation2 + $0x20] sm:$0x1]  ;;  %v2998_v9 = vshll.u32 %v8655_v56, 16  ;;  %v8687_v10 = vrot.slane %v2974_v54, 5  ;;  %v2185_v12 = vshll.u32 %v2098_v63, 16  ;;  %v2209_v22 = vshll.u32 %v8674_v5, 16 }
 0x12f   : > { %732 = vst.msk [vmem:[%s8287_s25 + $0xa0] sm:$0xff] %vm498_vm1, %v677_v59  ;;  %v8678_v6 = vpack.c.bf16 %v677_v59, %v677_v59  ;;  %v1162_v31 = vsel %vm8347_vm11, %v1154_v61, %v1161_v44  ;;  %v1776_v16 = vshll.u32 %v8663_v0, 16  ;;  %v1668_v23 = vld [vmem:[#allocation2 + $0x2c] sm:$0x1]  ;;  %v7869_v5 = vld [vmem:[%s11192_s5] sm:$0xff] }
 0x130   : > { %1566 = vrot.lane.b32.xlu0 %v8636_v28, %s8116_s26  ;;  %1322 = vrot.lane.b32.xlu1 %v1162_v31, %s8117_s27  ;;  %v1800_v50 = vshll.u32 %v1668_v23, 16  ;;  %v8728_v61 = vrot.slane %v2998_v9, 5  ;;  %v8730_v44 = vrot.slane %v2185_v12, 5  ;;  %v8746_v9 = vrot.slane %v2209_v22, 5 }
 0x131   : > { %v861_v17 = vrot.slane %v8678_v6, 7  ;;  %1564 = vrot.lane.b32.xlu2 %v8595_v45, %s8116_s26  ;;  %v1271_v19 = vpop.permute.xlu0 %1270  ;;  %v1165_v20 = vshrl.u32 %v8678_v6, 16  ;;  %v1168_v21 = vshll.u32 %v8678_v6, 16  ;;  %3720 = vmatpush.bf16.msrb.mxu0 %v7869_v5 }
 0x132   : > { %v1421_v24 = vsel %vm8601_vm2, %v1271_v19, %v1420_v7  ;;  %v1539_v25 = vpop.permute.xlu1 %1538  ;;  %v1291_v27 = vpop.permute.xlu2 %1290  ;;  %v2907_v13 = vld [vmem:[#allocation2 + $0x1c] sm:$0xf]  ;;  %v8754_v19 = vrot.slane %v1800_v50, 5 }
 0x133   : > { %v2097_v30 = vld [vmem:[#allocation2 + $0x1c] sm:$0xf]  ;;  %973 = vst.msk [vmem:[#allocation2 + $0x84] sm:$0xe] %vm940_vm3, %v861_v17  ;;  %v1445_v34 = vsel %vm8464_vm14, %v1291_v27, %v1444_v3  ;;  %v8709_v35 = vrot.slane %v1165_v20, 7  ;;  %v2964_v36 = vshll.u32 %v2907_v13, 16 }
 0x134   : > { %v1664_v33 = vld [vmem:[#allocation2 + $0x1c] sm:$0xf]  ;;  %v2968_v37 = vshrl.u32 %v2907_v13, 16  ;;  %1422 = vst [vmem:[#allocation2 + $0x14] sm:$0x1] %v1421_v24  ;;  %v679_v38 = vpop.f32.mrf.mxu0  ;;  %v2175_v39 = vshll.u32 %v2097_v30, 16 }
 0x135   : > { %v2179_v11 = vshrl.u32 %v2097_v30, 16  ;;  %v1766_v40 = vshll.u32 %v1664_v33, 16  ;;  %v1770_v42 = vshrl.u32 %v1664_v33, 16  ;;  %1630 = vst.msk [vmem:[#allocation2 + $0x28] sm:$0xf] %vm1624_vm0, %v1539_v25  ;;  %v680_v15 = vadd.f32 %v8715_v43, %v679_v38 }
 0x136   : > { %v1170_v47 = vor.u32 %v1168_v21, %v8709_v35  ;;  %v2966_v49 = vrot.slane %v2964_v36, 5  ;;  %1446 = vst [vmem:[#allocation2 + $0x3c] sm:$0xf] %v1445_v34  ;;  %v2970_v52 = vrot.slane %v2968_v37, 4  ;;  %v2177_v53 = vrot.slane %v2175_v39, 5 }
 0x137   : > { %v2181_v54 = vrot.slane %v2179_v11, 4  ;;  %v8719_v56 = vrot.slane %v1766_v40, 5  ;;  %733 = vst.msk [vmem:[%s8287_s25 + $0xa8] sm:$0xff] %vm498_vm1, %v680_v15  ;;  %v8723_v58 = vpack.c.bf16 %v680_v15, %v680_v15  ;;  %v8736_v2 = vrot.slane %v1770_v42, 4 }
 0x138   : > { %v2967_v59 = vsel %vm8551_vm10, %v8665_v1, %v2966_v49  ;;  %1324 = vrot.lane.b32.xlu1 %v1163_v8, %s8117_s27  ;;  %v2971_v62 = vor.u32 %v2970_v52, %v2966_v49  ;;  %v2178_v63 = vsel %vm8551_vm10, %v8672_v18, %v2177_v53  ;;  %v8744_v8 = vrot.slane %v1776_v16, 5 }
 0x139   : > { %v2182_v0 = vor.u32 %v2181_v54, %v2177_v53  ;;  %1326 = vrot.lane.b32.xlu2 %v1170_v47, %s8117_s27  ;;  %v1537_v1 = vpop.permute.xlu0 %1536  ;;  %v1173_v31 = vshrl.u32 %v8723_v58, 16  ;;  %v1176_v7 = vshll.u32 %v8723_v58, 16  ;;  %v1171_v18 = vrot.slane %v8709_v35, 4 }
 0x13a   : > { %1629 = vst.msk [vmem:[#allocation2 + $0x24] sm:$0xf] %vm1624_vm0, %v1537_v1  ;;  %v2972_v3 = vrot.slane %v2971_v62, 4  ;;  %v1769_v12 = vsel %vm8551_vm10, %v8689_v14, %v8719_v56  ;;  %v3340_v21 = vunpack.c.l.b16 %v2967_v59  ;;  %v8758_v24 = vunpack.c.l.b16 %v2178_v63 }
 0x13b   : > { %v8756_v20 = vrot.slane %v1173_v31, 7  ;;  %v2095_v16 = vld [vmem:[#allocation2 + $0x14] sm:$0x1]  ;;  %v2183_v22 = vrot.slane %v2182_v0, 4  ;;  %v1773_v33 = vor.u32 %v8736_v2, %v8719_v56  ;;  %v8767_v37 = vunpack.c.l.b16 %v1769_v12  ;;  %v1437_v56 = vld [vmem:[#allocation2 + $0x30] sm:$0xf] }
 0x13c   : > { %v1662_v23 = vld [vmem:[#allocation2 + $0x14] sm:$0x1]  ;;  %v682_v25 = vpop.f32.mrf.mxu0  ;;  %v2977_v27 = vsel %vm8551_vm10, %v2972_v3, %v8687_v10  ;;  %v2161_v13 = vshll.u32 %v2095_v16, 16  ;;  %v2910_v14 = vld [vmem:[#allocation2 + $0x28] sm:$0xf] }
 0x13d   : > { %v1752_v30 = vshll.u32 %v1662_v23, 16  ;;  %v683_v34 = vadd.f32 %v8715_v43, %v682_v25  ;;  %v1178_v35 = vor.u32 %v1176_v7, %v8756_v20  ;;  %v3341_v36 = vunpack.c.l.b16 %v2977_v27  ;;  %v2100_v31 = vld [vmem:[#allocation2 + $0x28] sm:$0xf]  ;;  %v8797_v7 = vpop.permute.xlu2 %1546 }
 0x13e   : > { %v2163_v38 = vrot.slane %v2161_v13, 5  ;;  %v2988_v11 = vshll.u32 %v2910_v14, 16  ;;  %v2992_v40 = vshrl.u32 %v2910_v14, 16  ;;  %v2188_v47 = vsel %vm8551_vm10, %v2183_v22, %v8730_v44 }
 0x13f   : > { %v1754_v39 = vrot.slane %v1752_v30, 5  ;;  %734 = vst.msk [vmem:[%s8287_s25 + $0xb0] sm:$0xff] %vm498_vm1, %v683_v34  ;;  %v8771_v10 = vpack.c.bf16 %v683_v34, %v683_v34  ;;  %v1179_v42 = vsel %vm8347_vm11, %v1171_v18, %v1178_v35  ;;  %v3372_v15 = vpack.c.b16 %v3341_v36, %v3340_v21 }
 0x140   : > { %1328 = vrot.lane.b32.xlu0 %v1179_v42, %s8117_s27  ;;  %1568 = vrot.lane.b32.xlu1 %v8678_v6, %s8116_s26  ;;  %v2164_v49 = vsel %vm8551_vm10, %v8653_v55, %v2163_v38  ;;  %v8787_v52 = vrot.slane %v2988_v11, 5  ;;  %v2994_v53 = vrot.slane %v2992_v40, 4  ;;  %v1180_v22 = vrot.slane %v8756_v20, 4 }
 0x141   : > { %v1755_v50 = vsel %vm8551_vm10, %v8670_v4, %v1754_v39  ;;  %v866_v54 = vrot.slane %v8771_v10, 7  ;;  %7681 = vmatmul.msk.bf16.vlgmr.msra.gmra.mxu3 %vm2575_vm4, %v3372_v15  ;;  %1570 = vrot.lane.b32.xlu2 %v8723_v58, %s8116_s26  ;;  %v1285_v59 = vpop.permute.xlu0 %1284  ;;  %v2528_v44 = vunpack.c.l.b16 %v2164_v49  ;;  %v1182_v55 = vshrl.u32 %v8771_v10, 16  ;;  %v2909_v63 = vld [vmem:[#allocation2 + $0x24] sm:$0xf] }
 0x142   : > { %v2720_v62 = vunpack.c.l.b16 %v1755_v50  ;;  %v1438_v4 = vsel %vm8464_vm14, %v1285_v59, %v1437_v56  ;;  %v1287_v0 = vpop.permute.xlu1 %1286  ;;  %v1185_v2 = vshll.u32 %v8771_v10, 16  ;;  %v2979_v5 = vshrl.u32 %v2909_v63, 16  ;;  %v2099_v16 = vld [vmem:[#allocation2 + $0x24] sm:$0xf] }
 0x143   : > { %v2982_v1 = vshll.u32 %v2909_v63, 16  ;;  %976 = vst.msk [vmem:[#allocation2 + $0x90] sm:$0xe] %vm940_vm3, %v866_v54  ;;  %v2559_v18 = vpack.c.b16 %v2528_v44, %v8700_v26  ;;  %v8804_v12 = vrot.slane %v1182_v55, 7  ;;  %v2995_v21 = vor.u32 %v2994_v53, %v8787_v52  ;;  %v1666_v11 = vld [vmem:[#allocation2 + $0x24] sm:$0xf] }
 0x144   : > { %v2750_v3 = vpack.c.b16 %v2720_v62, %v8702_v29  ;;  %1439 = vst [vmem:[#allocation2 + $0x30] sm:$0xf] %v1438_v4  ;;  %v685_v23 = vpop.f32.mrf.mxu0  ;;  %v2981_v25 = vrot.slane %v2979_v5, 4  ;;  %v1774_v13 = vrot.slane %v1773_v33, 4  ;;  %v8814_v14 = vunpack.c.l.b16 %v2188_v47 }
 0x145   : > { %v2984_v27 = vrot.slane %v2982_v1, 5  ;;  %1631 = vst.msk [vmem:[#allocation2 + $0x30] sm:$0xf] %vm1624_vm0, %v8645_v41  ;;  %v686_v26 = vadd.f32 %v8715_v43, %v685_v23  ;;  %7648 = vmatmul.msk.bf16.vlgmr.msra.gmra.mxu1 %vm2575_vm4, %v2559_v18  ;;  %v1187_v29 = vor.u32 %v1185_v2, %v8804_v12  ;;  %v2996_v30 = vrot.slane %v2995_v21, 4 }
 0x146   : > { %7665 = vmatmul.msk.bf16.gmra.mxu2 %vm2575_vm4, %v2750_v3  ;;  %1440 = vst.msk [vmem:[#allocation2 + $0x34] sm:$0xf] %vm1410_vm12, %v1287_v0  ;;  %v1779_v33 = vsel %vm8551_vm10, %v1774_v13, %v8744_v8  ;;  %v2190_v34 = vshrl.u32 %v2099_v16, 16  ;;  %v2193_v41 = vshll.u32 %v2099_v16, 16  ;;  %v1188_v36 = vrot.slane %v8804_v12, 4 }
 0x147   : > { %v2985_v20 = vor.u32 %v2984_v27, %v2981_v25  ;;  %735 = vst.msk [vmem:[%s8287_s25 + $0xb8] sm:$0xff] %vm498_vm1, %v686_v26  ;;  %v8822_v35 = vpack.c.bf16 %v686_v26, %v686_v26  ;;  %v3001_v38 = vsel %vm8551_vm10, %v2996_v30, %v8728_v61  ;;  %v2199_v39 = vshll.u32 %v2100_v31, 16  ;;  %v1441_v61 = vld [vmem:[#allocation2 + $0x38] sm:$0x1] }
 0x148   : > { %1330 = vrot.lane.b32.xlu0 %v1180_v22, %s8117_s27  ;;  %1332 = vrot.lane.b32.xlu1 %v1187_v29, %s8117_s27  ;;  %v8830_v8 = vunpack.c.l.b16 %v1779_v33  ;;  %v2192_v42 = vrot.slane %v2190_v34, 4  ;;  %v2195_v15 = vrot.slane %v2193_v41, 5  ;;  %v3343_v53 = vunpack.c.l.b16 %v3001_v38  ;;  %v8850_v29 = vld [vmem:[#allocation2 + $0x28] sm:$0xf] }
 0x149   : > { %v2986_v40 = vrot.slane %v2985_v20, 4  ;;  %v1543_v47 = vpop.permute.xlu0 %1542  ;;  %v1190_v49 = vshrl.u32 %v8822_v35, 16  ;;  %v1193_v50 = vshll.u32 %v8822_v35, 16  ;;  %v2201_v56 = vrot.slane %v2199_v39, 5 }
 0x14a   : > { %1632 = vst.msk [vmem:[#allocation2 + $0x34] sm:$0xf] %vm1624_vm0, %v1543_v47  ;;  %v1289_v59 = vpop.permute.xlu1 %1288  ;;  %v2196_v62 = vor.u32 %v2195_v15, %v2192_v42  ;;  %v2203_v55 = vshrl.u32 %v2100_v31, 16  ;;  %v1781_v63 = vshrl.u32 %v1666_v11, 16  ;;  %v1784_v1 = vshll.u32 %v1666_v11, 16 }
 0x14b   : > { %v2991_v44 = vsel %vm8551_vm10, %v2986_v40, %v8787_v52  ;;  %v1442_v4 = vsel %vm8601_vm2, %v1289_v59, %v1441_v61  ;;  %v1299_v0 = vpop.permute.xlu2 %1298  ;;  %v8840_v2 = vrot.slane %v1190_v49, 7  ;;  %v2560_v3 = vpack.c.b16 %v8814_v14, %v8758_v24  ;;  %v1455_v15 = vld [vmem:[#allocation2 + $0x50] sm:$0x1] }
 0x14c   : > { %v3342_v5 = vunpack.c.l.b16 %v2991_v44  ;;  %1443 = vst [vmem:[#allocation2 + $0x38] sm:$0x1] %v1442_v4  ;;  %v688_v18 = vpop.f32.mrf.mxu0  ;;  %v2912_v12 = vld [vmem:[#allocation2 + $0x30] sm:$0xf]  ;;  %v2197_v21 = vrot.slane %v2196_v62, 4  ;;  %v2205_v52 = vrot.slane %v2203_v55, 4  ;;  %v2751_v22 = vpack.c.b16 %v8830_v8, %v8767_v37 }
 0x14d   : > { %1454 = vst.msk [vmem:[#allocation2 + $0x4c] sm:$0xf] %vm1410_vm12, %v1299_v0  ;;  %v689_v31 = vadd.f32 %v8715_v43, %v688_v18  ;;  %v1195_v16 = vor.u32 %v1193_v50, %v8840_v2  ;;  %v1197_v25 = vrot.slane %v8840_v2, 4  ;;  %v3003_v27 = vshrl.u32 %v2912_v12, 16 }
 0x14e   : > { %v3373_v23 = vpack.c.b16 %v3343_v53, %v3342_v5  ;;  %v3006_v13 = vshll.u32 %v2912_v12, 16  ;;  %v2206_v26 = vor.u32 %v2205_v52, %v2201_v56  ;;  %v2202_v14 = vsel %vm8551_vm10, %v2197_v21, %v2201_v56  ;;  %v2102_v52 = vld [vmem:[#allocation2 + $0x30] sm:$0xf] }
 0x14f   : > { %736 = vst.msk [vmem:[%s8287_s25 + $0xc0] sm:$0xff] %vm498_vm1, %v689_v31  ;;  %v8854_v24 = vpack.c.bf16 %v689_v31, %v689_v31  ;;  %v1196_v30 = vsel %vm8347_vm11, %v1188_v36, %v1195_v16  ;;  %v1783_v20 = vrot.slane %v1781_v63, 4  ;;  %v3005_v37 = vrot.slane %v3003_v27, 4 }
 0x150   : > { %1572 = vrot.lane.b32.xlu0 %v8771_v10, %s8116_s26  ;;  %1574 = vrot.lane.b32.xlu1 %v8822_v35, %s8116_s26  ;;  %v3008_v33 = vrot.slane %v3006_v13, 5  ;;  %v2207_v34 = vrot.slane %v2206_v26, 4  ;;  %v1786_v41 = vrot.slane %v1784_v1, 5  ;;  %v1790_v40 = vshll.u32 %v8850_v29, 16 }
 0x151   : > { %v871_v38 = vrot.slane %v8854_v24, 7  ;;  %1334 = vrot.lane.b32.xlu2 %v1196_v30, %s8117_s27  ;;  %7682 = vmatmul.msk.bf16.gmra.mxu3 %vm2575_vm4, %v3373_v23  ;;  %v1199_v36 = vshrl.u32 %v8854_v24, 16  ;;  %v1202_v39 = vshll.u32 %v8854_v24, 16  ;;  %v2913_v11 = vld [vmem:[#allocation2 + $0x34] sm:$0xf]  ;;  %v8878_v44 = vunpack.c.l.b16 %v2202_v14 }
 0x152   : > { %v1293_v8 = vpop.permute.xlu0 %1292  ;;  %v1545_v42 = vpop.permute.xlu1 %1544  ;;  %v3009_v47 = vor.u32 %v3008_v33, %v3005_v37  ;;  %v3012_v49 = vshll.u32 %v2913_v11, 16  ;;  %v3016_v50 = vshrl.u32 %v2913_v11, 16  ;;  %v2212_v53 = vsel %vm8551_vm10, %v2207_v34, %v8746_v9  ;;  %v8898_v26 = vld [vmem:[#allocation2 + $0x34] sm:$0xf]  ;;  %v1448_v33 = vld [vmem:[#allocation2 + $0x44] sm:$0x1] }
 0x153   : > { %979 = vst.msk [vmem:[#allocation2 + $0x9c] sm:$0xe] %vm940_vm3, %v871_v38  ;;  %v1301_v56 = vpop.permute.xlu2 %1300  ;;  %v8876_v61 = vrot.slane %v1199_v36, 7  ;;  %v2914_v59 = vld [vmem:[#allocation2 + $0x38] sm:$0x1]  ;;  %v8880_v62 = vunpack.c.l.b16 %v2212_v53  ;;  %v1787_v55 = vor.u32 %v1786_v41, %v1783_v20  ;;  %v1792_v21 = vrot.slane %v1790_v40, 5 }
 0x154   : > { %1447 = vst.msk [vmem:[#allocation2 + $0x40] sm:$0xf] %vm1410_vm12, %v1293_v8  ;;  %v1456_v63 = vsel %vm8601_vm2, %v1301_v56, %v1455_v15  ;;  %v691_v4 = vpop.f32.mrf.mxu0  ;;  %v3010_v9 = vrot.slane %v3009_v47, 4  ;;  %v3014_v0 = vrot.slane %v3012_v49, 5  ;;  %v3018_v5 = vrot.slane %v3016_v50, 4 }
 0x155   : > { %1634 = vst.msk [vmem:[#allocation2 + $0x40] sm:$0xf] %vm1624_vm0, %v8797_v7  ;;  %v692_v1 = vadd.f32 %v8715_v43, %v691_v4  ;;  %7649 = vmatmul.msk.bf16.gmra.mxu1 %vm2575_vm4, %v2560_v3  ;;  %v1204_v18 = vor.u32 %v1202_v39, %v8876_v61  ;;  %v3022_v12 = vshll.u32 %v2914_v59, 16  ;;  %v1205_v31 = vrot.slane %v8876_v61, 4  ;;  %v1451_v11 = vld [vmem:[#allocation2 + $0x48] sm:$0xf] }
 0x156   : > { %7666 = vmatmul.msk.bf16.gmra.mxu2 %vm2575_vm4, %v2751_v22  ;;  %1633 = vst.msk [vmem:[#allocation2 + $0x3c] sm:$0xf] %vm1624_vm0, %v1545_v42  ;;  %v3015_v16 = vsel %vm8551_vm10, %v3010_v9, %v3014_v0  ;;  %v3019_v7 = vor.u32 %v3018_v5, %v3014_v0  ;;  %v1788_v23 = vrot.slane %v1787_v55, 4  ;;  %v1794_v13 = vshrl.u32 %v8850_v29, 16 }
 0x157   : > { %1457 = vst [vmem:[#allocation2 + $0x50] sm:$0x1] %v1456_v63  ;;  %v8895_v27 = vpack.c.bf16 %v692_v1, %v692_v1  ;;  %v3024_v3 = vrot.slane %v3022_v12, 5  ;;  %v3344_v22 = vunpack.c.l.b16 %v3015_v16  ;;  %v2214_v20 = vshrl.u32 %v2102_v52, 16 }
 0x158   : > { %737 = vst.msk [vmem:[%s8287_s25 + $0xc8] sm:$0xff] %vm498_vm1, %v692_v1  ;;  %1338 = vrot.lane.b32.xlu0 %v1204_v18, %s8117_s27  ;;  %v3020_v30 = vrot.slane %v3019_v7, 4  ;;  %v1793_v14 = vsel %vm8551_vm10, %v1788_v23, %v1792_v21  ;;  %v2217_v37 = vshll.u32 %v2102_v52, 16  ;;  %v1796_v41 = vrot.slane %v1794_v13, 4 }
 0x159   : > { %1336 = vrot.lane.b32.xlu2 %v1197_v25, %s8117_s27  ;;  %v1207_v34 = vshrl.u32 %v8895_v27, 16  ;;  %v1210_v29 = vshll.u32 %v8895_v27, 16  ;;  %v8910_v36 = vunpack.c.l.b16 %v1793_v14  ;;  %v2216_v42 = vrot.slane %v2214_v20, 4  ;;  %v2104_v20 = vld [vmem:[#allocation2 + $0x38] sm:$0x1] }
 0x15a   : > { %v1295_v39 = vpop.permute.xlu0 %1294  ;;  %v1297_v40 = vpop.permute.xlu1 %1296  ;;  %v3025_v8 = vsel %vm8551_vm10, %v3020_v30, %v3024_v3  ;;  %v2219_v15 = vrot.slane %v2217_v37, 5  ;;  %v2223_v47 = vshll.u32 %v8898_v26, 16  ;;  %v1797_v61 = vor.u32 %v1796_v41, %v1792_v21 }
 0x15b   : > { %v1449_v2 = vsel %vm8601_vm2, %v1295_v39, %v1448_v33  ;;  %v1452_v25 = vsel %vm8464_vm14, %v1297_v40, %v1451_v11  ;;  %v8919_v49 = vpop.permute.xlu2 %1552  ;;  %v8921_v50 = vrot.slane %v1207_v34, 7  ;;  %v3345_v53 = vunpack.c.l.b16 %v3025_v8 }
 0x15c   : > { %1450 = vst [vmem:[#allocation2 + $0x44] sm:$0x1] %v1449_v2  ;;  %v694_v56 = vpop.f32.mrf.mxu0  ;;  %v2916_v59 = vld [vmem:[#allocation2 + $0x40] sm:$0xf]  ;;  %v2220_v55 = vor.u32 %v2219_v15, %v2216_v42  ;;  %v8923_v63 = vrot.slane %v2223_v47, 5  ;;  %v2227_v4 = vshrl.u32 %v8898_v26, 16  ;;  %v2561_v15 = vpack.c.b16 %v8880_v62, %v8878_v44 }
 0x15d   : > { %1453 = vst [vmem:[#allocation2 + $0x48] sm:$0xf] %v1452_v25  ;;  %v695_v9 = vadd.f32 %v8715_v43, %v694_v56  ;;  %v1212_v0 = vor.u32 %v1210_v29, %v8921_v50  ;;  %v3374_v5 = vpack.c.b16 %v3345_v53, %v3344_v22  ;;  %v1214_v1 = vrot.slane %v8921_v50, 4  ;;  %v2915_v18 = vld [vmem:[#allocation2 + $0x3c] sm:$0xf] }
 0x15e   : > { %v1798_v12 = vrot.slane %v1797_v61, 4  ;;  %v3027_v52 = vshrl.u32 %v2915_v18, 16  ;;  %v3030_v16 = vshll.u32 %v2915_v18, 16  ;;  %v3036_v7 = vshll.u32 %v2916_v59, 16 }
 0x15f   : > { %738 = vst.msk [vmem:[%s8287_s25 + $0xd0] sm:$0xff] %vm498_vm1, %v695_v9  ;;  %v8931_v21 = vpack.c.bf16 %v695_v9, %v695_v9  ;;  %v1213_v23 = vsel %vm8347_vm11, %v1205_v31, %v1212_v0  ;;  %v3040_v3 = vshrl.u32 %v2916_v59, 16  ;;  %v2221_v13 = vrot.slane %v2220_v55, 4  ;;  %v1670_v0 = vld [vmem:[#allocation2 + $0x34] sm:$0xf] }
 0x160   : > { %1578 = vrot.lane.b32.xlu0 %v8895_v27, %s8116_s26  ;;  %1340 = vrot.lane.b32.xlu1 %v1213_v23, %s8117_s27  ;;  %v1803_v22 = vsel %vm8551_vm10, %v1798_v12, %v8754_v19  ;;  %v3029_v26 = vrot.slane %v3027_v52, 4  ;;  %v3032_v30 = vrot.slane %v3030_v16, 5  ;;  %v8941_v14 = vrot.slane %v3036_v7, 5  ;;  %v1465_v19 = vld [vmem:[#allocation2 + $0x60] sm:$0xf] }
 0x161   : > { %v876_v37 = vrot.slane %v8931_v21, 7  ;;  %1576 = vrot.lane.b32.xlu2 %v8854_v24, %s8116_s26  ;;  %7683 = vmatmul.msk.bf16.gmra.mxu3 %vm2575_vm4, %v3374_v5  ;;  %v2724_v31 = vunpack.c.l.b16 %v1803_v22  ;;  %v1216_v33 = vshrl.u32 %v8931_v21, 16  ;;  %v1219_v34 = vshll.u32 %v8931_v21, 16 }
 0x162   : > { %v1549_v29 = vpop.permute.xlu0 %1548  ;;  %v1551_v41 = vpop.permute.xlu1 %1550  ;;  %v3033_v39 = vor.u32 %v3032_v30, %v3029_v26  ;;  %v3042_v11 = vrot.slane %v3040_v3, 4  ;;  %v2226_v40 = vsel %vm8551_vm10, %v2221_v13, %v8923_v63  ;;  %v2229_v8 = vrot.slane %v2227_v4, 4  ;;  %v1669_v4 = vld [vmem:[#allocation2 + $0x30] sm:$0xf] }
 0x163   : > { %982 = vst.msk [vmem:[#allocation2 + $0xa8] sm:$0xe] %vm940_vm3, %v876_v37  ;;  %v1309_v42 = vpop.permute.xlu2 %1308  ;;  %v2752_v47 = vpack.c.b16 %v2724_v31, %v8910_v36  ;;  %v8958_v2 = vrot.slane %v1216_v33, 7  ;;  %v2917_v25 = vld [vmem:[#allocation2 + $0x44] sm:$0x1]  ;;  %v2233_v50 = vshll.u32 %v2104_v20, 16  ;;  %v8970_v9 = vunpack.c.l.b16 %v2226_v40 }
 0x164   : > { %1635 = vst.msk [vmem:[#allocation2 + $0x48] sm:$0xf] %vm1624_vm0, %v1549_v29  ;;  %v1466_v53 = vsel %vm8464_vm14, %v1309_v42, %v1465_v19  ;;  %v697_v56 = vpop.f32.mrf.mxu0  ;;  %v3034_v61 = vrot.slane %v3033_v39, 4  ;;  %v3043_v59 = vor.u32 %v3042_v11, %v8941_v14  ;;  %v3046_v55 = vshll.u32 %v2917_v25, 16  ;;  %v1671_v33 = vld [vmem:[#allocation2 + $0x38] sm:$0x1] }
 0x165   : > { %1636 = vst.msk [vmem:[#allocation2 + $0x4c] sm:$0xf] %vm1624_vm0, %v1551_v41  ;;  %v698_v44 = vadd.f32 %v8715_v43, %v697_v56  ;;  %7650 = vmatmul.msk.bf16.gmra.mxu1 %vm2575_vm4, %v2561_v15  ;;  %v1221_v62 = vor.u32 %v1219_v34, %v8958_v2  ;;  %v1222_v36 = vrot.slane %v8958_v2, 4  ;;  %v2230_v12 = vor.u32 %v2229_v8, %v8923_v63 }
 0x166   : > { %7667 = vmatmul.msk.bf16.gmra.mxu2 %vm2575_vm4, %v2752_v47  ;;  %1467 = vst [vmem:[#allocation2 + $0x60] sm:$0xf] %v1466_v53  ;;  %v3044_v5 = vrot.slane %v3043_v59, 4  ;;  %v3048_v18 = vrot.slane %v3046_v55, 5  ;;  %v2235_v52 = vrot.slane %v2233_v50, 5  ;;  %v3039_v7 = vsel %vm8551_vm10, %v3034_v61, %v8941_v14 }
 0x167   : > { %739 = vst.msk [vmem:[%s8287_s25 + $0xd8] sm:$0xff] %vm498_vm1, %v698_v44  ;;  %v8975_v16 = vpack.c.bf16 %v698_v44, %v698_v44  ;;  %v1805_v23 = vshrl.u32 %v1669_v4, 16  ;;  %v1808_v3 = vshll.u32 %v1669_v4, 16  ;;  %v2231_v22 = vrot.slane %v2230_v12, 4  ;;  %v1458_v14 = vld [vmem:[#allocation2 + $0x54] sm:$0xf] }
 0x168   : > { %1342 = vrot.lane.b32.xlu1 %v1214_v1, %s8117_s27  ;;  %v3049_v13 = vsel %vm8551_vm10, %v3044_v5, %v3048_v18  ;;  %v1814_v26 = vshll.u32 %v1670_v0, 16  ;;  %v1818_v30 = vshrl.u32 %v1670_v0, 16  ;;  %v3346_v8 = vunpack.c.l.b16 %v3039_v7  ;;  %v2920_v44 = vld [vmem:[#allocation2 + $0x50] sm:$0x1] }
 0x169   : > { %1344 = vrot.lane.b32.xlu2 %v1221_v62, %s8117_s27  ;;  %v1224_v63 = vshrl.u32 %v8975_v16, 16  ;;  %v1227_v20 = vshll.u32 %v8975_v16, 16  ;;  %v3347_v31 = vunpack.c.l.b16 %v3049_v13  ;;  %v1807_v34 = vrot.slane %v1805_v23, 4 }
 0x16a   : > { %v1303_v29 = vpop.permute.xlu0 %1302  ;;  %v2236_v1 = vsel %vm8551_vm10, %v2231_v22, %v2235_v52  ;;  %v1810_v41 = vrot.slane %v1808_v3, 5  ;;  %v1816_v19 = vrot.slane %v1814_v26, 5  ;;  %v1820_v39 = vrot.slane %v1818_v30, 4  ;;  %v2105_v22 = vld [vmem:[#allocation2 + $0x3c] sm:$0xf] }
 0x16b   : > { %v1459_v11 = vsel %vm8464_vm14, %v1303_v29, %v1458_v14  ;;  %v8990_v40 = vrot.slane %v1224_v63, 7  ;;  %v2534_v42 = vunpack.c.l.b16 %v2236_v1  ;;  %v2918_v15 = vld [vmem:[#allocation2 + $0x48] sm:$0xf]  ;;  %v1824_v50 = vshll.u32 %v1671_v33, 16 }
 0x16c   : > { %1460 = vst [vmem:[#allocation2 + $0x54] sm:$0xf] %v1459_v11  ;;  %v700_v47 = vpop.f32.mrf.mxu0  ;;  %v1811_v2 = vor.u32 %v1810_v41, %v1807_v34  ;;  %v1821_v25 = vor.u32 %v1820_v39, %v1816_v19  ;;  %v2919_v53 = vld [vmem:[#allocation2 + $0x4c] sm:$0xf]  ;;  %v3051_v56 = vshrl.u32 %v2918_v15, 16  ;;  %v3375_v55 = vpack.c.b16 %v3347_v31, %v3346_v8 }
 0x16d   : > { %1637 = vst.msk [vmem:[#allocation2 + $0x54] sm:$0xf] %vm1624_vm0, %v8919_v49  ;;  %v701_v61 = vadd.f32 %v8715_v43, %v700_v47  ;;  %v1229_v59 = vor.u32 %v1227_v20, %v8990_v40  ;;  %v2562_v4 = vpack.c.b16 %v2534_v42, %v8970_v9  ;;  %v1826_v5 = vrot.slane %v1824_v50, 5  ;;  %v2106_v20 = vld [vmem:[#allocation2 + $0x40] sm:$0xf] }
 0x16e   : > { %v1812_v62 = vrot.slane %v1811_v2, 4  ;;  %v1822_v0 = vrot.slane %v1821_v25, 4  ;;  %v3053_v18 = vrot.slane %v3051_v56, 4  ;;  %v3054_v49 = vshll.u32 %v2918_v15, 16  ;;  %v1672_v41 = vld [vmem:[#allocation2 + $0x3c] sm:$0xf] }
 0x16f   : > { %740 = vst.msk [vmem:[%s8287_s25 + $0xe0] sm:$0xff] %vm498_vm1, %v701_v61  ;;  %v8999_v12 = vpack.c.bf16 %v701_v61, %v701_v61  ;;  %v1230_v52 = vsel %vm8347_vm11, %v1222_v36, %v1229_v59  ;;  %v3060_v7 = vshll.u32 %v2919_v53, 16  ;;  %v3064_v3 = vshrl.u32 %v2919_v53, 16  ;;  %v2107_v25 = vld [vmem:[#allocation2 + $0x44] sm:$0x1] }
 0x170   : > { %1346 = vrot.lane.b32.xlu0 %v1230_v52, %s8117_s27  ;;  %1580 = vrot.lane.b32.xlu1 %v8931_v21, %s8116_s26  ;;  %v1817_v9 = vsel %vm8551_vm10, %v1812_v62, %v1816_v19  ;;  %v1827_v23 = vsel %vm8551_vm10, %v1822_v0, %v1826_v5  ;;  %v3070_v13 = vshll.u32 %v2920_v44, 16  ;;  %v3056_v14 = vrot.slane %v3054_v49, 5  ;;  %v9016_v19 = vpop.permute.xlu2 %1558 }
 0x171   : > { %v881_v26 = vrot.slane %v8999_v12, 7  ;;  %1582 = vrot.lane.b32.xlu2 %v8975_v16, %s8116_s26  ;;  %7684 = vmatmul.msk.bf16.gmra.mxu3 %vm2575_vm4, %v3375_v55  ;;  %v2725_v36 = vunpack.c.l.b16 %v1817_v9  ;;  %v2726_v30 = vunpack.c.l.b16 %v1827_v23  ;;  %v1233_v63 = vshrl.u32 %v8999_v12, 16 }
 0x172   : > { %v1555_v31 = vpop.permute.xlu0 %1554  ;;  %v1305_v33 = vpop.permute.xlu1 %1304  ;;  %v1236_v34 = vshll.u32 %v8999_v12, 16  ;;  %v3062_v29 = vrot.slane %v3060_v7, 5  ;;  %v3066_v1 = vrot.slane %v3064_v3, 4  ;;  %v1231_v11 = vrot.slane %v8990_v40, 4 }
 0x173   : > { %985 = vst.msk [vmem:[#allocation2 + $0xb4] sm:$0xe] %vm940_vm3, %v881_v26  ;;  %v2753_v39 = vpack.c.b16 %v2726_v30, %v2725_v36  ;;  %v9022_v8 = vrot.slane %v1233_v63, 7  ;;  %v2238_v42 = vshrl.u32 %v2105_v22, 16  ;;  %v3057_v47 = vor.u32 %v3056_v14, %v3053_v18  ;;  %v1673_v30 = vld [vmem:[#allocation2 + $0x40] sm:$0xf] }
 0x174   : > { %1461 = vst.msk [vmem:[#allocation2 + $0x58] sm:$0xf] %vm1410_vm12, %v1305_v33  ;;  %v703_v15 = vpop.f32.mrf.mxu0  ;;  %v3067_v2 = vor.u32 %v3066_v1, %v3062_v29  ;;  %v2241_v50 = vshll.u32 %v2105_v22, 16  ;;  %v2247_v53 = vshll.u32 %v2106_v20, 16  ;;  %v3072_v61 = vrot.slane %v3070_v13, 5 }
 0x175   : > { %1638 = vst.msk [vmem:[#allocation2 + $0x58] sm:$0xf] %vm1624_vm0, %v1555_v31  ;;  %v704_v56 = vadd.f32 %v8715_v43, %v703_v15  ;;  %7651 = vmatmul.msk.bf16.gmra.mxu1 %vm2575_vm4, %v2562_v4  ;;  %v1238_v40 = vor.u32 %v1236_v34, %v9022_v8  ;;  %v2240_v59 = vrot.slane %v2238_v42, 4  ;;  %v3058_v55 = vrot.slane %v3057_v47, 4  ;;  %v1462_v63 = vld [vmem:[#allocation2 + $0x5c] sm:$0x1] }
 0x176   : > { %7668 = vmatmul.msk.bf16.gmra.mxu2 %vm2575_vm4, %v2753_v39  ;;  %v3068_v44 = vrot.slane %v3067_v2, 4  ;;  %v2243_v62 = vrot.slane %v2241_v50, 5  ;;  %v2249_v0 = vrot.slane %v2247_v53, 5  ;;  %v2251_v18 = vshrl.u32 %v2106_v20, 16 }
 0x177   : > { %741 = vst.msk [vmem:[%s8287_s25 + $0xe8] sm:$0xff] %vm498_vm1, %v704_v56  ;;  %v9032_v5 = vpack.c.bf16 %v704_v56, %v704_v56  ;;  %v2257_v52 = vshll.u32 %v2107_v25, 16  ;;  %v1829_v49 = vshrl.u32 %v1672_v41, 16  ;;  %v3063_v4 = vsel %vm8551_vm10, %v3058_v55, %v3062_v29 }
 0x178   : > { %1348 = vrot.lane.b32.xlu0 %v1231_v11, %s8117_s27  ;;  %1350 = vrot.lane.b32.xlu1 %v1238_v40, %s8117_s27  ;;  %v3073_v7 = vsel %vm8551_vm10, %v3068_v44, %v3072_v61  ;;  %v2244_v9 = vor.u32 %v2243_v62, %v2240_v59  ;;  %v1832_v23 = vshll.u32 %v1672_v41, 16  ;;  %v3348_v22 = vunpack.c.l.b16 %v3063_v4  ;;  %v1674_v11 = vld [vmem:[#allocation2 + $0x44] sm:$0x1]  ;;  %v2921_v61 = vld [vmem:[#allocation2 + $0x54] sm:$0xf] }
 0x179   : > { %v1241_v3 = vshrl.u32 %v9032_v5, 16  ;;  %v1244_v13 = vshll.u32 %v9032_v5, 16  ;;  %v3349_v36 = vunpack.c.l.b16 %v3073_v7  ;;  %v1239_v31 = vrot.slane %v9022_v8, 4 }
 0x17a   : > { %v1307_v20 = vpop.permute.xlu1 %1306  ;;  %v2245_v33 = vrot.slane %v2244_v9, 4  ;;  %v2253_v34 = vrot.slane %v2251_v18, 4  ;;  %v1831_v14 = vrot.slane %v1829_v49, 4  ;;  %v2259_v41 = vrot.slane %v2257_v52, 5 }
 0x17b   : > { %v1463_v29 = vsel %vm8601_vm2, %v1307_v20, %v1462_v63  ;;  %v1317_v1 = vpop.permute.xlu2 %1316  ;;  %v9045_v39 = vrot.slane %v1241_v3, 7  ;;  %v1834_v42 = vrot.slane %v1832_v23, 5  ;;  %v1838_v8 = vshll.u32 %v1673_v30, 16 }
 0x17c   : > { %1464 = vst [vmem:[#allocation2 + $0x5c] sm:$0x1] %v1463_v29  ;;  %v706_v15 = vpop.f32.mrf.mxu0  ;;  %v2250_v47 = vsel %vm8551_vm10, %v2245_v33, %v2249_v0  ;;  %v2254_v2 = vor.u32 %v2253_v34, %v2249_v0  ;;  %v1842_v25 = vshrl.u32 %v1673_v30, 16  ;;  %v3376_v56 = vpack.c.b16 %v3349_v36, %v3348_v22  ;;  %v2922_v30 = vld [vmem:[#allocation2 + $0x58] sm:$0xf] }
 0x17d   : > { %1475 = vst.msk [vmem:[#allocation2 + $0x70] sm:$0xf] %vm1410_vm12, %v1317_v1  ;;  %v707_v50 = vadd.f32 %v8715_v43, %v706_v15  ;;  %v1246_v53 = vor.u32 %v1244_v13, %v9045_v39  ;;  %v1835_v40 = vor.u32 %v1834_v42, %v1831_v14  ;;  %v1840_v55 = vrot.slane %v1838_v8, 5 }
 0x17e   : > { %v2255_v59 = vrot.slane %v2254_v2, 4  ;;  %v1844_v44 = vrot.slane %v1842_v25, 4  ;;  %v1848_v62 = vshll.u32 %v1674_v11, 16  ;;  %v2535_v52 = vunpack.c.l.b16 %v2250_v47 }
 0x17f   : > { %742 = vst.msk [vmem:[%s8287_s25 + $0xf0] sm:$0xff] %vm498_vm1, %v707_v50  ;;  %v9054_v18 = vpack.c.bf16 %v707_v50, %v707_v50  ;;  %v1247_v0 = vsel %vm8347_vm11, %v1239_v31, %v1246_v53  ;;  %v1836_v49 = vrot.slane %v1835_v40, 4  ;;  %v3075_v23 = vshrl.u32 %v2921_v61, 16  ;;  %v1476_v31 = vld [vmem:[#allocation2 + $0x74] sm:$0x1] }
 0x180   : > { %1584 = vrot.lane.b32.xlu0 %v8999_v12, %s8116_s26  ;;  %1586 = vrot.lane.b32.xlu1 %v9032_v5, %s8116_s26  ;;  %v2260_v4 = vsel %vm8551_vm10, %v2255_v59, %v2259_v41  ;;  %v1845_v7 = vor.u32 %v1844_v44, %v1840_v55  ;;  %v1850_v9 = vrot.slane %v1848_v62, 5  ;;  %v1248_v14 = vrot.slane %v9045_v39, 4  ;;  %v2108_v53 = vld [vmem:[#allocation2 + $0x48] sm:$0xf] }
 0x181   : > { %v886_v3 = vrot.slane %v9054_v18, 7  ;;  %1352 = vrot.lane.b32.xlu2 %v1247_v0, %s8117_s27  ;;  %7685 = vmatmul.msk.bf16.gmra.mxu3 %vm2575_vm4, %v3376_v56  ;;  %v2536_v13 = vunpack.c.l.b16 %v2260_v4  ;;  %v1841_v22 = vsel %vm8551_vm10, %v1836_v49, %v1840_v55  ;;  %v1250_v36 = vshrl.u32 %v9054_v18, 16  ;;  %v2109_v55 = vld [vmem:[#allocation2 + $0x4c] sm:$0xf] }
 0x182   : > { %v1311_v63 = vpop.permute.xlu0 %1310  ;;  %v1557_v20 = vpop.permute.xlu1 %1556  ;;  %v1846_v33 = vrot.slane %v1845_v7, 4  ;;  %v1253_v34 = vshll.u32 %v9054_v18, 16  ;;  %v3077_v29 = vrot.slane %v3075_v23, 4  ;;  %v2727_v11 = vunpack.c.l.b16 %v1841_v22  ;;  %v1472_v7 = vld [vmem:[#allocation2 + $0x6c] sm:$0xf] }
 0x183   : > { %988 = vst.msk [vmem:[#allocation2 + $0xc0] sm:$0xe] %vm940_vm3, %v886_v3  ;;  %v1319_v1 = vpop.permute.xlu2 %1318  ;;  %v2563_v41 = vpack.c.b16 %v2536_v13, %v2535_v52  ;;  %v9075_v42 = vrot.slane %v1250_v36, 7  ;;  %v2923_v15 = vld [vmem:[#allocation2 + $0x5c] sm:$0x1]  ;;  %v3078_v47 = vshll.u32 %v2921_v61, 16 }
 0x184   : > { %1468 = vst.msk [vmem:[#allocation2 + $0x64] sm:$0xf] %vm1410_vm12, %v1311_v63  ;;  %v1477_v2 = vsel %vm8601_vm2, %v1319_v1, %v1476_v31  ;;  %v709_v8 = vpop.f32.mrf.mxu0  ;;  %v1851_v39 = vsel %vm8551_vm10, %v1846_v33, %v1850_v9  ;;  %v3084_v25 = vshll.u32 %v2922_v30, 16  ;;  %v3088_v50 = vshrl.u32 %v2922_v30, 16  ;;  %v2110_v63 = vld [vmem:[#allocation2 + $0x50] sm:$0x1] }
 0x185   : > { %1640 = vst.msk [vmem:[#allocation2 + $0x64] sm:$0xf] %vm1624_vm0, %v9016_v19  ;;  %v710_v56 = vadd.f32 %v8715_v43, %v709_v8  ;;  %7652 = vmatmul.msk.bf16.gmra.mxu1 %vm2575_vm4, %v2563_v41  ;;  %v2728_v40 = vunpack.c.l.b16 %v1851_v39  ;;  %v1255_v61 = vor.u32 %v1253_v34, %v9075_v42  ;;  %v1256_v59 = vrot.slane %v9075_v42, 4  ;;  %v1469_v33 = vld [vmem:[#allocation2 + $0x68] sm:$0x1] }
 0x186   : > { %1639 = vst.msk [vmem:[#allocation2 + $0x60] sm:$0xf] %vm1624_vm0, %v1557_v20  ;;  %v3080_v44 = vrot.slane %v3078_v47, 5  ;;  %v3086_v62 = vrot.slane %v3084_v25, 5  ;;  %v3090_v0 = vrot.slane %v3088_v50, 4  ;;  %v3094_v52 = vshll.u32 %v2923_v15, 16 }
 0x187   : > { %1478 = vst [vmem:[#allocation2 + $0x74] sm:$0x1] %v1477_v2  ;;  %v9089_v49 = vpack.c.bf16 %v710_v56, %v710_v56  ;;  %v2754_v19 = vpack.c.b16 %v2728_v40, %v2727_v11  ;;  %v2262_v43 = vshrl.u32 %v2108_v53, 16  ;;  %v2265_v4 = vshll.u32 %v2108_v53, 16  ;;  %v1675_v39 = vld [vmem:[#allocation2 + $0x48] sm:$0xf] }
 0x188   : > { %743 = vst.msk [vmem:[%s8287_s25 + $0xf8] sm:$0xff] %vm498_vm1, %v710_v56  ;;  %1356 = vrot.lane.b32.xlu0 %v1255_v61, %s8117_s27  ;;  %v3081_v9 = vor.u32 %v3080_v44, %v3077_v29  ;;  %v3091_v23 = vor.u32 %v3090_v0, %v3086_v62  ;;  %v3096_v13 = vrot.slane %v3094_v52, 5  ;;  %v2271_v22 = vshll.u32 %v2109_v55, 16  ;;  %v1676_v40 = vld [vmem:[#allocation2 + $0x4c] sm:$0xf] }
 0x189   : > { %7669 = vmatmul.msk.bf16.gmra.mxu2 %vm2575_vm4, %v2754_v19  ;;  %1354 = vrot.lane.b32.xlu2 %v1248_v14, %s8117_s27  ;;  %v1258_v36 = vshrl.u32 %v9089_v49, 16  ;;  %v1261_v30 = vshll.u32 %v9089_v49, 16  ;;  %v2264_v20 = vrot.slane %v2262_v43, 4  ;;  %v2267_v31 = vrot.slane %v2265_v4, 5  ;;  %v1677_v43 = vld [vmem:[#allocation2 + $0x50] sm:$0x1] }
 0x18a   : > { %v1313_v34 = vpop.permute.xlu0 %1312  ;;  %v1315_v1 = vpop.permute.xlu1 %1314  ;;  %v3082_v41 = vrot.slane %v3081_v9, 4  ;;  %v3092_v11 = vrot.slane %v3091_v23, 4  ;;  %v2273_v29 = vrot.slane %v2271_v22, 5  ;;  %v2275_v42 = vshrl.u32 %v2109_v55, 16  ;;  %v2113_v45 = vld [vmem:[#allocation2 + $0x5c] sm:$0x1] }
 0x18b   : > { %v1470_v15 = vsel %vm8601_vm2, %v1313_v34, %v1469_v33  ;;  %v1473_v14 = vsel %vm8464_vm14, %v1315_v1, %v1472_v7  ;;  %v9102_v47 = vpop.permute.xlu2 %1564  ;;  %v9104_v2 = vrot.slane %v1258_v36, 7  ;;  %v2268_v8 = vor.u32 %v2267_v31, %v2264_v20 }
 0x18c   : > { %1471 = vst [vmem:[#allocation2 + $0x68] sm:$0x1] %v1470_v15  ;;  %v3087_v25 = vsel %vm8551_vm10, %v3082_v41, %v3086_v62  ;;  %v3097_v50 = vsel %vm8551_vm10, %v3092_v11, %v3096_v13  ;;  %v2277_v53 = vrot.slane %v2275_v42, 4  ;;  %v2281_v56 = vshll.u32 %v2110_v63, 16  ;;  %v1486_v11 = vld [vmem:[#allocation2 + $0x84] sm:$0xf] }
 0x18d   : > { %1474 = vst [vmem:[#allocation2 + $0x6c] sm:$0xf] %v1473_v14  ;;  %v1263_v61 = vor.u32 %v1261_v30, %v9104_v2  ;;  %v3350_v55 = vunpack.c.l.b16 %v3087_v25  ;;  %v3351_v44 = vunpack.c.l.b16 %v3097_v50  ;;  %v2269_v0 = vrot.slane %v2268_v8, 4  ;;  %v2924_v22 = vld [vmem:[#allocation2 + $0x60] sm:$0xf] }
 0x18e   : > { %v2278_v52 = vor.u32 %v2277_v53, %v2273_v29  ;;  %v2283_v19 = vrot.slane %v2281_v56, 5  ;;  %v1853_v4 = vshrl.u32 %v1675_v39, 16  ;;  %v1856_v7 = vshll.u32 %v1675_v39, 16  ;;  %v2925_v15 = vld [vmem:[#allocation2 + $0x64] sm:$0xf] }
 0x18f   : > { %v1264_v62 = vsel %vm8347_vm11, %v1256_v59, %v1263_v61  ;;  %v3377_v9 = vpack.c.b16 %v3351_v44, %v3350_v55  ;;  %v2274_v23 = vsel %vm8551_vm10, %v2269_v0, %v2273_v29  ;;  %v1862_v13 = vshll.u32 %v1676_v40, 16 }
 0x190   : > { %1590 = vrot.lane.b32.xlu0 %v9089_v49, %s8116_s26  ;;  %1358 = vrot.lane.b32.xlu1 %v1264_v62, %s8117_s27  ;;  %v2279_v36 = vrot.slane %v2278_v52, 4  ;;  %v2537_v30 = vunpack.c.l.b16 %v2274_v23  ;;  %v1855_v63 = vrot.slane %v1853_v4, 4  ;;  %v1858_v20 = vrot.slane %v1856_v7, 5  ;;  %v2112_v23 = vld [vmem:[#allocation2 + $0x58] sm:$0xf] }
 0x191   : > { %1588 = vrot.lane.b32.xlu2 %v9054_v18, %s8116_s26  ;;  %7686 = vmatmul.msk.bf16.gmra.mxu3 %vm2575_vm4, %v3377_v9  ;;  %v1864_v59 = vrot.slane %v1862_v13, 5  ;;  %v1866_v31 = vshrl.u32 %v1676_v40, 16  ;;  %v1872_v33 = vshll.u32 %v1677_v43, 16  ;;  %v1265_v34 = vrot.slane %v9104_v2, 4  ;;  %v2111_v43 = vld [vmem:[#allocation2 + $0x54] sm:$0xf] }
 0x192   : > { %v1561_v1 = vpop.permute.xlu0 %1560  ;;  %v1563_v41 = vpop.permute.xlu1 %1562  ;;  %v2284_v29 = vsel %vm8551_vm10, %v2279_v36, %v2283_v19  ;;  %v1859_v42 = vor.u32 %v1858_v20, %v1855_v63  ;;  %v3099_v14 = vshrl.u32 %v2924_v22, 16  ;;  %v3102_v8 = vshll.u32 %v2924_v22, 16 }
 0x193   : > { %1641 = vst.msk [vmem:[#allocation2 + $0x6c] sm:$0xf] %vm1624_vm0, %v1561_v1  ;;  %v1327_v39 = vpop.permute.xlu2 %1326  ;;  %v2538_v25 = vunpack.c.l.b16 %v2284_v29  ;;  %v1868_v50 = vrot.slane %v1866_v31, 4  ;;  %v1874_v53 = vrot.slane %v1872_v33, 5  ;;  %v2926_v56 = vld [vmem:[#allocation2 + $0x68] sm:$0x1] }
 0x194   : > { %1642 = vst.msk [vmem:[#allocation2 + $0x70] sm:$0xf] %vm1624_vm0, %v1563_v41  ;;  %v1487_v2 = vsel %vm8464_vm14, %v1327_v39, %v1486_v11  ;;  %v1860_v40 = vrot.slane %v1859_v42, 4  ;;  %v3101_v61 = vrot.slane %v3099_v14, 4  ;;  %v3104_v55 = vrot.slane %v3102_v8, 5 }
 0x195   : > { %1488 = vst [vmem:[#allocation2 + $0x84] sm:$0xf] %v1487_v2  ;;  %v2564_v44 = vpack.c.b16 %v2538_v25, %v2537_v30  ;;  %v1869_v0 = vor.u32 %v1868_v50, %v1864_v59  ;;  %v3108_v52 = vshll.u32 %v2925_v15, 16  ;;  %v3112_v19 = vshrl.u32 %v2925_v15, 16  ;;  %v1479_v29 = vld [vmem:[#allocation2 + $0x78] sm:$0xf] }
 0x196   : > { %v1865_v4 = vsel %vm8551_vm10, %v1860_v40, %v1864_v59  ;;  %v3105_v7 = vor.u32 %v3104_v55, %v3101_v61  ;;  %v3118_v62 = vshll.u32 %v2926_v56, 16  ;;  %v857_v9 = vrot.slane %v856_v57, 4  ;;  %v1678_v8 = vld [vmem:[#allocation2 + $0x54] sm:$0xf] }
 0x197   : > { %7653 = vmatmul.msk.bf16.gmra.mxu1 %vm2575_vm4, %v2564_v44  ;;  %v1870_v13 = vrot.slane %v1869_v0, 4  ;;  %v2729_v22 = vunpack.c.l.b16 %v1865_v4  ;;  %v3110_v36 = vrot.slane %v3108_v52, 5  ;;  %v3114_v63 = vrot.slane %v3112_v19, 4  ;;  %v1680_v0 = vld [vmem:[#allocation2 + $0x5c] sm:$0x1] }
 0x198   : > { %1360 = vrot.lane.b32.xlu1 %v1265_v34, %s8117_s27  ;;  %v3106_v30 = vrot.slane %v3105_v7, 4  ;;  %v3120_v20 = vrot.slane %v3118_v62, 5  ;;  %v858_v31 = vrot.slane %v8636_v28, 7  ;;  %v2286_v33 = vshrl.u32 %v2111_v43, 16 }
 0x199   : > { %v1875_v59 = vsel %vm8551_vm10, %v1870_v13, %v1874_v53  ;;  %v3115_v1 = vor.u32 %v3114_v63, %v3110_v36  ;;  %v2289_v57 = vshll.u32 %v2111_v43, 16  ;;  %v2295_v41 = vshll.u32 %v2112_v23, 16  ;;  %v1679_v53 = vld [vmem:[#allocation2 + $0x58] sm:$0xf] }
 0x19a   : > { %v2730_v11 = vunpack.c.l.b16 %v1875_v59  ;;  %v1321_v42 = vpop.permute.xlu0 %1320  ;;  %v3111_v15 = vsel %vm8551_vm10, %v3106_v30, %v3110_v36  ;;  %v859_v34 = vsel %vm8322_vm6, %v857_v9, %v858_v31  ;;  %v2288_v14 = vrot.slane %v2286_v33, 4  ;;  %v2927_v33 = vld [vmem:[#allocation2 + $0x6c] sm:$0xf] }
 0x19b   : > { %v1480_v28 = vsel %vm8464_vm14, %v1321_v42, %v1479_v29  ;;  %v3116_v39 = vrot.slane %v3115_v1, 4  ;;  %v3352_v25 = vunpack.c.l.b16 %v3111_v15  ;;  %971 = vst.msk [vmem:[#allocation2 + $0x7c] sm:$0xf] %vm942_vm7, %v859_v34  ;;  %v2291_v50 = vrot.slane %v2289_v57, 5  ;;  %v2929_v34 = vld [vmem:[#allocation2 + $0x74] sm:$0x1] }
 0x19c   : > { %v2755_v56 = vpack.c.b16 %v2730_v11, %v2729_v22  ;;  %1481 = vst [vmem:[#allocation2 + $0x78] sm:$0xf] %v1480_v28  ;;  %v2297_v2 = vrot.slane %v2295_v41, 5  ;;  %v2299_v40 = vshrl.u32 %v2112_v23, 16  ;;  %v2305_v61 = vshll.u32 %v2113_v45, 16 }
 0x19d   : > { %1643 = vst.msk [vmem:[#allocation2 + $0x78] sm:$0xf] %vm1624_vm0, %v9102_v47  ;;  %v3121_v55 = vsel %vm8551_vm10, %v3116_v39, %v3120_v20  ;;  %v2292_v44 = vor.u32 %v2291_v50, %v2288_v14  ;;  %v1877_v52 = vshrl.u32 %v1678_v8, 16  ;;  %v1880_v19 = vshll.u32 %v1678_v8, 16  ;;  %v2928_v45 = vld [vmem:[#allocation2 + $0x70] sm:$0xf]  ;;  %v9154_v14 = vpop.permute.xlu2 %1570 }
 0x19e   : > { %7670 = vmatmul.msk.bf16.gmra.mxu2 %vm2575_vm4, %v2755_v56  ;;  %v3353_v43 = vunpack.c.l.b16 %v3121_v55  ;;  %v2301_v4 = vrot.slane %v2299_v40, 4  ;;  %v2307_v7 = vrot.slane %v2305_v61, 5  ;;  %v1886_v62 = vshll.u32 %v1679_v53, 16  ;;  %v2114_v61 = vld [vmem:[#allocation2 + $0x60] sm:$0xf] }
 0x19f   : > { %v2293_v9 = vrot.slane %v2292_v44, 4  ;;  %v1879_v13 = vrot.slane %v1877_v52, 4  ;;  %v1882_v23 = vrot.slane %v1880_v19, 5  ;;  %v1890_v22 = vshrl.u32 %v1679_v53, 16 }
 0x1a0   : > { %v3378_v36 = vpack.c.b16 %v3353_v43, %v3352_v25  ;;  %v2302_v63 = vor.u32 %v2301_v4, %v2297_v2  ;;  %v1888_v47 = vrot.slane %v1886_v62, 5  ;;  %v1896_v30 = vshll.u32 %v1680_v0, 16 }
 0x1a1   : > { %v1883_v20 = vor.u32 %v1882_v23, %v1879_v13  ;;  %v1892_v59 = vrot.slane %v1890_v22, 4  ;;  %v860_v1 = vrot.slane %v858_v31, 4  ;;  %v2298_v11 = vsel %vm8551_vm10, %v2293_v9, %v2297_v2  ;;  %v2115_v23 = vld [vmem:[#allocation2 + $0x64] sm:$0xf] }
 0x1a2   : > { %7687 = vmatmul.msk.bf16.gmra.mxu3 %vm2575_vm4, %v3378_v36  ;;  %v1567_v57 = vpop.permute.xlu0 %1566  ;;  %v1323_v41 = vpop.permute.xlu1 %1322  ;;  %v2303_v29 = vrot.slane %v2302_v63, 4  ;;  %v1898_v42 = vrot.slane %v1896_v30, 5  ;;  %v867_v15 = vrot.slane %v866_v54, 4  ;;  %v868_v28 = vrot.slane %v8822_v35, 7 }
 0x1a3   : > { %1482 = vst.msk [vmem:[#allocation2 + $0x7c] sm:$0xf] %vm1410_vm12, %v1323_v41  ;;  %v1884_v8 = vrot.slane %v1883_v20, 4  ;;  %v1893_v31 = vor.u32 %v1892_v59, %v1888_v47  ;;  %v3123_v39 = vshrl.u32 %v2927_v33, 16  ;;  %v3126_v50 = vshll.u32 %v2927_v33, 16 }
 0x1a4   : > { %1644 = vst.msk [vmem:[#allocation2 + $0x7c] sm:$0xf] %vm1624_vm0, %v1567_v57  ;;  %v2308_v25 = vsel %vm8551_vm10, %v2303_v29, %v2307_v7  ;;  %v3132_v53 = vshll.u32 %v2928_v45, 16  ;;  %v3136_v56 = vshrl.u32 %v2928_v45, 16  ;;  %v2539_v10 = vunpack.c.l.b16 %v2298_v11  ;;  %v1682_v45 = vld [vmem:[#allocation2 + $0x64] sm:$0xf] }
 0x1a5   : > { %v2540_v54 = vunpack.c.l.b16 %v2308_v25  ;;  %v1894_v2 = vrot.slane %v1893_v31, 4  ;;  %972 = vst.msk [vmem:[#allocation2 + $0x80] sm:$0x1] %vm944_vm8, %v860_v1  ;;  %v869_v40 = vsel %vm8322_vm6, %v867_v15, %v868_v28  ;;  %v1889_v35 = vsel %vm8551_vm10, %v1884_v8, %v1888_v47  ;;  %v2116_v47 = vld [vmem:[#allocation2 + $0x68] sm:$0x1] }
 0x1a6   : > { %977 = vst.msk [vmem:[#allocation2 + $0x94] sm:$0xf] %vm942_vm7, %v869_v40  ;;  %v3125_v55 = vrot.slane %v3123_v39, 4  ;;  %v3128_v44 = vrot.slane %v3126_v50, 5  ;;  %v3134_v0 = vrot.slane %v3132_v53, 5  ;;  %v3138_v43 = vrot.slane %v3136_v56, 4 }
 0x1a7   : > { %v2565_v52 = vpack.c.b16 %v2540_v54, %v2539_v10  ;;  %v1899_v19 = vsel %vm8551_vm10, %v1894_v2, %v1898_v42  ;;  %v3142_v4 = vshll.u32 %v2929_v34, 16  ;;  %v862_v9 = vrot.slane %v861_v17, 4  ;;  %v1681_v17 = vld [vmem:[#allocation2 + $0x60] sm:$0xf]  ;;  %v1683_v56 = vld [vmem:[#allocation2 + $0x68] sm:$0x1] }
 0x1a8   : > { %v2732_v7 = vunpack.c.l.b16 %v1899_v19  ;;  %v3129_v62 = vor.u32 %v3128_v44, %v3125_v55  ;;  %v863_v13 = vrot.slane %v8723_v58, 7  ;;  %v2731_v22 = vunpack.c.l.b16 %v1889_v35 }
 0x1a9   : > { %7654 = vmatmul.msk.bf16.gmra.mxu1 %vm2575_vm4, %v2565_v52  ;;  %v3139_v36 = vor.u32 %v3138_v43, %v3134_v0  ;;  %v870_v63 = vrot.slane %v868_v28, 4  ;;  %v2310_v30 = vshrl.u32 %v2114_v61, 16  ;;  %v3144_v59 = vrot.slane %v3142_v4, 5  ;;  %v2930_v4 = vld [vmem:[#allocation2 + $0x78] sm:$0xf] }
 0x1aa   : > { %v1325_v33 = vpop.permute.xlu1 %1324  ;;  %v3130_v20 = vrot.slane %v3129_v62, 4  ;;  %v864_v1 = vsel %vm8322_vm6, %v862_v9, %v863_v13  ;;  %v2313_v6 = vshll.u32 %v2114_v61, 16  ;;  %v2319_v29 = vshll.u32 %v2115_v23, 16 }
 0x1ab   : > { %v1335_v57 = vpop.permute.xlu2 %1334  ;;  %v3140_v41 = vrot.slane %v3139_v36, 4  ;;  %974 = vst.msk [vmem:[#allocation2 + $0x88] sm:$0xf] %vm942_vm7, %v864_v1  ;;  %v2312_v11 = vrot.slane %v2310_v30, 4  ;;  %v2323_v42 = vshrl.u32 %v2115_v23, 16  ;;  %v2756_v15 = vpack.c.b16 %v2732_v7, %v2731_v22 }
 0x1ac   : > { %v1483_v34 = vld [vmem:[#allocation2 + $0x80] sm:$0x1]  ;;  %1496 = vst.msk [vmem:[#allocation2 + $0x94] sm:$0xf] %vm1410_vm12, %v1335_v57  ;;  %v3135_v8 = vsel %vm8551_vm10, %v3130_v20, %v3134_v0  ;;  %v2315_v31 = vrot.slane %v2313_v6, 5  ;;  %v2329_v28 = vshll.u32 %v2116_v47, 16 }
 0x1ad   : > { %v1484_v39 = vsel %vm8601_vm2, %v1325_v33, %v1483_v34  ;;  %v3145_v25 = vsel %vm8551_vm10, %v3140_v41, %v3144_v59  ;;  %v3354_v50 = vunpack.c.l.b16 %v3135_v8  ;;  %978 = vst.msk [vmem:[#allocation2 + $0x98] sm:$0x1] %vm944_vm8, %v870_v63  ;;  %v2321_v53 = vrot.slane %v2319_v29, 5  ;;  %v2931_v22 = vld [vmem:[#allocation2 + $0x7c] sm:$0xf] }
 0x1ae   : > { %7671 = vmatmul.msk.bf16.gmra.mxu2 %vm2575_vm4, %v2756_v15  ;;  %1485 = vst [vmem:[#allocation2 + $0x80] sm:$0x1] %v1484_v39  ;;  %v3355_v10 = vunpack.c.l.b16 %v3145_v25  ;;  %v2316_v54 = vor.u32 %v2315_v31, %v2312_v11  ;;  %v2325_v2 = vrot.slane %v2323_v42, 4  ;;  %v2331_v40 = vrot.slane %v2329_v28, 5  ;;  %v9197_v11 = vpop.f32.mrf.mxu2  ;;  %v2117_v15 = vld [vmem:[#allocation2 + $0x6c] sm:$0xf] }
 0x1af   : > { %v1901_v61 = vshrl.u32 %v1681_v17, 16  ;;  %v1904_v35 = vshll.u32 %v1681_v17, 16  ;;  %v1910_v55 = vshll.u32 %v1682_v45, 16  ;;  %v1914_v44 = vshrl.u32 %v1682_v45, 16  ;;  %v2118_v34 = vld [vmem:[#allocation2 + $0x70] sm:$0xf] }
 0x1b0   : > { %v3379_v0 = vpack.c.b16 %v3355_v10, %v3354_v50  ;;  %v2317_v52 = vrot.slane %v2316_v54, 4  ;;  %v2326_v19 = vor.u32 %v2325_v2, %v2321_v53  ;;  %v1920_v43 = vshll.u32 %v1683_v56, 16 }
 0x1b1   : > { %v1903_v7 = vrot.slane %v1901_v61, 4  ;;  %v1906_v62 = vrot.slane %v1904_v35, 5  ;;  %v1912_v9 = vrot.slane %v1910_v55, 5  ;;  %v1916_v23 = vrot.slane %v1914_v44, 4  ;;  %v2119_v44 = vld [vmem:[#allocation2 + $0x74] sm:$0x1] }
 0x1b2   : > { %7688 = vmatmul.msk.bf16.gmra.mxu3 %vm2575_vm4, %v3379_v0  ;;  %v1329_v36 = vpop.permute.xlu0 %1328  ;;  %v1569_v63 = vpop.permute.xlu1 %1568  ;;  %v2322_v47 = vsel %vm8551_vm10, %v2317_v52, %v2321_v53  ;;  %v2327_v30 = vrot.slane %v2326_v19, 4  ;;  %v1922_v33 = vrot.slane %v1920_v43, 5  ;;  %v865_v6 = vrot.slane %v863_v13, 4 }
 0x1b3   : > { %1489 = vst.msk [vmem:[#allocation2 + $0x88] sm:$0xf] %vm1410_vm12, %v1329_v36  ;;  %v1337_v20 = vpop.permute.xlu2 %1336  ;;  %v1907_v59 = vor.u32 %v1906_v62, %v1903_v7  ;;  %v1917_v1 = vor.u32 %v1916_v23, %v1912_v9  ;;  %v3147_v17 = vshrl.u32 %v2930_v4, 16  ;;  %v2541_v41 = vunpack.c.l.b16 %v2322_v47  ;;  %v1493_v7 = vld [vmem:[#allocation2 + $0x90] sm:$0xf] }
 0x1b4   : > { %1646 = vst.msk [vmem:[#allocation2 + $0x88] sm:$0xf] %vm1624_vm0, %v9154_v14  ;;  %v1497_v45 = vld [vmem:[#allocation2 + $0x98] sm:$0x1]  ;;  %v2332_v57 = vsel %vm8551_vm10, %v2327_v30, %v2331_v40  ;;  %v3150_v29 = vshll.u32 %v2930_v4, 16  ;;  %v3156_v42 = vshll.u32 %v2931_v22, 16 }
 0x1b5   : > { %1645 = vst.msk [vmem:[#allocation2 + $0x84] sm:$0xf] %vm1624_vm0, %v1569_v63  ;;  %v1498_v58 = vsel %vm8601_vm2, %v1337_v20, %v1497_v45  ;;  %v2542_v13 = vunpack.c.l.b16 %v2332_v57  ;;  %v1908_v8 = vrot.slane %v1907_v59, 4  ;;  %v1918_v31 = vrot.slane %v1917_v1, 4  ;;  %v2932_v14 = vld [vmem:[#allocation2 + $0x80] sm:$0x1] }
 0x1b6   : > { %1499 = vst [vmem:[#allocation2 + $0x98] sm:$0x1] %v1498_v58  ;;  %v3149_v28 = vrot.slane %v3147_v17, 4  ;;  %v3152_v39 = vrot.slane %v3150_v29, 5  ;;  %v3158_v25 = vrot.slane %v3156_v42, 5  ;;  %v3160_v50 = vshrl.u32 %v2931_v22, 16  ;;  %v9215_v58 = vpop.f32.mrf.mxu2 }
 0x1b7   : > { %v2566_v53 = vpack.c.b16 %v2542_v13, %v2541_v41  ;;  %v1913_v56 = vsel %vm8551_vm10, %v1908_v8, %v1912_v9  ;;  %v1923_v10 = vsel %vm8551_vm10, %v1918_v31, %v1922_v33  ;;  %975 = vst.msk [vmem:[#allocation2 + $0x8c] sm:$0x1] %vm944_vm8, %v865_v6  ;;  %v3166_v54 = vshll.u32 %v2932_v14, 16  ;;  %v1684_v36 = vld [vmem:[#allocation2 + $0x6c] sm:$0xf] }
 0x1b8   : > { %v2733_v2 = vunpack.c.l.b16 %v1913_v56  ;;  %v2734_v40 = vunpack.c.l.b16 %v1923_v10  ;;  %v3153_v61 = vor.u32 %v3152_v39, %v3149_v28  ;;  %v3162_v35 = vrot.slane %v3160_v50, 4  ;;  %v1685_v59 = vld [vmem:[#allocation2 + $0x70] sm:$0xf]  ;;  %v1686_v29 = vld [vmem:[#allocation2 + $0x74] sm:$0x1] }
 0x1b9   : > { %7655 = vmatmul.msk.bf16.gmra.mxu1 %vm2575_vm4, %v2566_v53  ;;  %v3168_v55 = vrot.slane %v3166_v54, 5  ;;  %v2334_v0 = vshrl.u32 %v2117_v15, 16  ;;  %v2337_v52 = vshll.u32 %v2117_v15, 16  ;;  %v2343_v19 = vshll.u32 %v2118_v34, 16 }
 0x1ba   : > { %v2757_v43 = vpack.c.b16 %v2734_v40, %v2733_v2  ;;  %v1331_v4 = vpop.permute.xlu0 %1330  ;;  %v1333_v62 = vpop.permute.xlu1 %1332  ;;  %v3154_v9 = vrot.slane %v3153_v61, 4  ;;  %v3163_v23 = vor.u32 %v3162_v35, %v3158_v25  ;;  %v2347_v22 = vshrl.u32 %v2118_v34, 16 }
 0x1bb   : > { %v1494_v63 = vsel %vm8464_vm14, %v1333_v62, %v1493_v7  ;;  %v9210_v47 = vpop.permute.xlu2 %1576  ;;  %v2336_v30 = vrot.slane %v2334_v0, 4  ;;  %v2339_v33 = vrot.slane %v2337_v52, 5  ;;  %v2345_v20 = vrot.slane %v2343_v19, 5  ;;  %v1507_v52 = vld [vmem:[#allocation2 + $0xa8] sm:$0xf] }
 0x1bc   : > { %1495 = vst [vmem:[#allocation2 + $0x90] sm:$0xf] %v1494_v63  ;;  %v3159_v1 = vsel %vm8551_vm10, %v3154_v9, %v3158_v25  ;;  %v3164_v6 = vrot.slane %v3163_v23, 4  ;;  %v2349_v17 = vrot.slane %v2347_v22, 4  ;;  %v2353_v45 = vshll.u32 %v2119_v44, 16 }
 0x1bd   : > { %v3356_v57 = vunpack.c.l.b16 %v3159_v1  ;;  %v2340_v41 = vor.u32 %v2339_v33, %v2336_v30  ;;  %v1925_v42 = vshrl.u32 %v1684_v36, 16  ;;  %v1928_v15 = vshll.u32 %v1684_v36, 16  ;;  %v2933_v28 = vld [vmem:[#allocation2 + $0x84] sm:$0xf]  ;;  %v2934_v62 = vld [vmem:[#allocation2 + $0x88] sm:$0xf] }
 0x1be   : > { %7672 = vmatmul.msk.bf16.gmra.mxu2 %vm2575_vm4, %v2757_v43  ;;  %v1490_v34 = vld [vmem:[#allocation2 + $0x8c] sm:$0x1]  ;;  %v3169_v13 = vsel %vm8551_vm10, %v3164_v6, %v3168_v55  ;;  %v2350_v8 = vor.u32 %v2349_v17, %v2345_v20  ;;  %v2355_v31 = vrot.slane %v2353_v45, 5  ;;  %v1934_v14 = vshll.u32 %v1685_v59, 16  ;;  %v9231_v36 = vld [vmem:[%s11191_s4] ss:$0 sm:$0xff] }
 0x1bf   : > { %v1491_v39 = vsel %vm8601_vm2, %v1331_v4, %v1490_v34  ;;  %v3357_v25 = vunpack.c.l.b16 %v3169_v13  ;;  %v2341_v50 = vrot.slane %v2340_v41, 4  ;;  %v1927_v53 = vrot.slane %v1925_v42, 4  ;;  %v2120_v13 = vld [vmem:[#allocation2 + $0x78] sm:$0xf] }
 0x1c0   : > { %1492 = vst [vmem:[#allocation2 + $0x8c] sm:$0x1] %v1491_v39  ;;  %v2351_v56 = vrot.slane %v2350_v8, 4  ;;  %v1930_v10 = vrot.slane %v1928_v15, 5  ;;  %v1936_v54 = vrot.slane %v1934_v14, 5  ;;  %v1938_v2 = vshrl.u32 %v1685_v59, 16 }
 0x1c1   : > { %v3380_v40 = vpack.c.b16 %v3357_v25, %v3356_v57  ;;  %v2346_v61 = vsel %vm8551_vm10, %v2341_v50, %v2345_v20  ;;  %v1944_v35 = vshll.u32 %v1686_v29, 16  ;;  %v3171_v55 = vshrl.u32 %v2933_v28, 16 }
 0x1c2   : > { %v2637_v44 = vpop.f32.mrf.mxu1  ;;  %v1573_v0 = vpop.permute.xlu0 %1572  ;;  %v2356_v19 = vsel %vm8551_vm10, %v2351_v56, %v2355_v31  ;;  %v2543_v43 = vunpack.c.l.b16 %v2346_v61  ;;  %v1931_v4 = vor.u32 %v1930_v10, %v1927_v53  ;;  %v1940_v7 = vrot.slane %v1938_v2, 4 }
 0x1c3   : > { %7689 = vmatmul.msk.bf16.gmra.mxu3 %vm2575_vm4, %v3380_v40  ;;  %v2826_v9 = vadd.f32 %v9197_v11, %v2637_v44  ;;  %1647 = vst.msk [vmem:[#allocation2 + $0x90] sm:$0xf] %vm1624_vm0, %v1573_v0  ;;  %v1575_v23 = vpop.permute.xlu1 %1574  ;;  %v1345_v22 = vpop.permute.xlu2 %1344  ;;  %v2544_v63 = vunpack.c.l.b16 %v2356_v19  ;;  %v1946_v30 = vrot.slane %v1944_v35, 5  ;;  %v3173_v33 = vrot.slane %v3171_v55, 4  ;;  %v2121_v40 = vld [vmem:[#allocation2 + $0x7c] sm:$0xf] }
 0x1c4   : > { %1648 = vst.msk [vmem:[#allocation2 + $0x94] sm:$0xf] %vm1624_vm0, %v1575_v23  ;;  %v1508_v20 = vsel %vm8464_vm14, %v1345_v22, %v1507_v52  ;;  %v3448_v59 = vpop.f32.mrf.mxu3  ;;  %v1932_v1 = vrot.slane %v1931_v4, 4  ;;  %v1941_v11 = vor.u32 %v1940_v7, %v1936_v54  ;;  %v3174_v6 = vshll.u32 %v2933_v28, 16  ;;  %v2122_v19 = vld [vmem:[#allocation2 + $0x80] sm:$0x1] }
 0x1c5   : > { %1509 = vst [vmem:[#allocation2 + $0xa8] sm:$0xf] %v1508_v20  ;;  %v3528_v17 = vadd.f32 %v3448_v59, %v2826_v9  ;;  %v2567_v45 = vpack.c.b16 %v2544_v63, %v2543_v43  ;;  %v3180_v57 = vshll.u32 %v2934_v62, 16  ;;  %v3184_v41 = vshrl.u32 %v2934_v62, 16  ;;  %v1687_v23 = vld [vmem:[#allocation2 + $0x78] sm:$0xf] }
 0x1c6   : > { %v1937_v29 = vsel %vm8551_vm10, %v1932_v1, %v1936_v54  ;;  %v1942_v42 = vrot.slane %v1941_v11, 4  ;;  %v3176_v15 = vrot.slane %v3174_v6, 5  ;;  %v872_v34 = vrot.slane %v871_v38, 4  ;;  %v1500_v54 = vld [vmem:[#allocation2 + $0x9c] sm:$0xf] }
 0x1c7   : > { %v9241_v8 = vadd.f32 %v9231_v36, %v3528_v17  ;;  %v2735_v31 = vunpack.c.l.b16 %v1937_v29  ;;  %v2935_v14 = vld [vmem:[#allocation2 + $0x8c] sm:$0x1]  ;;  %v3182_v28 = vrot.slane %v3180_v57, 5  ;;  %v3186_v39 = vrot.slane %v3184_v41, 4  ;;  %v1688_v6 = vld [vmem:[#allocation2 + $0x7c] sm:$0xf] }
 0x1c8   : > { %v1947_v25 = vsel %vm8551_vm10, %v1942_v42, %v1946_v30  ;;  %v3177_v53 = vor.u32 %v3176_v15, %v3173_v33  ;;  %v3190_v56 = vshll.u32 %v2935_v14, 16  ;;  %v873_v10 = vrot.slane %v8895_v27, 7  ;;  %v1689_v15 = vld [vmem:[#allocation2 + $0x80] sm:$0x1] }
 0x1c9   : > { %v9245_v50 = vpop.f32.mrf.mxu2  ;;  %v3596_v24 = vmax.f32 %v9241_v8, 0.0  ;;  %7656 = vmatmul.msk.bf16.gmra.mxu1 %vm2575_vm4, %v2567_v45  ;;  %v2736_v38 = vunpack.c.l.b16 %v1947_v25  ;;  %v3187_v2 = vor.u32 %v3186_v39, %v3182_v28  ;;  %v2358_v61 = vshrl.u32 %v2120_v13, 16 }
 0x1ca   : > { %v2639_v35 = vpop.f32.mrf.mxu1  ;;  %v1339_v55 = vpop.permute.xlu0 %1338  ;;  %v3178_v44 = vrot.slane %v3177_v53, 4  ;;  %v3192_v0 = vrot.slane %v3190_v56, 5  ;;  %v874_v52 = vsel %vm8322_vm6, %v872_v34, %v873_v10  ;;  %v2361_v43 = vshll.u32 %v2120_v13, 16 }
 0x1cb   : > { %v2758_v4 = vpack.c.b16 %v2736_v38, %v2735_v31  ;;  %v2828_v7 = vadd.f32 %v9215_v58, %v2639_v35  ;;  %v1501_v62 = vsel %vm8464_vm14, %v1339_v55, %v1500_v54  ;;  %v3188_v9 = vrot.slane %v3187_v2, 4  ;;  %980 = vst.msk [vmem:[#allocation2 + $0xa0] sm:$0xf] %vm942_vm7, %v874_v52  ;;  %v9270_v55 = vpop.permute.xlu2 %1582 }
 0x1cc   : > { %1502 = vst [vmem:[#allocation2 + $0x9c] sm:$0xf] %v1501_v62  ;;  %v3450_v22 = vpop.f32.mrf.mxu3  ;;  %v3183_v63 = vsel %vm8551_vm10, %v3178_v44, %v3182_v28  ;;  %v2360_v30 = vrot.slane %v2358_v61, 4  ;;  %v2363_v33 = vrot.slane %v2361_v43, 5  ;;  %v2367_v20 = vshll.u32 %v2121_v40, 16 }
 0x1cd   : > { %1649 = vst.msk [vmem:[#allocation2 + $0x9c] sm:$0xf] %vm1624_vm0, %v9210_v47  ;;  %v3529_v59 = vadd.f32 %v3450_v22, %v2828_v7  ;;  %v3193_v58 = vsel %vm8551_vm10, %v3188_v9, %v3192_v0  ;;  %v3358_v1 = vunpack.c.l.b16 %v3183_v63  ;;  %v2371_v11 = vshrl.u32 %v2121_v40, 16  ;;  %v2937_v7 = vld [vmem:[#allocation2 + $0x94] sm:$0xf] }
 0x1ce   : > { %7673 = vmatmul.msk.bf16.gmra.mxu2 %vm2575_vm4, %v2758_v4  ;;  %v3359_v17 = vunpack.c.l.b16 %v3193_v58  ;;  %v2364_v45 = vor.u32 %v2363_v33, %v2360_v30  ;;  %v2369_v57 = vrot.slane %v2367_v20, 5  ;;  %v2377_v41 = vshll.u32 %v2122_v19, 16  ;;  %v2936_v4 = vld [vmem:[#allocation2 + $0x90] sm:$0xf] }
 0x1cf   : > { %v3565_v29 = vadd.f32 %v9231_v36, %v3529_v59  ;;  %v2373_v42 = vrot.slane %v2371_v11, 4  ;;  %v1949_v34 = vshrl.u32 %v1687_v23, 16  ;;  %v1952_v13 = vshll.u32 %v1687_v23, 16 }
 0x1d0   : > { %v3381_v8 = vpack.c.b16 %v3359_v17, %v3358_v1  ;;  %v2365_v31 = vrot.slane %v2364_v45, 4  ;;  %v2379_v14 = vrot.slane %v2377_v41, 5  ;;  %v1958_v28 = vshll.u32 %v1688_v6, 16  ;;  %v2938_v1 = vld [vmem:[#allocation2 + $0x98] sm:$0x1] }
 0x1d1   : > { %v9266_v47 = vpop.f32.mrf.mxu2  ;;  %v3597_v39 = vmax.f32 %v3565_v29, 0.0  ;;  %v2374_v25 = vor.u32 %v2373_v42, %v2369_v57  ;;  %v1951_v53 = vrot.slane %v1949_v34, 4  ;;  %v1954_v56 = vrot.slane %v1952_v13, 5 }
 0x1d2   : > { %v2642_v38 = vpop.f32.mrf.mxu1  ;;  %v1579_v54 = vpop.permute.xlu0 %1578  ;;  %v2370_v2 = vsel %vm8551_vm10, %v2365_v31, %v2369_v57  ;;  %v1960_v40 = vrot.slane %v1958_v28, 5  ;;  %v1962_v61 = vshrl.u32 %v1688_v6, 16  ;;  %v1968_v35 = vshll.u32 %v1689_v15, 16 }
 0x1d3   : > { %v3628_v44 = vpack.c.bf16 %v3597_v39, %v3596_v24  ;;  %7690 = vmatmul.msk.bf16.gmra.mxu3 %vm2575_vm4, %v3381_v8  ;;  %v2831_v0 = vadd.f32 %v9245_v50, %v2642_v38  ;;  %v1341_v52 = vpop.permute.xlu1 %1340  ;;  %v2375_v19 = vrot.slane %v2374_v25, 4  ;;  %v2545_v43 = vunpack.c.l.b16 %v2370_v2 }
 0x1d4   : > { %1503 = vst.msk [vmem:[#allocation2 + $0xa0] sm:$0xf] %vm1410_vm12, %v1341_v52  ;;  %v3453_v62 = vpop.f32.mrf.mxu3  ;;  %v1955_v9 = vor.u32 %v1954_v56, %v1951_v53  ;;  %v1964_v23 = vrot.slane %v1962_v61, 4  ;;  %v1970_v22 = vrot.slane %v1968_v35, 5  ;;  %vm3664_vm1 = vcmask 261120  }
 0x1d5   : > { %1650 = vst.msk [vmem:[#allocation2 + $0xa0] sm:$0xf] %vm1624_vm0, %v1579_v54  ;;  %v3530_v63 = vadd.f32 %v3453_v62, %v2831_v0  ;;  %v2380_v24 = vsel %vm8551_vm10, %v2375_v19, %v2379_v14  ;;  %7705 = vmatmul.msk.bf16.vlgmr.msrb.gmra.mxu0 %vm3664_vm1, %v3628_v44  ;;  %v875_v50 = vrot.slane %v873_v10, 4  ;;  %v882_v30 = vrot.slane %v881_v26, 4  ;;  %v2123_v14 = vld [vmem:[#allocation2 + $0x84] sm:$0xf] }
 0x1d6   : > { %v2546_v33 = vunpack.c.l.b16 %v2380_v24  ;;  %v1956_v20 = vrot.slane %v1955_v9, 4  ;;  %v1965_v59 = vor.u32 %v1964_v23, %v1960_v40  ;;  %v883_v58 = vrot.slane %v9032_v5, 7  ;;  %v2124_v54 = vld [vmem:[#allocation2 + $0x88] sm:$0xf] }
 0x1d7   : > { %v9285_v11 = vadd.f32 %v9231_v36, %v3530_v63  ;;  %981 = vst.msk [vmem:[#allocation2 + $0xa4] sm:$0x1] %vm944_vm8, %v875_v50  ;;  %v3195_v6 = vshrl.u32 %v2936_v4, 16  ;;  %v3198_v17 = vshll.u32 %v2936_v4, 16  ;;  %v3204_v45 = vshll.u32 %v2937_v7, 16 }
 0x1d8   : > { %v2568_v57 = vpack.c.b16 %v2546_v33, %v2545_v43  ;;  %v1961_v27 = vsel %vm8551_vm10, %v1956_v20, %v1960_v40  ;;  %v1966_v12 = vrot.slane %v1965_v59, 4  ;;  %v884_v10 = vsel %vm8322_vm6, %v882_v30, %v883_v58  ;;  %v2125_v43 = vld [vmem:[#allocation2 + $0x8c] sm:$0x1]  ;;  %v1690_v4 = vld [vmem:[#allocation2 + $0x84] sm:$0xf] }
 0x1d9   : > { %v9290_v26 = vpop.f32.mrf.mxu2  ;;  %v3598_v5 = vmax.f32 %v9285_v11, 0.0  ;;  %v2737_v41 = vunpack.c.l.b16 %v1961_v27  ;;  %986 = vst.msk [vmem:[#allocation2 + $0xb8] sm:$0xf] %vm942_vm7, %v884_v10  ;;  %v3197_v29 = vrot.slane %v3195_v6, 4  ;;  %v3200_v42 = vrot.slane %v3198_v17, 5 }
 0x1da   : > { %7657 = vmatmul.msk.bf16.gmra.mxu1 %vm2575_vm4, %v2568_v57  ;;  %v1971_v15 = vsel %vm8551_vm10, %v1966_v12, %v1970_v22  ;;  %v2644_v34 = vpop.f32.mrf.mxu1  ;;  %v3206_v13 = vrot.slane %v3204_v45, 5  ;;  %v3208_v8 = vshrl.u32 %v2937_v7, 16  ;;  %v3214_v31 = vshll.u32 %v2938_v1, 16  ;;  %v1691_v50 = vld [vmem:[#allocation2 + $0x88] sm:$0xf] }
 0x1db   : > { %v2738_v28 = vunpack.c.l.b16 %v1971_v15  ;;  %v2833_v39 = vadd.f32 %v9266_v47, %v2644_v34  ;;  %v1343_v25 = vpop.permute.xlu1 %1342  ;;  %v1353_v53 = vpop.permute.xlu2 %1352  ;;  %v3201_v56 = vor.u32 %v3200_v42, %v3197_v29  ;;  %v877_v38 = vrot.slane %v876_v37, 4  ;;  %v1692_v10 = vld [vmem:[#allocation2 + $0x8c] sm:$0x1] }
 0x1dc   : > { %1517 = vst.msk [vmem:[#allocation2 + $0xb8] sm:$0xf] %vm1410_vm12, %v1353_v53  ;;  %v3455_v2 = vpop.f32.mrf.mxu3  ;;  %v3210_v40 = vrot.slane %v3208_v8, 4  ;;  %v3216_v61 = vrot.slane %v3214_v31, 5  ;;  %v878_v35 = vrot.slane %v8975_v16, 7  ;;  %v885_v44 = vrot.slane %v883_v58, 4 }
 0x1dd   : > { %v2759_v0 = vpack.c.b16 %v2738_v28, %v2737_v41  ;;  %v3531_v52 = vadd.f32 %v3455_v2, %v2833_v39  ;;  %v3202_v19 = vrot.slane %v3201_v56, 4  ;;  %v2382_v47 = vshrl.u32 %v2123_v14, 16  ;;  %v2130_v18 = vld [vmem:[#allocation2 + $0xa0] sm:$0xf] }
 0x1de   : > { %v1504_v7 = vld [vmem:[#allocation2 + $0xa4] sm:$0x1]  ;;  %v3211_v62 = vor.u32 %v3210_v40, %v3206_v13  ;;  %v879_v21 = vsel %vm8322_vm6, %v877_v38, %v878_v35  ;;  %987 = vst.msk [vmem:[#allocation2 + $0xbc] sm:$0x1] %vm944_vm8, %v885_v44  ;;  %v2385_v37 = vshll.u32 %v2123_v14, 16  ;;  %v2391_v9 = vshll.u32 %v2124_v54, 16 }
 0x1df   : > { %7674 = vmatmul.msk.bf16.gmra.mxu2 %vm2575_vm4, %v2759_v0  ;;  %v1505_v23 = vsel %vm8601_vm2, %v1343_v25, %v1504_v7  ;;  %v3567_v22 = vadd.f32 %v9231_v36, %v3531_v52  ;;  %v3207_v63 = vsel %vm8551_vm10, %v3202_v19, %v3206_v13  ;;  %983 = vst.msk [vmem:[#allocation2 + $0xac] sm:$0xf] %vm942_vm7, %v879_v21  ;;  %v2384_v24 = vrot.slane %v2382_v47, 4  ;;  %v2939_v14 = vld [vmem:[#allocation2 + $0x9c] sm:$0xf] }
 0x1e0   : > { %1506 = vst [vmem:[#allocation2 + $0xa4] sm:$0x1] %v1505_v23  ;;  %v3212_v33 = vrot.slane %v3211_v62, 4  ;;  %v3360_v20 = vunpack.c.l.b16 %v3207_v63  ;;  %v2387_v59 = vrot.slane %v2385_v37, 5  ;;  %v2393_v58 = vrot.slane %v2391_v9, 5 }
 0x1e1   : > { %v9316_v30 = vpop.f32.mrf.mxu2  ;;  %v3599_v1 = vmax.f32 %v3567_v22, 0.0  ;;  %v2395_v11 = vshrl.u32 %v2124_v54, 16  ;;  %v2401_v6 = vshll.u32 %v2125_v43, 16  ;;  %v1973_v17 = vshrl.u32 %v1690_v4, 16  ;;  %v2940_v21 = vld [vmem:[#allocation2 + $0xa0] sm:$0xf] }
 0x1e2   : > { %v3217_v45 = vsel %vm8551_vm10, %v3212_v33, %v3216_v61  ;;  %v2647_v57 = vpop.f32.mrf.mxu1  ;;  %v1347_v27 = vpop.permute.xlu0 %1346  ;;  %v2388_v12 = vor.u32 %v2387_v59, %v2384_v24  ;;  %v1976_v41 = vshll.u32 %v1690_v4, 16  ;;  %v1982_v29 = vshll.u32 %v1691_v50, 16 }
 0x1e3   : > { %v3629_v42 = vpack.c.bf16 %v3599_v1, %v3598_v5  ;;  %v3361_v15 = vunpack.c.l.b16 %v3217_v45  ;;  %v2836_v34 = vadd.f32 %v9290_v26, %v2647_v57  ;;  %1510 = vst.msk [vmem:[#allocation2 + $0xac] sm:$0xf] %vm1410_vm12, %v1347_v27  ;;  %v1581_v13 = vpop.permute.xlu1 %1580  ;;  %v1355_v8 = vpop.permute.xlu2 %1354  ;;  %v2397_v31 = vrot.slane %v2395_v11, 4  ;;  %v1514_v11 = vld [vmem:[#allocation2 + $0xb4] sm:$0xf] }
 0x1e4   : > { %1652 = vst.msk [vmem:[#allocation2 + $0xac] sm:$0xf] %vm1624_vm0, %v9270_v55  ;;  %v3458_v28 = vpop.f32.mrf.mxu3  ;;  %v2389_v39 = vrot.slane %v2388_v12, 4  ;;  %v2403_v25 = vrot.slane %v2401_v6, 5  ;;  %v1975_v53 = vrot.slane %v1973_v17, 4  ;;  %v1978_v56 = vrot.slane %v1976_v41, 5 }
 0x1e5   : > { %v3382_v38 = vpack.c.b16 %v3361_v15, %v3360_v20  ;;  %1651 = vst.msk [vmem:[#allocation2 + $0xa8] sm:$0xf] %vm1624_vm0, %v1581_v13  ;;  %v1518_v5 = vld [vmem:[#allocation2 + $0xbc] sm:$0x1]  ;;  %v3532_v54 = vadd.f32 %v3458_v28, %v2836_v34  ;;  %v2398_v26 = vor.u32 %v2397_v31, %v2393_v58  ;;  %v1984_v2 = vrot.slane %v1982_v29, 5  ;;  %7706 = vmatmul.msk.bf16.gmra.mxu0 %vm3664_vm1, %v3629_v42 }
 0x1e6   : > { %v1519_v40 = vsel %vm8601_vm2, %v1355_v8, %v1518_v5  ;;  %v2394_v55 = vsel %vm8551_vm10, %v2389_v39, %v2393_v58  ;;  %v1979_v61 = vor.u32 %v1978_v56, %v1975_v53  ;;  %v1986_v44 = vshrl.u32 %v1691_v50, 16  ;;  %v2126_v57 = vld [vmem:[#allocation2 + $0x90] sm:$0xf]  ;;  %v2127_v8 = vld [vmem:[#allocation2 + $0x94] sm:$0xf] }
 0x1e7   : > { %7691 = vmatmul.msk.bf16.gmra.mxu3 %vm2575_vm4, %v3382_v38  ;;  %1520 = vst [vmem:[#allocation2 + $0xbc] sm:$0x1] %v1519_v40  ;;  %v9332_v0 = vadd.f32 %v9231_v36, %v3532_v54  ;;  %v2399_v52 = vrot.slane %v2398_v26, 4  ;;  %v2547_v19 = vunpack.c.l.b16 %v2394_v55  ;;  %v1992_v43 = vshll.u32 %v1692_v10, 16  ;;  %v2941_v16 = vld [vmem:[#allocation2 + $0xa4] sm:$0x1] }
 0x1e8   : > { %v1980_v47 = vrot.slane %v1979_v61, 4  ;;  %v1988_v4 = vrot.slane %v1986_v44, 4  ;;  %v880_v62 = vrot.slane %v878_v35, 4  ;;  %v3219_v37 = vshrl.u32 %v2939_v14, 16  ;;  %v2128_v54 = vld [vmem:[#allocation2 + $0x98] sm:$0x1] }
 0x1e9   : > { %v9334_v7 = vpop.f32.mrf.mxu2  ;;  %v3600_v9 = vmax.f32 %v9332_v0, 0.0  ;;  %v2404_v23 = vsel %vm8551_vm10, %v2399_v52, %v2403_v25  ;;  %v1994_v22 = vrot.slane %v1992_v43, 5  ;;  %v3222_v63 = vshll.u32 %v2939_v14, 16 }
 0x1ea   : > { %v2548_v24 = vunpack.c.l.b16 %v2404_v23  ;;  %v1985_v50 = vsel %vm8551_vm10, %v1980_v47, %v1984_v2  ;;  %v1989_v33 = vor.u32 %v1988_v4, %v1984_v2  ;;  %v2649_v20 = vpop.f32.mrf.mxu1  ;;  %984 = vst.msk [vmem:[#allocation2 + $0xb0] sm:$0x1] %vm944_vm8, %v880_v62  ;;  %v1349_v59 = vpop.permute.xlu0 %1348  ;;  %v3221_v35 = vrot.slane %v3219_v37, 4  ;;  %v1694_v23 = vld [vmem:[#allocation2 + $0x94] sm:$0xf] }
 0x1eb   : > { %v2739_v58 = vunpack.c.l.b16 %v1985_v50  ;;  %v2838_v1 = vadd.f32 %v9316_v30, %v2649_v20  ;;  %v1351_v6 = vpop.permute.xlu1 %1350  ;;  %v3224_v17 = vrot.slane %v3222_v63, 5  ;;  %v3228_v45 = vshll.u32 %v2940_v21, 16  ;;  %v1695_v20 = vld [vmem:[#allocation2 + $0x98] sm:$0x1] }
 0x1ec   : > { %v2569_v27 = vpack.c.b16 %v2548_v24, %v2547_v19  ;;  %v1990_v12 = vrot.slane %v1989_v33, 4  ;;  %v1515_v10 = vsel %vm8464_vm14, %v1351_v6, %v1514_v11  ;;  %v3460_v41 = vpop.f32.mrf.mxu3  ;;  %v3232_v29 = vshrl.u32 %v2940_v21, 16  ;;  %v1693_v19 = vld [vmem:[#allocation2 + $0x90] sm:$0xf] }
 0x1ed   : > { %1516 = vst [vmem:[#allocation2 + $0xb4] sm:$0xf] %v1515_v10  ;;  %v3533_v42 = vadd.f32 %v3460_v41, %v2838_v1  ;;  %v3225_v15 = vor.u32 %v3224_v17, %v3221_v35  ;;  %v3230_v34 = vrot.slane %v3228_v45, 5  ;;  %v3238_v13 = vshll.u32 %v2941_v16, 16  ;;  %v7876_v10 = vld [vmem:[%s11194_s7 + $0x28] sm:$0xff] }
 0x1ee   : > { %7658 = vmatmul.msk.bf16.gmra.mxu1 %vm2575_vm4, %v2569_v27  ;;  %v1995_v30 = vsel %vm8551_vm10, %v1990_v12, %v1994_v22  ;;  %v3234_v31 = vrot.slane %v3232_v29, 4  ;;  %v2406_v14 = vshrl.u32 %v2126_v57, 16  ;;  %v2409_v28 = vshll.u32 %v2126_v57, 16  ;;  %v7888_v41 = vld [vmem:[%s11194_s7 + $0x88] sm:$0xff]  ;;  %v7882_v29 = vld [vmem:[%s11194_s7 + $0x58] sm:$0xff]  ;;  %5985 = vmatpush.bf16.msrb.mxu2 %v7876_v10 }
 0x1ef   : > { %v2740_v39 = vunpack.c.l.b16 %v1995_v30  ;;  %v3569_v25 = vadd.f32 %v9231_v36, %v3533_v42  ;;  %v3226_v53 = vrot.slane %v3225_v15, 4  ;;  %v3240_v56 = vrot.slane %v3238_v13, 5  ;;  %6652 = vmatpush.bf16.msrb.mxu3 %v7888_v41  ;;  %5764 = vmatpush.bf16.msrb.mxu1 %v7882_v29 }
 0x1f0   : > { %v3235_v5 = vor.u32 %v3234_v31, %v3230_v34  ;;  %v2408_v26 = vrot.slane %v2406_v14, 4  ;;  %v2411_v2 = vrot.slane %v2409_v28, 5  ;;  %v2415_v40 = vshll.u32 %v2127_v8, 16 }
 0x1f1   : > { %v9351_v38 = vpop.f32.mrf.mxu2  ;;  %v2760_v55 = vpack.c.b16 %v2740_v39, %v2739_v58  ;;  %v1511_v61 = vld [vmem:[#allocation2 + $0xb0] sm:$0x1]  ;;  %v3601_v44 = vmax.f32 %v3569_v25, 0.0  ;;  %v3231_v0 = vsel %vm8551_vm10, %v3226_v53, %v3230_v34  ;;  %v2419_v52 = vshrl.u32 %v2127_v8, 16  ;;  %v2943_v53 = vld [vmem:[#allocation2 + $0xac] sm:$0xf] }
 0x1f2   : > { %v1512_v43 = vsel %vm8601_vm2, %v1349_v59, %v1511_v61  ;;  %v3236_v47 = vrot.slane %v3235_v5, 4  ;;  %v3362_v4 = vunpack.c.l.b16 %v3231_v0  ;;  %v2652_v62 = vpop.f32.mrf.mxu1  ;;  %v1585_v21 = vpop.permute.xlu0 %1584  ;;  %v2412_v37 = vor.u32 %v2411_v2, %v2408_v26  ;;  %v1521_v61 = vld [vmem:[#allocation2 + $0xc0] sm:$0xf] }
 0x1f3   : > { %7675 = vmatmul.msk.bf16.gmra.mxu2 %vm2575_vm4, %v2760_v55  ;;  %1513 = vst [vmem:[#allocation2 + $0xb0] sm:$0x1] %v1512_v43  ;;  %v3630_v22 = vpack.c.bf16 %v3601_v44, %v3600_v9  ;;  %v2841_v63 = vadd.f32 %v9334_v7, %v2652_v62  ;;  %v1587_v24 = vpop.permute.xlu1 %1586  ;;  %v2417_v50 = vrot.slane %v2415_v40, 5  ;;  %v2421_v33 = vrot.slane %v2419_v52, 4  ;;  %v2942_v7 = vld [vmem:[#allocation2 + $0xa8] sm:$0xf] }
 0x1f4   : > { %v3241_v16 = vsel %vm8551_vm10, %v3236_v47, %v3240_v56  ;;  %1653 = vst.msk [vmem:[#allocation2 + $0xb4] sm:$0xf] %vm1624_vm0, %v1585_v21  ;;  %v3463_v59 = vpop.f32.mrf.mxu3  ;;  %v2413_v35 = vrot.slane %v2412_v37, 4  ;;  %v2425_v58 = vshll.u32 %v2128_v54, 16  ;;  %v1997_v1 = vshrl.u32 %v1693_v19, 16 }
 0x1f5   : > { %v3363_v11 = vunpack.c.l.b16 %v3241_v16  ;;  %1654 = vst.msk [vmem:[#allocation2 + $0xb8] sm:$0xf] %vm1624_vm0, %v1587_v24  ;;  %v3534_v6 = vadd.f32 %v3463_v59, %v2841_v63  ;;  %v2422_v9 = vor.u32 %v2421_v33, %v2417_v50  ;;  %v2000_v17 = vshll.u32 %v1693_v19, 16  ;;  %7707 = vmatmul.msk.bf16.gmra.mxu0 %vm3664_vm1, %v3630_v22 }
 0x1f6   : > { %v2418_v45 = vsel %vm8551_vm10, %v2413_v35, %v2417_v50  ;;  %v2427_v57 = vrot.slane %v2425_v58, 5  ;;  %v1999_v27 = vrot.slane %v1997_v1, 4  ;;  %v2006_v12 = vshll.u32 %v1694_v23, 16 }
 0x1f7   : > { %v3383_v42 = vpack.c.b16 %v3363_v11, %v3362_v4  ;;  %v9376_v15 = vadd.f32 %v9231_v36, %v3534_v6  ;;  %v2423_v34 = vrot.slane %v2422_v9, 4  ;;  %v2549_v13 = vunpack.c.l.b16 %v2418_v45  ;;  %v1589_v4 = vpop.permute.xlu2 %1588 }
 0x1f8   : > { %v2002_v8 = vrot.slane %v2000_v17, 5  ;;  %v2008_v30 = vrot.slane %v2006_v12, 5  ;;  %v2010_v31 = vshrl.u32 %v1694_v23, 16  ;;  %v2016_v14 = vshll.u32 %v1695_v20, 16  ;;  %v2129_v20 = vld [vmem:[#allocation2 + $0x9c] sm:$0xf] }
 0x1f9   : > { %7692 = vmatmul.msk.bf16.gmra.mxu3 %vm2575_vm4, %v3383_v42  ;;  %v3602_v28 = vmax.f32 %v9376_v15, 0.0  ;;  %v2428_v39 = vsel %vm8551_vm10, %v2423_v34, %v2427_v57  ;;  %v2845_v25 = vpop.f32.mrf.mxu2  ;;  %v3243_v56 = vshrl.u32 %v2942_v7, 16  ;;  %v3246_v5 = vshll.u32 %v2942_v7, 16 }
 0x1fa   : > { %v2550_v54 = vunpack.c.l.b16 %v2428_v39  ;;  %v2003_v26 = vor.u32 %v2002_v8, %v1999_v27  ;;  %v2012_v2 = vrot.slane %v2010_v31, 4  ;;  %v2018_v40 = vrot.slane %v2016_v14, 5  ;;  %v2654_v55 = vpop.f32.mrf.mxu1  ;;  %v1357_v44 = vpop.permute.xlu0 %1356  ;;  %v2944_v0 = vld [vmem:[#allocation2 + $0xb0] sm:$0x1] }
 0x1fb   : > { %v2843_v52 = vadd.f32 %v9351_v38, %v2654_v55  ;;  %v1522_v19 = vsel %vm8464_vm14, %v1357_v44, %v1521_v61  ;;  %v3245_v43 = vrot.slane %v3243_v56, 4  ;;  %v3248_v47 = vrot.slane %v3246_v5, 5 }
 0x1fc   : > { %v2570_v62 = vpack.c.b16 %v2550_v54, %v2549_v13  ;;  %v2004_v21 = vrot.slane %v2003_v26, 4  ;;  %v2013_v37 = vor.u32 %v2012_v2, %v2008_v30  ;;  %1523 = vst [vmem:[#allocation2 + $0xc0] sm:$0xf] %v1522_v19  ;;  %v3465_v23 = vpop.f32.mrf.mxu3  ;;  %v3252_v22 = vshll.u32 %v2943_v53, 16  ;;  %v1696_v13 = vld [vmem:[#allocation2 + $0x9c] sm:$0xf] }
 0x1fd   : > { %1655 = vst.msk [vmem:[#allocation2 + $0xc0] sm:$0xf] %vm1624_vm0, %v1589_v4  ;;  %v3535_v63 = vadd.f32 %v3465_v23, %v2843_v52  ;;  %v3249_v24 = vor.u32 %v3248_v47, %v3245_v43  ;;  %v3256_v50 = vshrl.u32 %v2943_v53, 16  ;;  %v3262_v33 = vshll.u32 %v2944_v0, 16  ;;  %v1698_v19 = vld [vmem:[#allocation2 + $0xa4] sm:$0x1] }
 0x1fe   : > { %7659 = vmatmul.msk.bf16.gmra.mxu1 %vm2575_vm4, %v2570_v62  ;;  %v2009_v48 = vsel %vm8551_vm10, %v2004_v21, %v2008_v30  ;;  %v2014_v38 = vrot.slane %v2013_v37, 4  ;;  %v3254_v16 = vrot.slane %v3252_v22, 5  ;;  %v887_v59 = vrot.slane %v886_v3, 4  ;;  %v2131_v3 = vld [vmem:[#allocation2 + $0xa4] sm:$0x1] }
 0x1ff   : > { %v2741_v35 = vunpack.c.l.b16 %v2009_v48  ;;  %v3571_v58 = vadd.f32 %v9231_v36, %v3535_v63  ;;  %v3250_v1 = vrot.slane %v3249_v24, 4  ;;  %v3258_v11 = vrot.slane %v3256_v50, 4 }
 0x200   : > { %v2019_v6 = vsel %vm8551_vm10, %v2014_v38, %v2018_v40  ;;  %v3264_v9 = vrot.slane %v3262_v33, 5  ;;  %v888_v17 = vrot.slane %v9089_v49, 7  ;;  %v2430_v7 = vshrl.u32 %v2129_v20, 16  ;;  %v1697_v40 = vld [vmem:[#allocation2 + $0xa0] sm:$0xf] }
 0x201   : > { %v2742_v45 = vunpack.c.l.b16 %v2019_v6  ;;  %v3603_v57 = vmax.f32 %v3571_v58, 0.0  ;;  %v3255_v27 = vsel %vm8551_vm10, %v3250_v1, %v3254_v16  ;;  %v3259_v12 = vor.u32 %v3258_v11, %v3254_v16  ;;  %v2847_v30 = vpop.f32.mrf.mxu2  ;;  %v2946_v58 = vld [vmem:[#allocation2 + $0xb8] sm:$0xf] }
 0x202   : > { %v3364_v10 = vunpack.c.l.b16 %v3255_v27  ;;  %v2657_v41 = vpop.f32.mrf.mxu1  ;;  %v1591_v29 = vpop.permute.xlu0 %1590  ;;  %v889_v42 = vsel %vm8322_vm6, %v887_v59, %v888_v17  ;;  %v2432_v15 = vrot.slane %v2430_v7, 4  ;;  %v2433_v34 = vshll.u32 %v2129_v20, 16  ;;  %v2945_v20 = vld [vmem:[#allocation2 + $0xb4] sm:$0xf] }
 0x203   : > { %v2761_v8 = vpack.c.b16 %v2742_v45, %v2741_v35  ;;  %v3631_v49 = vpack.c.bf16 %v3603_v57, %v3602_v28  ;;  %v3260_v31 = vrot.slane %v3259_v12, 4  ;;  %v2846_v14 = vadd.f32 %v2845_v25, %v2657_v41  ;;  %989 = vst.msk [vmem:[#allocation2 + $0xc4] sm:$0xf] %vm942_vm7, %v889_v42  ;;  %v1359_v39 = vpop.permute.xlu1 %1358  ;;  %v2947_v41 = vld [vmem:[#allocation2 + $0xbc] sm:$0x1] }
 0x204   : > { %1524 = vst.msk [vmem:[#allocation2 + $0xc4] sm:$0xf] %vm1410_vm12, %v1359_v39  ;;  %v3468_v53 = vpop.f32.mrf.mxu3  ;;  %v2435_v56 = vrot.slane %v2433_v34, 5  ;;  %v2439_v5 = vshll.u32 %v2130_v18, 16  ;;  %v2443_v54 = vshrl.u32 %v2130_v18, 16  ;;  %v2449_v26 = vshll.u32 %v2131_v3, 16 }
 0x205   : > { %7676 = vmatmul.msk.bf16.gmra.mxu2 %vm2575_vm4, %v2761_v8  ;;  %v3265_v2 = vsel %vm8551_vm10, %v3260_v31, %v3264_v9  ;;  %1656 = vst.msk [vmem:[#allocation2 + $0xc4] sm:$0xf] %vm1624_vm0, %v1591_v29  ;;  %v3536_v28 = vadd.f32 %v3468_v53, %v2846_v14  ;;  %v2021_v25 = vshrl.u32 %v1696_v13, 16  ;;  %v2024_v55 = vshll.u32 %v1696_v13, 16  ;;  %7708 = vmatmul.msk.bf16.gmra.mxu0 %vm3664_vm1, %v3631_v49  ;;  %v2132_v42 = vld [vmem:[#allocation2 + $0xa8] sm:$0xf] }
 0x206   : > { %v3365_v61 = vunpack.c.l.b16 %v3265_v2  ;;  %v2436_v44 = vor.u32 %v2435_v56, %v2432_v15  ;;  %v2441_v0 = vrot.slane %v2439_v5, 5  ;;  %v2445_v52 = vrot.slane %v2443_v54, 4  ;;  %v2133_v49 = vld [vmem:[#allocation2 + $0xac] sm:$0xf] }
 0x207   : > { %v9407_v43 = vadd.f32 %v9231_v36, %v3536_v28  ;;  %v2451_v47 = vrot.slane %v2449_v26, 5  ;;  %v2023_v4 = vrot.slane %v2021_v25, 4  ;;  %v2026_v62 = vrot.slane %v2024_v55, 5 }
 0x208   : > { %v3384_v21 = vpack.c.b16 %v3365_v61, %v3364_v10  ;;  %v2437_v37 = vrot.slane %v2436_v44, 4  ;;  %v2446_v23 = vor.u32 %v2445_v52, %v2441_v0  ;;  %v2030_v22 = vshll.u32 %v1697_v40, 16 }
 0x209   : > { %v3604_v63 = vmax.f32 %v9407_v43, 0.0  ;;  %v2027_v24 = vor.u32 %v2026_v62, %v2023_v4  ;;  %v2034_v50 = vshrl.u32 %v1697_v40, 16  ;;  %v2040_v33 = vshll.u32 %v1698_v19, 16  ;;  %v2134_v40 = vld [vmem:[#allocation2 + $0xb0] sm:$0x1] }
 0x20a   : > { %7693 = vmatmul.msk.bf16.gmra.mxu3 %vm2575_vm4, %v3384_v21  ;;  %v2442_v48 = vsel %vm8551_vm10, %v2437_v37, %v2441_v0  ;;  %v2447_v38 = vrot.slane %v2446_v23, 4  ;;  %v2032_v16 = vrot.slane %v2030_v22, 5  ;;  %v2659_v59 = vpop.f32.mrf.mxu1  ;;  %v890_v35 = vrot.slane %v888_v17, 4  ;;  %v1699_v19 = vld [vmem:[#allocation2 + $0xa8] sm:$0xf] }
 0x20b   : > { %v2551_v1 = vunpack.c.l.b16 %v2442_v48  ;;  %v2028_v11 = vrot.slane %v2027_v24, 4  ;;  %v2036_v6 = vrot.slane %v2034_v50, 4  ;;  %v2042_v9 = vrot.slane %v2040_v33, 5  ;;  %v1361_v2 = vpop.permute.xlu1 %1360  ;;  %v1700_v33 = vld [vmem:[#allocation2 + $0xac] sm:$0xf] }
 0x20c   : > { %v2452_v7 = vsel %vm8551_vm10, %v2447_v38, %v2451_v47  ;;  %v2848_v45 = vadd.f32 %v2847_v30, %v2659_v59  ;;  %990 = vst.msk [vmem:[#allocation2 + $0xc8] sm:$0x1] %vm944_vm8, %v890_v35  ;;  %v3470_v57 = vpop.f32.mrf.mxu3  ;;  %v3267_v27 = vshrl.u32 %v2945_v20, 16  ;;  %v3270_v12 = vshll.u32 %v2945_v20, 16  ;;  %v2850_v17 = vpop.f32.mrf.mxu2 }
 0x20d   : > { %v2552_v18 = vunpack.c.l.b16 %v2452_v7  ;;  %v2033_v3 = vsel %vm8551_vm10, %v2028_v11, %v2032_v16  ;;  %v2037_v10 = vor.u32 %v2036_v6, %v2032_v16  ;;  %v3276_v29 = vshll.u32 %v2946_v58, 16  ;;  %v1701_v7 = vld [vmem:[#allocation2 + $0xb0] sm:$0x1] }
 0x20e   : > { %v2743_v15 = vunpack.c.l.b16 %v2033_v3  ;;  %v3537_v34 = vadd.f32 %v3470_v57, %v2848_v45  ;;  %v3269_v13 = vrot.slane %v3267_v27, 4  ;;  %v3272_v8 = vrot.slane %v3270_v12, 5  ;;  %v2948_v3 = vld [vmem:[#allocation2 + $0xc0] sm:$0xf] }
 0x20f   : > { %v2571_v30 = vpack.c.b16 %v2552_v18, %v2551_v1  ;;  %v2038_v31 = vrot.slane %v2037_v10, 4  ;;  %v3278_v14 = vrot.slane %v3276_v29, 5  ;;  %v3280_v39 = vshrl.u32 %v2946_v58, 16 }
 0x210   : > { %v3573_v53 = vadd.f32 %v9231_v36, %v3537_v34  ;;  %v3273_v56 = vor.u32 %v3272_v8, %v3269_v13  ;;  %v3286_v5 = vshll.u32 %v2947_v41, 16  ;;  %v2454_v54 = vshrl.u32 %v2132_v42, 16 }
 0x211   : > { %7660 = vmatmul.msk.bf16.gmra.mxu1 %vm2575_vm4, %v2571_v30  ;;  %v2043_v26 = vsel %vm8551_vm10, %v2038_v31, %v2042_v9  ;;  %v3282_v28 = vrot.slane %v3280_v39, 4  ;;  %v2457_v25 = vshll.u32 %v2132_v42, 16  ;;  %v2463_v55 = vshll.u32 %v2133_v49, 16  ;;  %v2949_v42 = vld [vmem:[#allocation2 + $0xc4] sm:$0xf] }
 0x212   : > { %v2744_v61 = vunpack.c.l.b16 %v2043_v26  ;;  %v3605_v44 = vmax.f32 %v3573_v53, 0.0  ;;  %v3274_v0 = vrot.slane %v3273_v56, 4  ;;  %v3288_v52 = vrot.slane %v3286_v5, 5 }
 0x213   : > { %v1525_v43 = vld [vmem:[#allocation2 + $0xc8] sm:$0x1]  ;;  %v3283_v47 = vor.u32 %v3282_v28, %v3278_v14  ;;  %v2456_v4 = vrot.slane %v2454_v54, 4  ;;  %v2459_v62 = vrot.slane %v2457_v25, 5  ;;  %v2465_v21 = vrot.slane %v2463_v55, 5  ;;  %v7875_v55 = vld [vmem:[%s11194_s7 + $0x20] sm:$0xff] }
 0x214   : > { %v2762_v37 = vpack.c.b16 %v2744_v61, %v2743_v15  ;;  %v1526_v23 = vsel %vm8601_vm2, %v1361_v2, %v1525_v43  ;;  %v3632_v22 = vpack.c.bf16 %v3605_v44, %v3604_v63  ;;  %v3279_v24 = vsel %vm8551_vm10, %v3274_v0, %v3278_v14  ;;  %v2662_v50 = vpop.f32.mrf.mxu1  ;;  %v3473_v16 = vpop.f32.mrf.mxu3  ;;  %v7887_v61 = vld [vmem:[%s11194_s7 + $0x80] sm:$0xff]  ;;  %v2135_v43 = vld [vmem:[#allocation2 + $0xb4] sm:$0xf]  ;;  %5986 = vmatpush.bf16.msrb.mxu2 %v7875_v55 }
 0x215   : > { %1527 = vst [vmem:[#allocation2 + $0xc8] sm:$0x1] %v1526_v23  ;;  %v3284_v20 = vrot.slane %v3283_v47, 4  ;;  %v3366_v48 = vunpack.c.l.b16 %v3279_v24  ;;  %v2851_v38 = vadd.f32 %v2850_v17, %v2662_v50  ;;  %v2460_v59 = vor.u32 %v2459_v62, %v2456_v4  ;;  %v2852_v46 = vpop.f32.mrf.mxu2  ;;  %6653 = vmatpush.bf16.msrb.mxu3 %v7887_v61  ;;  %v2951_v61 = vld [vmem:[#allocation2 + $0xcc] sm:$0xf] }
 0x216   : > { %7677 = vmatmul.msk.bf16.gmra.mxu2 %vm2575_vm4, %v2762_v37  ;;  %v2467_v35 = vshrl.u32 %v2133_v49, 16  ;;  %v2473_v58 = vshll.u32 %v2134_v40, 16  ;;  %v2045_v1 = vshrl.u32 %v1699_v19, 16  ;;  %v2048_v11 = vshll.u32 %v1699_v19, 16  ;;  %7709 = vmatmul.msk.bf16.gmra.mxu0 %vm3664_vm1, %v3632_v22 }
 0x217   : > { %v3289_v63 = vsel %vm8551_vm10, %v3284_v20, %v3288_v52  ;;  %v3538_v6 = vadd.f32 %v3473_v16, %v2851_v38  ;;  %v2461_v9 = vrot.slane %v2460_v59, 4  ;;  %v2054_v45 = vshll.u32 %v1700_v33, 16  ;;  %v9450_v20 = vld [vmem:[%s11191_s4] ss:$0 sm:$0xff]  ;;  %v2136_v16 = vld [vmem:[#allocation2 + $0xb8] sm:$0xf] }
 0x218   : > { %v3367_v57 = vunpack.c.l.b16 %v3289_v63  ;;  %v2469_v27 = vrot.slane %v2467_v35, 4  ;;  %v2475_v12 = vrot.slane %v2473_v58, 5  ;;  %v2047_v18 = vrot.slane %v2045_v1, 4 }
 0x219   : > { %v9431_v10 = vadd.f32 %v9231_v36, %v3538_v6  ;;  %v2466_v17 = vsel %vm8551_vm10, %v2461_v9, %v2465_v21  ;;  %v2050_v41 = vrot.slane %v2048_v11, 5  ;;  %v2056_v29 = vrot.slane %v2054_v45, 5  ;;  %v2137_v9 = vld [vmem:[#allocation2 + $0xbc] sm:$0x1]  ;;  %v7881_v45 = vld [vmem:[%s11194_s7 + $0x50] sm:$0xff] }
 0x21a   : > { %v3385_v15 = vpack.c.b16 %v3367_v57, %v3366_v48  ;;  %v2470_v34 = vor.u32 %v2469_v27, %v2465_v21  ;;  %v2553_v13 = vunpack.c.l.b16 %v2466_v17  ;;  %v2058_v8 = vshrl.u32 %v1700_v33, 16  ;;  %5765 = vmatpush.bf16.msrb.mxu1 %v7881_v45 }
 0x21b   : > { %v3606_v49 = vmax.f32 %v9431_v10, 0.0  ;;  %v2051_v30 = vor.u32 %v2050_v41, %v2047_v18  ;;  %v2064_v31 = vshll.u32 %v1701_v7, 16  ;;  %v3291_v14 = vshrl.u32 %v2948_v3, 16 }
 0x21c   : > { %7694 = vmatmul.msk.bf16.gmra.mxu3 %vm2575_vm4, %v3385_v15  ;;  %v2471_v39 = vrot.slane %v2470_v34, 4  ;;  %v2060_v36 = vrot.slane %v2058_v8, 4  ;;  %v2664_v53 = vpop.f32.mrf.mxu1  ;;  %v2950_v56 = vld [vmem:[#allocation2 + $0xc8] sm:$0x1]  ;;  %v3294_v5 = vshll.u32 %v2948_v3, 16  ;;  %v3300_v54 = vshll.u32 %v2949_v42, 16  ;;  %v3475_v40 = vpop.f32.mrf.mxu3 }
 0x21d   : > { %v2052_v26 = vrot.slane %v2051_v30, 4  ;;  %v2066_v2 = vrot.slane %v2064_v31, 5  ;;  %v2853_v28 = vadd.f32 %v2852_v46, %v2664_v53  ;;  %v3293_v25 = vrot.slane %v3291_v14, 4  ;;  %v1702_v3 = vld [vmem:[#allocation2 + $0xb4] sm:$0xf] }
 0x21e   : > { %v2476_v44 = vsel %vm8551_vm10, %v2471_v39, %v2475_v12  ;;  %v2061_v0 = vor.u32 %v2060_v36, %v2056_v29  ;;  %v3296_v52 = vrot.slane %v3294_v5, 5  ;;  %v3302_v19 = vrot.slane %v3300_v54, 5  ;;  %v1703_v31 = vld [vmem:[#allocation2 + $0xb8] sm:$0xf] }
 0x21f   : > { %v2554_v47 = vunpack.c.l.b16 %v2476_v44  ;;  %v2057_v4 = vsel %vm8551_vm10, %v2052_v26, %v2056_v29  ;;  %v3539_v62 = vadd.f32 %v3475_v40, %v2853_v28  ;;  %v3304_v21 = vshrl.u32 %v2949_v42, 16  ;;  %v1704_v26 = vld [vmem:[#allocation2 + $0xbc] sm:$0x1] }
 0x220   : > { %v2062_v37 = vrot.slane %v2061_v0, 4  ;;  %v2745_v23 = vunpack.c.l.b16 %v2057_v4  ;;  %v3297_v22 = vor.u32 %v3296_v52, %v3293_v25  ;;  %v3310_v24 = vshll.u32 %v2950_v56, 16 }
 0x221   : > { %v2572_v50 = vpack.c.b16 %v2554_v47, %v2553_v13  ;;  %v2855_v33 = vpop.f32.mrf.mxu2  ;;  %v3575_v48 = vadd.f32 %v9450_v20, %v3539_v62  ;;  %v3306_v38 = vrot.slane %v3304_v21, 4  ;;  %v2478_v59 = vshrl.u32 %v2135_v43, 16  ;;  %v2952_v21 = vld [vmem:[#allocation2 + $0xd0] sm:$0xf] }
 0x222   : > { %v2067_v35 = vsel %vm8551_vm10, %v2062_v37, %v2066_v2  ;;  %v3298_v58 = vrot.slane %v3297_v22, 4  ;;  %v3312_v1 = vrot.slane %v3310_v24, 5  ;;  %v2481_v11 = vshll.u32 %v2135_v43, 16 }
 0x223   : > { %7661 = vmatmul.msk.bf16.gmra.mxu1 %vm2575_vm4, %v2572_v50  ;;  %v2746_v46 = vunpack.c.l.b16 %v2067_v35  ;;  %v3607_v63 = vmax.f32 %v3575_v48, 0.0  ;;  %v3307_v6 = vor.u32 %v3306_v38, %v3302_v19  ;;  %v2480_v7 = vrot.slane %v2478_v59, 4 }
 0x224   : > { %v3303_v57 = vsel %vm8551_vm10, %v3298_v58, %v3302_v19  ;;  %v2483_v27 = vrot.slane %v2481_v11, 5  ;;  %v2487_v12 = vshll.u32 %v2136_v16, 16  ;;  %v2491_v18 = vshrl.u32 %v2136_v16, 16  ;;  %v2953_v16 = vld [vmem:[#allocation2 + $0xd4] sm:$0x1] }
 0x225   : > { %v2763_v10 = vpack.c.b16 %v2746_v46, %v2745_v23  ;;  %v3633_v17 = vpack.c.bf16 %v3607_v63, %v3606_v49  ;;  %v3308_v41 = vrot.slane %v3307_v6, 4  ;;  %v3368_v29 = vunpack.c.l.b16 %v3303_v57  ;;  %v3478_v42 = vpop.f32.mrf.mxu3  ;;  %v2138_v63 = vld [vmem:[#allocation2 + $0xc0] sm:$0xf]  ;;  %v2139_v57 = vld [vmem:[#allocation2 + $0xc4] sm:$0xf] }
 0x226   : > { %v2667_v15 = vpop.f32.mrf.mxu1  ;;  %v2484_v34 = vor.u32 %v2483_v27, %v2480_v7  ;;  %v2489_v13 = vrot.slane %v2487_v12, 5  ;;  %v2493_v8 = vrot.slane %v2491_v18, 4  ;;  %v2497_v30 = vshll.u32 %v2137_v9, 16 }
 0x227   : > { %7678 = vmatmul.msk.bf16.gmra.mxu2 %vm2575_vm4, %v2763_v10  ;;  %v3313_v14 = vsel %vm8551_vm10, %v3308_v41, %v3312_v1  ;;  %v2856_v39 = vadd.f32 %v2855_v33, %v2667_v15  ;;  %v2069_v36 = vshrl.u32 %v1702_v3, 16  ;;  %v2072_v53 = vshll.u32 %v1702_v3, 16  ;;  %7710 = vmatmul.msk.bf16.gmra.mxu0 %vm3664_vm1, %v3633_v17 }
 0x228   : > { %v3369_v49 = vunpack.c.l.b16 %v3313_v14  ;;  %v2485_v56 = vrot.slane %v2484_v34, 4  ;;  %v2494_v5 = vor.u32 %v2493_v8, %v2489_v13  ;;  %v2499_v54 = vrot.slane %v2497_v30, 5 }
 0x229   : > { %v2857_v2 = vpop.f32.mrf.mxu2  ;;  %v3540_v28 = vadd.f32 %v3478_v42, %v2856_v39  ;;  %v2071_v40 = vrot.slane %v2069_v36, 4  ;;  %v2074_v25 = vrot.slane %v2072_v53, 5  ;;  %v2078_v55 = vshll.u32 %v1703_v31, 16  ;;  %v2140_v36 = vld [vmem:[#allocation2 + $0xc8] sm:$0x1] }
 0x22a   : > { %v3386_v44 = vpack.c.b16 %v3369_v49, %v3368_v29  ;;  %v2490_v0 = vsel %vm8551_vm10, %v2485_v56, %v2489_v13  ;;  %v2495_v52 = vrot.slane %v2494_v5, 4  ;;  %v2082_v19 = vshrl.u32 %v1703_v31, 16 }
 0x22b   : > { %v3576_v43 = vadd.f32 %v9450_v20, %v3540_v28  ;;  %v2555_v47 = vunpack.c.l.b16 %v2490_v0  ;;  %v2075_v4 = vor.u32 %v2074_v25, %v2071_v40  ;;  %v2080_v62 = vrot.slane %v2078_v55, 5 }
 0x22c   : > { %7695 = vmatmul.msk.bf16.gmra.mxu3 %vm2575_vm4, %v3386_v44  ;;  %v2500_v37 = vsel %vm8551_vm10, %v2495_v52, %v2499_v54  ;;  %v2084_v23 = vrot.slane %v2082_v19, 4  ;;  %v2088_v22 = vshll.u32 %v1704_v26, 16  ;;  %v3315_v24 = vshrl.u32 %v2951_v61, 16 }
 0x22d   : > { %v3608_v50 = vmax.f32 %v3576_v43, 0.0  ;;  %v2556_v33 = vunpack.c.l.b16 %v2500_v37  ;;  %v2076_v48 = vrot.slane %v2075_v4, 4  ;;  %v3480_v38 = vpop.f32.mrf.mxu3  ;;  %v3318_v59 = vshll.u32 %v2951_v61, 16 }
 0x22e   : > { %v2085_v35 = vor.u32 %v2084_v23, %v2080_v62  ;;  %v2090_v58 = vrot.slane %v2088_v22, 5  ;;  %v2669_v1 = vpop.f32.mrf.mxu1  ;;  %v3317_v11 = vrot.slane %v3315_v24, 4  ;;  %v3324_v46 = vshll.u32 %v2952_v21, 16 }
 0x22f   : > { %v2573_v6 = vpack.c.b16 %v2556_v33, %v2555_v47  ;;  %v2081_v9 = vsel %vm8551_vm10, %v2076_v48, %v2080_v62  ;;  %v2858_v7 = vadd.f32 %v2857_v2, %v2669_v1  ;;  %v3320_v45 = vrot.slane %v3318_v59, 5 }
 0x230   : > { %v2086_v27 = vrot.slane %v2085_v35, 4  ;;  %v2747_v12 = vunpack.c.l.b16 %v2081_v9  ;;  %v3326_v18 = vrot.slane %v3324_v46, 5  ;;  %v3328_v3 = vshrl.u32 %v2952_v21, 16 }
 0x231   : > { %v2860_v10 = vpop.f32.mrf.mxu2  ;;  %v3541_v17 = vadd.f32 %v3480_v38, %v2858_v7  ;;  %v3321_v41 = vor.u32 %v3320_v45, %v3317_v11  ;;  %v3334_v29 = vshll.u32 %v2953_v16, 16  ;;  %v2502_v42 = vshrl.u32 %v2138_v63, 16 }
 0x232   : > { %v2091_v15 = vsel %vm8551_vm10, %v2086_v27, %v2090_v58  ;;  %v3330_v34 = vrot.slane %v3328_v3, 4  ;;  %v2505_v13 = vshll.u32 %v2138_v63, 16  ;;  %v2511_v8 = vshll.u32 %v2139_v57, 16 }
 0x233   : > { %7662 = vmatmul.msk.bf16.gmra.mxu1 %vm2575_vm4, %v2573_v6  ;;  %v2748_v30 = vunpack.c.l.b16 %v2091_v15  ;;  %v3577_v31 = vadd.f32 %v9450_v20, %v3541_v17  ;;  %v3322_v14 = vrot.slane %v3321_v41, 4  ;;  %v3336_v39 = vrot.slane %v3334_v29, 5  ;;  %v7880_v17 = vld [vmem:[%s11194_s7 + $0x48] sm:$0xff] }
 0x234   : > { %v3331_v53 = vor.u32 %v3330_v34, %v3326_v18  ;;  %v2504_v49 = vrot.slane %v2502_v42, 4  ;;  %v2507_v56 = vrot.slane %v2505_v13, 5  ;;  %v2513_v5 = vrot.slane %v2511_v8, 5  ;;  %5766 = vmatpush.bf16.msrb.mxu1 %v7880_v17  ;;  %v9504_v34 = vld [vmem:[%s11193_s6] ss:$0 sm:$0xff] }
 0x235   : > { %v2764_v54 = vpack.c.b16 %v2748_v30, %v2747_v12  ;;  %v3609_v26 = vmax.f32 %v3577_v31, 0.0  ;;  %v3327_v2 = vsel %vm8551_vm10, %v3322_v14, %v3326_v18  ;;  %v3483_v28 = vpop.f32.mrf.mxu3  ;;  %v2515_v40 = vshrl.u32 %v2139_v57, 16  ;;  %v7874_v12 = vld [vmem:[%s11194_s7 + $0x18] sm:$0xff] }
 0x236   : > { %v3332_v25 = vrot.slane %v3331_v53, 4  ;;  %v2672_v55 = vpop.f32.mrf.mxu1  ;;  %v2508_v61 = vor.u32 %v2507_v56, %v2504_v49  ;;  %v2521_v44 = vshll.u32 %v2140_v36, 16  ;;  %v3370_v52 = vunpack.c.l.b16 %v3327_v2  ;;  %v7886_v18 = vld [vmem:[%s11194_s7 + $0x78] sm:$0xff]  ;;  %5987 = vmatpush.bf16.msrb.mxu2 %v7874_v12 }
 0x237   : > { %7679 = vmatmul.msk.bf16.gmra.mxu2 %vm2575_vm4, %v2764_v54  ;;  %v3634_v0 = vpack.c.bf16 %v3609_v26, %v3608_v50  ;;  %v2517_v19 = vrot.slane %v2515_v40, 4  ;;  %v2861_v62 = vadd.f32 %v2860_v10, %v2672_v55  ;;  %6654 = vmatpush.bf16.msrb.mxu3 %v7886_v18  ;;  %vm419_vm3 = vcmask 778240  }
 0x238   : > { %v3337_v43 = vsel %vm8551_vm10, %v3332_v25, %v3336_v39  ;;  %v2523_v37 = vrot.slane %v2521_v44, 5  ;;  %v2509_v23 = vrot.slane %v2508_v61, 4  ;;  %vm4027_vm7 = vcmask 257025  }
 0x239   : > { %v2862_v47 = vpop.f32.mrf.mxu2  ;;  %v3371_v4 = vunpack.c.l.b16 %v3337_v43  ;;  %v2518_v21 = vor.u32 %v2517_v19, %v2513_v5  ;;  %7711 = vmatmul.msk.bf16.gmra.mxu0 %vm3664_vm1, %v3634_v0  ;;  %v3542_v50 = vadd.f32 %v3483_v28, %v2861_v62  ;;  %vm4494_vm8 = vcmask 519424  }
 0x23a   : > { %v2514_v33 = vsel %vm8551_vm10, %v2509_v23, %v2513_v5  ;;  %vm9719_vm12 = vmand %vm4494_vm8, %vm1411_vm13  ;;  %vm4029_vm13 = vcmask 257024   ;;  %vm4031_vm14 = vcmask 253952   ;;  %vm4707_vm0 = vcmask 781824  }
 0x23b   : > { %v3387_v22 = vpack.c.b16 %v3371_v4, %v3370_v52  ;;  %v2519_v24 = vrot.slane %v2518_v21, 4  ;;  %v2557_v35 = vunpack.c.l.b16 %v2514_v33  ;;  %v3578_v1 = vadd.f32 %v9450_v20, %v3542_v50 }
 0x23d   : > { %7696 = vmatmul.msk.bf16.gmra.mxu3 %vm2575_vm4, %v3387_v22  ;;  %v2524_v48 = vsel %vm8551_vm10, %v2519_v24, %v2523_v37  ;;  %v3485_v38 = vpop.f32.mrf.mxu3  ;;  %v3610_v9 = vmax.f32 %v3578_v1, 0.0 }
 0x23e   : > { %v2558_v16 = vunpack.c.l.b16 %v2524_v48  ;;  %v2674_v59 = vpop.f32.mrf.mxu1 }
 0x23f   : > { %v2863_v58 = vadd.f32 %v2862_v47, %v2674_v59 }
 0x240   : > { %v2574_v11 = vpack.c.b16 %v2558_v16, %v2557_v35 }
 0x241   : > { %v2865_v46 = vpop.f32.mrf.mxu2  ;;  %v3543_v63 = vadd.f32 %v3485_v38, %v2863_v58 }
 0x243   : > { %7663 = vmatmul.msk.bf16.gmra.mxu1 %vm2575_vm4, %v2574_v11  ;;  %v3579_v6 = vadd.f32 %v9450_v20, %v3543_v63  ;;  %vm9863_vm4 = vmand %vm4501_vm5, %vm991_vm9  ;;  %vm5713_vm9 = vcmask 785408  }
 0x245   : > { %v3611_v7 = vmax.f32 %v3579_v6, 0.0 }
 0x246   : > { %v2677_v45 = vpop.f32.mrf.mxu1  ;;  %v3488_v57 = vpop.f32.mrf.mxu3 }
 0x247   : > { %v3635_v27 = vpack.c.bf16 %v3611_v7, %v3610_v9  ;;  %v2866_v10 = vadd.f32 %v2865_v46, %v2677_v45 }
 0x249   : > { %v2867_v3 = vpop.f32.mrf.mxu2  ;;  %7712 = vmatmul.msk.bf16.gmra.mxu0 %vm3664_vm1, %v3635_v27  ;;  %v3544_v41 = vadd.f32 %v3488_v57, %v2866_v10 }
 0x24b   : > { %v3580_v13 = vadd.f32 %v9450_v20, %v3544_v41 }
 0x24d   : > { %v3612_v36 = vmax.f32 %v3580_v13, 0.0 }
 0x24e   : > { %v2679_v29 = vpop.f32.mrf.mxu1  ;;  %v3490_v42 = vpop.f32.mrf.mxu3 }
 0x24f   : > { %v2868_v15 = vadd.f32 %v2867_v3, %v2679_v29 }
 0x251   : > { %v2870_v8 = vpop.f32.mrf.mxu2  ;;  %v3545_v30 = vadd.f32 %v3490_v42, %v2868_v15 }
 0x252   : > { %v3722_v31 = vpop.f32.mrf.mxu0 }
 0x253   : > { %v3581_v14 = vadd.f32 %v9450_v20, %v3545_v30  ;;  %v3723_v39 = vadd.f32 %v9504_v34, %v3722_v31 }
 0x255   : > { %v3613_v53 = vmax.f32 %v3581_v14, 0.0  ;;  %v3802_v49 = vmax.f32 %v3723_v39, 0.0 }
 0x256   : > { %v3493_v56 = vpop.f32.mrf.mxu3 }
 0x257   : > { %v3636_v5 = vpack.c.bf16 %v3613_v53, %v3612_v36  ;;  %v2682_v54 = vpop.f32.mrf.mxu1  ;;  %v9509_v26 = vpack.c.bf16 %v3802_v49, %v3802_v49  ;;  %v7873_v53 = vld [vmem:[%s11194_s7 + $0x10] sm:$0xff] }
 0x258   : > { %v2871_v40 = vadd.f32 %v2870_v8, %v2682_v54  ;;  %5988 = vmatpush.bf16.msrb.mxu2 %v7873_v53 }
 0x259   : > { %v2872_v2 = vpop.f32.mrf.mxu2  ;;  %7713 = vmatmul.msk.bf16.gmra.mxu0 %vm3664_vm1, %v3636_v5  ;;  %v4079_v28 = vshrl.u32 %v9509_v26, 16  ;;  %v4082_v44 = vshll.u32 %v9509_v26, 16 }
 0x25a   : > { %v3724_v25 = vpop.f32.mrf.mxu0  ;;  %v3546_v19 = vadd.f32 %v3493_v56, %v2871_v40 }
 0x25b   : > { %v3725_v55 = vadd.f32 %v9504_v34, %v3724_v25  ;;  %v4081_v61 = vrot.slane %v4079_v28, 7 }
 0x25c   : > { %v3582_v37 = vadd.f32 %v9450_v20, %v3546_v19 }
 0x25d   : > { %v3803_v0 = vmax.f32 %v3725_v55, 0.0  ;;  %v4084_v52 = vor.u32 %v4082_v44, %v4081_v61  ;;  %v4085_v59 = vrot.slane %v4081_v61, 4  ;;  %v7885_v55 = vld [vmem:[%s11194_s7 + $0x70] sm:$0xff] }
 0x25e   : > { %v3495_v4 = vpop.f32.mrf.mxu3  ;;  %v3614_v58 = vmax.f32 %v3582_v37, 0.0  ;;  %6655 = vmatpush.bf16.msrb.mxu3 %v7885_v55 }
 0x25f   : > { %v2684_v43 = vpop.f32.mrf.mxu1  ;;  %v9515_v47 = vpack.c.bf16 %v3803_v0, %v3803_v0  ;;  %4350 = vrot.lane.b32.xlu0 %v4084_v52, %s8118_s12 }
 0x260   : > { %v2873_v62 = vadd.f32 %v2872_v2, %v2684_v43 }
 0x261   : > { %v4087_v21 = vshrl.u32 %v9515_v47, 16  ;;  %v4090_v48 = vshll.u32 %v9515_v47, 16 }
 0x262   : > { %v2875_v23 = vpop.f32.mrf.mxu2  ;;  %v3547_v22 = vadd.f32 %v3495_v4, %v2873_v62  ;;  %v3727_v24 = vpop.f32.mrf.mxu0 }
 0x263   : > { %v3728_v33 = vadd.f32 %v9504_v34, %v3727_v24  ;;  %v9521_v50 = vrot.slane %v4087_v21, 7  ;;  %v7879_v24 = vld [vmem:[%s11194_s7 + $0x40] sm:$0xff] }
 0x264   : > { %v3583_v38 = vadd.f32 %v9450_v20, %v3547_v22  ;;  %5767 = vmatpush.bf16.msrb.mxu1 %v7879_v24 }
 0x265   : > { %v3804_v16 = vmax.f32 %v3728_v33, 0.0  ;;  %v4092_v35 = vor.u32 %v4090_v48, %v9521_v50 }
 0x266   : > { %v3615_v1 = vmax.f32 %v3583_v38, 0.0 }
 0x267   : > { %v9526_v11 = vpack.c.bf16 %v3804_v16, %v3804_v16  ;;  %v4093_v46 = vsel %vm8347_vm11, %v4085_v59, %v4092_v35 }
 0x268   : > { %v3637_v63 = vpack.c.bf16 %v3615_v1, %v3614_v58  ;;  %4352 = vrot.lane.b32.xlu1 %v4093_v46, %s8118_s12 }
 0x269   : > { %v4096_v6 = vshrl.u32 %v9526_v11, 16  ;;  %v4099_v27 = vshll.u32 %v9526_v11, 16 }
 0x26a   : > { %v3498_v9 = vpop.f32.mrf.mxu3  ;;  %7714 = vmatmul.msk.bf16.gmra.mxu0 %vm3664_vm1, %v3637_v63  ;;  %v3729_v45 = vpop.f32.mrf.mxu0 }
 0x26b   : > { %v2687_v7 = vpop.f32.mrf.mxu1  ;;  %v4098_v57 = vrot.slane %v4096_v6, 7  ;;  %v2877_v12 = vpop.f32.mrf.mxu2  ;;  %v3730_v18 = vadd.f32 %v9504_v34, %v3729_v45 }
 0x26c   : > { %v2876_v10 = vadd.f32 %v2875_v23, %v2687_v7 }
 0x26d   : > { %v4101_v3 = vor.u32 %v4099_v27, %v4098_v57  ;;  %v3805_v17 = vmax.f32 %v3730_v18, 0.0  ;;  %v4102_v36 = vrot.slane %v4098_v57, 4 }
 0x26e   : > { %v3548_v29 = vadd.f32 %v3498_v9, %v2876_v10  ;;  %v4094_v9 = vrot.slane %v9521_v50, 4 }
 0x26f   : > { %4356 = vrot.lane.b32.xlu2 %v4101_v3, %s8118_s12  ;;  %v9536_v41 = vpack.c.bf16 %v3805_v17, %v3805_v17 }
 0x270   : > { %4615 = vrot.lane.b32.xlu1 %v9526_v11, %s8119_s15  ;;  %v3584_v49 = vadd.f32 %v9450_v20, %v3548_v29 }
 0x271   : > { %v4104_v15 = vshrl.u32 %v9536_v41, 16  ;;  %v4107_v39 = vshll.u32 %v9536_v41, 16 }
 0x272   : > { %v3500_v42 = vpop.f32.mrf.mxu3  ;;  %v3732_v8 = vpop.f32.mrf.mxu0  ;;  %v3616_v61 = vmax.f32 %v3584_v49, 0.0 }
 0x273   : > { %v2689_v13 = vpop.f32.mrf.mxu1  ;;  %v3733_v31 = vadd.f32 %v9504_v34, %v3732_v8  ;;  %v4106_v14 = vrot.slane %v4104_v15, 7 }
 0x274   : > { %v2878_v30 = vadd.f32 %v2877_v12, %v2689_v13 }
 0x275   : > { %v3806_v54 = vmax.f32 %v3733_v31, 0.0  ;;  %v4109_v2 = vor.u32 %v4107_v39, %v4106_v14  ;;  %v4111_v62 = vrot.slane %v4106_v14, 4 }
 0x276   : > { %v2880_v56 = vpop.f32.mrf.mxu2  ;;  %v3549_v5 = vadd.f32 %v3500_v42, %v2878_v30 }
 0x277   : > { %4617 = vrot.lane.b32.xlu2 %v9536_v41, %s8119_s15  ;;  %v4110_v40 = vsel %vm8347_vm11, %v4102_v36, %v4109_v2  ;;  %v9554_v25 = vpack.c.bf16 %v3806_v54, %v3806_v54 }
 0x278   : > { %v3585_v28 = vadd.f32 %v9450_v20, %v3549_v5  ;;  %4613 = vrot.lane.b32.xlu1 %v9515_v47, %s8119_s15  ;;  %4358 = vrot.lane.b32.xlu0 %v4110_v40, %s8118_s12 }
 0x279   : > { %v4113_v21 = vshrl.u32 %v9554_v25, 16  ;;  %v4116_v45 = vshll.u32 %v9554_v25, 16 }
 0x27a   : > { %v3617_v44 = vmax.f32 %v3585_v28, 0.0  ;;  %v3734_v52 = vpop.f32.mrf.mxu0 }
 0x27b   : > { %v2692_v0 = vpop.f32.mrf.mxu1  ;;  %v3735_v4 = vadd.f32 %v9504_v34, %v3734_v52  ;;  %v4115_v48 = vrot.slane %v4113_v21, 7 }
 0x27c   : > { %v3638_v19 = vpack.c.bf16 %v3617_v44, %v3616_v61  ;;  %v3503_v43 = vpop.f32.mrf.mxu3  ;;  %v2881_v23 = vadd.f32 %v2880_v56, %v2692_v0 }
 0x27d   : > { %v3807_v22 = vmax.f32 %v3735_v4, 0.0  ;;  %v4119_v7 = vrot.slane %v4115_v48, 4  ;;  %v4118_v3 = vor.u32 %v4116_v45, %v4115_v48 }
 0x27e   : > { %v2882_v37 = vpop.f32.mrf.mxu2  ;;  %7715 = vmatmul.msk.bf16.gmra.mxu0 %vm3664_vm1, %v3638_v19  ;;  %v3550_v38 = vadd.f32 %v3503_v43, %v2881_v23 }
 0x27f   : > { %4360 = vrot.lane.b32.xlu2 %v4111_v62, %s8118_s12  ;;  %v9567_v33 = vpack.c.bf16 %v3807_v22, %v3807_v22 }
 0x280   : > { %4611 = vrot.lane.b32.xlu0 %v9509_v26, %s8119_s15  ;;  %v3586_v57 = vadd.f32 %v9450_v20, %v3550_v38 }
 0x281   : > { %v4121_v16 = vshrl.u32 %v9567_v33, 16  ;;  %v4124_v6 = vshll.u32 %v9567_v33, 16 }
 0x282   : > { %v3737_v35 = vpop.f32.mrf.mxu0  ;;  %v3618_v50 = vmax.f32 %v3586_v57, 0.0 }
 0x283   : > { %v2694_v59 = vpop.f32.mrf.mxu1  ;;  %v3738_v46 = vadd.f32 %v9504_v34, %v3737_v35  ;;  %v4123_v63 = vrot.slane %v4121_v16, 7 }
 0x284   : > { %v2883_v58 = vadd.f32 %v2882_v37, %v2694_v59  ;;  %v3505_v1 = vpop.f32.mrf.mxu3 }
 0x285   : > { %v3808_v12 = vmax.f32 %v3738_v46, 0.0  ;;  %v4126_v18 = vor.u32 %v4124_v6, %v4123_v63  ;;  %v4128_v53 = vrot.slane %v4123_v63, 4 }
 0x286   : > { %v3551_v27 = vadd.f32 %v3505_v1, %v2883_v58 }
 0x287   : > { %4354 = vrot.lane.b32.xlu2 %v4094_v9, %s8118_s12  ;;  %v4127_v29 = vsel %vm8347_vm11, %v4119_v7, %v4126_v18  ;;  %v9581_v42 = vpack.c.bf16 %v3808_v12, %v3808_v12 }
 0x288   : > { %v2885_v10 = vpop.f32.mrf.mxu2  ;;  %v3587_v17 = vadd.f32 %v9450_v20, %v3551_v27  ;;  %4364 = vrot.lane.b32.xlu1 %v4127_v29, %s8118_s12  ;;  %4362 = vrot.lane.b32.xlu0 %v4118_v3, %s8118_s12  ;;  %v7884_v29 = vld [vmem:[%s11194_s7 + $0x68] sm:$0xff] }
 0x289   : > { %v4130_v14 = vshrl.u32 %v9581_v42, 16  ;;  %v4133_v40 = vshll.u32 %v9581_v42, 16  ;;  %6656 = vmatpush.bf16.msrb.mxu3 %v7884_v29 }
 0x28a   : > { %v3619_v15 = vmax.f32 %v3587_v17, 0.0  ;;  %v3739_v13 = vpop.f32.mrf.mxu0  ;;  %v7872_v17 = vld [vmem:[%s11194_s7 + $0x8] sm:$0xff] }
 0x28b   : > { %v3740_v30 = vadd.f32 %v9504_v34, %v3739_v13  ;;  %v4132_v54 = vrot.slane %v4130_v14, 7  ;;  %5989 = vmatpush.bf16.msrb.mxu2 %v7872_v17 }
 0x28c   : > { %v3639_v8 = vpack.c.bf16 %v3619_v15, %v3618_v50 }
 0x28d   : > { %v3508_v31 = vpop.f32.mrf.mxu3  ;;  %v3809_v36 = vmax.f32 %v3740_v30, 0.0  ;;  %v4135_v19 = vor.u32 %v4133_v40, %v4132_v54  ;;  %v4136_v62 = vrot.slane %v4132_v54, 4 }
 0x28e   : > { %v2697_v39 = vpop.f32.mrf.mxu1  ;;  %7716 = vmatmul.msk.bf16.gmra.mxu0 %vm3664_vm1, %v3639_v8 }
 0x28f   : > { %4619 = vrot.lane.b32.xlu2 %v9554_v25, %s8119_s15  ;;  %v9590_v56 = vpack.c.bf16 %v3809_v36, %v3809_v36  ;;  %v2886_v5 = vadd.f32 %v2885_v10, %v2697_v39 }
 0x290   : > { %v2887_v49 = vpop.f32.mrf.mxu2  ;;  %4366 = vrot.lane.b32.xlu1 %v4128_v53, %s8118_s12  ;;  %4621 = vrot.lane.b32.xlu0 %v9567_v33, %s8119_s15 }
 0x291   : > { %v4138_v2 = vshrl.u32 %v9590_v56, 16  ;;  %v4141_v44 = vshll.u32 %v9590_v56, 16  ;;  %v3552_v0 = vadd.f32 %v3508_v31, %v2886_v5 }
 0x293   : > { %v3742_v28 = vpop.f32.mrf.mxu0  ;;  %v4140_v61 = vrot.slane %v4138_v2, 7  ;;  %v3588_v24 = vadd.f32 %v9450_v20, %v3552_v0 }
 0x294   : > { %v3743_v55 = vadd.f32 %v9504_v34, %v3742_v28 }
 0x295   : > { %v3510_v52 = vpop.f32.mrf.mxu3  ;;  %v4143_v21 = vor.u32 %v4141_v44, %v4140_v61  ;;  %v3620_v63 = vmax.f32 %v3588_v24, 0.0  ;;  %v4145_v18 = vrot.slane %v4140_v61, 4 }
 0x296   : > { %v2699_v43 = vpop.f32.mrf.mxu1  ;;  %v3810_v4 = vmax.f32 %v3743_v55, 0.0 }
 0x297   : > { %v2888_v37 = vadd.f32 %v2887_v49, %v2699_v43  ;;  %4368 = vrot.lane.b32.xlu2 %v4135_v19, %s8118_s12  ;;  %v4144_v22 = vsel %vm8347_vm11, %v4136_v62, %v4143_v21  ;;  %v7878_v49 = vld [vmem:[%s11194_s7 + $0x38] sm:$0xff] }
 0x298   : > { %v9600_v23 = vpack.c.bf16 %v3810_v4, %v3810_v4  ;;  %4623 = vrot.lane.b32.xlu1 %v9581_v42, %s8119_s15  ;;  %4370 = vrot.lane.b32.xlu0 %v4144_v22, %s8118_s12 }
 0x299   : > { %v2890_v48 = vpop.f32.mrf.mxu2  ;;  %v3553_v38 = vadd.f32 %v3510_v52, %v2888_v37  ;;  %5768 = vmatpush.bf16.msrb.mxu1 %v7878_v49 }
 0x29a   : > { %v4147_v16 = vshrl.u32 %v9600_v23, 16  ;;  %v4150_v46 = vshll.u32 %v9600_v23, 16 }
 0x29b   : > { %v3589_v59 = vadd.f32 %v9450_v20, %v3553_v38  ;;  %v3744_v35 = vpop.f32.mrf.mxu0  ;;  %v3903_v38 = vrot.slane %v9526_v11, 7 }
 0x29c   : > { %v3745_v58 = vadd.f32 %v9504_v34, %v3744_v35  ;;  %v4149_v1 = vrot.slane %v4147_v16, 7 }
 0x29d   : > { %v3621_v6 = vmax.f32 %v3589_v59, 0.0  ;;  %4033 = vst.msk [vmem:[#allocation3 + $0x18] sm:$0xe] %vm4027_vm7, %v3903_v38 }
 0x29e   : > { %v3811_v9 = vmax.f32 %v3745_v58, 0.0  ;;  %v4152_v7 = vor.u32 %v4150_v46, %v4149_v1  ;;  %v4153_v31 = vrot.slane %v4149_v1, 4 }
 0x29f   : > { %v3640_v45 = vpack.c.bf16 %v3621_v6, %v3620_v63  ;;  %v3513_v57 = vpop.f32.mrf.mxu3  ;;  %4625 = vrot.lane.b32.xlu2 %v9590_v56, %s8119_s15  ;;  %v8120_v63 = vmov 1065369472  }
 0x2a0   : > { %v2702_v27 = vpop.f32.mrf.mxu1  ;;  %v9614_v12 = vpack.c.bf16 %v3811_v9, %v3811_v9  ;;  %4374 = vrot.lane.b32.xlu1 %v4152_v7, %s8118_s12  ;;  %4372 = vrot.lane.b32.xlu0 %v4145_v18, %s8118_s12  ;;  %427 = vst.msk [vmem:[#allocation3 + $0x18] sm:$0x1] %vm419_vm3, %v8120_v63 }
 0x2a1   : > { %v2892_v3 = vpop.f32.mrf.mxu2  ;;  %7717 = vmatmul.msk.bf16.gmra.mxu0 %vm3664_vm1, %v3640_v45  ;;  %v2891_v50 = vadd.f32 %v2890_v48, %v2702_v27  ;;  %420 = vst.msk [vmem:[#allocation3 + $0x8] sm:$0x1] %vm419_vm3, %v8120_v63 }
 0x2a2   : > { %v4155_v10 = vshrl.u32 %v9614_v12, 16  ;;  %v4158_v8 = vshll.u32 %v9614_v12, 16  ;;  %424 = vst.msk [vmem:[#allocation3 + $0xd4] sm:$0x1] %vm419_vm3, %v8120_v63 }
 0x2a3   : > { %v3554_v39 = vadd.f32 %v3513_v57, %v2891_v50  ;;  %426 = vst.msk [vmem:[#allocation3 + $0xc] sm:$0x1] %vm419_vm3, %v8120_v63 }
 0x2a4   : > { %v3747_v15 = vpop.f32.mrf.mxu0  ;;  %v4157_v13 = vrot.slane %v4155_v10, 7  ;;  %428 = vst.msk [vmem:[#allocation3 + $0x24] sm:$0x1] %vm419_vm3, %v8120_v63 }
 0x2a5   : > { %v3748_v30 = vadd.f32 %v9504_v34, %v3747_v15  ;;  %v3590_v55 = vadd.f32 %v9450_v20, %v3554_v39  ;;  %429 = vst.msk [vmem:[#allocation3 + $0x30] sm:$0x1] %vm419_vm3, %v8120_v63 }
 0x2a6   : > { %v4160_v14 = vor.u32 %v4158_v8, %v4157_v13  ;;  %v4162_v62 = vrot.slane %v4157_v13, 4  ;;  %430 = vst.msk [vmem:[#allocation3 + $0x3c] sm:$0x1] %vm419_vm3, %v8120_v63 }
 0x2a7   : > { %v3515_v36 = vpop.f32.mrf.mxu3  ;;  %v3812_v53 = vmax.f32 %v3748_v30, 0.0  ;;  %v3622_v21 = vmax.f32 %v3590_v55, 0.0  ;;  %431 = vst.msk [vmem:[#allocation3 + $0x48] sm:$0x1] %vm419_vm3, %v8120_v63 }
 0x2a8   : > { %v2704_v5 = vpop.f32.mrf.mxu1  ;;  %v4161_v54 = vsel %vm8347_vm11, %v4153_v31, %v4160_v14  ;;  %4629 = vrot.lane.b32.xlu1 %v9614_v12, %s8119_s15  ;;  %4627 = vrot.lane.b32.xlu0 %v9600_v23, %s8119_s15  ;;  %432 = vst.msk [vmem:[#allocation3 + $0x54] sm:$0x1] %vm419_vm3, %v8120_v63 }
 0x2a9   : > { %v2893_v2 = vadd.f32 %v2892_v3, %v2704_v5  ;;  %v9633_v28 = vpack.c.bf16 %v3812_v53, %v3812_v53  ;;  %4376 = vrot.lane.b32.xlu2 %v4161_v54, %s8118_s12  ;;  %433 = vst.msk [vmem:[#allocation3 + $0x60] sm:$0x1] %vm419_vm3, %v8120_v63 }
 0x2aa   : > { %v2895_v40 = vpop.f32.mrf.mxu2  ;;  %434 = vst.msk [vmem:[#allocation3 + $0x6c] sm:$0x1] %vm419_vm3, %v8120_v63 }
 0x2ab   : > { %v3555_v61 = vadd.f32 %v3515_v36, %v2893_v2  ;;  %v4164_v44 = vshrl.u32 %v9633_v28, 16  ;;  %v4167_v4 = vshll.u32 %v9633_v28, 16  ;;  %435 = vst.msk [vmem:[#allocation3 + $0x78] sm:$0x1] %vm419_vm3, %v8120_v63 }
 0x2ac   : > { %v3749_v0 = vpop.f32.mrf.mxu0  ;;  %436 = vst.msk [vmem:[#allocation3 + $0x84] sm:$0x1] %vm419_vm3, %v8120_v63 }
 0x2ad   : > { %v3591_v52 = vadd.f32 %v9450_v20, %v3555_v61  ;;  %v3750_v19 = vadd.f32 %v9504_v34, %v3749_v0  ;;  %v4166_v43 = vrot.slane %v4164_v44, 7  ;;  %437 = vst.msk [vmem:[#allocation3 + $0x90] sm:$0x1] %vm419_vm3, %v8120_v63 }
 0x2ae   : > { %438 = vst.msk [vmem:[#allocation3 + $0x9c] sm:$0x1] %vm419_vm3, %v8120_v63 }
 0x2af   : > { %v3623_v37 = vmax.f32 %v3591_v52, 0.0  ;;  %v3518_v22 = vpop.f32.mrf.mxu3  ;;  %v3813_v24 = vmax.f32 %v3750_v19, 0.0  ;;  %v4169_v48 = vor.u32 %v4167_v4, %v4166_v43  ;;  %v4170_v18 = vrot.slane %v4166_v43, 4  ;;  %439 = vst.msk [vmem:[#allocation3 + $0xa8] sm:$0x1] %vm419_vm3, %v8120_v63 }
 0x2b0   : > { %v2707_v16 = vpop.f32.mrf.mxu1  ;;  %440 = vst.msk [vmem:[#allocation3 + $0xb4] sm:$0x1] %vm419_vm3, %v8120_v63 }
 0x2b1   : > { %v3641_v59 = vpack.c.bf16 %v3623_v37, %v3622_v21  ;;  %v9646_v35 = vpack.c.bf16 %v3813_v24, %v3813_v24  ;;  %4378 = vrot.lane.b32.xlu2 %v4162_v62, %s8118_s12  ;;  %v2896_v58 = vadd.f32 %v2895_v40, %v2707_v16  ;;  %4380 = vrot.lane.b32.xlu0 %v4169_v48, %s8118_s12 }
 0x2b2   : > { %v2897_v1 = vpop.f32.mrf.mxu2  ;;  %441 = vst.msk [vmem:[#allocation3 + $0xc0] sm:$0x1] %vm419_vm3, %v8120_v63 }
 0x2b3   : > { %7718 = vmatmul.msk.bf16.gmra.mxu0 %vm3664_vm1, %v3641_v59  ;;  %v4172_v46 = vshrl.u32 %v9646_v35, 16  ;;  %v4175_v9 = vshll.u32 %v9646_v35, 16  ;;  %v3556_v7 = vadd.f32 %v3518_v22, %v2896_v58  ;;  %444 = vst.msk [vmem:[#allocation3 + $0x14] sm:$0x1] %vm419_vm3, %v8120_v63 }
 0x2b4   : > { %445 = vst.msk [vmem:[#allocation3 + $0x20] sm:$0x1] %vm419_vm3, %v8120_v63 }
 0x2b5   : > { %v4174_v6 = vrot.slane %v4172_v46, 7  ;;  %v3592_v15 = vadd.f32 %v9450_v20, %v3556_v7  ;;  %446 = vst.msk [vmem:[#allocation3 + $0x2c] sm:$0x1] %vm419_vm3, %v8120_v63  ;;  %v4506_v7 = vld [vmem:[#allocation3 + $0x18] sm:$0xf] }
 0x2b6   : > { %v3752_v45 = vpop.f32.mrf.mxu0  ;;  %447 = vst.msk [vmem:[#allocation3 + $0x38] sm:$0x1] %vm419_vm3, %v8120_v63 }
 0x2b7   : > { %v3520_v57 = vpop.f32.mrf.mxu3  ;;  %v3753_v27 = vadd.f32 %v9504_v34, %v3752_v45  ;;  %v4177_v3 = vor.u32 %v4175_v9, %v4174_v6  ;;  %v3624_v39 = vmax.f32 %v3592_v15, 0.0  ;;  %v4179_v55 = vrot.slane %v4174_v6, 4  ;;  %448 = vst.msk [vmem:[#allocation3 + $0x44] sm:$0x1] %vm419_vm3, %v8120_v63 }
 0x2b8   : > { %v2709_v10 = vpop.f32.mrf.mxu1  ;;  %449 = vst.msk [vmem:[#allocation3 + $0x50] sm:$0x1] %vm419_vm3, %v8120_v63  ;;  %v3905_v15 = vrot.slane %v9536_v41, 7 }
 0x2b9   : > { %v2898_v17 = vadd.f32 %v2897_v1, %v2709_v10  ;;  %v3814_v29 = vmax.f32 %v3753_v27, 0.0  ;;  %v4178_v50 = vsel %vm8347_vm11, %v4170_v18, %v4177_v3  ;;  %4631 = vrot.lane.b32.xlu2 %v9633_v28, %s8119_s15  ;;  %4633 = vrot.lane.b32.xlu0 %v9646_v35, %s8119_s15  ;;  %v7871_v10 = vld [vmem:[%s11194_s7] sm:$0xff]  ;;  %450 = vst.msk [vmem:[#allocation3 + $0x5c] sm:$0x1] %vm419_vm3, %v8120_v63 }
 0x2ba   : > { %4382 = vrot.lane.b32.xlu1 %v4178_v50, %s8118_s12  ;;  %v2900_v30 = vpop.f32.mrf.mxu2  ;;  %5990 = vmatpush.bf16.msrb.mxu2 %v7871_v10  ;;  %451 = vst.msk [vmem:[#allocation3 + $0x68] sm:$0x1] %vm419_vm3, %v8120_v63 }
 0x2bb   : > { %v3557_v13 = vadd.f32 %v3520_v57, %v2898_v17  ;;  %v9679_v8 = vpack.c.bf16 %v3814_v29, %v3814_v29  ;;  %v7883_v17 = vld [vmem:[%s11194_s7 + $0x60] sm:$0xff]  ;;  %452 = vst.msk [vmem:[#allocation3 + $0x74] sm:$0x1] %vm419_vm3, %v8120_v63 }
 0x2bc   : > { %6657 = vmatpush.bf16.msrb.mxu3 %v7883_v17  ;;  %453 = vst.msk [vmem:[#allocation3 + $0x80] sm:$0x1] %vm419_vm3, %v8120_v63 }
 0x2bd   : > { %v3593_v31 = vadd.f32 %v9450_v20, %v3557_v13  ;;  %v4181_v14 = vshrl.u32 %v9679_v8, 16  ;;  %v4184_v54 = vshll.u32 %v9679_v8, 16  ;;  %454 = vst.msk [vmem:[#allocation3 + $0x8c] sm:$0x1] %vm419_vm3, %v8120_v63 }
 0x2be   : > { %v3754_v36 = vpop.f32.mrf.mxu0  ;;  %455 = vst.msk [vmem:[#allocation3 + $0x98] sm:$0x1] %vm419_vm3, %v8120_v63 }
 0x2bf   : > { %v3625_v53 = vmax.f32 %v3593_v31, 0.0  ;;  %v3755_v49 = vadd.f32 %v9504_v34, %v3754_v36  ;;  %v4183_v5 = vrot.slane %v4181_v14, 7  ;;  %v7877_v36 = vld [vmem:[%s11194_s7 + $0x30] sm:$0xff]  ;;  %456 = vst.msk [vmem:[#allocation3 + $0xa4] sm:$0x1] %vm419_vm3, %v8120_v63 }
 0x2c0   : > { %v2712_v2 = vpop.f32.mrf.mxu1  ;;  %v3523_v40 = vpop.f32.mrf.mxu3  ;;  %5769 = vmatpush.bf16.msrb.mxu1 %v7877_v36  ;;  %457 = vst.msk [vmem:[#allocation3 + $0xb0] sm:$0x1] %vm419_vm3, %v8120_v63 }
 0x2c1   : > { %v3642_v61 = vpack.c.bf16 %v3625_v53, %v3624_v39  ;;  %v3815_v44 = vmax.f32 %v3755_v49, 0.0  ;;  %v4186_v0 = vor.u32 %v4184_v54, %v4183_v5  ;;  %v2901_v52 = vadd.f32 %v2900_v30, %v2712_v2  ;;  %458 = vst.msk [vmem:[#allocation3 + $0xbc] sm:$0x1] %vm419_vm3, %v8120_v63 }
 0x2c2   : > { %4384 = vrot.lane.b32.xlu1 %v4179_v55, %s8118_s12  ;;  %v2902_v21 = vpop.f32.mrf.mxu2  ;;  %v4187_v46 = vrot.slane %v4183_v5, 4  ;;  %v3904_v2 = vrot.slane %v3903_v38, 4  ;;  %v3898_v55 = vrot.slane %v9509_v26, 7  ;;  %v3908_v38 = vrot.slane %v9554_v25, 7  ;;  %459 = vst.msk [vmem:[#allocation3 + $0xc8] sm:$0x1] %vm419_vm3, %v8120_v63 }
 0x2c3   : > { %7719 = vmatmul.msk.bf16.gmra.mxu0 %vm3664_vm1, %v3642_v61  ;;  %v9703_v19 = vpack.c.bf16 %v3815_v44, %v3815_v44  ;;  %4386 = vrot.lane.b32.xlu2 %v4186_v0, %s8118_s12  ;;  %v3558_v4 = vadd.f32 %v3523_v40, %v2901_v52  ;;  %v3913_v26 = vrot.slane %v9581_v42, 7  ;;  %v3918_v0 = vrot.slane %v9600_v23, 7  ;;  %443 = vst.msk [vmem:[#allocation3 + $0x8] sm:$0x1] %vm419_vm3, %v8120_v63 }
 0x2c4   : > { %v9786_v11 = vsel %vm8322_vm6, %v3904_v2, %v3905_v15  ;;  %4028 = vst.msk [vmem:[#allocation3 + $0xc] sm:$0xe] %vm4027_vm7, %v3898_v55  ;;  %v3899_v10 = vrot.slane %v3898_v55, 4 }
 0x2c5   : > { %v4189_v43 = vshrl.u32 %v9703_v19, 16  ;;  %v4192_v24 = vshll.u32 %v9703_v19, 16  ;;  %v3594_v45 = vadd.f32 %v9450_v20, %v3558_v4  ;;  %4036 = vst.msk [vmem:[#allocation3 + $0x24] sm:$0xe] %vm4027_vm7, %v3908_v38 }
 0x2c6   : > { %v3757_v62 = vpop.f32.mrf.mxu0  ;;  %4039 = vst.msk [vmem:[#allocation3 + $0x30] sm:$0xe] %vm4027_vm7, %v3913_v26 }
 0x2c7   : > { %v3758_v37 = vadd.f32 %v9504_v34, %v3757_v62  ;;  %v4191_v22 = vrot.slane %v4189_v43, 7  ;;  %v3626_v13 = vmax.f32 %v3594_v45, 0.0  ;;  %v3923_v43 = vrot.slane %v9633_v28, 7  ;;  %4042 = vst.msk [vmem:[#allocation3 + $0x3c] sm:$0xe] %vm4027_vm7, %v3918_v0 }
 0x2c8   : > { %v2714_v16 = vpop.f32.mrf.mxu1  ;;  %v3525_v59 = vpop.f32.mrf.mxu3  ;;  %460 = vst.msk [vmem:[#allocation3 + $0xd4] sm:$0x1] %vm419_vm3, %v8120_v63 }
 0x2c9   : > { %v2903_v58 = vadd.f32 %v2902_v21, %v2714_v16  ;;  %v3816_v1 = vmax.f32 %v3758_v37, 0.0  ;;  %v4194_v6 = vor.u32 %v4192_v24, %v4191_v22  ;;  %v4357_v9 = vpop.permute.xlu2 %4356  ;;  %v4196_v40 = vrot.slane %v4191_v22, 4  ;;  %4045 = vst.msk [vmem:[#allocation3 + $0x48] sm:$0xe] %vm4027_vm7, %v3923_v43 }
 0x2ca   : > { %4635 = vrot.lane.b32.xlu1 %v9679_v8, %s8119_s15  ;;  %v4507_v57 = vsel %vm9719_vm12, %v4357_v9, %v4506_v7  ;;  %v3928_v37 = vrot.slane %v9679_v8, 7  ;;  %v3900_v7 = vrot.slane %v9515_v47, 7  ;;  %4034 = vst.msk [vmem:[#allocation3 + $0x1c] sm:$0xf] %vm4029_vm13, %v9786_v11 }
 0x2cb   : > { %v3559_v27 = vadd.f32 %v3525_v59, %v2903_v58  ;;  %v9736_v18 = vpack.c.bf16 %v3816_v1, %v3816_v1  ;;  %v4195_v3 = vsel %vm8347_vm11, %v4187_v46, %v4194_v6  ;;  %4637 = vrot.lane.b32.xlu2 %v9703_v19, %s8119_s15  ;;  %4508 = vst [vmem:[#allocation3 + $0x18] sm:$0xf] %v4507_v57 }
 0x2cc   : > { %4388 = vrot.lane.b32.xlu0 %v4195_v3, %s8118_s12  ;;  %4048 = vst.msk [vmem:[#allocation3 + $0x54] sm:$0xe] %vm4027_vm7, %v3928_v37  ;;  %v3907_v3 = vrot.slane %v3905_v15, 4 }
 0x2cd   : > { %v3595_v29 = vadd.f32 %v9450_v20, %v3559_v27  ;;  %v4198_v50 = vshrl.u32 %v9736_v18, 16  ;;  %v4201_v39 = vshll.u32 %v9736_v18, 16  ;;  %v3933_v22 = vrot.slane %v9736_v18, 7  ;;  %v4496_v27 = vld [vmem:[#allocation3 + $0xc] sm:$0xf] }
 0x2ce   : > { %v3759_v30 = vpop.f32.mrf.mxu0  ;;  %4035 = vst.msk [vmem:[#allocation3 + $0x20] sm:$0x1] %vm4031_vm14, %v3907_v3 }
 0x2cf   : > { %v3627_v31 = vmax.f32 %v3595_v29, 0.0  ;;  %v3760_v20 = vadd.f32 %v9504_v34, %v3759_v30  ;;  %v4200_v14 = vrot.slane %v4198_v50, 7  ;;  %4051 = vst.msk [vmem:[#allocation3 + $0x60] sm:$0xe] %vm4027_vm7, %v3933_v22  ;;  %v3901_v30 = vsel %vm8322_vm6, %v3899_v10, %v3900_v7 }
 0x2d0   : > { %4030 = vst.msk [vmem:[#allocation3 + $0x10] sm:$0xf] %vm4029_vm13, %v3901_v30 }
 0x2d1   : > { %v3643_v53 = vpack.c.bf16 %v3627_v31, %v3626_v13  ;;  %v3817_v49 = vmax.f32 %v3760_v20, 0.0  ;;  %v4203_v5 = vor.u32 %v4201_v39, %v4200_v14  ;;  %v9769_v54 = vpop.permute.xlu2 %4617  ;;  %v4204_v16 = vrot.slane %v4200_v14, 4  ;;  %v4351_v9 = vpop.permute.xlu0 %4350  ;;  %417 = vst.msk [vmem:[#allocation3] sm:$0xf] %vm416_vm15, %v8120_v63 }
 0x2d2   : > { %v4497_v47 = vsel %vm9719_vm12, %v4351_v9, %v4496_v27  ;;  %v3902_v31 = vrot.slane %v3900_v7, 4  ;;  %418 = vst.msk [vmem:[#allocation3 + $0x4] sm:$0xf] %vm416_vm15, %v8120_v63 }
 0x2d3   : > { %7720 = vmatmul.msk.bf16.gmra.mxu0 %vm3664_vm1, %v3643_v53  ;;  %v9779_v61 = vpack.c.bf16 %v3817_v49, %v3817_v49  ;;  %4392 = vrot.lane.b32.xlu1 %v4203_v5, %s8118_s12  ;;  %4498 = vst [vmem:[#allocation3 + $0xc] sm:$0xf] %v4497_v47 }
 0x2d4   : > { %4390 = vrot.lane.b32.xlu0 %v4196_v40, %s8118_s12  ;;  %4032 = vst.msk [vmem:[#allocation3 + $0x14] sm:$0x1] %vm4031_vm14, %v3902_v31 }
 0x2d5   : > { %v4206_v44 = vshrl.u32 %v9779_v61, 16  ;;  %v4209_v21 = vshll.u32 %v9779_v61, 16  ;;  %425 = vst.msk [vmem:[#allocation3] sm:$0x1] %vm419_vm3, %v8120_v63 }
 0x2d6   : > { %v3762_v52 = vpop.f32.mrf.mxu0  ;;  %422 = vst.msk [vmem:[#allocation3 + $0xcc] sm:$0xf] %vm416_vm15, %v8120_v63 }
 0x2d7   : > { %v3763_v4 = vadd.f32 %v9504_v34, %v3762_v52  ;;  %v4208_v62 = vrot.slane %v4206_v44, 7  ;;  %v4510_v44 = vld [vmem:[#allocation3 + $0x20] sm:$0x1]  ;;  %423 = vst.msk [vmem:[#allocation3 + $0xd0] sm:$0xf] %vm416_vm15, %v8120_v63 }
 0x2d8   : > { %442 = vst.msk [vmem:[#allocation3 + $0xcc] sm:$0x1] %vm419_vm3, %v8120_v63 }
 0x2d9   : > { %v3818_v24 = vmax.f32 %v3763_v4, 0.0  ;;  %v4211_v59 = vor.u32 %v4209_v21, %v4208_v62  ;;  %v9811_v58 = vpop.permute.xlu2 %4360  ;;  %v4213_v14 = vrot.slane %v4208_v62, 4 }
 0x2da   : > { %v4353_v1 = vpop.permute.xlu1 %4352  ;;  %v4511_v21 = vsel %vm9863_vm4, %v9811_v58, %v4510_v44  ;;  %v4742_v58 = vld [vmem:[#allocation3 + $0x8] sm:$0x1] }
 0x2db   : > { %v9819_v46 = vpack.c.bf16 %v3818_v24, %v3818_v24  ;;  %4641 = vrot.lane.b32.xlu1 %v9779_v61, %s8119_s15  ;;  %v4212_v6 = vsel %vm8347_vm11, %v4204_v16, %v4211_v59  ;;  %4500 = vst.msk [vmem:[#allocation3 + $0x10] sm:$0xf] %vm4494_vm8, %v4353_v1  ;;  %v3910_v16 = vrot.slane %v9567_v33, 7  ;;  %v3909_v33 = vrot.slane %v3908_v38, 4 }
 0x2dc   : > { %4639 = vrot.lane.b32.xlu0 %v9736_v18, %s8119_s15  ;;  %4394 = vrot.lane.b32.xlu2 %v4212_v6, %s8118_s12  ;;  %4512 = vst [vmem:[#allocation3 + $0x20] sm:$0x1] %v4511_v21  ;;  %v4503_v6 = vld [vmem:[#allocation3 + $0x14] sm:$0x1]  ;;  %v4808_v30 = vshll.u32 %v4742_v58, 16 }
 0x2dd   : > { %v3938_v45 = vrot.slane %v9819_v46, 7  ;;  %v4215_v57 = vshrl.u32 %v9819_v46, 16  ;;  %v4218_v13 = vshll.u32 %v9819_v46, 16 }
 0x2de   : > { %v3764_v17 = vpop.f32.mrf.mxu0 }
 0x2df   : > { %v3765_v29 = vadd.f32 %v9504_v34, %v3764_v17  ;;  %v4217_v50 = vrot.slane %v4215_v57, 7  ;;  %4054 = vst.msk [vmem:[#allocation3 + $0x6c] sm:$0xe] %vm4027_vm7, %v3938_v45  ;;  %v3912_v17 = vrot.slane %v3910_v16, 4 }
 0x2e1   : > { %v3819_v41 = vmax.f32 %v3765_v29, 0.0  ;;  %v4220_v15 = vor.u32 %v4218_v13, %v4217_v50  ;;  %v4355_v20 = vpop.permute.xlu2 %4354  ;;  %v4221_v52 = vrot.slane %v4217_v50, 4  ;;  %v4520_v13 = vld [vmem:[#allocation3 + $0x30] sm:$0xf]  ;;  %4038 = vst.msk [vmem:[#allocation3 + $0x2c] sm:$0x1] %vm4031_vm14, %v3912_v17 }
 0x2e2   : > { %v4616_v39 = vpop.permute.xlu1 %4615  ;;  %v4504_v7 = vsel %vm9863_vm4, %v4355_v20, %v4503_v6 }
 0x2e3   : > { %v9854_v36 = vpack.c.bf16 %v3819_v41, %v3819_v41  ;;  %4710 = vst.msk [vmem:[#allocation3 + $0x18] sm:$0xf] %vm4707_vm0, %v4616_v39 }
 0x2e4   : > { %4398 = vrot.lane.b32.xlu0 %v4220_v15, %s8118_s12  ;;  %4396 = vrot.lane.b32.xlu2 %v4213_v14, %s8118_s12  ;;  %4505 = vst [vmem:[#allocation3 + $0x14] sm:$0x1] %v4504_v7  ;;  %v4741_v15 = vld [vmem:[#allocation3 + $0x4] sm:$0xf]  ;;  %v4740_v14 = vld [vmem:[#allocation3] sm:$0xf] }
 0x2e5   : > { %v4223_v53 = vshrl.u32 %v9854_v36, 16  ;;  %v4226_v40 = vshll.u32 %v9854_v36, 16  ;;  %v4802_v39 = vshrl.u32 %v4741_v15, 16 }
 0x2e7   : > { %v3767_v5 = vpop.f32.mrf.mxu0  ;;  %v9867_v2 = vrot.slane %v4223_v53, 7  ;;  %v3911_v53 = vsel %vm8322_vm6, %v3909_v33, %v3910_v16  ;;  %v4804_v21 = vrot.slane %v4802_v39, 4  ;;  %v3920_v33 = vrot.slane %v9614_v12, 7 }
 0x2e8   : > { %v3768_v55 = vadd.f32 %v9504_v34, %v3767_v5  ;;  %4037 = vst.msk [vmem:[#allocation3 + $0x28] sm:$0xf] %vm4029_vm13, %v3911_v53 }
 0x2e9   : > { %v4228_v4 = vor.u32 %v4226_v40, %v9867_v2  ;;  %v9876_v62 = vpop.permute.xlu2 %4619  ;;  %v4230_v29 = vrot.slane %v9867_v2, 4  ;;  %v4789_v40 = vshrl.u32 %v4740_v14, 16 }
 0x2ea   : > { %v3820_v24 = vmax.f32 %v3768_v55, 0.0  ;;  %v4614_v11 = vpop.permute.xlu1 %4613  ;;  %v4359_v1 = vpop.permute.xlu0 %4358  ;;  %v6073_v57 = vld [vmem:[#allocation3 + $0x18] sm:$0xf]  ;;  %v6075_v55 = vld [vmem:[#allocation3 + $0x20] sm:$0x1] }
 0x2eb   : > { %v4229_v59 = vsel %vm8347_vm11, %v4221_v52, %v4228_v4  ;;  %4709 = vst.msk [vmem:[#allocation3 + $0x10] sm:$0xf] %vm4707_vm0, %v4614_v11  ;;  %v6122_v10 = vshrl.u32 %v6073_v57, 16  ;;  %v6125_v25 = vshll.u32 %v6073_v57, 16  ;;  %v4792_v52 = vshll.u32 %v4740_v14, 16 }
 0x2ec   : > { %v9888_v9 = vpack.c.bf16 %v3820_v24, %v3820_v24  ;;  %4400 = vrot.lane.b32.xlu1 %v4229_v59, %s8118_s12  ;;  %4645 = vrot.lane.b32.xlu0 %v9854_v36, %s8119_s15  ;;  %4509 = vst.msk [vmem:[#allocation3 + $0x1c] sm:$0xf] %vm4494_vm8, %v4359_v1  ;;  %v4810_v24 = vrot.slane %v4808_v30, 5  ;;  %v4791_v16 = vrot.slane %v4789_v40, 4  ;;  %v6141_v7 = vshll.u32 %v6075_v55, 16 }
 0x2ed   : > { %4643 = vrot.lane.b32.xlu2 %v9819_v46, %s8119_s15  ;;  %4711 = vst.msk [vmem:[#allocation3 + $0x1c] sm:$0xf] %vm4707_vm0, %v9769_v54  ;;  %v6124_v31 = vrot.slane %v6122_v10, 4  ;;  %v4798_v54 = vshll.u32 %v4741_v15, 16  ;;  %v6127_v1 = vrot.slane %v6125_v25, 5  ;;  %v4794_v6 = vrot.slane %v4792_v52, 5 }
 0x2ee   : > { %v3943_v27 = vrot.slane %v9888_v9, 7  ;;  %v4232_v3 = vshrl.u32 %v9888_v9, 16  ;;  %v4235_v50 = vshll.u32 %v9888_v9, 16  ;;  %v6143_v39 = vrot.slane %v6141_v7, 5  ;;  %v4513_v40 = vld [vmem:[#allocation3 + $0x24] sm:$0xf] }
 0x2ef   : > { %v3769_v47 = vpop.f32.mrf.mxu0  ;;  %v4800_v4 = vrot.slane %v4798_v54, 5  ;;  %v6128_v10 = vor.u32 %v6127_v1, %v6124_v31  ;;  %v5186_v7 = vld [vmem:[#allocation3 + $0x14] sm:$0x1] }
 0x2f0   : > { %4057 = vst.msk [vmem:[#allocation3 + $0x78] sm:$0xe] %vm4027_vm7, %v3943_v27  ;;  %v3770_v38 = vadd.f32 %v9504_v34, %v3769_v47  ;;  %v9911_v41 = vrot.slane %v4232_v3, 7  ;;  %v3919_v47 = vrot.slane %v3918_v0, 4 }
 0x2f1   : > { %v4369_v20 = vpop.permute.xlu2 %4368  ;;  %v4805_v58 = vor.u32 %v4804_v21, %v4800_v4 }
 0x2f2   : > { %v3821_v5 = vmax.f32 %v3770_v38, 0.0  ;;  %v4237_v2 = vor.u32 %v4235_v50, %v9911_v41  ;;  %v4521_v34 = vsel %vm9719_vm12, %v4369_v20, %v4520_v13  ;;  %v4612_v44 = vpop.permute.xlu0 %4611  ;;  %v4238_v59 = vrot.slane %v9911_v41, 4  ;;  %v5185_v15 = vld [vmem:[#allocation3 + $0x10] sm:$0xf] }
 0x2f3   : > { %4522 = vst [vmem:[#allocation3 + $0x30] sm:$0xf] %v4521_v34  ;;  %v4806_v50 = vrot.slane %v4805_v58, 4  ;;  %v6129_v38 = vrot.slane %v6128_v10, 4  ;;  %v3921_v41 = vsel %vm8322_vm6, %v3919_v47, %v3920_v33  ;;  %v5242_v53 = vshll.u32 %v5185_v15, 16 }
 0x2f4   : > { %v9922_v11 = vpack.c.bf16 %v3821_v5, %v3821_v5  ;;  %4402 = vrot.lane.b32.xlu1 %v4230_v29, %s8118_s12  ;;  %4708 = vst.msk [vmem:[#allocation3 + $0xc] sm:$0xf] %vm4707_vm0, %v4612_v44  ;;  %v6074_v3 = vld [vmem:[#allocation3 + $0x1c] sm:$0xf]  ;;  %v4795_v29 = vor.u32 %v4794_v6, %v4791_v16  ;;  %v5246_v21 = vshrl.u32 %v5185_v15, 16 }
 0x2f5   : > { %4404 = vrot.lane.b32.xlu2 %v4237_v2, %s8118_s12  ;;  %v6131_v13 = vshll.u32 %v6074_v3, 16  ;;  %v6135_v30 = vshrl.u32 %v6074_v3, 16  ;;  %v4811_v23 = vsel %vm8551_vm10, %v4806_v50, %v4810_v24  ;;  %4043 = vst.msk [vmem:[#allocation3 + $0x40] sm:$0xf] %vm4029_vm13, %v3921_v41  ;;  %v9956_v24 = vld [vmem:[%s11193_s6] ss:$0 sm:$0xff] }
 0x2f6   : > { %v4240_v57 = vshrl.u32 %v9922_v11, 16  ;;  %v4243_v63 = vshll.u32 %v9922_v11, 16  ;;  %v4796_v31 = vrot.slane %v4795_v29, 4  ;;  %v5852_v17 = vunpack.c.l.b16 %v4811_v23 }
 0x2f7   : > { %v6133_v0 = vrot.slane %v6131_v13, 5  ;;  %v6137_v20 = vrot.slane %v6135_v30, 4  ;;  %v5244_v30 = vrot.slane %v5242_v53, 5  ;;  %v5248_v15 = vrot.slane %v5246_v21, 4 }
 0x2f8   : > { %v9936_v25 = vrot.slane %v4240_v57, 7  ;;  %v4801_v2 = vsel %vm8551_vm10, %v4796_v31, %v4800_v4 }
 0x2f9   : > { %v9947_v54 = vpop.permute.xlu2 %4625  ;;  %v6134_v55 = vsel %vm8551_vm10, %v6129_v38, %v6133_v0  ;;  %v6138_v44 = vor.u32 %v6137_v20, %v6133_v0  ;;  %v5851_v1 = vunpack.c.l.b16 %v4801_v2  ;;  %v5252_v0 = vshll.u32 %v5186_v7, 16 }
 0x2fa   : > { %v4245_v14 = vor.u32 %v4243_v63, %v9936_v25  ;;  %v4365_v34 = vpop.permute.xlu1 %4364  ;;  %v4363_v6 = vpop.permute.xlu0 %4362  ;;  %v4247_v58 = vrot.slane %v9936_v25, 4  ;;  %v6518_v13 = vunpack.c.l.b16 %v6134_v55  ;;  %v4744_v63 = vld [vmem:[#allocation3 + $0x10] sm:$0xf]  ;;  %v4517_v55 = vld [vmem:[#allocation3 + $0x2c] sm:$0x1] }
 0x2fb   : > { %v3772_v5 = vpop.f32.mrf.mxu0  ;;  %v5184_v52 = vld [vmem:[#allocation3 + $0xc] sm:$0xf]  ;;  %4516 = vst.msk [vmem:[#allocation3 + $0x28] sm:$0xf] %vm4494_vm8, %v4365_v34  ;;  %v4514_v57 = vsel %vm9719_vm12, %v4363_v6, %v4513_v40  ;;  %v6139_v3 = vrot.slane %v6138_v44, 4 }
 0x2fc   : > { %v3773_v16 = vadd.f32 %v9956_v24, %v3772_v5  ;;  %4647 = vrot.lane.b32.xlu1 %v9888_v9, %s8119_s15  ;;  %v4246_v4 = vsel %vm8347_vm11, %v4238_v59, %v4245_v14  ;;  %v5233_v10 = vshrl.u32 %v5184_v52, 16  ;;  %v5236_v47 = vshll.u32 %v5184_v52, 16  ;;  %v4743_v29 = vld [vmem:[#allocation3 + $0xc] sm:$0xf]  ;;  %4515 = vst [vmem:[#allocation3 + $0x24] sm:$0xf] %v4514_v57 }
 0x2fd   : > { %4406 = vrot.lane.b32.xlu0 %v4246_v4, %s8118_s12  ;;  %4649 = vrot.lane.b32.xlu2 %v9922_v11, %s8119_s15  ;;  %v5883_v59 = vpack.c.b16 %v5852_v17, %v5851_v1  ;;  %4712 = vst.msk [vmem:[#allocation3 + $0x24] sm:$0xf] %vm4707_vm0, %v9876_v62  ;;  %v6144_v25 = vsel %vm8551_vm10, %v6139_v3, %v6143_v39  ;;  %v4813_v20 = vshrl.u32 %v4743_v29, 16  ;;  %v4816_v53 = vshll.u32 %v4743_v29, 16 }
 0x2fe   : > { %v3822_v50 = vmax.f32 %v3773_v16, 0.0  ;;  %v5235_v38 = vrot.slane %v5233_v10, 4  ;;  %v5238_v41 = vrot.slane %v5236_v47, 5  ;;  %v6519_v23 = vunpack.c.l.b16 %v6144_v25  ;;  %v4745_v10 = vld [vmem:[#allocation3 + $0x14] sm:$0x1] }
 0x2ff   : > { %7797 = vmatmul.msk.bf16.vlgmr.msrb.gmra.mxu2 %vm5713_vm9, %v5883_v59  ;;  %v5249_v14 = vor.u32 %v5248_v15, %v5244_v30  ;;  %v4822_v5 = vshll.u32 %v4744_v63, 16  ;;  %v5254_v16 = vrot.slane %v5252_v0, 5  ;;  %v4815_v1 = vrot.slane %v4813_v20, 4 }
 0x300   : > { %v9974_v31 = vpack.c.bf16 %v3822_v50, %v3822_v50  ;;  %v5239_v17 = vor.u32 %v5238_v41, %v5235_v38  ;;  %v6550_v34 = vpack.c.b16 %v6519_v23, %v6518_v13  ;;  %v4818_v47 = vrot.slane %v4816_v53, 5  ;;  %v5187_v53 = vld [vmem:[#allocation3 + $0x18] sm:$0xf] }
 0x301   : > { %v5250_v21 = vrot.slane %v5249_v14, 4  ;;  %v4824_v59 = vrot.slane %v4822_v5, 5  ;;  %v4826_v13 = vshrl.u32 %v4744_v63, 16  ;;  %v3914_v15 = vrot.slane %v3913_v26, 4 }
 0x302   : > { %v3948_v2 = vrot.slane %v9974_v31, 7  ;;  %v4249_v62 = vshrl.u32 %v9974_v31, 16  ;;  %v4252_v39 = vshll.u32 %v9974_v31, 16  ;;  %v4367_v44 = vpop.permute.xlu1 %4366  ;;  %v5240_v52 = vrot.slane %v5239_v17, 4  ;;  %7849 = vmatmul.msk.bf16.vlgmr.msrb.gmra.mxu3 %vm5713_vm9, %v6550_v34  ;;  %v4622_v57 = vpop.permute.xlu0 %4621 }
 0x303   : > { %v3774_v40 = vpop.f32.mrf.mxu0  ;;  %v4518_v7 = vsel %vm9863_vm4, %v4367_v44, %v4517_v55  ;;  %v4377_v3 = vpop.permute.xlu2 %4376  ;;  %v5255_v50 = vsel %vm8551_vm10, %v5250_v21, %v5254_v16  ;;  %4713 = vst.msk [vmem:[#allocation3 + $0x28] sm:$0xf] %vm4707_vm0, %v4622_v57  ;;  %v4819_v23 = vor.u32 %v4818_v47, %v4815_v1  ;;  %v4828_v0 = vrot.slane %v4826_v13, 4  ;;  %v4746_v47 = vld [vmem:[#allocation3 + $0x18] sm:$0xf] }
 0x304   : > { %4060 = vst.msk [vmem:[#allocation3 + $0x84] sm:$0xe] %vm4027_vm7, %v3948_v2  ;;  %v3775_v4 = vadd.f32 %v9956_v24, %v3774_v40  ;;  %v9984_v6 = vrot.slane %v4249_v62, 7  ;;  %v5245_v29 = vsel %vm8551_vm10, %v5240_v52, %v5244_v30  ;;  %v4832_v30 = vshll.u32 %v4745_v10, 16 }
 0x305   : > { %4408 = vrot.lane.b32.xlu0 %v4247_v58, %s8118_s12  ;;  %4519 = vst [vmem:[#allocation3 + $0x2c] sm:$0x1] %v4518_v7  ;;  %v5629_v41 = vunpack.c.l.b16 %v5245_v29  ;;  %v5630_v58 = vunpack.c.l.b16 %v5255_v50  ;;  %v3915_v17 = vrot.slane %v9590_v56, 7  ;;  %v3922_v14 = vrot.slane %v3920_v33, 4  ;;  %v5189_v56 = vld [vmem:[#allocation3 + $0x20] sm:$0x1] }
 0x306   : > { %v3823_v25 = vmax.f32 %v3775_v4, 0.0  ;;  %v4254_v38 = vor.u32 %v4252_v39, %v9984_v6  ;;  %4530 = vst.msk [vmem:[#allocation3 + $0x40] sm:$0xf] %vm4494_vm8, %v4377_v3  ;;  %v4255_v63 = vrot.slane %v9984_v6, 4  ;;  %v4820_v26 = vrot.slane %v4819_v23, 4 }
 0x307   : > { %v5661_v42 = vpack.c.b16 %v5630_v58, %v5629_v41  ;;  %v4829_v5 = vor.u32 %v4828_v0, %v4824_v59  ;;  %v4834_v62 = vrot.slane %v4832_v30, 5  ;;  %v5188_v39 = vld [vmem:[#allocation3 + $0x1c] sm:$0xf]  ;;  %v3916_v55 = vsel %vm8322_vm6, %v3914_v15, %v3915_v17  ;;  %4044 = vst.msk [vmem:[#allocation3 + $0x44] sm:$0x1] %vm4031_vm14, %v3922_v14 }
 0x308   : > { %v9999_v20 = vpack.c.bf16 %v3823_v25, %v3823_v25  ;;  %4410 = vrot.lane.b32.xlu1 %v4254_v38, %s8118_s12  ;;  %v3917_v44 = vrot.slane %v3915_v17, 4  ;;  %v4825_v12 = vsel %vm8551_vm10, %v4820_v26, %v4824_v59  ;;  %4040 = vst.msk [vmem:[#allocation3 + $0x34] sm:$0xf] %vm4029_vm13, %v3916_v55  ;;  %v5257_v16 = vshrl.u32 %v5187_v53, 16  ;;  %v4527_v26 = vld [vmem:[#allocation3 + $0x3c] sm:$0xf] }
 0x309   : > { %7757 = vmatmul.msk.bf16.vlgmr.msrb.gmra.mxu1 %vm5713_vm9, %v5661_v42  ;;  %v4830_v33 = vrot.slane %v4829_v5, 4  ;;  %v5260_v1 = vshll.u32 %v5187_v53, 16  ;;  %v5853_v7 = vunpack.c.l.b16 %v4825_v12  ;;  %v5266_v10 = vshll.u32 %v5188_v39, 16 }
 0x30a   : > { %v4257_v34 = vshrl.u32 %v9999_v20, 16  ;;  %v4260_v40 = vshll.u32 %v9999_v20, 16  ;;  %v4624_v21 = vpop.permute.xlu1 %4623  ;;  %v4371_v57 = vpop.permute.xlu0 %4370  ;;  %v5259_v50 = vrot.slane %v5257_v16, 4  ;;  %v5270_v13 = vshrl.u32 %v5188_v39, 16  ;;  %4041 = vst.msk [vmem:[#allocation3 + $0x38] sm:$0x1] %vm4031_vm14, %v3917_v44 }
 0x30b   : > { %v3777_v52 = vpop.f32.mrf.mxu0  ;;  %4714 = vst.msk [vmem:[#allocation3 + $0x30] sm:$0xf] %vm4707_vm0, %v4624_v21  ;;  %v4379_v3 = vpop.permute.xlu2 %4378  ;;  %v4835_v29 = vsel %vm8551_vm10, %v4830_v33, %v4834_v62  ;;  %v5262_v59 = vrot.slane %v5260_v1, 5  ;;  %v5268_v23 = vrot.slane %v5266_v10, 5  ;;  %v5276_v30 = vshll.u32 %v5189_v56, 16 }
 0x30c   : > { %v3778_v4 = vadd.f32 %v9956_v24, %v3777_v52  ;;  %v10016_v6 = vrot.slane %v4257_v34, 7  ;;  %4523 = vst.msk [vmem:[#allocation3 + $0x34] sm:$0xf] %vm4494_vm8, %v4371_v57  ;;  %v5854_v41 = vunpack.c.l.b16 %v4835_v29  ;;  %v5272_v0 = vrot.slane %v5270_v13, 4  ;;  %v4747_v56 = vld [vmem:[#allocation3 + $0x1c] sm:$0xf] }
 0x30d   : > { %4651 = vrot.lane.b32.xlu0 %v9974_v31, %s8119_s15  ;;  %4715 = vst.msk [vmem:[#allocation3 + $0x34] sm:$0xf] %vm4707_vm0, %v9947_v54  ;;  %v5263_v58 = vor.u32 %v5262_v59, %v5259_v50  ;;  %v4837_v42 = vshrl.u32 %v4746_v47, 16  ;;  %v5278_v39 = vrot.slane %v5276_v30, 5  ;;  %v4840_v34 = vshll.u32 %v4746_v47, 16 }
 0x30e   : > { %v3824_v25 = vmax.f32 %v3778_v4, 0.0  ;;  %v4262_v38 = vor.u32 %v4260_v40, %v10016_v6  ;;  %v4264_v15 = vrot.slane %v10016_v6, 4  ;;  %v5884_v53 = vpack.c.b16 %v5854_v41, %v5853_v7  ;;  %v4531_v54 = vld [vmem:[#allocation3 + $0x44] sm:$0x1]  ;;  %v4748_v47 = vld [vmem:[#allocation3 + $0x20] sm:$0x1] }
 0x30f   : > { %v5264_v5 = vrot.slane %v5263_v58, 4  ;;  %v5273_v62 = vor.u32 %v5272_v0, %v5268_v23  ;;  %v4532_v55 = vsel %vm9863_vm4, %v4379_v3, %v4531_v54  ;;  %v4839_v16 = vrot.slane %v4837_v42, 4  ;;  %v6077_v30 = vld [vmem:[#allocation3 + $0x28] sm:$0xf] }
 0x310   : > { %v10029_v17 = vpack.c.bf16 %v3824_v25, %v3824_v25  ;;  %4653 = vrot.lane.b32.xlu1 %v9999_v20, %s8119_s15  ;;  %v4263_v14 = vsel %vm8347_vm11, %v4255_v63, %v4262_v38  ;;  %7798 = vmatmul.msk.bf16.gmra.mxu2 %vm5713_vm9, %v5884_v53  ;;  %4533 = vst [vmem:[#allocation3 + $0x44] sm:$0x1] %v4532_v55  ;;  %v4842_v1 = vrot.slane %v4840_v34, 5  ;;  %v4846_v59 = vshll.u32 %v4747_v56, 16  ;;  %v6076_v25 = vld [vmem:[#allocation3 + $0x24] sm:$0xf] }
 0x311   : > { %4412 = vrot.lane.b32.xlu2 %v4263_v14, %s8118_s12  ;;  %v5269_v33 = vsel %vm8551_vm10, %v5264_v5, %v5268_v23  ;;  %v5274_v21 = vrot.slane %v5273_v62, 4  ;;  %v4850_v13 = vshrl.u32 %v4747_v56, 16  ;;  %v4524_v58 = vld [vmem:[#allocation3 + $0x38] sm:$0x1]  ;;  %v4856_v62 = vshll.u32 %v4748_v47, 16 }
 0x312   : > { %v3953_v40 = vrot.slane %v10029_v17, 7  ;;  %v4266_v44 = vshrl.u32 %v10029_v17, 16  ;;  %v4269_v63 = vshll.u32 %v10029_v17, 16  ;;  %v4375_v12 = vpop.permute.xlu1 %4374  ;;  %v4373_v57 = vpop.permute.xlu0 %4372  ;;  %v5631_v10 = vunpack.c.l.b16 %v5269_v33 }
 0x313   : > { %v3779_v52 = vpop.f32.mrf.mxu0  ;;  %v4528_v7 = vsel %vm9719_vm12, %v4375_v12, %v4527_v26  ;;  %v10052_v3 = vpop.permute.xlu2 %4631  ;;  %v5279_v29 = vsel %vm8551_vm10, %v5274_v21, %v5278_v39  ;;  %v4843_v50 = vor.u32 %v4842_v1, %v4839_v16  ;;  %v4525_v14 = vsel %vm9863_vm4, %v4373_v57, %v4524_v58  ;;  %v5191_v1 = vld [vmem:[#allocation3 + $0x28] sm:$0xf] }
 0x314   : > { %4063 = vst.msk [vmem:[#allocation3 + $0x90] sm:$0xe] %vm4027_vm7, %v3953_v40  ;;  %v3780_v4 = vadd.f32 %v9956_v24, %v3779_v52  ;;  %v10048_v6 = vrot.slane %v4266_v44, 7  ;;  %v5632_v0 = vunpack.c.l.b16 %v5279_v29  ;;  %v4848_v42 = vrot.slane %v4846_v59, 5  ;;  %v6078_v44 = vld [vmem:[#allocation3 + $0x2c] sm:$0x1] }
 0x315   : > { %4529 = vst [vmem:[#allocation3 + $0x3c] sm:$0xf] %v4528_v7  ;;  %v4844_v53 = vrot.slane %v4843_v50, 4  ;;  %v4852_v54 = vrot.slane %v4850_v13, 4  ;;  %v6146_v39 = vshrl.u32 %v6076_v25, 16  ;;  %v6155_v56 = vshll.u32 %v6077_v30, 16 }
 0x316   : > { %v3825_v38 = vmax.f32 %v3780_v4, 0.0  ;;  %v4271_v41 = vor.u32 %v4269_v63, %v10048_v6  ;;  %v4272_v23 = vrot.slane %v10048_v6, 4  ;;  %4526 = vst [vmem:[#allocation3 + $0x38] sm:$0x1] %v4525_v14  ;;  %v5662_v5 = vpack.c.b16 %v5632_v0, %v5631_v10  ;;  %v5190_v52 = vld [vmem:[#allocation3 + $0x24] sm:$0xf] }
 0x317   : > { %v4849_v34 = vsel %vm8551_vm10, %v4844_v53, %v4848_v42  ;;  %v4853_v55 = vor.u32 %v4852_v54, %v4848_v42  ;;  %v6149_v63 = vshll.u32 %v6076_v25, 16  ;;  %v4858_v21 = vrot.slane %v4856_v62, 5  ;;  %v4541_v54 = vld [vmem:[#allocation3 + $0x54] sm:$0xf] }
 0x318   : > { %v10060_v26 = vpack.c.bf16 %v3825_v38, %v3825_v38  ;;  %4416 = vrot.lane.b32.xlu0 %v4271_v41, %s8118_s12  ;;  %v5855_v16 = vunpack.c.l.b16 %v4849_v34  ;;  %v6148_v6 = vrot.slane %v6146_v39, 4  ;;  %v6157_v7 = vrot.slane %v6155_v56, 5 }
 0x319   : > { %4414 = vrot.lane.b32.xlu2 %v4264_v15, %s8118_s12  ;;  %7758 = vmatmul.msk.bf16.gmra.mxu1 %vm5713_vm9, %v5662_v5  ;;  %v4854_v4 = vrot.slane %v4853_v55, 4  ;;  %v6151_v15 = vrot.slane %v6149_v63, 5  ;;  %v6159_v47 = vshrl.u32 %v6077_v30, 16  ;;  %v6165_v29 = vshll.u32 %v6078_v44, 16  ;;  %v5192_v55 = vld [vmem:[#allocation3 + $0x2c] sm:$0x1] }
 0x31a   : > { %v4274_v12 = vshrl.u32 %v10060_v26, 16  ;;  %v4277_v33 = vshll.u32 %v10060_v26, 16  ;;  %v4630_v57 = vpop.permute.xlu1 %4629  ;;  %v4628_v50 = vpop.permute.xlu0 %4627  ;;  %v5281_v59 = vshrl.u32 %v5190_v52, 16  ;;  %v5284_v41 = vshll.u32 %v5190_v52, 16 }
 0x31b   : > { %4717 = vst.msk [vmem:[#allocation3 + $0x40] sm:$0xf] %vm4707_vm0, %v4630_v57  ;;  %v4859_v13 = vsel %vm8551_vm10, %v4854_v4, %v4858_v21  ;;  %v6152_v25 = vor.u32 %v6151_v15, %v6148_v6  ;;  %v5290_v58 = vshll.u32 %v5191_v1, 16  ;;  %v6161_v42 = vrot.slane %v6159_v47, 4 }
 0x31c   : > { %v10069_v10 = vrot.slane %v4274_v12, 7  ;;  %4716 = vst.msk [vmem:[#allocation3 + $0x3c] sm:$0xf] %vm4707_vm0, %v4628_v50  ;;  %v5856_v53 = vunpack.c.l.b16 %v4859_v13  ;;  %v6167_v30 = vrot.slane %v6165_v29, 5  ;;  %v5283_v52 = vrot.slane %v5281_v59, 4 }
 0x31d   : > { %v4387_v38 = vpop.permute.xlu2 %4386  ;;  %v6153_v62 = vrot.slane %v6152_v25, 4  ;;  %v6162_v56 = vor.u32 %v6161_v42, %v6157_v7  ;;  %v4749_v12 = vld [vmem:[#allocation3 + $0x24] sm:$0xf]  ;;  %v5286_v4 = vrot.slane %v5284_v41, 5  ;;  %v5292_v6 = vrot.slane %v5290_v58, 5 }
 0x31e   : > { %v3782_v0 = vpop.f32.mrf.mxu0  ;;  %v4279_v14 = vor.u32 %v4277_v33, %v10069_v10  ;;  %v4542_v39 = vsel %vm9719_vm12, %v4387_v38, %v4541_v54  ;;  %v4281_v34 = vrot.slane %v10069_v10, 4  ;;  %v5885_v63 = vpack.c.b16 %v5856_v53, %v5855_v16  ;;  %v4534_v53 = vld [vmem:[#allocation3 + $0x48] sm:$0xf] }
 0x31f   : > { %v3783_v5 = vadd.f32 %v9956_v24, %v3782_v0  ;;  %4543 = vst [vmem:[#allocation3 + $0x54] sm:$0xf] %v4542_v39  ;;  %v6158_v21 = vsel %vm8551_vm10, %v6153_v62, %v6157_v7  ;;  %v6163_v15 = vrot.slane %v6162_v56, 4  ;;  %v5294_v57 = vshrl.u32 %v5191_v1, 16  ;;  %v4751_v39 = vld [vmem:[#allocation3 + $0x2c] sm:$0x1] }
 0x320   : > { %v4280_v44 = vsel %vm8347_vm11, %v4272_v23, %v4279_v14  ;;  %4657 = vrot.lane.b32.xlu0 %v10060_v26, %s8119_s15  ;;  %v4750_v23 = vld [vmem:[#allocation3 + $0x28] sm:$0xf]  ;;  %7799 = vmatmul.msk.bf16.gmra.mxu2 %vm5713_vm9, %v5885_v63  ;;  %v6520_v16 = vunpack.c.l.b16 %v6158_v21  ;;  %v5300_v10 = vshll.u32 %v5192_v55, 16  ;;  %v5287_v29 = vor.u32 %v5286_v4, %v5283_v52  ;;  %v6079_v52 = vld [vmem:[#allocation3 + $0x30] sm:$0xf] }
 0x321   : > { %v3826_v33 = vmax.f32 %v3783_v5, 0.0  ;;  %4418 = vrot.lane.b32.xlu1 %v4280_v44, %s8118_s12  ;;  %4655 = vrot.lane.b32.xlu2 %v10029_v17, %s8119_s15  ;;  %v4861_v50 = vshrl.u32 %v4749_v12, 16  ;;  %v4864_v59 = vshll.u32 %v4749_v12, 16  ;;  %v6168_v13 = vsel %vm8551_vm10, %v6163_v15, %v6167_v30 }
 0x322   : > { %v5296_v38 = vrot.slane %v5294_v57, 4  ;;  %v5302_v7 = vrot.slane %v5300_v10, 5  ;;  %v4870_v41 = vshll.u32 %v4750_v23, 16  ;;  %v6521_v0 = vunpack.c.l.b16 %v6168_v13 }
 0x323   : > { %v10090_v47 = vpack.c.bf16 %v3826_v33, %v3826_v33  ;;  %v4381_v25 = vpop.permute.xlu0 %4380  ;;  %v5288_v5 = vrot.slane %v5287_v29, 4  ;;  %v4863_v30 = vrot.slane %v4861_v50, 4  ;;  %v4866_v56 = vrot.slane %v4864_v59, 5  ;;  %v6080_v29 = vld [vmem:[#allocation3 + $0x34] sm:$0xf] }
 0x324   : > { %v4535_v54 = vsel %vm9719_vm12, %v4381_v25, %v4534_v53  ;;  %v5297_v62 = vor.u32 %v5296_v38, %v5292_v6  ;;  %v6551_v55 = vpack.c.b16 %v6521_v0, %v6520_v16  ;;  %v4872_v21 = vrot.slane %v4870_v41, 5 }
 0x325   : > { %v3958_v58 = vrot.slane %v10090_v47, 7  ;;  %v4283_v14 = vshrl.u32 %v10090_v47, 16  ;;  %v4286_v1 = vshll.u32 %v10090_v47, 16  ;;  %4536 = vst [vmem:[#allocation3 + $0x48] sm:$0xf] %v4535_v54  ;;  %v5293_v12 = vsel %vm8551_vm10, %v5288_v5, %v5292_v6 }
 0x326   : > { %v3784_v42 = vpop.f32.mrf.mxu0  ;;  %v5298_v33 = vrot.slane %v5297_v62, 4  ;;  %v4874_v4 = vshrl.u32 %v4750_v23, 16  ;;  %7850 = vmatmul.msk.bf16.gmra.mxu3 %vm5713_vm9, %v6551_v55  ;;  %4718 = vst.msk [vmem:[#allocation3 + $0x48] sm:$0xf] %vm4707_vm0, %v10052_v3  ;;  %v5633_v10 = vunpack.c.l.b16 %v5293_v12  ;;  %v4867_v50 = vor.u32 %v4866_v56, %v4863_v30  ;;  %v10120_v62 = vpop.permute.xlu2 %4637 }
 0x327   : > { %4066 = vst.msk [vmem:[#allocation3 + $0x9c] sm:$0xe] %vm4027_vm7, %v3958_v58  ;;  %v3785_v44 = vadd.f32 %v9956_v24, %v3784_v42  ;;  %v10103_v63 = vrot.slane %v4283_v14, 7  ;;  %v4880_v23 = vshll.u32 %v4751_v39, 16  ;;  %v6170_v25 = vshrl.u32 %v6079_v52, 16 }
 0x328   : > { %v5303_v6 = vsel %vm8551_vm10, %v5298_v33, %v5302_v7  ;;  %v4876_v59 = vrot.slane %v4874_v4, 4  ;;  %v6173_v38 = vshll.u32 %v6079_v52, 16  ;;  %v4868_v41 = vrot.slane %v4867_v50, 4  ;;  %v6081_v14 = vld [vmem:[#allocation3 + $0x38] sm:$0x1] }
 0x329   : > { %v3827_v15 = vmax.f32 %v3785_v44, 0.0  ;;  %4420 = vrot.lane.b32.xlu1 %v4281_v34, %s8118_s12  ;;  %v4288_v16 = vor.u32 %v4286_v1, %v10103_v63  ;;  %v4289_v57 = vrot.slane %v10103_v63, 4  ;;  %v5634_v34 = vunpack.c.l.b16 %v5303_v6 }
 0x32a   : > { %v4877_v0 = vor.u32 %v4876_v59, %v4872_v21  ;;  %v4882_v3 = vrot.slane %v4880_v23, 5  ;;  %v6179_v1 = vshll.u32 %v6080_v29, 16  ;;  %v6172_v5 = vrot.slane %v6170_v25, 4 }
 0x32b   : > { %v10115_v13 = vpack.c.bf16 %v3827_v15, %v3827_v15  ;;  %4422 = vrot.lane.b32.xlu2 %v4288_v16, %s8118_s12  ;;  %v5663_v54 = vpack.c.b16 %v5634_v34, %v5633_v10  ;;  %v4873_v39 = vsel %vm8551_vm10, %v4868_v41, %v4872_v21  ;;  %v6175_v55 = vrot.slane %v6173_v38, 5  ;;  %v4634_v25 = vpop.permute.xlu0 %4633 }
 0x32c   : > { %v4383_v53 = vpop.permute.xlu1 %4382  ;;  %v4878_v30 = vrot.slane %v4877_v0, 4  ;;  %v6181_v44 = vrot.slane %v6179_v1, 5  ;;  %v5857_v56 = vunpack.c.l.b16 %v4873_v39  ;;  %v6183_v52 = vshrl.u32 %v6080_v29, 16 }
 0x32d   : > { %v4291_v42 = vshrl.u32 %v10115_v13, 16  ;;  %v4294_v7 = vshll.u32 %v10115_v13, 16  ;;  %7759 = vmatmul.msk.bf16.gmra.mxu1 %vm5713_vm9, %v5663_v54  ;;  %v6189_v12 = vshll.u32 %v6081_v14, 16  ;;  %v6176_v15 = vor.u32 %v6175_v55, %v6172_v5  ;;  %v5195_v54 = vld [vmem:[#allocation3 + $0x38] sm:$0x1] }
 0x32e   : > { %v4883_v4 = vsel %vm8551_vm10, %v4878_v30, %v4882_v3  ;;  %v3924_v16 = vrot.slane %v3923_v43, 4  ;;  %v3925_v21 = vrot.slane %v9646_v35, 7  ;;  %v6185_v29 = vrot.slane %v6183_v52, 4  ;;  %v5193_v43 = vld [vmem:[#allocation3 + $0x30] sm:$0xf] }
 0x32f   : > { %v10124_v63 = vrot.slane %v4291_v42, 7  ;;  %v5858_v50 = vunpack.c.l.b16 %v4883_v4  ;;  %v6177_v59 = vrot.slane %v6176_v15, 4  ;;  %v6191_v23 = vrot.slane %v6189_v12, 5  ;;  %v5194_v3 = vld [vmem:[#allocation3 + $0x34] sm:$0xf] }
 0x330   : > { %v3787_v33 = vpop.f32.mrf.mxu0  ;;  %v3926_v34 = vsel %vm8322_vm6, %v3924_v16, %v3925_v21  ;;  %v6186_v0 = vor.u32 %v6185_v29, %v6181_v44  ;;  %v3927_v1 = vrot.slane %v3925_v21, 4  ;;  %v5305_v55 = vshrl.u32 %v5193_v43, 16 }
 0x331   : > { %v3788_v10 = vadd.f32 %v9956_v24, %v3787_v33  ;;  %4659 = vrot.lane.b32.xlu1 %v10090_v47, %s8119_s15  ;;  %v4296_v6 = vor.u32 %v4294_v7, %v10124_v63  ;;  %v4298_v28 = vrot.slane %v10124_v63, 4  ;;  %v5886_v41 = vpack.c.b16 %v5858_v50, %v5857_v56  ;;  %4046 = vst.msk [vmem:[#allocation3 + $0x4c] sm:$0xf] %vm4029_vm13, %v3926_v34 }
 0x332   : > { %v6182_v14 = vsel %vm8551_vm10, %v6177_v59, %v6181_v44  ;;  %4537 = vst.msk [vmem:[#allocation3 + $0x4c] sm:$0xf] %vm4494_vm8, %v4383_v53  ;;  %v3935_v7 = vrot.slane %v9779_v61, 7  ;;  %v6187_v39 = vrot.slane %v6186_v0, 4  ;;  %v4752_v44 = vld [vmem:[#allocation3 + $0x30] sm:$0xf] }
 0x333   : > { %v3828_v38 = vmax.f32 %v3788_v10, 0.0  ;;  %v4297_v35 = vsel %vm8347_vm11, %v4289_v57, %v4296_v6  ;;  %4661 = vrot.lane.b32.xlu2 %v10115_v13, %s8119_s15  ;;  %v3934_v57 = vrot.slane %v3933_v22, 4  ;;  %7800 = vmatmul.msk.bf16.gmra.mxu2 %vm5713_vm9, %v5886_v41  ;;  %v6522_v30 = vunpack.c.l.b16 %v6182_v14  ;;  %4719 = vst.msk [vmem:[#allocation3 + $0x4c] sm:$0xf] %vm4707_vm0, %v4634_v25 }
 0x334   : > { %4424 = vrot.lane.b32.xlu0 %v4297_v35, %s8118_s12  ;;  %v10148_v42 = vpop.permute.xlu1 %4384  ;;  %4047 = vst.msk [vmem:[#allocation3 + $0x50] sm:$0x1] %vm4031_vm14, %v3927_v1  ;;  %v5308_v53 = vshll.u32 %v5193_v43, 16  ;;  %v5314_v63 = vshll.u32 %v5194_v3, 16  ;;  %v5318_v56 = vshrl.u32 %v5194_v3, 16  ;;  %v6192_v12 = vsel %vm8551_vm10, %v6187_v39, %v6191_v23 }
 0x335   : > { %v10153_v5 = vpack.c.bf16 %v3828_v38, %v3828_v38  ;;  %v3936_v18 = vsel %vm8322_vm6, %v3934_v57, %v3935_v7  ;;  %v6523_v15 = vunpack.c.l.b16 %v6192_v12  ;;  %v5307_v21 = vrot.slane %v5305_v55, 4  ;;  %v4753_v43 = vld [vmem:[#allocation3 + $0x34] sm:$0xf]  ;;  %v4754_v1 = vld [vmem:[#allocation3 + $0x38] sm:$0x1] }
 0x336   : > { %v4395_v22 = vpop.permute.xlu2 %4394  ;;  %4052 = vst.msk [vmem:[#allocation3 + $0x64] sm:$0xf] %vm4029_vm13, %v3936_v18  ;;  %v5310_v10 = vrot.slane %v5308_v53, 5  ;;  %v5316_v6 = vrot.slane %v5314_v63, 5  ;;  %v5320_v59 = vrot.slane %v5318_v56, 4  ;;  %v5324_v23 = vshll.u32 %v5195_v54, 16 }
 0x337   : > { %v3963_v52 = vrot.slane %v10153_v5, 7  ;;  %v4300_v33 = vshrl.u32 %v10153_v5, 16  ;;  %v4303_v4 = vshll.u32 %v10153_v5, 16  ;;  %4551 = vst.msk [vmem:[#allocation3 + $0x64] sm:$0xf] %vm4494_vm8, %v4395_v22  ;;  %v6552_v34 = vpack.c.b16 %v6523_v15, %v6522_v30 }
 0x338   : > { %v3789_v16 = vpop.f32.mrf.mxu0  ;;  %v5311_v25 = vor.u32 %v5310_v10, %v5307_v21  ;;  %v4885_v38 = vshrl.u32 %v4752_v44, 16  ;;  %v4888_v35 = vshll.u32 %v4752_v44, 16  ;;  %v5321_v14 = vor.u32 %v5320_v59, %v5316_v6 }
 0x339   : > { %4069 = vst.msk [vmem:[#allocation3 + $0xa8] sm:$0xe] %vm4027_vm7, %v3963_v52  ;;  %v3790_v50 = vadd.f32 %v9956_v24, %v3789_v16  ;;  %v10173_v29 = vrot.slane %v4300_v33, 7  ;;  %7851 = vmatmul.msk.bf16.gmra.mxu3 %vm5713_vm9, %v6552_v34  ;;  %v5326_v39 = vrot.slane %v5324_v23, 5  ;;  %v4894_v53 = vshll.u32 %v4753_v43, 16 }
 0x33a   : > { %v5312_v57 = vrot.slane %v5311_v25, 4  ;;  %v4887_v55 = vrot.slane %v4885_v38, 4  ;;  %v4890_v54 = vrot.slane %v4888_v35, 5  ;;  %v5322_v22 = vrot.slane %v5321_v14, 4  ;;  %v6083_v38 = vld [vmem:[#allocation3 + $0x40] sm:$0xf] }
 0x33b   : > { %v3829_v41 = vmax.f32 %v3790_v50, 0.0  ;;  %v4305_v0 = vor.u32 %v4303_v4, %v10173_v29  ;;  %v4306_v3 = vrot.slane %v10173_v29, 4  ;;  %v4538_v44 = vld [vmem:[#allocation3 + $0x50] sm:$0x1]  ;;  %v4898_v63 = vshrl.u32 %v4753_v43, 16 }
 0x33c   : > { %4426 = vrot.lane.b32.xlu0 %v4298_v28, %s8118_s12  ;;  %v4636_v30 = vpop.permute.xlu1 %4635  ;;  %v4539_v56 = vsel %vm9863_vm4, %v10148_v42, %v4538_v44  ;;  %v5317_v28 = vsel %vm8551_vm10, %v5312_v57, %v5316_v6  ;;  %v4891_v12 = vor.u32 %v4890_v54, %v4887_v55  ;;  %v4904_v33 = vshll.u32 %v4754_v1, 16  ;;  %v6082_v4 = vld [vmem:[#allocation3 + $0x3c] sm:$0xf]  ;;  %v6084_v1 = vld [vmem:[#allocation3 + $0x44] sm:$0x1] }
 0x33d   : > { %v10179_v18 = vpack.c.bf16 %v3829_v41, %v3829_v41  ;;  %4428 = vrot.lane.b32.xlu1 %v4305_v0, %s8118_s12  ;;  %4720 = vst.msk [vmem:[#allocation3 + $0x54] sm:$0xf] %vm4707_vm0, %v4636_v30  ;;  %v5327_v10 = vsel %vm8551_vm10, %v5322_v22, %v5326_v39  ;;  %v5635_v50 = vunpack.c.l.b16 %v5317_v28  ;;  %v4896_v6 = vrot.slane %v4894_v53, 5 }
 0x33e   : > { %v10188_v15 = vpop.permute.xlu0 %4388  ;;  %4540 = vst [vmem:[#allocation3 + $0x50] sm:$0x1] %v4539_v56  ;;  %v5636_v29 = vunpack.c.l.b16 %v5327_v10  ;;  %v4892_v59 = vrot.slane %v4891_v12, 4  ;;  %v4900_v23 = vrot.slane %v4898_v63, 4  ;;  %v4906_v43 = vrot.slane %v4904_v33, 5 }
 0x33f   : > { %v4308_v16 = vshrl.u32 %v10179_v18, 16  ;;  %v4311_v21 = vshll.u32 %v10179_v18, 16  ;;  %v6194_v35 = vshrl.u32 %v6082_v4, 16  ;;  %v6197_v57 = vshll.u32 %v6082_v4, 16  ;;  %v10211_v4 = vpop.permute.xlu2 %4396 }
 0x340   : > { %v3792_v42 = vpop.f32.mrf.mxu0  ;;  %v5664_v41 = vpack.c.b16 %v5636_v29, %v5635_v50  ;;  %v4897_v0 = vsel %vm8551_vm10, %v4892_v59, %v4896_v6  ;;  %v4901_v14 = vor.u32 %v4900_v23, %v4896_v6  ;;  %v6203_v53 = vshll.u32 %v6083_v38, 16 }
 0x341   : > { %v3793_v34 = vadd.f32 %v9956_v24, %v3792_v42  ;;  %v10195_v25 = vrot.slane %v4308_v16, 7  ;;  %v5859_v54 = vunpack.c.l.b16 %v4897_v0  ;;  %v6196_v30 = vrot.slane %v6194_v35, 4 }
 0x342   : > { %7760 = vmatmul.msk.bf16.gmra.mxu1 %vm5713_vm9, %v5664_v41  ;;  %v4902_v44 = vrot.slane %v4901_v14, 4  ;;  %v6199_v22 = vrot.slane %v6197_v57, 5  ;;  %v6207_v63 = vshrl.u32 %v6083_v38, 16  ;;  %v6213_v12 = vshll.u32 %v6084_v1, 16  ;;  %v5196_v41 = vld [vmem:[#allocation3 + $0x3c] sm:$0xf] }
 0x343   : > { %v3830_v39 = vmax.f32 %v3793_v34, 0.0  ;;  %v4313_v55 = vor.u32 %v4311_v21, %v10195_v25  ;;  %v3929_v33 = vrot.slane %v3928_v37, 4  ;;  %v6205_v50 = vrot.slane %v6203_v53, 5 }
 0x344   : > { %4663 = vrot.lane.b32.xlu0 %v10153_v5, %s8119_s15  ;;  %v4907_v21 = vsel %vm8551_vm10, %v4902_v44, %v4906_v43  ;;  %v6200_v10 = vor.u32 %v6199_v22, %v6196_v30  ;;  %v6209_v42 = vrot.slane %v6207_v63, 4  ;;  %v6215_v8 = vrot.slane %v6213_v12, 5  ;;  %v4548_v43 = vld [vmem:[#allocation3 + $0x60] sm:$0xf]  ;;  %v5198_v30 = vld [vmem:[#allocation3 + $0x44] sm:$0x1] }
 0x345   : > { %v10203_v56 = vpack.c.bf16 %v3830_v39, %v3830_v39  ;;  %4665 = vrot.lane.b32.xlu1 %v10179_v18, %s8119_s15  ;;  %v4314_v28 = vsel %vm8347_vm11, %v4306_v3, %v4313_v55  ;;  %v4393_v16 = vpop.permute.xlu1 %4392  ;;  %v5860_v6 = vunpack.c.l.b16 %v4907_v21  ;;  %v3930_v38 = vrot.slane %v9703_v19, 7  ;;  %v5197_v39 = vld [vmem:[#allocation3 + $0x40] sm:$0xf]  ;;  %v4755_v63 = vld [vmem:[#allocation3 + $0x3c] sm:$0xf] }
 0x346   : > { %4430 = vrot.lane.b32.xlu2 %v4314_v28, %s8118_s12  ;;  %v10216_v29 = vpop.permute.xlu0 %4390  ;;  %v6201_v37 = vrot.slane %v6200_v10, 4  ;;  %v6210_v23 = vor.u32 %v6209_v42, %v6205_v50  ;;  %v3937_v35 = vrot.slane %v3935_v7, 4  ;;  %v4315_v7 = vrot.slane %v10195_v25, 4  ;;  %v4756_v42 = vld [vmem:[#allocation3 + $0x40] sm:$0xf] }
 0x347   : > { %v3968_v59 = vrot.slane %v10203_v56, 7  ;;  %v4317_v3 = vshrl.u32 %v10203_v56, 16  ;;  %v5887_v0 = vpack.c.b16 %v5860_v6, %v5859_v54  ;;  %v4320_v57 = vshll.u32 %v10203_v56, 16 }
 0x348   : > { %v3794_v34 = vpop.f32.mrf.mxu0  ;;  %v6206_v19 = vsel %vm8551_vm10, %v6201_v37, %v6205_v50  ;;  %v6211_v55 = vrot.slane %v6210_v23, 4  ;;  %v3931_v61 = vsel %vm8322_vm6, %v3929_v33, %v3930_v38  ;;  %4053 = vst.msk [vmem:[#allocation3 + $0x68] sm:$0x1] %vm4031_vm14, %v3937_v35  ;;  %v4549_v53 = vsel %vm9719_vm12, %v4393_v16, %v4548_v43 }
 0x349   : > { %4072 = vst.msk [vmem:[#allocation3 + $0xb4] sm:$0xe] %vm4027_vm7, %v3968_v59  ;;  %v3795_v14 = vadd.f32 %v9956_v24, %v3794_v34  ;;  %v10227_v1 = vrot.slane %v4317_v3, 7  ;;  %7801 = vmatmul.msk.bf16.gmra.mxu2 %vm5713_vm9, %v5887_v0  ;;  %v6524_v54 = vunpack.c.l.b16 %v6206_v19  ;;  %v3932_v25 = vrot.slane %v3930_v38, 4 }
 0x34a   : > { %4049 = vst.msk [vmem:[#allocation3 + $0x58] sm:$0xf] %vm4029_vm13, %v3931_v61  ;;  %v6216_v28 = vsel %vm8551_vm10, %v6211_v55, %v6215_v8  ;;  %v5329_v33 = vshrl.u32 %v5196_v41, 16  ;;  %v5332_v16 = vshll.u32 %v5196_v41, 16  ;;  %v5338_v50 = vshll.u32 %v5197_v39, 16 }
 0x34b   : > { %v3831_v44 = vmax.f32 %v3795_v14, 0.0  ;;  %v4322_v22 = vor.u32 %v4320_v57, %v10227_v1  ;;  %4544 = vst.msk [vmem:[#allocation3 + $0x58] sm:$0xf] %vm4494_vm8, %v10188_v15  ;;  %v4323_v12 = vrot.slane %v10227_v1, 4  ;;  %v6525_v21 = vunpack.c.l.b16 %v6216_v28  ;;  %v4757_v41 = vld [vmem:[#allocation3 + $0x44] sm:$0x1] }
 0x34c   : > { %4721 = vst.msk [vmem:[#allocation3 + $0x58] sm:$0xf] %vm4707_vm0, %v10120_v62  ;;  %v5331_v15 = vrot.slane %v5329_v33, 4  ;;  %v5342_v6 = vshrl.u32 %v5197_v39, 16  ;;  %v5348_v8 = vshll.u32 %v5198_v30, 16  ;;  %v4909_v37 = vshrl.u32 %v4755_v63, 16  ;;  %v10255_v62 = vpop.permute.xlu2 %4643 }
 0x34d   : > { %v10246_v10 = vpack.c.bf16 %v3831_v44, %v3831_v44  ;;  %4434 = vrot.lane.b32.xlu0 %v4322_v22, %s8118_s12  ;;  %v4642_v3 = vpop.permute.xlu1 %4641  ;;  %4550 = vst [vmem:[#allocation3 + $0x60] sm:$0xf] %v4549_v53  ;;  %v6553_v34 = vpack.c.b16 %v6525_v21, %v6524_v54  ;;  %v5334_v43 = vrot.slane %v5332_v16, 5  ;;  %v5340_v14 = vrot.slane %v5338_v50, 5 }
 0x34e   : > { %4432 = vrot.lane.b32.xlu2 %v4315_v7, %s8118_s12  ;;  %v4640_v23 = vpop.permute.xlu0 %4639  ;;  %4050 = vst.msk [vmem:[#allocation3 + $0x5c] sm:$0x1] %vm4031_vm14, %v3932_v25  ;;  %v5344_v1 = vrot.slane %v5342_v6, 4  ;;  %v5350_v57 = vrot.slane %v5348_v8, 5  ;;  %v4911_v19 = vrot.slane %v4909_v37, 4  ;;  %v4912_v30 = vshll.u32 %v4755_v63, 16 }
 0x34f   : > { %v4325_v38 = vshrl.u32 %v10246_v10, 16  ;;  %v4328_v35 = vshll.u32 %v10246_v10, 16  ;;  %4723 = vst.msk [vmem:[#allocation3 + $0x64] sm:$0xf] %vm4707_vm0, %v4642_v3  ;;  %7852 = vmatmul.msk.bf16.gmra.mxu3 %vm5713_vm9, %v6553_v34  ;;  %v4552_v39 = vld [vmem:[#allocation3 + $0x68] sm:$0x1]  ;;  %v5335_v7 = vor.u32 %v5334_v43, %v5331_v15 }
 0x350   : > { %v3797_v0 = vpop.f32.mrf.mxu0  ;;  %4722 = vst.msk [vmem:[#allocation3 + $0x60] sm:$0xf] %vm4707_vm0, %v4640_v23  ;;  %v4553_v54 = vsel %vm9863_vm4, %v10211_v4, %v4552_v39  ;;  %v5345_v44 = vor.u32 %v5344_v1, %v5340_v14  ;;  %v4918_v22 = vshll.u32 %v4756_v42, 16  ;;  %v4922_v53 = vshrl.u32 %v4756_v42, 16  ;;  %v6085_v6 = vld [vmem:[#allocation3 + $0x48] sm:$0xf] }
 0x351   : > { %v3798_v55 = vadd.f32 %v9956_v24, %v3797_v0  ;;  %v10260_v61 = vrot.slane %v4325_v38, 7  ;;  %4554 = vst [vmem:[#allocation3 + $0x68] sm:$0x1] %v4553_v54  ;;  %v5336_v33 = vrot.slane %v5335_v7, 4  ;;  %v4914_v21 = vrot.slane %v4912_v30, 5 }
 0x352   : > { %v5346_v24 = vrot.slane %v5345_v44, 4  ;;  %v4920_v16 = vrot.slane %v4918_v22, 5  ;;  %v4924_v50 = vrot.slane %v4922_v53, 4  ;;  %v4928_v3 = vshll.u32 %v4757_v41, 16  ;;  %v6086_v8 = vld [vmem:[#allocation3 + $0x4c] sm:$0xf] }
 0x353   : > { %v3832_v28 = vmax.f32 %v3798_v55, 0.0  ;;  %v4330_v25 = vor.u32 %v4328_v35, %v10260_v61  ;;  %v5341_v4 = vsel %vm8551_vm10, %v5336_v33, %v5340_v14  ;;  %v4915_v42 = vor.u32 %v4914_v21, %v4911_v19  ;;  %v6087_v35 = vld [vmem:[#allocation3 + $0x50] sm:$0x1] }
 0x354   : > { %v5351_v23 = vsel %vm8551_vm10, %v5346_v24, %v5350_v57  ;;  %v5637_v34 = vunpack.c.l.b16 %v5341_v4  ;;  %v4930_v38 = vrot.slane %v4928_v3, 5  ;;  %v6218_v39 = vshrl.u32 %v6085_v6, 16  ;;  %v4405_v22 = vpop.permute.xlu2 %4404  ;;  %v4562_v3 = vld [vmem:[#allocation3 + $0x78] sm:$0xf] }
 0x355   : > { %v10267_v63 = vpack.c.bf16 %v3832_v28, %v3832_v28  ;;  %v4331_v15 = vsel %vm8347_vm11, %v4323_v12, %v4330_v25  ;;  %4669 = vrot.lane.b32.xlu0 %v10246_v10, %s8119_s15  ;;  %v4545_v37 = vld [vmem:[#allocation3 + $0x5c] sm:$0x1]  ;;  %v4925_v12 = vor.u32 %v4924_v50, %v4920_v16  ;;  %v5638_v14 = vunpack.c.l.b16 %v5351_v23  ;;  %v5199_v23 = vld [vmem:[#allocation3 + $0x48] sm:$0xf] }
 0x356   : > { %4436 = vrot.lane.b32.xlu1 %v4331_v15, %s8118_s12  ;;  %4667 = vrot.lane.b32.xlu2 %v10203_v56, %s8119_s15  ;;  %v4546_v0 = vsel %vm9863_vm4, %v10216_v29, %v4545_v37  ;;  %v4916_v1 = vrot.slane %v4915_v42, 4  ;;  %v6221_v55 = vshll.u32 %v6085_v6, 16  ;;  %v6227_v7 = vshll.u32 %v6086_v8, 16  ;;  %v4399_v15 = vpop.permute.xlu0 %4398  ;;  %v8104_v6 = vld [vmem:[%s11193_s6] ss:$0 sm:$0xff] }
 0x357   : > { %v3973_v43 = vrot.slane %v10267_v63, 7  ;;  %v4334_v41 = vshrl.u32 %v10267_v63, 16  ;;  %4547 = vst [vmem:[#allocation3 + $0x5c] sm:$0x1] %v4546_v0  ;;  %v4926_v19 = vrot.slane %v4925_v12, 4  ;;  %v5665_v57 = vpack.c.b16 %v5638_v14, %v5637_v34 }
 0x358   : > { %v6231_v30 = vshrl.u32 %v6086_v8, 16  ;;  %v6237_v54 = vshll.u32 %v6087_v35, 16  ;;  %v3799_v44 = vpop.f32.mrf.mxu0  ;;  %v4921_v53 = vsel %vm8551_vm10, %v4916_v1, %v4920_v16  ;;  %v6220_v28 = vrot.slane %v6218_v39, 4  ;;  %v4555_v37 = vld [vmem:[#allocation3 + $0x6c] sm:$0xf] }
 0x359   : > { %4075 = vst.msk [vmem:[#allocation3 + $0xc0] sm:$0xe] %vm4027_vm7, %v3973_v43  ;;  %v4931_v29 = vsel %vm8551_vm10, %v4926_v19, %v4930_v38  ;;  %v6223_v25 = vrot.slane %v6221_v55, 5  ;;  %7761 = vmatmul.msk.bf16.gmra.mxu1 %vm5713_vm9, %v5665_v57  ;;  %v5861_v33 = vunpack.c.l.b16 %v4921_v53  ;;  %v6229_v24 = vrot.slane %v6227_v7, 5  ;;  %v5200_v0 = vld [vmem:[#allocation3 + $0x4c] sm:$0xf] }
 0x35a   : > { %v5862_v21 = vunpack.c.l.b16 %v4931_v29  ;;  %v6233_v50 = vrot.slane %v6231_v30, 4  ;;  %v6239_v42 = vrot.slane %v6237_v54, 5  ;;  %v3800_v16 = vadd.f32 %v8104_v6, %v3799_v44  ;;  %v5201_v55 = vld [vmem:[#allocation3 + $0x50] sm:$0x1]  ;;  %v4758_v29 = vld [vmem:[#allocation3 + $0x48] sm:$0xf] }
 0x35b   : > { %v6224_v4 = vor.u32 %v6223_v25, %v6220_v28  ;;  %v4563_v8 = vsel %vm9719_vm12, %v4405_v22, %v4562_v3  ;;  %v4332_v38 = vrot.slane %v10260_v61, 4  ;;  %v4336_v35 = vrot.slane %v4334_v41, 7 }
 0x35c   : > { %v5888_v34 = vpack.c.b16 %v5862_v21, %v5861_v33  ;;  %v6234_v12 = vor.u32 %v6233_v50, %v6229_v24  ;;  %4564 = vst [vmem:[#allocation3 + $0x78] sm:$0xf] %v4563_v8  ;;  %v3833_v1 = vmax.f32 %v3800_v16, 0.0  ;;  %v4337_v19 = vshll.u32 %v10267_v63, 16  ;;  %v4759_v50 = vld [vmem:[#allocation3 + $0x4c] sm:$0xf] }
 0x35d   : > { %v6225_v14 = vrot.slane %v6224_v4, 4  ;;  %v4556_v39 = vsel %vm9719_vm12, %v4399_v15, %v4555_v37  ;;  %v4340_v30 = vrot.slane %v4336_v35, 4  ;;  %v5353_v61 = vshrl.u32 %v5199_v23, 16  ;;  %v4760_v8 = vld [vmem:[#allocation3 + $0x50] sm:$0x1] }
 0x35e   : > { %v10302_v57 = vpop.permute.xlu1 %4400  ;;  %7802 = vmatmul.msk.bf16.gmra.mxu2 %vm5713_vm9, %v5888_v34  ;;  %v6235_v7 = vrot.slane %v6234_v12, 4  ;;  %4438 = vrot.lane.b32.xlu1 %v4332_v38, %s8118_s12  ;;  %4557 = vst [vmem:[#allocation3 + $0x6c] sm:$0xf] %v4556_v39  ;;  %v5356_v41 = vshll.u32 %v5199_v23, 16  ;;  %v10308_v44 = vpack.c.bf16 %v3833_v1, %v3833_v1  ;;  %v4339_v22 = vor.u32 %v4337_v19, %v4336_v35  ;;  %v10317_v34 = vpop.permute.xlu2 %4649  ;;  %v6088_v35 = vld [vmem:[#allocation3 + $0x54] sm:$0xf] }
 0x35f   : > { %v6230_v54 = vsel %vm8551_vm10, %v6225_v14, %v6229_v24  ;;  %4724 = vst.msk [vmem:[#allocation3 + $0x6c] sm:$0xf] %vm4707_vm0, %v10255_v62  ;;  %v5362_v53 = vshll.u32 %v5200_v0, 16  ;;  %v5355_v33 = vrot.slane %v5353_v61, 4  ;;  %v5366_v16 = vshrl.u32 %v5200_v0, 16 }
 0x360   : > { %v6240_v28 = vsel %vm8551_vm10, %v6235_v7, %v6239_v42  ;;  %v6526_v25 = vunpack.c.l.b16 %v6230_v54  ;;  %v5358_v21 = vrot.slane %v5356_v41, 5  ;;  %v4342_v15 = vshrl.u32 %v10308_v44, 16  ;;  %4440 = vrot.lane.b32.xlu2 %v4339_v22, %s8118_s12 }
 0x361   : > { %v6527_v3 = vunpack.c.l.b16 %v6240_v28  ;;  %v4345_v24 = vshll.u32 %v10308_v44, 16  ;;  %v5364_v4 = vrot.slane %v5362_v53, 5  ;;  %v5372_v62 = vshll.u32 %v5201_v55, 16 }
 0x362   : > { %v5359_v6 = vor.u32 %v5358_v21, %v5355_v33  ;;  %v4933_v37 = vshrl.u32 %v4758_v29, 16  ;;  %v10319_v42 = vrot.slane %v4342_v15, 7  ;;  %v4936_v12 = vshll.u32 %v4758_v29, 16  ;;  %v6089_v29 = vld [vmem:[#allocation3 + $0x58] sm:$0xf] }
 0x363   : > { %v6554_v23 = vpack.c.b16 %v6527_v3, %v6526_v25  ;;  %v4942_v38 = vshll.u32 %v4759_v50, 16  ;;  %v5368_v1 = vrot.slane %v5366_v16, 4  ;;  %v5374_v19 = vrot.slane %v5372_v62, 5  ;;  %v10329_v25 = vpop.permute.xlu0 %4645  ;;  %v6090_v15 = vld [vmem:[#allocation3 + $0x5c] sm:$0x1] }
 0x364   : > { %v5360_v14 = vrot.slane %v5359_v6, 4  ;;  %v4935_v39 = vrot.slane %v4933_v37, 4  ;;  %v4347_v7 = vor.u32 %v4345_v24, %v10319_v42  ;;  %v4938_v0 = vrot.slane %v4936_v12, 5 }
 0x365   : > { %7853 = vmatmul.msk.bf16.gmra.mxu3 %vm5713_vm9, %v6554_v23  ;;  %v4944_v55 = vrot.slane %v4942_v38, 5  ;;  %v4946_v61 = vshrl.u32 %v4759_v50, 16  ;;  %v5369_v22 = vor.u32 %v5368_v1, %v5364_v4  ;;  %v4952_v53 = vshll.u32 %v4760_v8, 16 }
 0x366   : > { %v10323_v41 = vpop.permute.xlu1 %4402  ;;  %4671 = vrot.lane.b32.xlu1 %v10267_v63, %s8119_s15  ;;  %v5365_v54 = vsel %vm8551_vm10, %v5360_v14, %v5364_v4  ;;  %v6242_v28 = vshrl.u32 %v6088_v35, 16  ;;  %v4348_v33 = vsel %vm8347_vm11, %v4340_v30, %v4347_v7  ;;  %v4939_v3 = vor.u32 %v4938_v0, %v4935_v39 }
 0x367   : > { %v5639_v21 = vunpack.c.l.b16 %v5365_v54  ;;  %v4948_v50 = vrot.slane %v4946_v61, 4  ;;  %4442 = vrot.lane.b32.xlu0 %v4348_v33, %s8118_s12  ;;  %v5370_v24 = vrot.slane %v5369_v22, 4  ;;  %v4954_v6 = vrot.slane %v4952_v53, 5  ;;  %v5202_v53 = vld [vmem:[#allocation3 + $0x54] sm:$0xf] }
 0x368   : > { %v6244_v16 = vrot.slane %v6242_v28, 4  ;;  %v6245_v62 = vshll.u32 %v6088_v35, 16  ;;  %4673 = vrot.lane.b32.xlu2 %v10308_v44, %s8119_s15  ;;  %v4940_v4 = vrot.slane %v4939_v3, 4  ;;  %v6251_v37 = vshll.u32 %v6089_v29, 16 }
 0x369   : > { %v4949_v8 = vor.u32 %v4948_v50, %v4944_v55  ;;  %v6255_v23 = vshrl.u32 %v6089_v29, 16  ;;  %v5375_v51 = vsel %vm8551_vm10, %v5370_v24, %v5374_v19  ;;  %v6261_v12 = vshll.u32 %v6090_v15, 16  ;;  %v5204_v24 = vld [vmem:[#allocation3 + $0x5c] sm:$0x1] }
 0x36a   : > { %v6247_v30 = vrot.slane %v6245_v62, 5  ;;  %v3939_v38 = vrot.slane %v3938_v45, 4  ;;  %v5640_v14 = vunpack.c.l.b16 %v5375_v51  ;;  %v4945_v1 = vsel %vm8551_vm10, %v4940_v4, %v4944_v55  ;;  %v5203_v45 = vld [vmem:[#allocation3 + $0x58] sm:$0xf]  ;;  %v4761_v62 = vld [vmem:[#allocation3 + $0x54] sm:$0xf] }
 0x36b   : > { %v4950_v35 = vrot.slane %v4949_v8, 4  ;;  %v6253_v39 = vrot.slane %v6251_v37, 5  ;;  %v4413_v7 = vpop.permute.xlu2 %4412  ;;  %v5863_v0 = vunpack.c.l.b16 %v4945_v1  ;;  %v6257_v54 = vrot.slane %v6255_v23, 4  ;;  %v4762_v37 = vld [vmem:[#allocation3 + $0x58] sm:$0xf] }
 0x36c   : > { %v6248_v61 = vor.u32 %v6247_v30, %v6244_v16  ;;  %v6263_v22 = vrot.slane %v6261_v12, 5  ;;  %v5666_v29 = vpack.c.b16 %v5640_v14, %v5639_v21  ;;  %v3940_v28 = vrot.slane %v9854_v36, 7 }
 0x36d   : > { %v4955_v19 = vsel %vm8551_vm10, %v4950_v35, %v4954_v6  ;;  %v4349_v46 = vrot.slane %v10319_v42, 4  ;;  %v6258_v50 = vor.u32 %v6257_v54, %v6253_v39  ;;  %v3949_v15 = vrot.slane %v3948_v2, 4 }
 0x36e   : > { %v4648_v33 = vpop.permute.xlu1 %4647  ;;  %v5864_v3 = vunpack.c.l.b16 %v4955_v19  ;;  %v6249_v55 = vrot.slane %v6248_v61, 4  ;;  %7762 = vmatmul.msk.bf16.gmra.mxu1 %vm5713_vm9, %v5666_v29  ;;  %v3941_v36 = vsel %vm8322_vm6, %v3939_v38, %v3940_v28  ;;  %v3942_v21 = vrot.slane %v3940_v28, 4  ;;  %v4763_v38 = vld [vmem:[#allocation3 + $0x5c] sm:$0x1]  ;;  %v6092_v29 = vld [vmem:[#allocation3 + $0x64] sm:$0xf] }
 0x36f   : > { %4726 = vst.msk [vmem:[#allocation3 + $0x78] sm:$0xf] %vm4707_vm0, %v4648_v33  ;;  %v10349_v16 = vpop.permute.xlu0 %4406  ;;  %v3950_v42 = vrot.slane %v9999_v20, 7  ;;  %v5377_v6 = vshrl.u32 %v5202_v53, 16  ;;  %v6259_v2 = vrot.slane %v6258_v50, 4  ;;  %4444 = vrot.lane.b32.xlu0 %v4349_v46, %s8118_s12  ;;  %v5380_v8 = vshll.u32 %v5202_v53, 16 }
 0x370   : > { %v5889_v4 = vpack.c.b16 %v5864_v3, %v5863_v0  ;;  %v6254_v31 = vsel %vm8551_vm10, %v6249_v55, %v6253_v39  ;;  %4055 = vst.msk [vmem:[#allocation3 + $0x70] sm:$0xf] %vm4029_vm13, %v3941_v36  ;;  %v5386_v12 = vshll.u32 %v5203_v45, 16  ;;  %v5390_v35 = vshrl.u32 %v5203_v45, 16 }
 0x371   : > { %v6528_v23 = vunpack.c.l.b16 %v6254_v31  ;;  %4558 = vst.msk [vmem:[#allocation3 + $0x70] sm:$0xf] %vm4494_vm8, %v10302_v57  ;;  %v3951_v51 = vsel %vm8322_vm6, %v3949_v15, %v3950_v42  ;;  %v5379_v30 = vrot.slane %v5377_v6, 4  ;;  %v6264_v14 = vsel %vm8551_vm10, %v6259_v2, %v6263_v22  ;;  %v6091_v57 = vld [vmem:[#allocation3 + $0x60] sm:$0xf] }
 0x372   : > { %7803 = vmatmul.msk.bf16.gmra.mxu2 %vm5713_vm9, %v5889_v4  ;;  %4725 = vst.msk [vmem:[#allocation3 + $0x70] sm:$0xf] %vm4707_vm0, %v10329_v25  ;;  %v5382_v1 = vrot.slane %v5380_v8, 5  ;;  %v5396_v39 = vshll.u32 %v5204_v24, 16  ;;  %v6529_v0 = vunpack.c.l.b16 %v6264_v14  ;;  %v5388_v61 = vrot.slane %v5386_v12, 5 }
 0x373   : > { %4056 = vst.msk [vmem:[#allocation3 + $0x74] sm:$0x1] %vm4031_vm14, %v3942_v21  ;;  %v4957_v54 = vshrl.u32 %v4761_v62, 16  ;;  %v4960_v53 = vshll.u32 %v4761_v62, 16  ;;  %v5392_v28 = vrot.slane %v5390_v35, 4  ;;  %v4966_v22 = vshll.u32 %v4762_v37, 16  ;;  %v10373_v55 = vpop.permute.xlu2 %4414 }
 0x374   : > { %4061 = vst.msk [vmem:[#allocation3 + $0x88] sm:$0xf] %vm4029_vm13, %v3951_v51  ;;  %v5383_v19 = vor.u32 %v5382_v1, %v5379_v30  ;;  %v5398_v46 = vrot.slane %v5396_v39, 5  ;;  %v6555_v33 = vpack.c.b16 %v6529_v0, %v6528_v23  ;;  %v4970_v3 = vshrl.u32 %v4762_v37, 16  ;;  %v6093_v12 = vld [vmem:[#allocation3 + $0x68] sm:$0x1] }
 0x375   : > { %4572 = vst.msk [vmem:[#allocation3 + $0x88] sm:$0xf] %vm4494_vm8, %v4413_v7  ;;  %v4959_v25 = vrot.slane %v4957_v54, 4  ;;  %v4962_v45 = vrot.slane %v4960_v53, 5  ;;  %v5393_v15 = vor.u32 %v5392_v28, %v5388_v61  ;;  %v4968_v24 = vrot.slane %v4966_v22, 5 }
 0x376   : > { %v5384_v50 = vrot.slane %v5383_v19, 4  ;;  %v4976_v36 = vshll.u32 %v4763_v38, 16  ;;  %7854 = vmatmul.msk.bf16.gmra.mxu3 %vm5713_vm9, %v6555_v33  ;;  %v4972_v6 = vrot.slane %v4970_v3, 4  ;;  %v6266_v62 = vshrl.u32 %v6091_v57, 16 }
 0x377   : > { %v4963_v21 = vor.u32 %v4962_v45, %v4959_v25  ;;  %v6269_v4 = vshll.u32 %v6091_v57, 16  ;;  %v10376_v31 = vpop.permute.xlu0 %4408  ;;  %v5394_v2 = vrot.slane %v5393_v15, 4  ;;  %v6275_v37 = vshll.u32 %v6092_v29, 16 }
 0x378   : > { %v5389_v7 = vsel %vm8551_vm10, %v5384_v50, %v5388_v61  ;;  %v4978_v8 = vrot.slane %v4976_v36, 5  ;;  %v4973_v30 = vor.u32 %v4972_v6, %v4968_v24  ;;  %v6268_v14 = vrot.slane %v6266_v62, 4  ;;  %v5206_v6 = vld [vmem:[#allocation3 + $0x64] sm:$0xf] }
 0x379   : > { %v5641_v23 = vunpack.c.l.b16 %v5389_v7  ;;  %v4964_v51 = vrot.slane %v4963_v21, 4  ;;  %v5399_v35 = vsel %vm8551_vm10, %v5394_v2, %v5398_v46  ;;  %v6271_v39 = vrot.slane %v6269_v4, 5  ;;  %v4569_v21 = vld [vmem:[#allocation3 + $0x84] sm:$0xf]  ;;  %v5207_v7 = vld [vmem:[#allocation3 + $0x68] sm:$0x1] }
 0x37a   : > { %v4411_v38 = vpop.permute.xlu1 %4410  ;;  %v4559_v1 = vld [vmem:[#allocation3 + $0x74] sm:$0x1]  ;;  %v6277_v57 = vrot.slane %v6275_v37, 5  ;;  %v6279_v0 = vshrl.u32 %v6092_v29, 16  ;;  %v5642_v54 = vunpack.c.l.b16 %v5399_v35  ;;  %v4974_v19 = vrot.slane %v4973_v30, 4 }
 0x37b   : > { %v4560_v61 = vsel %vm9863_vm4, %v10323_v41, %v4559_v1  ;;  %v4969_v53 = vsel %vm8551_vm10, %v4964_v51, %v4968_v24  ;;  %v6272_v22 = vor.u32 %v6271_v39, %v6268_v14  ;;  %v6285_v25 = vshll.u32 %v6093_v12, 16  ;;  %v5205_v41 = vld [vmem:[#allocation3 + $0x60] sm:$0xf]  ;;  %v4765_v30 = vld [vmem:[#allocation3 + $0x64] sm:$0xf] }
 0x37c   : > { %4561 = vst [vmem:[#allocation3 + $0x74] sm:$0x1] %v4560_v61  ;;  %v5865_v28 = vunpack.c.l.b16 %v4969_v53  ;;  %v6281_v33 = vrot.slane %v6279_v0, 4  ;;  %v5667_v45 = vpack.c.b16 %v5642_v54, %v5641_v23  ;;  %v4979_v46 = vsel %vm8551_vm10, %v4974_v19, %v4978_v8  ;;  %v4764_v2 = vld [vmem:[#allocation3 + $0x60] sm:$0xf] }
 0x37d   : > { %v3944_v29 = vrot.slane %v3943_v27, 4  ;;  %v3945_v3 = vrot.slane %v9922_v11, 7  ;;  %v5866_v50 = vunpack.c.l.b16 %v4979_v46  ;;  %v6273_v15 = vrot.slane %v6272_v22, 4  ;;  %v10399_v11 = vpop.permute.xlu2 %4655  ;;  %v6094_v1 = vld [vmem:[#allocation3 + $0x6c] sm:$0xf] }
 0x37e   : > { %v6282_v36 = vor.u32 %v6281_v33, %v6277_v57  ;;  %v6287_v24 = vrot.slane %v6285_v25, 5  ;;  %7763 = vmatmul.msk.bf16.gmra.mxu1 %vm5713_vm9, %v5667_v45  ;;  %v3952_v4 = vrot.slane %v3950_v42, 4  ;;  %v4570_v9 = vsel %vm9719_vm12, %v4411_v38, %v4569_v21  ;;  %v4766_v38 = vld [vmem:[#allocation3 + $0x68] sm:$0x1]  ;;  %v4768_v47 = vld [vmem:[#allocation3 + $0x70] sm:$0xf] }
 0x37f   : > { %v3946_v62 = vsel %vm8322_vm6, %v3944_v29, %v3945_v3  ;;  %v3947_v27 = vrot.slane %v3945_v3, 4  ;;  %v5890_v8 = vpack.c.b16 %v5866_v50, %v5865_v28  ;;  %v6278_v37 = vsel %vm8551_vm10, %v6273_v15, %v6277_v57  ;;  %v4652_v35 = vpop.permute.xlu0 %4651  ;;  %4571 = vst [vmem:[#allocation3 + $0x84] sm:$0xf] %v4570_v9 }
 0x380   : > { %v6283_v23 = vrot.slane %v6282_v36, 4  ;;  %4058 = vst.msk [vmem:[#allocation3 + $0x7c] sm:$0xf] %vm4029_vm13, %v3946_v62  ;;  %v5401_v51 = vshrl.u32 %v5205_v41, 16  ;;  %v6530_v12 = vunpack.c.l.b16 %v6278_v37  ;;  %v5404_v20 = vshll.u32 %v5205_v41, 16 }
 0x381   : > { %4565 = vst.msk [vmem:[#allocation3 + $0x7c] sm:$0xf] %vm4494_vm8, %v10349_v16  ;;  %v5410_v42 = vshll.u32 %v5206_v6, 16  ;;  %v5414_v14 = vshrl.u32 %v5206_v6, 16  ;;  %v5420_v0 = vshll.u32 %v5207_v7, 16  ;;  %v4981_v61 = vshrl.u32 %v4764_v2, 16 }
 0x382   : > { %7804 = vmatmul.msk.bf16.gmra.mxu2 %vm5713_vm9, %v5890_v8  ;;  %v6288_v39 = vsel %vm8551_vm10, %v6283_v23, %v6287_v24  ;;  %4727 = vst.msk [vmem:[#allocation3 + $0x7c] sm:$0xf] %vm4707_vm0, %v10317_v34  ;;  %v5403_v57 = vrot.slane %v5401_v51, 4  ;;  %v5406_v16 = vrot.slane %v5404_v20, 5  ;;  %v4654_v28 = vpop.permute.xlu1 %4653  ;;  %v4984_v25 = vshll.u32 %v4764_v2, 16 }
 0x383   : > { %v6531_v54 = vunpack.c.l.b16 %v6288_v39  ;;  %4062 = vst.msk [vmem:[#allocation3 + $0x8c] sm:$0x1] %vm4031_vm14, %v3952_v4  ;;  %v5412_v53 = vrot.slane %v5410_v42, 5  ;;  %v5416_v19 = vrot.slane %v5414_v14, 4  ;;  %v5422_v22 = vrot.slane %v5420_v0, 5 }
 0x384   : > { %v4983_v33 = vrot.slane %v4981_v61, 4  ;;  %v4990_v45 = vshll.u32 %v4765_v30, 16  ;;  %4059 = vst.msk [vmem:[#allocation3 + $0x80] sm:$0x1] %vm4031_vm14, %v3947_v27  ;;  %v5407_v29 = vor.u32 %v5406_v16, %v5403_v57  ;;  %v4994_v3 = vshrl.u32 %v4765_v30, 16 }
 0x385   : > { %v6556_v46 = vpack.c.b16 %v6531_v54, %v6530_v12  ;;  %v5417_v34 = vor.u32 %v5416_v19, %v5412_v53  ;;  %v6095_v41 = vld [vmem:[#allocation3 + $0x70] sm:$0xf]  ;;  %v4986_v50 = vrot.slane %v4984_v25, 5  ;;  %v5000_v36 = vshll.u32 %v4766_v38, 16  ;;  %4729 = vst.msk [vmem:[#allocation3 + $0x88] sm:$0xf] %vm4707_vm0, %v4654_v28  ;;  %v4423_v30 = vpop.permute.xlu2 %4422 }
 0x386   : > { %v4992_v15 = vrot.slane %v4990_v45, 5  ;;  %v6290_v24 = vshrl.u32 %v6094_v1, 16  ;;  %v5408_v21 = vrot.slane %v5407_v29, 4  ;;  %v4996_v62 = vrot.slane %v4994_v3, 4  ;;  %4728 = vst.msk [vmem:[#allocation3 + $0x84] sm:$0xf] %vm4707_vm0, %v4652_v35 }
 0x387   : > { %7855 = vmatmul.msk.bf16.gmra.mxu3 %vm5713_vm9, %v6556_v46  ;;  %v5418_v6 = vrot.slane %v5417_v34, 4  ;;  %v6293_v4 = vshll.u32 %v6094_v1, 16  ;;  %v4987_v9 = vor.u32 %v4986_v50, %v4983_v33  ;;  %v6299_v7 = vshll.u32 %v6095_v41, 16  ;;  %v6096_v23 = vld [vmem:[#allocation3 + $0x74] sm:$0x1] }
 0x388   : > { %v6292_v27 = vrot.slane %v6290_v24, 4  ;;  %v5413_v2 = vsel %vm8551_vm10, %v5408_v21, %v5412_v53  ;;  %v4997_v37 = vor.u32 %v4996_v62, %v4992_v15  ;;  %v5002_v38 = vrot.slane %v5000_v36, 5  ;;  %v4583_v0 = vld [vmem:[#allocation3 + $0x9c] sm:$0xf]  ;;  %v4576_v46 = vld [vmem:[#allocation3 + $0x90] sm:$0xf] }
 0x389   : > { %v5423_v8 = vsel %vm8551_vm10, %v5418_v6, %v5422_v22  ;;  %v6295_v51 = vrot.slane %v6293_v4, 5  ;;  %v5643_v20 = vunpack.c.l.b16 %v5413_v2  ;;  %v4988_v14 = vrot.slane %v4987_v9, 4  ;;  %v5771_v22 = vpop.f32.mrf.mxu1  ;;  %v6659_v9 = vpop.f32.mrf.mxu3  ;;  %v5208_v2 = vld [vmem:[#allocation3 + $0x6c] sm:$0xf] }
 0x38a   : > { %v4573_v12 = vld [vmem:[#allocation3 + $0x8c] sm:$0x1]  ;;  %v5644_v42 = vunpack.c.l.b16 %v5423_v8  ;;  %v4998_v35 = vrot.slane %v4997_v37, 4  ;;  %v6303_v57 = vshrl.u32 %v6095_v41, 16  ;;  %v4417_v61 = vpop.permute.xlu0 %4416  ;;  %v6301_v53 = vrot.slane %v6299_v7, 5  ;;  %v5992_v41 = vpop.f32.mrf.mxu2 }
 0x38b   : > { %v4574_v1 = vsel %vm9863_vm4, %v10373_v55, %v4573_v12  ;;  %v6296_v39 = vor.u32 %v6295_v51, %v6292_v27  ;;  %v4566_v54 = vld [vmem:[#allocation3 + $0x80] sm:$0x1]  ;;  %v4993_v16 = vsel %vm8551_vm10, %v4988_v14, %v4992_v15  ;;  %v6309_v19 = vshll.u32 %v6096_v23, 16  ;;  %v5209_v8 = vld [vmem:[#allocation3 + $0x70] sm:$0xf] }
 0x38c   : > { %4575 = vst [vmem:[#allocation3 + $0x8c] sm:$0x1] %v4574_v1  ;;  %v4584_v28 = vsel %vm9719_vm12, %v4423_v30, %v4583_v0  ;;  %v4567_v55 = vsel %vm9863_vm4, %v10376_v31, %v4566_v54  ;;  %v5668_v33 = vpack.c.b16 %v5644_v42, %v5643_v20  ;;  %v5003_v25 = vsel %vm8551_vm10, %v4998_v35, %v5002_v38  ;;  %v10438_v31 = vld [vmem:[%s11195_s8] ss:$0 sm:$0xff]  ;;  %v5210_v23 = vld [vmem:[#allocation3 + $0x74] sm:$0x1] }
 0x38d   : > { %v5867_v45 = vunpack.c.l.b16 %v4993_v16  ;;  %4585 = vst [vmem:[#allocation3 + $0x9c] sm:$0xf] %v4584_v28  ;;  %v5868_v29 = vunpack.c.l.b16 %v5003_v25  ;;  %v6297_v34 = vrot.slane %v6296_v39, 4  ;;  %v6305_v3 = vrot.slane %v6303_v57, 4  ;;  %v4767_v1 = vld [vmem:[#allocation3 + $0x6c] sm:$0xf] }
 0x38e   : > { %4568 = vst [vmem:[#allocation3 + $0x80] sm:$0x1] %v4567_v55  ;;  %v4577_v50 = vsel %vm9719_vm12, %v4417_v61, %v4576_v46  ;;  %7764 = vmatmul.msk.bf16.gmra.mxu1 %vm5713_vm9, %v5668_v33  ;;  %v5993_v15 = vadd.f32 %v5992_v41, %v5771_v22  ;;  %v3954_v36 = vrot.slane %v3953_v40, 4  ;;  %v3955_v24 = vrot.slane %v10060_v26, 7  ;;  %v4769_v16 = vld [vmem:[#allocation3 + $0x74] sm:$0x1] }
 0x38f   : > { %4578 = vst [vmem:[#allocation3 + $0x90] sm:$0xf] %v4577_v50  ;;  %v5891_v21 = vpack.c.b16 %v5868_v29, %v5867_v45  ;;  %v6302_v6 = vsel %vm8551_vm10, %v6297_v34, %v6301_v53  ;;  %v6306_v62 = vor.u32 %v6305_v3, %v6301_v53  ;;  %v6311_v4 = vrot.slane %v6309_v19, 5  ;;  %v6097_v33 = vld [vmem:[#allocation3 + $0x78] sm:$0xf] }
 0x390   : > { %4730 = vst.msk [vmem:[#allocation3 + $0x90] sm:$0xf] %vm4707_vm0, %v10399_v11  ;;  %v6739_v27 = vadd.f32 %v6659_v9, %v5993_v15  ;;  %v3956_v7 = vsel %vm8322_vm6, %v3954_v36, %v3955_v24  ;;  %v6532_v40 = vunpack.c.l.b16 %v6302_v6  ;;  %v10456_v37 = vrot.slane %v3958_v58, 4  ;;  %v6098_v15 = vld [vmem:[#allocation3 + $0x7c] sm:$0xf] }
 0x391   : > { %v6307_v17 = vrot.slane %v6306_v62, 4  ;;  %4064 = vst.msk [vmem:[#allocation3 + $0x94] sm:$0xf] %vm4029_vm13, %v3956_v7  ;;  %v5425_v51 = vshrl.u32 %v5208_v2, 16  ;;  %v5428_v30 = vshll.u32 %v5208_v2, 16  ;;  %v5434_v12 = vshll.u32 %v5209_v8, 16  ;;  %v5773_v2 = vpop.f32.mrf.mxu1 }
 0x392   : > { %7805 = vmatmul.msk.bf16.gmra.mxu2 %vm5713_vm9, %v5891_v21  ;;  %v10452_v26 = vadd.f32 %v10438_v31, %v6739_v27  ;;  %v5438_v14 = vshrl.u32 %v5209_v8, 16  ;;  %v5444_v38 = vshll.u32 %v5210_v23, 16  ;;  %v5005_v58 = vshrl.u32 %v4767_v1, 16  ;;  %v4658_v21 = vpop.permute.xlu0 %4657  ;;  %v10468_v8 = vpop.permute.xlu2 %4661 }
 0x393   : > { %v6312_v11 = vsel %vm8551_vm10, %v6307_v17, %v6311_v4  ;;  %v5427_v35 = vrot.slane %v5425_v51, 4  ;;  %v5430_v39 = vrot.slane %v5428_v30, 5  ;;  %v5436_v57 = vrot.slane %v5434_v12, 5  ;;  %v4419_v34 = vpop.permute.xlu1 %4418  ;;  %v5994_v30 = vpop.f32.mrf.mxu2 }
 0x394   : > { %v6533_v20 = vunpack.c.l.b16 %v6312_v11  ;;  %v10461_v42 = vadd.f32 2.0, %v10452_v26  ;;  %v5440_v54 = vrot.slane %v5438_v14, 4  ;;  %v3957_v53 = vrot.slane %v3955_v24, 4  ;;  %4579 = vst.msk [vmem:[#allocation3 + $0x94] sm:$0xf] %vm4494_vm8, %v4419_v34 }
 0x395   : > { %v5431_v19 = vor.u32 %v5430_v39, %v5427_v35  ;;  %v5446_v28 = vrot.slane %v5444_v38, 5  ;;  %v5007_v22 = vrot.slane %v5005_v58, 4  ;;  %v5008_v55 = vshll.u32 %v4767_v1, 16  ;;  %v6099_v17 = vld [vmem:[#allocation3 + $0x80] sm:$0x1] }
 0x396   : > { %v6557_v0 = vpack.c.b16 %v6533_v20, %v6532_v40  ;;  %v6871_v61 = vand.u32 2147483647, %v10461_v42  ;;  %v5441_v45 = vor.u32 %v5440_v54, %v5436_v57  ;;  %v5014_v46 = vshll.u32 %v4768_v47, 16  ;;  %4731 = vst.msk [vmem:[#allocation3 + $0x94] sm:$0xf] %vm4707_vm0, %v4658_v21 }
 0x397   : > { %v5018_v29 = vshrl.u32 %v4768_v47, 16  ;;  %v5432_v3 = vrot.slane %v5431_v19, 4  ;;  %v5010_v41 = vrot.slane %v5008_v55, 5  ;;  %v5024_v50 = vshll.u32 %v4769_v16, 16  ;;  %4065 = vst.msk [vmem:[#allocation3 + $0x98] sm:$0x1] %vm4031_vm14, %v3957_v53 }
 0x398   : > { %7856 = vmatmul.msk.bf16.gmra.mxu3 %vm5713_vm9, %v6557_v0  ;;  %v6903_v25 = vsub.f32 0.0, %v6871_v61  ;;  %v6314_v36 = vshrl.u32 %v6097_v33, 16  ;;  %v5442_v24 = vrot.slane %v5441_v45, 4  ;;  %v5016_v62 = vrot.slane %v5014_v46, 5  ;;  %v5211_v21 = vld [vmem:[#allocation3 + $0x78] sm:$0xf] }
 0x399   : > { %v5020_v4 = vrot.slane %v5018_v29, 4  ;;  %v5437_v9 = vsel %vm8551_vm10, %v5432_v3, %v5436_v57  ;;  %v5011_v27 = vor.u32 %v5010_v41, %v5007_v22  ;;  %v5026_v7 = vrot.slane %v5024_v50, 5 }
 0x39a   : > { %v6935_v6 = vmul.f32 1.442695, %v6903_v25  ;;  %v6316_v40 = vrot.slane %v6314_v36, 4  ;;  %v5447_v11 = vsel %vm8551_vm10, %v5442_v24, %v5446_v28  ;;  %v5645_v23 = vunpack.c.l.b16 %v5437_v9  ;;  %v6661_v28 = vpop.f32.mrf.mxu3 }
 0x39b   : > { %v5021_v51 = vor.u32 %v5020_v4, %v5016_v62  ;;  %v5646_v12 = vunpack.c.l.b16 %v5447_v11  ;;  %v5012_v20 = vrot.slane %v5011_v27, 4  ;;  %v6317_v14 = vshll.u32 %v6097_v33, 16 }
 0x39c   : > { %7909 = vpow2.f32 %v6935_v6  ;;  %v6323_v38 = vshll.u32 %v6098_v15, 16  ;;  %v6327_v35 = vshrl.u32 %v6098_v15, 16  ;;  %v6333_v39 = vshll.u32 %v6099_v17, 16  ;;  %v5212_v6 = vld [vmem:[#allocation3 + $0x7c] sm:$0xf] }
 0x39d   : > { %v5022_v1 = vrot.slane %v5021_v51, 4  ;;  %v5995_v57 = vadd.f32 %v5994_v30, %v5773_v2  ;;  %v5669_v47 = vpack.c.b16 %v5646_v12, %v5645_v23  ;;  %v5017_v58 = vsel %vm8551_vm10, %v5012_v20, %v5016_v62 }
 0x39e   : > { %v6319_v0 = vrot.slane %v6317_v14, 5  ;;  %v6325_v61 = vrot.slane %v6323_v38, 5  ;;  %v6839_v54 = vmin.f32 %v10461_v42, 0.0  ;;  %v6329_v19 = vrot.slane %v6327_v35, 4  ;;  %v4580_v62 = vld [vmem:[#allocation3 + $0x98] sm:$0x1] }
 0x39f   : > { %v5027_v16 = vsel %vm8551_vm10, %v5022_v1, %v5026_v7  ;;  %v3960_v22 = vrot.slane %v10115_v13, 7  ;;  %7765 = vmatmul.msk.bf16.gmra.mxu1 %vm5713_vm9, %v5669_v47  ;;  %v5869_v53 = vunpack.c.l.b16 %v5017_v58  ;;  %v6740_v25 = vadd.f32 %v6661_v28, %v5995_v57  ;;  %v4421_v13 = vpop.permute.xlu1 %4420 }
 0x3a0   : > { %v5870_v55 = vunpack.c.l.b16 %v5027_v16  ;;  %v6320_v33 = vor.u32 %v6319_v0, %v6316_v40  ;;  %v6330_v46 = vor.u32 %v6329_v19, %v6325_v61  ;;  %v6335_v29 = vrot.slane %v6333_v39, 5  ;;  %v4431_v5 = vpop.permute.xlu2 %4430  ;;  %v4770_v40 = vld [vmem:[#allocation3 + $0x78] sm:$0xf]  ;;  %v4771_v39 = vld [vmem:[#allocation3 + $0x7c] sm:$0xf]  ;;  %v5997_v19 = vpop.f32.mrf.mxu2 }
 0x3a1   : > { %v3964_v34 = vrot.slane %v3963_v52, 4  ;;  %v3965_v3 = vrot.slane %v10179_v18, 7  ;;  %v10485_v36 = vadd.f32 %v10438_v31, %v6740_v25  ;;  %v5213_v52 = vld [vmem:[#allocation3 + $0x80] sm:$0x1]  ;;  %v5449_v9 = vshrl.u32 %v5211_v21, 16 }
 0x3a2   : > { %v7910_v45 = vpop.eup %7909  ;;  %v5892_v50 = vpack.c.b16 %v5870_v55, %v5869_v53  ;;  %v6321_v15 = vrot.slane %v6320_v33, 4  ;;  %v6331_v24 = vrot.slane %v6330_v46, 4  ;;  %v4581_v17 = vsel %vm9863_vm4, %v4421_v13, %v4580_v62 }
 0x3a3   : > { %v6999_v41 = vadd.f32 1.0, %v7910_v45  ;;  %v3966_v4 = vsel %vm8322_vm6, %v3964_v34, %v3965_v3  ;;  %v10495_v7 = vadd.f32 2.0, %v10485_v36  ;;  %4582 = vst [vmem:[#allocation3 + $0x98] sm:$0x1] %v4581_v17  ;;  %v3961_v23 = vsel %vm8322_vm6, %v10456_v37, %v3960_v22 }
 0x3a4   : > { %7806 = vmatmul.msk.bf16.gmra.mxu2 %vm5713_vm9, %v5892_v50  ;;  %v6326_v27 = vsel %vm8551_vm10, %v6321_v15, %v6325_v61  ;;  %4070 = vst.msk [vmem:[#allocation3 + $0xac] sm:$0xf] %vm4029_vm13, %v3966_v4  ;;  %v6336_v2 = vsel %vm8551_vm10, %v6331_v24, %v6335_v29  ;;  %v3962_v51 = vrot.slane %v3960_v22, 4  ;;  %v5451_v20 = vrot.slane %v5449_v9, 4  ;;  %v4772_v61 = vld [vmem:[#allocation3 + $0x80] sm:$0x1] }
 0x3a5   : > { %7911 = vlog2.f32 %v6999_v41  ;;  %v6534_v11 = vunpack.c.l.b16 %v6326_v27  ;;  %v6535_v30 = vunpack.c.l.b16 %v6336_v2  ;;  %v6872_v12 = vand.u32 2147483647, %v10495_v7  ;;  %4593 = vst.msk [vmem:[#allocation3 + $0xac] sm:$0xf] %vm4494_vm8, %v4431_v5  ;;  %v6100_v29 = vld [vmem:[#allocation3 + $0x84] sm:$0xf] }
 0x3a6   : > { %v5452_v14 = vshll.u32 %v5211_v21, 16  ;;  %v5458_v38 = vshll.u32 %v5212_v6, 16  ;;  %v5462_v1 = vshrl.u32 %v5212_v6, 16  ;;  %v5468_v35 = vshll.u32 %v5213_v52, 16  ;;  %v4425_v41 = vpop.permute.xlu0 %4424  ;;  %v5776_v6 = vpop.f32.mrf.mxu1  ;;  %4067 = vst.msk [vmem:[#allocation3 + $0xa0] sm:$0xf] %vm4029_vm13, %v3961_v23 }
 0x3a7   : > { %v5029_v57 = vshrl.u32 %v4770_v40, 16  ;;  %v6558_v47 = vpack.c.b16 %v6535_v30, %v6534_v11  ;;  %v6904_v58 = vsub.f32 0.0, %v6872_v12  ;;  %v5032_v16 = vshll.u32 %v4770_v40, 16  ;;  %v4660_v34 = vpop.permute.xlu1 %4659  ;;  %v6101_v27 = vld [vmem:[#allocation3 + $0x88] sm:$0xf] }
 0x3a8   : > { %v5454_v0 = vrot.slane %v5452_v14, 5  ;;  %v5460_v37 = vrot.slane %v5458_v38, 5  ;;  %v5464_v28 = vrot.slane %v5462_v1, 4  ;;  %v5470_v22 = vrot.slane %v5468_v35, 5  ;;  %4732 = vst.msk [vmem:[#allocation3 + $0x9c] sm:$0xf] %vm4707_vm0, %v4660_v34 }
 0x3a9   : > { %v5031_v53 = vrot.slane %v5029_v57, 4  ;;  %7857 = vmatmul.msk.bf16.gmra.mxu3 %vm5713_vm9, %v6558_v47  ;;  %v6937_v33 = vmul.f32 1.442695, %v6904_v58  ;;  %v5034_v45 = vrot.slane %v5032_v16, 5  ;;  %v5038_v46 = vshll.u32 %v4771_v39, 16  ;;  %v6664_v30 = vpop.f32.mrf.mxu3 }
 0x3aa   : > { %v5455_v25 = vor.u32 %v5454_v0, %v5451_v20  ;;  %v5465_v15 = vor.u32 %v5464_v28, %v5460_v37  ;;  %v5042_v13 = vshrl.u32 %v4771_v39, 16  ;;  %v5048_v21 = vshll.u32 %v4772_v61, 16  ;;  %4586 = vst.msk [vmem:[#allocation3 + $0xa0] sm:$0xf] %vm4494_vm8, %v4425_v41  ;;  %v6102_v35 = vld [vmem:[#allocation3 + $0x8c] sm:$0x1] }
 0x3ab   : > { %v7912_v55 = vpop.eup %7911  ;;  %7913 = vpow2.f32 %v6937_v33  ;;  %v5035_v62 = vor.u32 %v5034_v45, %v5031_v53  ;;  %v5040_v4 = vrot.slane %v5038_v46, 5  ;;  %v6338_v2 = vshrl.u32 %v6100_v29, 16  ;;  %4733 = vst.msk [vmem:[#allocation3 + $0xa0] sm:$0xf] %vm4707_vm0, %v10468_v8  ;;  %v4590_v41 = vld [vmem:[#allocation3 + $0xa8] sm:$0xf] }
 0x3ac   : > { %v7032_v50 = vmul.f32 0.6931472, %v7912_v55  ;;  %v5456_v24 = vrot.slane %v5455_v25, 4  ;;  %v5466_v52 = vrot.slane %v5465_v15, 4  ;;  %v5044_v9 = vrot.slane %v5042_v13, 4 }
 0x3ad   : > { %v5036_v40 = vrot.slane %v5035_v62, 4  ;;  %v6341_v11 = vshll.u32 %v6100_v29, 16  ;;  %4068 = vst.msk [vmem:[#allocation3 + $0xa4] sm:$0x1] %vm4031_vm14, %v3962_v51  ;;  %vm7448_vm11 = vcmask 15360   ;;  %v6340_v38 = vrot.slane %v6338_v2, 4  ;;  %v4433_v29 = vpop.permute.xlu2 %4432 }
 0x3ae   : > { %v10512_v5 = vsub.f32 %v6839_v54, %v7032_v50  ;;  %v5461_v17 = vsel %vm8551_vm10, %v5456_v24, %v5460_v37  ;;  %v5471_v42 = vsel %vm8551_vm10, %v5466_v52, %v5470_v22  ;;  %v5050_v54 = vrot.slane %v5048_v21, 5  ;;  %v5999_v22 = vpop.f32.mrf.mxu2 }
 0x3af   : > { %v5647_v12 = vunpack.c.l.b16 %v5461_v17  ;;  %v5648_v20 = vunpack.c.l.b16 %v5471_v42  ;;  %v5045_v14 = vor.u32 %v5044_v9, %v5040_v4  ;;  %v5998_v1 = vadd.f32 %v5997_v19, %v5776_v6  ;;  %v4429_v50 = vpop.permute.xlu1 %4428  ;;  %v4427_v9 = vpop.permute.xlu0 %4426 }
 0x3b0   : > { %v7127_v23 = vmul.f32 1.442695, %v10512_v5  ;;  %v6343_v39 = vrot.slane %v6341_v11, 5  ;;  %v6347_v57 = vshll.u32 %v6101_v27, 16  ;;  %v5041_v58 = vsel %vm8551_vm10, %v5036_v40, %v5040_v4 }
 0x3b1   : > { %v7914_v8 = vpop.eup %7913  ;;  %v5670_v47 = vpack.c.b16 %v5648_v20, %v5647_v12  ;;  %v5046_v0 = vrot.slane %v5045_v14, 4  ;;  %v6351_v61 = vshrl.u32 %v6101_v27, 16  ;;  %v3967_v28 = vrot.slane %v3965_v3, 4  ;;  %v5778_v3 = vpop.f32.mrf.mxu1 }
 0x3b2   : > { %7915 = vpow2.f32 %v7127_v23  ;;  %v7000_v16 = vadd.f32 1.0, %v7914_v8  ;;  %v6344_v37 = vor.u32 %v6343_v39, %v6340_v38  ;;  %v6349_v51 = vrot.slane %v6347_v57, 5  ;;  %v5214_v38 = vld [vmem:[#allocation3 + $0x84] sm:$0xf] }
 0x3b3   : > { %7766 = vmatmul.msk.bf16.gmra.mxu1 %vm5713_vm9, %v5670_v47  ;;  %v5051_v19 = vsel %vm8551_vm10, %v5046_v0, %v5050_v54  ;;  %v6353_v53 = vrot.slane %v6351_v61, 4  ;;  %v6357_v55 = vshll.u32 %v6102_v35, 16  ;;  %v6741_v33 = vadd.f32 %v6664_v30, %v5998_v1  ;;  %4071 = vst.msk [vmem:[#allocation3 + $0xb0] sm:$0x1] %vm4031_vm14, %v3967_v28  ;;  %v5215_v1 = vld [vmem:[#allocation3 + $0x88] sm:$0xf] }
 0x3b4   : > { %7917 = vlog2.f32 %v7000_v16  ;;  %v5871_v25 = vunpack.c.l.b16 %v5041_v58  ;;  %v5872_v45 = vunpack.c.l.b16 %v5051_v19  ;;  %v6345_v46 = vrot.slane %v6344_v37, 4  ;;  %v4587_v52 = vld [vmem:[#allocation3 + $0xa4] sm:$0x1] }
 0x3b5   : > { %v6354_v34 = vor.u32 %v6353_v53, %v6349_v51  ;;  %v10532_v18 = vadd.f32 %v10438_v31, %v6741_v33  ;;  %v3969_v15 = vrot.slane %v3968_v59, 4  ;;  %v3970_v13 = vrot.slane %v10246_v10, 7  ;;  %v6666_v59 = vpop.f32.mrf.mxu3  ;;  %v10566_v19 = vpop.permute.xlu2 %4667 }
 0x3b6   : > { %v5893_v6 = vpack.c.b16 %v5872_v45, %v5871_v25  ;;  %v6350_v24 = vsel %vm8551_vm10, %v6345_v46, %v6349_v51  ;;  %v6000_v62 = vadd.f32 %v5999_v22, %v5778_v3  ;;  %v4591_v4 = vsel %vm9719_vm12, %v4429_v50, %v4590_v41  ;;  %v6002_v16 = vpop.f32.mrf.mxu2  ;;  %v4773_v25 = vld [vmem:[#allocation3 + $0x84] sm:$0xf]  ;;  %v4774_v41 = vld [vmem:[#allocation3 + $0x88] sm:$0xf] }
 0x3b7   : > { %v6355_v27 = vrot.slane %v6354_v34, 4  ;;  %v6359_v17 = vrot.slane %v6357_v55, 5  ;;  %v10542_v40 = vadd.f32 2.0, %v10532_v18  ;;  %4592 = vst [vmem:[#allocation3 + $0xa8] sm:$0xf] %v4591_v4  ;;  %v4588_v56 = vsel %vm9863_vm4, %v4427_v9, %v4587_v52  ;;  %v4666_v45 = vpop.permute.xlu1 %4665 }
 0x3b8   : > { %v7916_v21 = vpop.eup %7915  ;;  %7807 = vmatmul.msk.bf16.gmra.mxu2 %vm5713_vm9, %v5893_v6  ;;  %v6536_v10 = vunpack.c.l.b16 %v6350_v24  ;;  %4589 = vst [vmem:[#allocation3 + $0xa4] sm:$0x1] %v4588_v56  ;;  %v6742_v2 = vadd.f32 %v6666_v59, %v6000_v62  ;;  %v3971_v11 = vsel %vm8322_vm6, %v3969_v15, %v3970_v13  ;;  %v7449_v54 = vsel %vm7448_vm11, %v10512_v5, 0.0  ;;  %v5216_v5 = vld [vmem:[#allocation3 + $0x8c] sm:$0x1]  ;;  %v4664_v62 = vpop.permute.xlu0 %4663 }
 0x3b9   : > { %7287 = vrot.lane.b32.xlu1 %v7916_v21, %s8117_s27  ;;  %v6360_v30 = vsel %vm8551_vm10, %v6355_v27, %v6359_v17  ;;  %v6873_v23 = vand.u32 2147483647, %v10542_v40  ;;  %4073 = vst.msk [vmem:[#allocation3 + $0xb8] sm:$0xf] %vm4029_vm13, %v3971_v11  ;;  %v6840_v12 = vmin.f32 %v10495_v7, 0.0  ;;  %v5473_v8 = vshrl.u32 %v5214_v38, 16  ;;  %v5781_v51 = vpop.f32.mrf.mxu1 }
 0x3ba   : > { %v7918_v42 = vpop.eup %7917  ;;  %v6537_v20 = vunpack.c.l.b16 %v6360_v30  ;;  %v10558_v14 = vadd.f32 %v10438_v31, %v6742_v2  ;;  %v4594_v39 = vld [vmem:[#allocation3 + $0xb0] sm:$0x1]  ;;  %v5476_v61 = vshll.u32 %v5214_v38, 16  ;;  %v5482_v22 = vshll.u32 %v5215_v1, 16  ;;  %v4775_v24 = vld [vmem:[#allocation3 + $0x8c] sm:$0x1] }
 0x3bb   : > { %v7034_v35 = vmul.f32 0.6931472, %v7918_v42  ;;  %v6905_v57 = vsub.f32 0.0, %v6873_v23  ;;  %v4595_v58 = vsel %vm9863_vm4, %v4433_v29, %v4594_v39  ;;  %v5475_v28 = vrot.slane %v5473_v8, 4  ;;  %v6103_v27 = vld [vmem:[#allocation3 + $0x90] sm:$0xf] }
 0x3bc   : > { %v6559_v47 = vpack.c.b16 %v6537_v20, %v6536_v10  ;;  %v10563_v0 = vadd.f32 2.0, %v10558_v14  ;;  %4596 = vst [vmem:[#allocation3 + $0xb0] sm:$0x1] %v4595_v58  ;;  %v10569_v55 = vadd.f32 %v6002_v16, %v5781_v51  ;;  %v5478_v33 = vrot.slane %v5476_v61, 5 }
 0x3bd   : > { %v7096_v7 = vsub.f32 %v6840_v12, %v7034_v35  ;;  %v6939_v37 = vmul.f32 1.442695, %v6905_v57  ;;  %v3972_v46 = vrot.slane %v3970_v13, 4  ;;  %v5484_v3 = vrot.slane %v5482_v22, 5  ;;  %4735 = vst.msk [vmem:[#allocation3 + $0xac] sm:$0xf] %vm4707_vm0, %v4666_v45 }
 0x3be   : > { %7858 = vmatmul.msk.bf16.gmra.mxu3 %vm5713_vm9, %v6559_v47  ;;  %v6874_v53 = vand.u32 2147483647, %v10563_v0  ;;  %v5479_v21 = vor.u32 %v5478_v33, %v5475_v28  ;;  %v5486_v6 = vshrl.u32 %v5215_v1, 16  ;;  %v5492_v4 = vshll.u32 %v5216_v5, 16  ;;  %4734 = vst.msk [vmem:[#allocation3 + $0xa8] sm:$0xf] %vm4707_vm0, %v4664_v62  ;;  %v4441_v33 = vpop.permute.xlu2 %4440 }
 0x3bf   : > { %v7129_v29 = vmul.f32 1.442695, %v7096_v7  ;;  %v7450_v34 = vsel %vm7448_vm11, %v7096_v7, 0.0  ;;  %7919 = vpow2.f32 %v6939_v37  ;;  %v5053_v52 = vshrl.u32 %v4773_v25, 16  ;;  %v6104_v12 = vld [vmem:[#allocation3 + $0x94] sm:$0xf] }
 0x3c0   : > { %v10572_v50 = vadd.f32 %v7450_v34, %v7449_v54  ;;  %v6906_v15 = vsub.f32 0.0, %v6874_v53  ;;  %v5056_v9 = vshll.u32 %v4773_v25, 16  ;;  %v5480_v17 = vrot.slane %v5479_v21, 4  ;;  %4074 = vst.msk [vmem:[#allocation3 + $0xbc] sm:$0x1] %vm4031_vm14, %v3972_v46  ;;  %v6669_v34 = vpop.f32.mrf.mxu3 }
 0x3c1   : > { %7921 = vpow2.f32 %v7129_v29  ;;  %v5488_v56 = vrot.slane %v5486_v6, 4  ;;  %v5062_v59 = vshll.u32 %v4774_v41, 16  ;;  %v5494_v10 = vrot.slane %v5492_v4, 5  ;;  %v6105_v37 = vld [vmem:[#allocation3 + $0x98] sm:$0x1] }
 0x3c2   : > { %v6941_v13 = vmul.f32 1.442695, %v6906_v15  ;;  %v5055_v2 = vrot.slane %v5053_v52, 4  ;;  %v5058_v11 = vrot.slane %v5056_v9, 5  ;;  %v5066_v30 = vshrl.u32 %v4774_v41, 16 }
 0x3c3   : > { %v5485_v23 = vsel %vm8551_vm10, %v5480_v17, %v5484_v3  ;;  %v5489_v42 = vor.u32 %v5488_v56, %v5484_v3  ;;  %v5064_v54 = vrot.slane %v5062_v59, 5  ;;  %v5072_v39 = vshll.u32 %v4775_v24, 16  ;;  %v4604_v24 = vld [vmem:[#allocation3 + $0xc0] sm:$0xf] }
 0x3c4   : > { %7923 = vpow2.f32 %v6941_v13  ;;  %v5649_v38 = vunpack.c.l.b16 %v5485_v23  ;;  %v5059_v1 = vor.u32 %v5058_v11, %v5055_v2  ;;  %v5068_v35 = vrot.slane %v5066_v30, 4 }
 0x3c5   : > { %v7920_v20 = vpop.eup %7919  ;;  %v5490_v8 = vrot.slane %v5489_v42, 4  ;;  %v6362_v47 = vshrl.u32 %v6103_v27, 16  ;;  %v6365_v58 = vshll.u32 %v6103_v27, 16  ;;  %v5074_v16 = vrot.slane %v5072_v39, 5  ;;  %v6004_v27 = vpop.f32.mrf.mxu2 }
 0x3c6   : > { %v7001_v57 = vadd.f32 1.0, %v7920_v20  ;;  %v5060_v61 = vrot.slane %v5059_v1, 4  ;;  %v5069_v7 = vor.u32 %v5068_v35, %v5064_v54  ;;  %v6371_v51 = vshll.u32 %v6104_v12, 16  ;;  %v4597_v35 = vld [vmem:[#allocation3 + $0xb4] sm:$0xf]  ;;  %v4435_v39 = vpop.permute.xlu0 %4434 }
 0x3c7   : > { %v7922_v5 = vpop.eup %7921  ;;  %v5495_v28 = vsel %vm8551_vm10, %v5490_v8, %v5494_v10  ;;  %v6364_v22 = vrot.slane %v6362_v47, 4  ;;  %v6367_v53 = vrot.slane %v6365_v58, 5  ;;  %v6375_v21 = vshrl.u32 %v6104_v12, 16 }
 0x3c8   : > { %7925 = vlog2.f32 %v7001_v57  ;;  %7289 = vrot.lane.b32.xlu2 %v7922_v5, %s8117_s27  ;;  %v5650_v25 = vunpack.c.l.b16 %v5495_v28  ;;  %v5065_v45 = vsel %vm8551_vm10, %v5060_v61, %v5064_v54  ;;  %v5070_v46 = vrot.slane %v5069_v7, 4 }
 0x3c9   : > { %v6373_v29 = vrot.slane %v6371_v51, 5  ;;  %v5873_v41 = vunpack.c.l.b16 %v5065_v45  ;;  %v6368_v15 = vor.u32 %v6367_v53, %v6364_v22  ;;  %v6381_v6 = vshll.u32 %v6105_v37, 16  ;;  %v6671_v37 = vpop.f32.mrf.mxu3 }
 0x3ca   : > { %v7924_v3 = vpop.eup %7923  ;;  %v5671_v4 = vpack.c.b16 %v5650_v25, %v5649_v38  ;;  %v5075_v52 = vsel %vm8551_vm10, %v5070_v46, %v5074_v16  ;;  %v4605_v9 = vsel %vm9719_vm12, %v4441_v33, %v4604_v24  ;;  %v6377_v17 = vrot.slane %v6375_v21, 4  ;;  %v5217_v46 = vld [vmem:[#allocation3 + $0x90] sm:$0xf] }
 0x3cb   : > { %v7002_v62 = vadd.f32 1.0, %v7924_v3  ;;  %v5874_v13 = vunpack.c.l.b16 %v5075_v52  ;;  %4606 = vst [vmem:[#allocation3 + $0xc0] sm:$0xf] %v4605_v9  ;;  %v6743_v56 = vadd.f32 %v6669_v34, %v10569_v55  ;;  %v3974_v59 = vrot.slane %v3973_v43, 4 }
 0x3cc   : > { %7767 = vmatmul.msk.bf16.gmra.mxu1 %vm5713_vm9, %v5671_v4  ;;  %v3975_v10 = vrot.slane %v10308_v44, 7  ;;  %v6369_v30 = vrot.slane %v6368_v15, 4  ;;  %v6378_v23 = vor.u32 %v6377_v17, %v6373_v29  ;;  %v6383_v42 = vrot.slane %v6381_v6, 5 }
 0x3cd   : > { %7927 = vlog2.f32 %v7002_v62  ;;  %v5894_v11 = vpack.c.b16 %v5874_v13, %v5873_v41  ;;  %v6841_v54 = vmin.f32 %v10542_v40, 0.0  ;;  %v10595_v20 = vadd.f32 %v10438_v31, %v6743_v56  ;;  %v5783_v40 = vpop.f32.mrf.mxu1  ;;  %v6007_v33 = vpop.f32.mrf.mxu2  ;;  %v4776_v13 = vld [vmem:[#allocation3 + $0x90] sm:$0xf] }
 0x3ce   : > { %v7926_v2 = vpop.eup %7925  ;;  %v3976_v38 = vsel %vm8322_vm6, %v3974_v59, %v3975_v10  ;;  %v6374_v63 = vsel %vm8551_vm10, %v6369_v30, %v6373_v29  ;;  %v6379_v43 = vrot.slane %v6378_v23, 4  ;;  %v3977_v44 = vrot.slane %v3975_v10, 4  ;;  %v5218_v29 = vld [vmem:[#allocation3 + $0x94] sm:$0xf] }
 0x3cf   : > { %v7036_v12 = vmul.f32 0.6931472, %v7926_v2  ;;  %7808 = vmatmul.msk.bf16.gmra.mxu2 %vm5713_vm9, %v5894_v11  ;;  %4076 = vst.msk [vmem:[#allocation3 + $0xc4] sm:$0xf] %vm4029_vm13, %v3976_v38  ;;  %v10604_v1 = vadd.f32 2.0, %v10595_v20  ;;  %v6842_v57 = vmin.f32 %v10563_v0, 0.0  ;;  %v6005_v8 = vadd.f32 %v6004_v27, %v5783_v40 }
 0x3d0   : > { %v6384_v32 = vsel %vm8551_vm10, %v6379_v43, %v6383_v42  ;;  %v4598_v47 = vsel %vm9719_vm12, %v4435_v39, %v4597_v35  ;;  %4077 = vst.msk [vmem:[#allocation3 + $0xc8] sm:$0x1] %vm4031_vm14, %v3977_v44  ;;  %v6538_v7 = vunpack.c.l.b16 %v6374_v63  ;;  %v5497_v34 = vshrl.u32 %v5217_v46, 16  ;;  %v4777_v59 = vld [vmem:[#allocation3 + $0x94] sm:$0xf]  ;;  %v4437_v63 = vpop.permute.xlu1 %4436  ;;  %v4670_v39 = vpop.permute.xlu0 %4669 }
 0x3d1   : > { %v7097_v55 = vsub.f32 %v6841_v54, %v7036_v12  ;;  %v6539_v16 = vunpack.c.l.b16 %v6384_v32  ;;  %4599 = vst [vmem:[#allocation3 + $0xb4] sm:$0xf] %v4598_v47  ;;  %v6875_v28 = vand.u32 2147483647, %v10604_v1  ;;  %v6744_v48 = vadd.f32 %v6671_v37, %v6005_v8  ;;  %v4778_v42 = vld [vmem:[#allocation3 + $0x98] sm:$0x1] }
 0x3d2   : > { %4736 = vst.msk [vmem:[#allocation3 + $0xb4] sm:$0xf] %vm4707_vm0, %v10566_v19  ;;  %v5500_v3 = vshll.u32 %v5217_v46, 16  ;;  %v5506_v41 = vshll.u32 %v5218_v29, 16  ;;  %v5510_v15 = vshrl.u32 %v5218_v29, 16  ;;  %v5499_v52 = vrot.slane %v5497_v34, 4 }
 0x3d3   : > { %v7928_v58 = vpop.eup %7927  ;;  %v7131_v5 = vmul.f32 1.442695, %v7097_v55  ;;  %v7452_v61 = vsel %vm7448_vm11, %v7097_v55, 0.0  ;;  %v6560_v22 = vpack.c.b16 %v6539_v16, %v6538_v7  ;;  %v6907_v25 = vsub.f32 0.0, %v6875_v28  ;;  %v6106_v35 = vld [vmem:[#allocation3 + $0x9c] sm:$0xf]  ;;  %v6674_v16 = vpop.f32.mrf.mxu3 }
 0x3d4   : > { %v7453_v51 = vadd.f32 %v7452_v61, %v10572_v50  ;;  %v7038_v0 = vmul.f32 0.6931472, %v7928_v58  ;;  %v10618_v45 = vadd.f32 %v10438_v31, %v6744_v48  ;;  %v5219_v50 = vld [vmem:[#allocation3 + $0x98] sm:$0x1]  ;;  %v5502_v9 = vrot.slane %v5500_v3, 5 }
 0x3d5   : > { %7929 = vpow2.f32 %v7131_v5  ;;  %7859 = vmatmul.msk.bf16.gmra.mxu3 %vm5713_vm9, %v6560_v22  ;;  %v6943_v6 = vmul.f32 1.442695, %v6907_v25  ;;  %v5786_v4 = vpop.f32.mrf.mxu1  ;;  %v5508_v27 = vrot.slane %v5506_v41, 5  ;;  %v5512_v11 = vrot.slane %v5510_v15, 4  ;;  %4600 = vst.msk [vmem:[#allocation3 + $0xb8] sm:$0xf] %vm4494_vm8, %v4437_v63 }
 0x3d6   : > { %v7098_v53 = vsub.f32 %v6842_v57, %v7038_v0  ;;  %v10623_v24 = vadd.f32 2.0, %v10618_v45  ;;  %v10628_v56 = vadd.f32 %v6007_v33, %v5786_v4  ;;  %v5503_v2 = vor.u32 %v5502_v9, %v5499_v52  ;;  %v6107_v48 = vld [vmem:[#allocation3 + $0xa0] sm:$0xf]  ;;  %4737 = vst.msk [vmem:[#allocation3 + $0xb8] sm:$0xf] %vm4707_vm0, %v4670_v39 }
 0x3d7   : > { %v5516_v30 = vshll.u32 %v5219_v50, 16  ;;  %v5077_v54 = vshrl.u32 %v4776_v13, 16  ;;  %v5080_v12 = vshll.u32 %v4776_v13, 16  ;;  %v5086_v38 = vshll.u32 %v4777_v59, 16  ;;  %v6108_v29 = vld [vmem:[#allocation3 + $0xa4] sm:$0x1] }
 0x3d8   : > { %v7133_v21 = vmul.f32 1.442695, %v7098_v53  ;;  %v7454_v19 = vsel %vm7448_vm11, %v7098_v53, 0.0  ;;  %v6876_v17 = vand.u32 2147483647, %v10623_v24  ;;  %v5504_v43 = vrot.slane %v5503_v2, 4 }
 0x3d9   : > { %v10625_v62 = vadd.f32 %v7454_v19, %v7453_v51  ;;  %v5513_v44 = vor.u32 %v5512_v11, %v5508_v27  ;;  %v5518_v55 = vrot.slane %v5516_v30, 5  ;;  %v5090_v40 = vshrl.u32 %v4777_v59, 16  ;;  %v6009_v51 = vpop.f32.mrf.mxu2 }
 0x3da   : > { %7931 = vpow2.f32 %v7133_v21  ;;  %v6908_v23 = vsub.f32 0.0, %v6876_v17  ;;  %v5079_v32 = vrot.slane %v5077_v54, 4  ;;  %v5082_v8 = vrot.slane %v5080_v12, 5 }
 0x3db   : > { %v7930_v10 = vpop.eup %7929  ;;  %7933 = vpow2.f32 %v6943_v6  ;;  %v5088_v47 = vrot.slane %v5086_v38, 5  ;;  %v5509_v58 = vsel %vm8551_vm10, %v5504_v43, %v5508_v27  ;;  %v5514_v5 = vrot.slane %v5513_v44, 4 }
 0x3dc   : > { %7291 = vrot.lane.b32.xlu0 %v7930_v10, %s8117_s27  ;;  %v6945_v57 = vmul.f32 1.442695, %v6908_v23  ;;  %v5092_v61 = vrot.slane %v5090_v40, 4  ;;  %v5096_v7 = vshll.u32 %v4778_v42, 16  ;;  %v5651_v0 = vunpack.c.l.b16 %v5509_v58  ;;  %v4439_v40 = vpop.permute.xlu1 %4438 }
 0x3dd   : > { %v5083_v28 = vor.u32 %v5082_v8, %v5079_v32  ;;  %v6386_v22 = vshrl.u32 %v6106_v35, 16  ;;  %v5519_v33 = vsel %vm8551_vm10, %v5514_v5, %v5518_v55  ;;  %v6389_v50 = vshll.u32 %v6106_v35, 16  ;;  %v5788_v44 = vpop.f32.mrf.mxu1  ;;  %v4601_v55 = vld [vmem:[#allocation3 + $0xbc] sm:$0x1] }
 0x3de   : > { %7935 = vpow2.f32 %v6945_v57  ;;  %v5093_v25 = vor.u32 %v5092_v61, %v5088_v47  ;;  %v5098_v46 = vrot.slane %v5096_v7, 5  ;;  %v5652_v3 = vunpack.c.l.b16 %v5519_v33  ;;  %v6676_v57 = vpop.f32.mrf.mxu3  ;;  %v5221_v33 = vld [vmem:[#allocation3 + $0xa0] sm:$0xf] }
 0x3df   : > { %v5084_v41 = vrot.slane %v5083_v28, 4  ;;  %v6388_v15 = vrot.slane %v6386_v22, 4  ;;  %v6391_v19 = vrot.slane %v6389_v50, 5  ;;  %v6395_v6 = vshll.u32 %v6107_v48, 16 }
 0x3e0   : > { %v7932_v37 = vpop.eup %7931  ;;  %v5094_v21 = vrot.slane %v5093_v25, 4  ;;  %v6399_v4 = vshrl.u32 %v6107_v48, 16  ;;  %v5672_v52 = vpack.c.b16 %v5652_v3, %v5651_v0  ;;  %v6405_v27 = vshll.u32 %v6108_v29, 16 }
 0x3e1   : > { %v7934_v53 = vpop.eup %7933  ;;  %7293 = vrot.lane.b32.xlu2 %v7932_v37, %s8117_s27  ;;  %v5089_v9 = vsel %vm8551_vm10, %v5084_v41, %v5088_v47  ;;  %v6392_v17 = vor.u32 %v6391_v19, %v6388_v15  ;;  %v6397_v59 = vrot.slane %v6395_v6, 5  ;;  %v6745_v23 = vadd.f32 %v6674_v16, %v10628_v56  ;;  %v10652_v47 = vpop.f32.mrf.mxu2 }
 0x3e2   : > { %v7003_v34 = vadd.f32 1.0, %v7934_v53  ;;  %v5099_v13 = vsel %vm8551_vm10, %v5094_v21, %v5098_v46  ;;  %7768 = vmatmul.msk.bf16.gmra.mxu1 %vm5713_vm9, %v5672_v52  ;;  %v5875_v2 = vunpack.c.l.b16 %v5089_v9  ;;  %v6401_v30 = vrot.slane %v6399_v4, 4  ;;  %v5220_v53 = vld [vmem:[#allocation3 + $0x9c] sm:$0xf]  ;;  %v5222_v46 = vld [vmem:[#allocation3 + $0xa4] sm:$0x1] }
 0x3e3   : > { %v5876_v11 = vunpack.c.l.b16 %v5099_v13  ;;  %v6393_v54 = vrot.slane %v6392_v17, 4  ;;  %v6407_v63 = vrot.slane %v6405_v27, 5  ;;  %v10645_v43 = vadd.f32 %v10438_v31, %v6745_v23  ;;  %v4779_v21 = vld [vmem:[#allocation3 + $0x9c] sm:$0xf]  ;;  %v4781_v23 = vld [vmem:[#allocation3 + $0xa4] sm:$0x1] }
 0x3e4   : > { %7937 = vlog2.f32 %v7003_v34  ;;  %v7936_v10 = vpop.eup %7935  ;;  %v6402_v38 = vor.u32 %v6401_v30, %v6397_v59  ;;  %v6010_v35 = vadd.f32 %v6009_v51, %v5788_v44  ;;  %v4602_v39 = vsel %vm9863_vm4, %v4439_v40, %v4601_v55  ;;  %v4672_v9 = vpop.permute.xlu1 %4671 }
 0x3e5   : > { %v7004_v42 = vadd.f32 1.0, %v7936_v10  ;;  %v5895_v12 = vpack.c.b16 %v5876_v11, %v5875_v2  ;;  %v6398_v56 = vsel %vm8551_vm10, %v6393_v54, %v6397_v59  ;;  %v10655_v58 = vadd.f32 2.0, %v10645_v43  ;;  %4603 = vst [vmem:[#allocation3 + $0xbc] sm:$0x1] %v4602_v39  ;;  %v4780_v59 = vld [vmem:[#allocation3 + $0xa0] sm:$0xf]  ;;  %v4443_v10 = vpop.permute.xlu0 %4442  ;;  %v4674_v55 = vpop.permute.xlu2 %4673 }
 0x3e6   : > { %v6403_v8 = vrot.slane %v6402_v38, 4  ;;  %v6843_v5 = vmin.f32 %v10604_v1, 0.0  ;;  %v6746_v7 = vadd.f32 %v6676_v57, %v6010_v35  ;;  %v6844_v16 = vmin.f32 %v10623_v24, 0.0  ;;  %4738 = vst.msk [vmem:[#allocation3 + $0xc0] sm:$0xf] %vm4707_vm0, %v4672_v9 }
 0x3e7   : > { %7939 = vlog2.f32 %v7004_v42  ;;  %7809 = vmatmul.msk.bf16.gmra.mxu2 %vm5713_vm9, %v5895_v12  ;;  %v6877_v51 = vand.u32 2147483647, %v10655_v58  ;;  %v6540_v28 = vunpack.c.l.b16 %v6398_v56  ;;  %v5521_v1 = vshrl.u32 %v5220_v53, 16  ;;  %v6109_v42 = vld [vmem:[#allocation3 + $0xa8] sm:$0xf] }
 0x3e8   : > { %v6408_v37 = vsel %vm8551_vm10, %v6403_v8, %v6407_v63  ;;  %v10663_v22 = vadd.f32 %v10438_v31, %v6746_v7  ;;  %v5524_v29 = vshll.u32 %v5220_v53, 16  ;;  %v5530_v50 = vshll.u32 %v5221_v33, 16  ;;  %4607 = vst.msk [vmem:[#allocation3 + $0xc4] sm:$0xf] %vm4494_vm8, %v4443_v10  ;;  %v6110_v53 = vld [vmem:[#allocation3 + $0xac] sm:$0xf] }
 0x3e9   : > { %v6541_v48 = vunpack.c.l.b16 %v6408_v37  ;;  %v6909_v25 = vsub.f32 0.0, %v6877_v51  ;;  %v5523_v4 = vrot.slane %v5521_v1, 4  ;;  %v5534_v11 = vshrl.u32 %v5221_v33, 16  ;;  %v10673_v38 = vpop.f32.mrf.mxu2  ;;  %4739 = vst.msk [vmem:[#allocation3 + $0xc4] sm:$0xf] %vm4707_vm0, %v4674_v55 }
 0x3ea   : > { %v7938_v32 = vpop.eup %7937  ;;  %v10667_v15 = vadd.f32 2.0, %v10663_v22  ;;  %v5526_v13 = vrot.slane %v5524_v29, 5  ;;  %v5532_v17 = vrot.slane %v5530_v50, 5  ;;  %v5540_v30 = vshll.u32 %v5222_v46, 16 }
 0x3eb   : > { %v7040_v61 = vmul.f32 0.6931472, %v7938_v32  ;;  %v6561_v41 = vpack.c.b16 %v6541_v48, %v6540_v28  ;;  %v6947_v6 = vmul.f32 1.442695, %v6909_v25  ;;  %v5104_v44 = vshll.u32 %v4779_v21, 16  ;;  %v5791_v32 = vpop.f32.mrf.mxu1  ;;  %v6679_v25 = vpop.f32.mrf.mxu3 }
 0x3ec   : > { %v6878_v52 = vand.u32 2147483647, %v10667_v15  ;;  %v5527_v63 = vor.u32 %v5526_v13, %v5523_v4  ;;  %v5536_v39 = vrot.slane %v5534_v11, 4  ;;  %v5542_v57 = vrot.slane %v5540_v30, 5 }
 0x3ed   : > { %v7099_v0 = vsub.f32 %v6843_v5, %v7040_v61  ;;  %v7940_v34 = vpop.eup %7939  ;;  %7860 = vmatmul.msk.bf16.gmra.mxu3 %vm5713_vm9, %v6561_v41  ;;  %v5106_v5 = vrot.slane %v5104_v44, 5  ;;  %v5114_v37 = vshrl.u32 %v4780_v59, 16  ;;  %v5120_v48 = vshll.u32 %v4781_v23, 16  ;;  %v6111_v41 = vld [vmem:[#allocation3 + $0xb0] sm:$0x1] }
 0x3ee   : > { %v7042_v31 = vmul.f32 0.6931472, %v7940_v34  ;;  %v6910_v2 = vsub.f32 0.0, %v6878_v52  ;;  %v5528_v56 = vrot.slane %v5527_v63, 4  ;;  %v5537_v7 = vor.u32 %v5536_v39, %v5532_v17 }
 0x3ef   : > { %v7135_v24 = vmul.f32 1.442695, %v7099_v0  ;;  %v7456_v3 = vsel %vm7448_vm11, %v7099_v0, 0.0  ;;  %v6410_v33 = vshrl.u32 %v6109_v42, 16  ;;  %v6013_v1 = vadd.f32 %v10652_v47, %v5791_v32 }
 0x3f0   : > { %v7457_v19 = vadd.f32 %v7456_v3, %v10625_v62  ;;  %v7100_v27 = vsub.f32 %v6844_v16, %v7042_v31  ;;  %v5101_v62 = vshrl.u32 %v4779_v21, 16  ;;  %v6949_v35 = vmul.f32 1.442695, %v6910_v2 }
 0x3f1   : > { %7941 = vpow2.f32 %v7135_v24  ;;  %v5110_v16 = vshll.u32 %v4780_v59, 16  ;;  %v5533_v0 = vsel %vm8551_vm10, %v5528_v56, %v5532_v17  ;;  %v5538_v29 = vrot.slane %v5537_v7, 4  ;;  %v4445_v7 = vpop.permute.xlu0 %4444 }
 0x3f2   : > { %7943 = vpow2.f32 %v6947_v6  ;;  %v7137_v54 = vmul.f32 1.442695, %v7100_v27  ;;  %v7458_v12 = vsel %vm7448_vm11, %v7100_v27, 0.0  ;;  %v5103_v8 = vrot.slane %v5101_v62, 4 }
 0x3f3   : > { %v10676_v40 = vadd.f32 %v7458_v12, %v7457_v19  ;;  %v5112_v50 = vrot.slane %v5110_v16, 5  ;;  %v5653_v34 = vunpack.c.l.b16 %v5533_v0  ;;  %v5116_v3 = vrot.slane %v5114_v37, 4 }
 0x3f4   : > { %7945 = vpow2.f32 %v7137_v54  ;;  %v5107_v28 = vor.u32 %v5106_v5, %v5103_v8  ;;  %v6412_v21 = vrot.slane %v6410_v33, 4  ;;  %v5543_v19 = vsel %vm8551_vm10, %v5538_v29, %v5542_v57  ;;  %v10696_v8 = vld [vmem:[%s11195_s8] ss:$0 sm:$0xff]  ;;  %v5793_v5 = vpop.f32.mrf.mxu1 }
 0x3f5   : > { %7947 = vpow2.f32 %v6949_v35  ;;  %v6413_v31 = vshll.u32 %v6109_v42, 16  ;;  %v6419_v6 = vshll.u32 %v6110_v53, 16  ;;  %v5654_v52 = vunpack.c.l.b16 %v5543_v19  ;;  %v6017_v42 = vpop.f32.mrf.mxu2 }
 0x3f6   : > { %v5108_v24 = vrot.slane %v5107_v28, 4  ;;  %v5117_v9 = vor.u32 %v5116_v3, %v5112_v50  ;;  %v5122_v27 = vrot.slane %v5120_v48, 5  ;;  %v6423_v13 = vshrl.u32 %v6110_v53, 16  ;;  %v6681_v28 = vpop.f32.mrf.mxu3 }
 0x3f7   : > { %v7942_v61 = vpop.eup %7941  ;;  %v6415_v59 = vrot.slane %v6413_v31, 5  ;;  %v6421_v10 = vrot.slane %v6419_v6, 5  ;;  %v6429_v2 = vshll.u32 %v6111_v41, 16  ;;  %v5673_v30 = vpack.c.b16 %v5654_v52, %v5653_v34  ;;  %v5224_v52 = vld [vmem:[#allocation3 + $0xac] sm:$0xf] }
 0x3f8   : > { %v7944_v51 = vpop.eup %7943  ;;  %7295 = vrot.lane.b32.xlu0 %v7942_v61, %s8117_s27  ;;  %v5113_v47 = vsel %vm8551_vm10, %v5108_v24, %v5112_v50  ;;  %v5118_v23 = vrot.slane %v5117_v9, 4  ;;  %v6425_v62 = vrot.slane %v6423_v13, 4  ;;  %v6845_v54 = vmin.f32 %v10655_v58, 0.0  ;;  %v4608_v61 = vld [vmem:[#allocation3 + $0xc8] sm:$0x1] }
 0x3f9   : > { %v7005_v46 = vadd.f32 1.0, %v7944_v51  ;;  %v6416_v12 = vor.u32 %v6415_v59, %v6412_v21  ;;  %v6747_v63 = vadd.f32 %v6679_v25, %v6013_v1  ;;  %7769 = vmatmul.msk.bf16.gmra.mxu1 %vm5713_vm9, %v5673_v30  ;;  %v5877_v55 = vunpack.c.l.b16 %v5113_v47  ;;  %v5223_v21 = vld [vmem:[#allocation3 + $0xa8] sm:$0xf] }
 0x3fa   : > { %v7946_v4 = vpop.eup %7945  ;;  %v5123_v44 = vsel %vm8551_vm10, %v5118_v23, %v5122_v27  ;;  %v6426_v35 = vor.u32 %v6425_v62, %v6421_v10  ;;  %v6431_v56 = vrot.slane %v6429_v2, 5  ;;  %v6015_v51 = vadd.f32 %v10673_v38, %v5793_v5  ;;  %v4782_v62 = vld [vmem:[#allocation3 + $0xa8] sm:$0xf]  ;;  %v4784_v5 = vld [vmem:[#allocation3 + $0xb0] sm:$0x1] }
 0x3fb   : > { %7949 = vlog2.f32 %v7005_v46  ;;  %v7948_v17 = vpop.eup %7947  ;;  %7297 = vrot.lane.b32.xlu2 %v7946_v4, %s8117_s27  ;;  %v5878_v57 = vunpack.c.l.b16 %v5123_v44  ;;  %v6417_v32 = vrot.slane %v6416_v12, 4  ;;  %v10699_v58 = vadd.f32 %v10696_v8, %v6747_v63  ;;  %v4783_v44 = vld [vmem:[#allocation3 + $0xac] sm:$0xf] }
 0x3fc   : > { %v7006_v11 = vadd.f32 1.0, %v7948_v17  ;;  %v6427_v37 = vrot.slane %v6426_v35, 4  ;;  %v4609_v0 = vsel %vm9863_vm4, %v4445_v7, %v4608_v61  ;;  %v6748_v29 = vadd.f32 %v6681_v28, %v6015_v51  ;;  %v5796_v59 = vpop.f32.mrf.mxu1 }
 0x3fd   : > { %v5896_v48 = vpack.c.b16 %v5878_v57, %v5877_v55  ;;  %v6422_v53 = vsel %vm8551_vm10, %v6417_v32, %v6421_v10  ;;  %v10707_v33 = vadd.f32 2.0, %v10699_v58  ;;  %4610 = vst [vmem:[#allocation3 + $0xc8] sm:$0x1] %v4609_v0  ;;  %v6846_v3 = vmin.f32 %v10667_v15, 0.0  ;;  %v10719_v9 = vpop.f32.mrf.mxu2  ;;  %v5225_v10 = vld [vmem:[#allocation3 + $0xb0] sm:$0x1] }
 0x3fe   : > { %7951 = vlog2.f32 %v7006_v11  ;;  %v6432_v46 = vsel %vm8551_vm10, %v6427_v37, %v6431_v56  ;;  %v6542_v1 = vunpack.c.l.b16 %v6422_v53  ;;  %v10716_v41 = vadd.f32 %v10696_v8, %v6748_v29  ;;  %v6112_v0 = vld [vmem:[#allocation3 + $0xb4] sm:$0xf] }
 0x3ff   : > { %7810 = vmatmul.msk.bf16.gmra.mxu2 %vm5713_vm9, %v5896_v48  ;;  %v6543_v38 = vunpack.c.l.b16 %v6432_v46  ;;  %v6879_v49 = vand.u32 2147483647, %v10707_v33  ;;  %v5545_v13 = vshrl.u32 %v5223_v21, 16  ;;  %v5548_v17 = vshll.u32 %v5223_v21, 16  ;;  %v6684_v46 = vpop.f32.mrf.mxu3 }
 0x400   : > { %v10722_v27 = vadd.f32 2.0, %v10716_v41  ;;  %v5554_v2 = vshll.u32 %v5224_v52, 16  ;;  %v10726_v30 = vadd.f32 %v6017_v42, %v5796_v59  ;;  %v5564_v56 = vshll.u32 %v5225_v10, 16 }
 0x401   : > { %v7950_v39 = vpop.eup %7949  ;;  %v6562_v6 = vpack.c.b16 %v6543_v38, %v6542_v1  ;;  %v6911_v4 = vsub.f32 0.0, %v6879_v49  ;;  %v5547_v23 = vrot.slane %v5545_v13, 4  ;;  %v5550_v63 = vrot.slane %v5548_v17, 5 }
 0x402   : > { %v7044_v16 = vmul.f32 0.6931472, %v7950_v39  ;;  %v6880_v11 = vand.u32 2147483647, %v10722_v27  ;;  %v5556_v39 = vrot.slane %v5554_v2, 5  ;;  %v5125_v61 = vshrl.u32 %v4782_v62, 16 }
 0x403   : > { %7861 = vmatmul.msk.bf16.gmra.mxu3 %vm5713_vm9, %v6562_v6  ;;  %v6951_v15 = vmul.f32 1.442695, %v6911_v4  ;;  %v5551_v32 = vor.u32 %v5550_v63, %v5547_v23  ;;  %v5128_v37 = vshll.u32 %v4782_v62, 16  ;;  %v5134_v51 = vshll.u32 %v4783_v44, 16 }
 0x404   : > { %v7101_v25 = vsub.f32 %v6845_v54, %v7044_v16  ;;  %v7952_v50 = vpop.eup %7951  ;;  %v6912_v35 = vsub.f32 0.0, %v6880_v11  ;;  %v5566_v48 = vrot.slane %v5564_v56, 5  ;;  %v5127_v53 = vrot.slane %v5125_v61, 4 }
 0x405   : > { %v7046_v31 = vmul.f32 0.6931472, %v7952_v50  ;;  %v5552_v28 = vrot.slane %v5551_v32, 4  ;;  %v5130_v29 = vrot.slane %v5128_v37, 5  ;;  %v5136_v38 = vrot.slane %v5134_v51, 5  ;;  %v10736_v13 = vpop.f32.mrf.mxu2  ;;  %v5798_v37 = vpop.f32.mrf.mxu1 }
 0x406   : > { %v7139_v34 = vmul.f32 1.442695, %v7101_v25  ;;  %v7460_v24 = vsel %vm7448_vm11, %v7101_v25, 0.0  ;;  %v6953_v7 = vmul.f32 1.442695, %v6912_v35  ;;  %v5138_v25 = vshrl.u32 %v4783_v44, 16 }
 0x407   : > { %v7461_v19 = vadd.f32 %v7460_v24, %v10676_v40  ;;  %v7102_v47 = vsub.f32 %v6846_v3, %v7046_v31  ;;  %v5558_v40 = vshrl.u32 %v5224_v52, 16  ;;  %v5557_v50 = vsel %vm8551_vm10, %v5552_v28, %v5556_v39  ;;  %v6113_v3 = vld [vmem:[#allocation3 + $0xb8] sm:$0xf]  ;;  %v6114_v52 = vld [vmem:[#allocation3 + $0xbc] sm:$0x1] }
 0x408   : > { %7953 = vpow2.f32 %v7139_v34  ;;  %v5140_v34 = vrot.slane %v5138_v25, 4  ;;  %v5144_v24 = vshll.u32 %v4784_v5, 16  ;;  %v6434_v21 = vshrl.u32 %v6112_v0, 16 }
 0x409   : > { %v7141_v54 = vmul.f32 1.442695, %v7102_v47  ;;  %v7462_v12 = vsel %vm7448_vm11, %v7102_v47, 0.0  ;;  %7955 = vpow2.f32 %v6951_v15  ;;  %v5560_v57 = vrot.slane %v5558_v40, 4 }
 0x40a   : > { %v10729_v55 = vadd.f32 %v7462_v12, %v7461_v19  ;;  %v5655_v6 = vunpack.c.l.b16 %v5557_v50  ;;  %v5131_v4 = vor.u32 %v5130_v29, %v5127_v53  ;;  %v5141_v15 = vor.u32 %v5140_v34, %v5136_v38 }
 0x40b   : > { %7957 = vpow2.f32 %v7141_v54  ;;  %v5561_v16 = vor.u32 %v5560_v57, %v5556_v39  ;;  %v5146_v59 = vrot.slane %v5144_v24, 5  ;;  %v6436_v10 = vrot.slane %v6434_v21, 4 }
 0x40c   : > { %7959 = vpow2.f32 %v6953_v7  ;;  %v5132_v2 = vrot.slane %v5131_v4, 4  ;;  %v6437_v40 = vshll.u32 %v6112_v0, 16  ;;  %v6443_v11 = vshll.u32 %v6113_v3, 16 }
 0x40d   : > { %v5562_v1 = vrot.slane %v5561_v16, 4  ;;  %v5142_v62 = vrot.slane %v5141_v15, 4  ;;  %v6447_v54 = vshrl.u32 %v6113_v3, 16  ;;  %v6453_v12 = vshll.u32 %v6114_v52, 16  ;;  %v10758_v24 = vpop.f32.mrf.mxu2 }
 0x40e   : > { %v7954_v42 = vpop.eup %7953  ;;  %v5137_v44 = vsel %vm8551_vm10, %v5132_v2, %v5136_v38  ;;  %v6439_v35 = vrot.slane %v6437_v40, 5  ;;  %v6445_v39 = vrot.slane %v6443_v11, 5  ;;  %v6749_v57 = vadd.f32 %v6684_v46, %v10726_v30  ;;  %v6686_v30 = vpop.f32.mrf.mxu3 }
 0x40f   : > { %7299 = vrot.lane.b32.xlu0 %v7954_v42, %s8117_s27  ;;  %v7956_v49 = vpop.eup %7955  ;;  %v5567_v31 = vsel %vm8551_vm10, %v5562_v1, %v5566_v48  ;;  %v5147_v56 = vsel %vm8551_vm10, %v5142_v62, %v5146_v59  ;;  %v5879_v5 = vunpack.c.l.b16 %v5137_v44  ;;  %v6449_v61 = vrot.slane %v6447_v54, 4  ;;  %v5801_v54 = vpop.f32.mrf.mxu1 }
 0x410   : > { %v7007_v19 = vadd.f32 1.0, %v7956_v49  ;;  %v5656_v47 = vunpack.c.l.b16 %v5567_v31  ;;  %v5880_v42 = vunpack.c.l.b16 %v5147_v56  ;;  %v6440_v7 = vor.u32 %v6439_v35, %v6436_v10  ;;  %v5226_v31 = vld [vmem:[#allocation3 + $0xb4] sm:$0xf] }
 0x411   : > { %v7958_v17 = vpop.eup %7957  ;;  %v10746_v16 = vadd.f32 %v10696_v8, %v6749_v57  ;;  %v6450_v51 = vor.u32 %v6449_v61, %v6445_v39  ;;  %v6455_v0 = vrot.slane %v6453_v12, 5  ;;  %v6020_v28 = vadd.f32 %v10719_v9, %v5798_v37  ;;  %v5228_v12 = vld [vmem:[#allocation3 + $0xbc] sm:$0x1]  ;;  %v4785_v35 = vld [vmem:[#allocation3 + $0xb4] sm:$0xf] }
 0x412   : > { %7961 = vlog2.f32 %v7007_v19  ;;  %7301 = vrot.lane.b32.xlu2 %v7958_v17, %s8117_s27  ;;  %v5674_v23 = vpack.c.b16 %v5656_v47, %v5655_v6  ;;  %v7960_v63 = vpop.eup %7959  ;;  %v5897_v53 = vpack.c.b16 %v5880_v42, %v5879_v5  ;;  %v6441_v25 = vrot.slane %v6440_v7, 4  ;;  %v5227_v6 = vld [vmem:[#allocation3 + $0xb8] sm:$0xf] }
 0x413   : > { %v7008_v32 = vadd.f32 1.0, %v7960_v63  ;;  %v10750_v46 = vadd.f32 2.0, %v10746_v16  ;;  %v6847_v1 = vmin.f32 %v10707_v33, 0.0  ;;  %v6451_v38 = vrot.slane %v6450_v51, 4  ;;  %v4786_v42 = vld [vmem:[#allocation3 + $0xb8] sm:$0xf] }
 0x414   : > { %7770 = vmatmul.msk.bf16.gmra.mxu1 %vm5713_vm9, %v5674_v23  ;;  %v6750_v49 = vadd.f32 %v6686_v30, %v6020_v28  ;;  %v6848_v50 = vmin.f32 %v10722_v27, 0.0  ;;  %7811 = vmatmul.msk.bf16.gmra.mxu2 %vm5713_vm9, %v5897_v53  ;;  %v6446_v34 = vsel %vm8551_vm10, %v6441_v25, %v6445_v39  ;;  %v5569_v52 = vshrl.u32 %v5226_v31, 16  ;;  %v6115_v25 = vld [vmem:[#allocation3 + $0xc0] sm:$0xf] }
 0x415   : > { %7963 = vlog2.f32 %v7008_v32  ;;  %v6881_v9 = vand.u32 2147483647, %v10750_v46  ;;  %v6456_v21 = vsel %vm8551_vm10, %v6451_v38, %v6455_v0  ;;  %v6544_v19 = vunpack.c.l.b16 %v6446_v34  ;;  %v4787_v0 = vld [vmem:[#allocation3 + $0xbc] sm:$0x1] }
 0x416   : > { %v10763_v33 = vadd.f32 %v10696_v8, %v6750_v49  ;;  %v6545_v27 = vunpack.c.l.b16 %v6456_v21  ;;  %v5572_v17 = vshll.u32 %v5226_v31, 16  ;;  %v5578_v2 = vshll.u32 %v5227_v6, 16  ;;  %v10776_v49 = vpop.f32.mrf.mxu2  ;;  %v6689_v21 = vpop.f32.mrf.mxu3 }
 0x417   : > { %v6913_v4 = vsub.f32 0.0, %v6881_v9  ;;  %v6023_v44 = vadd.f32 %v10736_v13, %v5801_v54  ;;  %v5571_v57 = vrot.slane %v5569_v52, 4  ;;  %v5588_v61 = vshll.u32 %v5228_v12, 16 }
 0x418   : > { %v7962_v48 = vpop.eup %7961  ;;  %v10767_v10 = vadd.f32 2.0, %v10763_v33  ;;  %v6563_v23 = vpack.c.b16 %v6545_v27, %v6544_v19  ;;  %v5574_v32 = vrot.slane %v5572_v17, 5  ;;  %v5580_v5 = vrot.slane %v5578_v2, 5 }
 0x419   : > { %v7048_v29 = vmul.f32 0.6931472, %v7962_v48  ;;  %v6955_v62 = vmul.f32 1.442695, %v6913_v4  ;;  %v5149_v28 = vshrl.u32 %v4785_v35, 16  ;;  %v5590_v53 = vrot.slane %v5588_v61, 5 }
 0x41a   : > { %v6882_v63 = vand.u32 2147483647, %v10767_v10  ;;  %7862 = vmatmul.msk.bf16.gmra.mxu3 %vm5713_vm9, %v6563_v23  ;;  %v5575_v51 = vor.u32 %v5574_v32, %v5571_v57  ;;  %v5152_v38 = vshll.u32 %v4785_v35, 16  ;;  %v5158_v9 = vshll.u32 %v4786_v42, 16  ;;  %v6116_v4 = vld [vmem:[#allocation3 + $0xc4] sm:$0xf] }
 0x41b   : > { %v7103_v3 = vsub.f32 %v6847_v1, %v7048_v29  ;;  %v7964_v47 = vpop.eup %7963  ;;  %v5151_v29 = vrot.slane %v5149_v28, 4  ;;  %v5168_v27 = vshll.u32 %v4787_v0, 16  ;;  %v6458_v52 = vshrl.u32 %v6115_v25, 16  ;;  %v6117_v23 = vld [vmem:[#allocation3 + $0xc8] sm:$0x1] }
 0x41c   : > { %v7050_v11 = vmul.f32 0.6931472, %v7964_v47  ;;  %v6914_v56 = vsub.f32 0.0, %v6882_v63  ;;  %v5576_v1 = vrot.slane %v5575_v51, 4  ;;  %v6461_v12 = vshll.u32 %v6115_v25, 16 }
 0x41d   : > { %v7143_v15 = vmul.f32 1.442695, %v7103_v3  ;;  %v7464_v59 = vsel %vm7448_vm11, %v7103_v3, 0.0  ;;  %v5162_v3 = vshrl.u32 %v4786_v42, 16  ;;  %v6467_v63 = vshll.u32 %v6116_v4, 16 }
 0x41e   : > { %v7465_v40 = vadd.f32 %v7464_v59, %v10729_v55  ;;  %v7104_v39 = vsub.f32 %v6848_v50, %v7050_v11  ;;  %v5582_v55 = vshrl.u32 %v5227_v6, 16  ;;  %v6957_v13 = vmul.f32 1.442695, %v6914_v56 }
 0x41f   : > { %7965 = vpow2.f32 %v7143_v15  ;;  %v5581_v31 = vsel %vm8551_vm10, %v5576_v1, %v5580_v5  ;;  %v5154_v6 = vrot.slane %v5152_v38, 5  ;;  %v5160_v59 = vrot.slane %v5158_v9, 5  ;;  %v10792_v38 = vpop.f32.mrf.mxu2 }
 0x420   : > { %7967 = vpow2.f32 %v6955_v62  ;;  %v7145_v7 = vmul.f32 1.442695, %v7104_v39  ;;  %v7466_v37 = vsel %vm7448_vm11, %v7104_v39, 0.0  ;;  %v5584_v48 = vrot.slane %v5582_v55, 4 }
 0x421   : > { %v10774_v30 = vadd.f32 %v7466_v37, %v7465_v40  ;;  %v5657_v15 = vunpack.c.l.b16 %v5581_v31  ;;  %v5155_v2 = vor.u32 %v5154_v6, %v5151_v29  ;;  %v5164_v40 = vrot.slane %v5162_v3, 4  ;;  %v5803_v29 = vpop.f32.mrf.mxu1 }
 0x422   : > { %7969 = vpow2.f32 %v7145_v7  ;;  %v5585_v34 = vor.u32 %v5584_v48, %v5580_v5  ;;  %v5170_v11 = vrot.slane %v5168_v27, 5  ;;  %v6460_v62 = vrot.slane %v6458_v52, 4 }
 0x423   : > { %7971 = vpow2.f32 %v6957_v13  ;;  %v5156_v57 = vrot.slane %v5155_v2, 4  ;;  %v5165_v32 = vor.u32 %v5164_v40, %v5160_v59  ;;  %v6471_v56 = vshrl.u32 %v6116_v4, 16 }
 0x424   : > { %v5586_v47 = vrot.slane %v5585_v34, 4  ;;  %v6463_v55 = vrot.slane %v6461_v12, 5  ;;  %v6469_v61 = vrot.slane %v6467_v63, 5  ;;  %v6477_v42 = vshll.u32 %v6117_v23, 16 }
 0x425   : > { %v7966_v50 = vpop.eup %7965  ;;  %v6751_v7 = vadd.f32 %v6689_v21, %v6023_v44  ;;  %v5161_v0 = vsel %vm8551_vm10, %v5156_v57, %v5160_v59  ;;  %v5166_v28 = vrot.slane %v5165_v32, 4  ;;  %v6025_v21 = vadd.f32 %v10758_v24, %v5803_v29  ;;  %v5230_v57 = vld [vmem:[#allocation3 + $0xc4] sm:$0xf] }
 0x426   : > { %v7968_v19 = vpop.eup %7967  ;;  %7303 = vrot.lane.b32.xlu0 %v7966_v50, %s8117_s27  ;;  %v5591_v54 = vsel %vm8551_vm10, %v5586_v47, %v5590_v53  ;;  %v5881_v13 = vunpack.c.l.b16 %v5161_v0  ;;  %v6464_v48 = vor.u32 %v6463_v55, %v6460_v62  ;;  %v6473_v53 = vrot.slane %v6471_v56, 4 }
 0x427   : > { %v7009_v17 = vadd.f32 1.0, %v7968_v19  ;;  %v5658_v39 = vunpack.c.l.b16 %v5591_v54  ;;  %v5171_v25 = vsel %vm8551_vm10, %v5166_v28, %v5170_v11  ;;  %v6479_v1 = vrot.slane %v6477_v42, 5  ;;  %v6691_v19 = vpop.f32.mrf.mxu3  ;;  %v5229_v11 = vld [vmem:[#allocation3 + $0xc0] sm:$0xf] }
 0x428   : > { %v7970_v35 = vpop.eup %7969  ;;  %v10790_v44 = vadd.f32 %v10696_v8, %v6751_v7  ;;  %v5882_v34 = vunpack.c.l.b16 %v5171_v25  ;;  %v6465_v9 = vrot.slane %v6464_v48, 4  ;;  %v6474_v3 = vor.u32 %v6473_v53, %v6469_v61  ;;  %v5231_v7 = vld [vmem:[#allocation3 + $0xc8] sm:$0x1]  ;;  %v10816_v48 = vpop.f32.mrf.mxu2 }
 0x429   : > { %7973 = vlog2.f32 %v7009_v17  ;;  %v7972_v5 = vpop.eup %7971  ;;  %7305 = vrot.lane.b32.xlu2 %v7970_v35, %s8117_s27  ;;  %v5675_v51 = vpack.c.b16 %v5658_v39, %v5657_v15  ;;  %v6849_v31 = vmin.f32 %v10750_v46, 0.0  ;;  %v6752_v47 = vadd.f32 %v6691_v19, %v6025_v21 }
 0x42a   : > { %v7010_v37 = vadd.f32 1.0, %v7972_v5  ;;  %v10797_v27 = vadd.f32 2.0, %v10790_v44  ;;  %v5898_v4 = vpack.c.b16 %v5882_v34, %v5881_v13  ;;  %v6470_v52 = vsel %vm8551_vm10, %v6465_v9, %v6469_v61  ;;  %v6119_v13 = vld [vmem:[#allocation3 + $0xd0] sm:$0xf] }
 0x42b   : > { %7771 = vmatmul.msk.bf16.gmra.mxu1 %vm5713_vm9, %v5675_v51  ;;  %v6475_v17 = vrot.slane %v6474_v3, 4  ;;  %v6850_v2 = vmin.f32 %v10767_v10, 0.0  ;;  %v6546_v24 = vunpack.c.l.b16 %v6470_v52  ;;  %v10807_v40 = vadd.f32 %v10696_v8, %v6752_v47  ;;  %v5806_v51 = vpop.f32.mrf.mxu1 }
 0x42c   : > { %7975 = vlog2.f32 %v7010_v37  ;;  %v6883_v59 = vand.u32 2147483647, %v10797_v27  ;;  %7812 = vmatmul.msk.bf16.gmra.mxu2 %vm5713_vm9, %v5898_v4  ;;  %v5593_v32 = vshrl.u32 %v5229_v11, 16  ;;  %v5596_v55 = vshll.u32 %v5229_v11, 16  ;;  %v6118_v37 = vld [vmem:[#allocation3 + $0xcc] sm:$0xf] }
 0x42d   : > { %v6480_v46 = vsel %vm8551_vm10, %v6475_v17, %v6479_v1  ;;  %v10812_v10 = vadd.f32 2.0, %v10807_v40  ;;  %v5602_v28 = vshll.u32 %v5230_v57, 16  ;;  %v5606_v29 = vshrl.u32 %v5230_v57, 16 }
 0x42e   : > { %v6547_v12 = vunpack.c.l.b16 %v6480_v46  ;;  %v6915_v63 = vsub.f32 0.0, %v6883_v59  ;;  %v5598_v0 = vrot.slane %v5596_v55, 5  ;;  %v5612_v21 = vshll.u32 %v5231_v7, 16 }
 0x42f   : > { %v7974_v50 = vpop.eup %7973  ;;  %v6884_v42 = vand.u32 2147483647, %v10812_v10  ;;  %v5604_v3 = vrot.slane %v5602_v28, 5  ;;  %v6482_v4 = vshrl.u32 %v6118_v37, 16  ;;  %v6491_v59 = vshll.u32 %v6119_v13, 16 }
 0x430   : > { %v7052_v6 = vmul.f32 0.6931472, %v7974_v50  ;;  %v6564_v56 = vpack.c.b16 %v6547_v12, %v6546_v24  ;;  %v6959_v5 = vmul.f32 1.442695, %v6915_v63  ;;  %v6694_v50 = vpop.f32.mrf.mxu3  ;;  %v5614_v47 = vrot.slane %v5612_v21, 5 }
 0x431   : > { %v6916_v1 = vsub.f32 0.0, %v6884_v42  ;;  %v6484_v46 = vrot.slane %v6482_v4, 4  ;;  %v6495_v24 = vshrl.u32 %v6119_v13, 16  ;;  %vm7415_vm6 = vcmask 31760  }
 0x432   : > { %v7105_v15 = vsub.f32 %v6849_v31, %v7052_v6  ;;  %v7976_v23 = vpop.eup %7975  ;;  %7863 = vmatmul.msk.bf16.gmra.mxu3 %vm5713_vm9, %v6564_v56  ;;  %v5608_v31 = vrot.slane %v5606_v29, 4  ;;  %v6120_v6 = vld [vmem:[#allocation3 + $0xd4] sm:$0x1] }
 0x433   : > { %v7054_v39 = vmul.f32 0.6931472, %v7976_v23  ;;  %v6961_v19 = vmul.f32 1.442695, %v6916_v1  ;;  %v6028_v23 = vadd.f32 %v10776_v49, %v5806_v51  ;;  %v6501_v12 = vshll.u32 %v6120_v6, 16 }
 0x434   : > { %v7147_v62 = vmul.f32 1.442695, %v7105_v15  ;;  %v7468_v54 = vsel %vm7448_vm11, %v7105_v15, 0.0  ;;  %v6485_v15 = vshll.u32 %v6118_v37, 16  ;;  %v6497_v57 = vrot.slane %v6495_v24, 4 }
 0x435   : > { %v7469_v35 = vadd.f32 %v7468_v54, %v10774_v30  ;;  %v7106_v61 = vsub.f32 %v6850_v2, %v7054_v39  ;;  %v5595_v30 = vrot.slane %v5593_v32, 4  ;;  %v5609_v2 = vor.u32 %v5608_v31, %v5604_v3 }
 0x436   : > { %7977 = vpow2.f32 %v7147_v62  ;;  %v6487_v62 = vrot.slane %v6485_v15, 5  ;;  %v6493_v54 = vrot.slane %v6491_v59, 5  ;;  %v6753_v56 = vadd.f32 %v6694_v50, %v6028_v23 }
 0x437   : > { %7979 = vpow2.f32 %v6959_v5  ;;  %v7149_v53 = vmul.f32 1.442695, %v7106_v61  ;;  %v7470_v25 = vsel %vm7448_vm11, %v7106_v61, 0.0  ;;  %v5599_v9 = vor.u32 %v5598_v0, %v5595_v30  ;;  %v5808_v30 = vpop.f32.mrf.mxu1  ;;  %v6034_v0 = vpop.f32.mrf.mxu2 }
 0x438   : > { %v10819_v34 = vadd.f32 %v7470_v25, %v7469_v35  ;;  %v5610_v39 = vrot.slane %v5609_v2, 4  ;;  %v6488_v32 = vor.u32 %v6487_v62, %v6484_v46  ;;  %v6498_v61 = vor.u32 %v6497_v57, %v6493_v54  ;;  %v6696_v25 = vpop.f32.mrf.mxu3 }
 0x439   : > { %7981 = vpow2.f32 %v7149_v53  ;;  %v5600_v17 = vrot.slane %v5599_v9, 4  ;;  %v6503_v42 = vrot.slane %v6501_v12, 5  ;;  %v10828_v51 = vadd.f32 %v10696_v8, %v6753_v56 }
 0x43a   : > { %7983 = vpow2.f32 %v6961_v19  ;;  %v5615_v55 = vsel %vm8551_vm10, %v5610_v39, %v5614_v47  ;;  %v6489_v37 = vrot.slane %v6488_v32, 4  ;;  %v6499_v13 = vrot.slane %v6498_v61, 4 }
 0x43b   : > { %v5605_v35 = vsel %vm8551_vm10, %v5600_v17, %v5604_v3  ;;  %v5660_v49 = vunpack.c.l.b16 %v5615_v55  ;;  %v6030_v53 = vadd.f32 %v10792_v38, %v5808_v30  ;;  %v10835_v9 = vadd.f32 2.0, %v10828_v51  ;;  %v7192_v55 = vld [vmem:[%s8287_s25 + $0x8] sm:$0xff] }
 0x43c   : > { %v7978_v52 = vpop.eup %7977  ;;  %v5659_v7 = vunpack.c.l.b16 %v5605_v35  ;;  %v6494_v50 = vsel %vm8551_vm10, %v6489_v37, %v6493_v54  ;;  %v6504_v3 = vsel %vm8551_vm10, %v6499_v13, %v6503_v42  ;;  %v6852_v12 = vmin.f32 %v10812_v10, 0.0  ;;  %v7290_v42 = vpop.permute.xlu2 %7289 }
 0x43d   : > { %7307 = vrot.lane.b32.xlu0 %v7978_v52, %s8117_s27  ;;  %v7980_v11 = vpop.eup %7979  ;;  %v6548_v21 = vunpack.c.l.b16 %v6494_v50  ;;  %v6754_v19 = vadd.f32 %v6696_v25, %v6030_v53  ;;  %v6549_v31 = vunpack.c.l.b16 %v6504_v3  ;;  %v6885_v38 = vand.u32 2147483647, %v10835_v9 }
 0x43e   : > { %v7011_v63 = vadd.f32 1.0, %v7980_v11  ;;  %v5676_v29 = vpack.c.b16 %v5660_v49, %v5659_v7  ;;  %v6851_v52 = vmin.f32 %v10797_v27, 0.0  ;;  %v7224_v61 = vadd.f32 %v7192_v55, %v10485_v36 }
 0x43f   : > { %v7982_v5 = vpop.eup %7981  ;;  %v10842_v4 = vadd.f32 %v10696_v8, %v6754_v19  ;;  %v6565_v47 = vpack.c.b16 %v6549_v31, %v6548_v21  ;;  %v6917_v15 = vsub.f32 0.0, %v6885_v38  ;;  %v5811_v46 = vpop.f32.mrf.mxu1  ;;  %vm7523_vm10 = vcmask 0  }
 0x440   : > { %7985 = vlog2.f32 %v7011_v63  ;;  %7309 = vrot.lane.b32.xlu2 %v7982_v5, %s8117_s27  ;;  %v7984_v28 = vpop.eup %7983  ;;  %7772 = vmatmul.msk.bf16.gmra.mxu1 %vm5713_vm9, %v5676_v29  ;;  %v6033_v11 = vadd.f32 %v10816_v48, %v5811_v46  ;;  %v6699_v23 = vpop.f32.mrf.mxu3 }
 0x441   : > { %v7012_v1 = vadd.f32 1.0, %v7984_v28  ;;  %v10846_v60 = vadd.f32 2.0, %v10842_v4  ;;  %v6963_v2 = vmul.f32 1.442695, %v6917_v15  ;;  %v6037_v63 = vpop.f32.mrf.mxu2  ;;  %v7384_v28 = vmul.f32 %v7290_v42, %v7224_v61 }
 0x442   : > { %7864 = vmatmul.msk.bf16.gmra.mxu3 %vm5713_vm9, %v6565_v47  ;;  %v6755_v32 = vadd.f32 %v6699_v23, %v6033_v11 }
 0x443   : > { %7987 = vlog2.f32 %v7012_v1  ;;  %v6886_v24 = vand.u32 2147483647, %v10846_v60  ;;  %7417 = vst.msk [vmem:[%s8287_s25 + $0x8] sm:$0xff] %vm7415_vm6, %v7384_v28 }
 0x444   : > { %7989 = vpow2.f32 %v6963_v2  ;;  %v10855_v48 = vadd.f32 %v10696_v8, %v6755_v32 }
 0x445   : > { %v6918_v57 = vsub.f32 0.0, %v6886_v24 }
 0x446   : > { %v7986_v6 = vpop.eup %7985 }
 0x447   : > { %v7056_v17 = vmul.f32 0.6931472, %v7986_v6  ;;  %v6965_v5 = vmul.f32 1.442695, %v6918_v57  ;;  %v5813_v30 = vpop.f32.mrf.mxu1 }
 0x448   : > { %v6701_v25 = vpop.f32.mrf.mxu3  ;;  %v6035_v1 = vadd.f32 %v6034_v0, %v5813_v30 }
 0x449   : > { %v7107_v59 = vsub.f32 %v6851_v52, %v7056_v17  ;;  %v7988_v62 = vpop.eup %7987  ;;  %v6039_v50 = vpop.f32.mrf.mxu2 }
 0x44a   : > { %v7058_v39 = vmul.f32 0.6931472, %v7988_v62  ;;  %v7990_v49 = vpop.eup %7989  ;;  %v6756_v3 = vadd.f32 %v6701_v25, %v6035_v1  ;;  %v7191_v62 = vld [vmem:[%s8287_s25] sm:$0xff]  ;;  %v7194_v1 = vld [vmem:[%s8287_s25 + $0x18] sm:$0xff] }
 0x44b   : > { %v7151_v54 = vmul.f32 1.442695, %v7107_v59  ;;  %v7472_v27 = vsel %vm7448_vm11, %v7107_v59, 0.0  ;;  %v7013_v13 = vadd.f32 1.0, %v7990_v49  ;;  %v6853_v59 = vmin.f32 %v10835_v9, 0.0 }
 0x44c   : > { %v7473_v35 = vadd.f32 %v7472_v27, %v10819_v34  ;;  %v7108_v56 = vsub.f32 %v6852_v12, %v7058_v39  ;;  %v10861_v34 = vadd.f32 2.0, %v10855_v48  ;;  %v10868_v38 = vadd.f32 %v10696_v8, %v6756_v3 }
 0x44d   : > { %7991 = vpow2.f32 %v7151_v54  ;;  %v6854_v27 = vmin.f32 %v10846_v60, 0.0  ;;  %v7223_v39 = vadd.f32 %v7191_v62, %v10452_v26 }
 0x44e   : > { %v7153_v10 = vmul.f32 1.442695, %v7108_v56  ;;  %v7474_v7 = vsel %vm7448_vm11, %v7108_v56, 0.0  ;;  %7993 = vpow2.f32 %v6965_v5  ;;  %v6887_v53 = vand.u32 2147483647, %v10861_v34 }
 0x44f   : > { %v7475_v37 = vadd.f32 %v7474_v7, %v7473_v35  ;;  %v10871_v0 = vadd.f32 2.0, %v10868_v38  ;;  %v5816_v52 = vpop.f32.mrf.mxu1  ;;  %v7288_v35 = vpop.permute.xlu1 %7287 }
 0x450   : > { %7995 = vpow2.f32 %v7153_v10  ;;  %v6919_v29 = vsub.f32 0.0, %v6887_v53  ;;  %v6038_v47 = vadd.f32 %v6037_v63, %v5816_v52  ;;  %v6704_v15 = vpop.f32.mrf.mxu3  ;;  %v7383_v60 = vmul.f32 %v7288_v35, %v7223_v39 }
 0x451   : > { %7997 = vlog2.f32 %v7013_v13  ;;  %v6888_v46 = vand.u32 2147483647, %v10871_v0  ;;  %v6042_v5 = vpop.f32.mrf.mxu2 }
 0x452   : > { %v6967_v19 = vmul.f32 1.442695, %v6919_v29  ;;  %v6757_v24 = vadd.f32 %v6704_v15, %v6038_v47  ;;  %7416 = vst.msk [vmem:[%s8287_s25] sm:$0xff] %vm7415_vm6, %v7383_v60 }
 0x453   : > { %v7992_v36 = vpop.eup %7991  ;;  %v6920_v23 = vsub.f32 0.0, %v6888_v46 }
 0x454   : > { %7311 = vrot.lane.b32.xlu0 %v7992_v36, %s8117_s27  ;;  %v7994_v21 = vpop.eup %7993  ;;  %7999 = vpow2.f32 %v6967_v19  ;;  %v10879_v12 = vadd.f32 %v10696_v8, %v6757_v24 }
 0x455   : > { %v7014_v31 = vadd.f32 1.0, %v7994_v21  ;;  %v6969_v56 = vmul.f32 1.442695, %v6920_v23  ;;  %v7226_v21 = vadd.f32 %v7194_v1, %v10558_v14 }
 0x456   : > { %v7996_v6 = vpop.eup %7995  ;;  %v10884_v42 = vadd.f32 2.0, %v10879_v12 }
 0x457   : > { %8001 = vlog2.f32 %v7014_v31  ;;  %7313 = vrot.lane.b32.xlu2 %v7996_v6, %s8117_s27  ;;  %v7998_v17 = vpop.eup %7997  ;;  %v5818_v10 = vpop.f32.mrf.mxu1  ;;  %v6855_v6 = vmin.f32 %v10861_v34, 0.0 }
 0x458   : > { %v7060_v2 = vmul.f32 0.6931472, %v7998_v17  ;;  %v6889_v26 = vand.u32 2147483647, %v10884_v42  ;;  %v6706_v49 = vpop.f32.mrf.mxu3  ;;  %v6040_v30 = vadd.f32 %v6039_v50, %v5818_v10  ;;  %v7294_v50 = vpop.permute.xlu2 %7293  ;;  %v6856_v10 = vmin.f32 %v10871_v0, 0.0 }
 0x459   : > { %v6044_v17 = vpop.f32.mrf.mxu2  ;;  %v6857_v1 = vmin.f32 %v10884_v42, 0.0  ;;  %v7292_v0 = vpop.permute.xlu0 %7291 }
 0x45a   : > { %v7109_v11 = vsub.f32 %v6853_v59, %v7060_v2  ;;  %v8000_v54 = vpop.eup %7999  ;;  %v6921_v13 = vsub.f32 0.0, %v6889_v26  ;;  %v6758_v25 = vadd.f32 %v6706_v49, %v6040_v30  ;;  %v7386_v59 = vmul.f32 %v7294_v50, %v7226_v21 }
 0x45b   : > { %v7015_v32 = vadd.f32 1.0, %v8000_v54 }
 0x45c   : > { %v7155_v57 = vmul.f32 1.442695, %v7109_v11  ;;  %v7476_v9 = vsel %vm7448_vm11, %v7109_v11, 0.0  ;;  %v6971_v36 = vmul.f32 1.442695, %v6921_v13  ;;  %v10892_v3 = vadd.f32 %v10696_v8, %v6758_v25  ;;  %7419 = vst.msk [vmem:[%s8287_s25 + $0x18] sm:$0xff] %vm7415_vm6, %v7386_v59 }
 0x45d   : > { %v8002_v63 = vpop.eup %8001  ;;  %v7477_v55 = vadd.f32 %v7476_v9, %v7475_v37 }
 0x45e   : > { %v7062_v61 = vmul.f32 0.6931472, %v8002_v63  ;;  %8003 = vpow2.f32 %v7155_v57  ;;  %v10898_v47 = vadd.f32 2.0, %v10892_v3 }
 0x45f   : > { %8005 = vlog2.f32 %v7015_v32  ;;  %v5821_v15 = vpop.f32.mrf.mxu1 }
 0x460   : > { %v7110_v7 = vsub.f32 %v6854_v27, %v7062_v61  ;;  %8007 = vpow2.f32 %v6969_v56  ;;  %v6043_v46 = vadd.f32 %v6042_v5, %v5821_v15  ;;  %v6709_v24 = vpop.f32.mrf.mxu3  ;;  %v6890_v11 = vand.u32 2147483647, %v10898_v47 }
 0x461   : > { %v6047_v26 = vpop.f32.mrf.mxu2 }
 0x462   : > { %v7157_v28 = vmul.f32 1.442695, %v7110_v7  ;;  %v7478_v37 = vsel %vm7448_vm11, %v7110_v7, 0.0  ;;  %v6759_v62 = vadd.f32 %v6709_v24, %v6043_v46  ;;  %v6922_v27 = vsub.f32 0.0, %v6890_v11 }
 0x463   : > { %v7479_v53 = vadd.f32 %v7478_v37, %v7477_v55  ;;  %v7196_v37 = vld [vmem:[%s8287_s25 + $0x28] sm:$0xff] }
 0x464   : > { %8009 = vpow2.f32 %v7157_v28  ;;  %v8004_v29 = vpop.eup %8003  ;;  %v10906_v63 = vadd.f32 %v10696_v8, %v6759_v62  ;;  %v6973_v9 = vmul.f32 1.442695, %v6922_v27  ;;  %v7193_v28 = vld [vmem:[%s8287_s25 + $0x10] sm:$0xff] }
 0x465   : > { %v8006_v19 = vpop.eup %8005  ;;  %8011 = vpow2.f32 %v6971_v36  ;;  %7315 = vrot.lane.b32.xlu1 %v8004_v29, %s8117_s27  ;;  %v7225_v25 = vadd.f32 %v7193_v28, %v10532_v18  ;;  %v7228_v36 = vadd.f32 %v7196_v37, %v10618_v45 }
 0x466   : > { %v8008_v31 = vpop.eup %8007  ;;  %v7064_v52 = vmul.f32 0.6931472, %v8006_v19  ;;  %v10909_v32 = vadd.f32 2.0, %v10906_v63  ;;  %v7298_v19 = vpop.permute.xlu2 %7297 }
 0x467   : > { %v7016_v2 = vadd.f32 1.0, %v8008_v31  ;;  %v5823_v56 = vpop.f32.mrf.mxu1  ;;  %v7388_v18 = vmul.f32 %v7298_v19, %v7228_v36  ;;  %v7195_v36 = vld [vmem:[%s8287_s25 + $0x20] sm:$0xff] }
 0x468   : > { %v7111_v14 = vsub.f32 %v6855_v6, %v7064_v52  ;;  %v6891_v55 = vand.u32 2147483647, %v10909_v32  ;;  %v6045_v61 = vadd.f32 %v6044_v17, %v5823_v56  ;;  %v6711_v60 = vpop.f32.mrf.mxu3  ;;  %v7385_v52 = vmul.f32 %v7292_v0, %v7225_v25  ;;  %v7198_v25 = vld [vmem:[%s8287_s25 + $0x38] sm:$0xff] }
 0x469   : > { %8013 = vlog2.f32 %v7016_v2  ;;  %7421 = vst.msk [vmem:[%s8287_s25 + $0x28] sm:$0xff] %vm7415_vm6, %v7388_v18  ;;  %v6049_v27 = vpop.f32.mrf.mxu2 }
 0x46a   : > { %v8010_v23 = vpop.eup %8009  ;;  %v7159_v54 = vmul.f32 1.442695, %v7111_v14  ;;  %v7480_v34 = vsel %vm7448_vm11, %v7111_v14, 0.0  ;;  %v6923_v49 = vsub.f32 0.0, %v6891_v55  ;;  %v6760_v30 = vadd.f32 %v6711_v60, %v6045_v61  ;;  %7418 = vst.msk [vmem:[%s8287_s25 + $0x10] sm:$0xff] %vm7415_vm6, %v7385_v52  ;;  %v7296_v52 = vpop.permute.xlu0 %7295 }
 0x46b   : > { %7317 = vrot.lane.b32.xlu0 %v8010_v23, %s8117_s27  ;;  %v8012_v35 = vpop.eup %8011  ;;  %v7481_v39 = vadd.f32 %v7480_v34, %v7479_v53 }
 0x46c   : > { %8015 = vpow2.f32 %v7159_v54  ;;  %v7017_v57 = vadd.f32 1.0, %v8012_v35  ;;  %v6975_v29 = vmul.f32 1.442695, %v6923_v49  ;;  %v10919_v21 = vadd.f32 %v10696_v8, %v6760_v30 }
 0x46e   : > { %8017 = vlog2.f32 %v7017_v57  ;;  %v10924_v42 = vadd.f32 2.0, %v10919_v21  ;;  %v10935_v57 = vld [vmem:[%s11195_s8] ss:$0 sm:$0xff] }
 0x46f   : > { %v8014_v5 = vpop.eup %8013  ;;  %8019 = vpow2.f32 %v6973_v9  ;;  %v5826_v59 = vpop.f32.mrf.mxu1 }
 0x470   : > { %v7066_v7 = vmul.f32 0.6931472, %v8014_v5  ;;  %8021 = vpow2.f32 %v6975_v29  ;;  %v6892_v46 = vand.u32 2147483647, %v10924_v42  ;;  %v6048_v24 = vadd.f32 %v6047_v26, %v5826_v59  ;;  %v6714_v14 = vpop.f32.mrf.mxu3 }
 0x471   : > { %v7227_v29 = vadd.f32 %v7195_v36, %v10595_v20  ;;  %v6859_v20 = vmin.f32 %v10909_v32, 0.0 }
 0x472   : > { %v8016_v13 = vpop.eup %8015  ;;  %v7112_v53 = vsub.f32 %v6856_v10, %v7066_v7  ;;  %v6924_v62 = vsub.f32 0.0, %v6892_v46  ;;  %v6761_v54 = vadd.f32 %v6714_v14, %v6048_v24  ;;  %v6858_v10 = vmin.f32 %v10898_v47, 0.0 }
 0x473   : > { %7319 = vrot.lane.b32.xlu2 %v8016_v13, %s8117_s27 }
 0x474   : > { %v8018_v50 = vpop.eup %8017  ;;  %v7161_v31 = vmul.f32 1.442695, %v7112_v53  ;;  %v7482_v6 = vsel %vm7448_vm11, %v7112_v53, 0.0  ;;  %v10938_v9 = vadd.f32 %v10935_v57, %v6761_v54 }
 0x475   : > { %v8020_v17 = vpop.eup %8019  ;;  %v7483_v45 = vadd.f32 %v7482_v6, %v7481_v39  ;;  %v7068_v15 = vmul.f32 0.6931472, %v8018_v50  ;;  %v6977_v39 = vmul.f32 1.442695, %v6924_v62  ;;  %v7302_v6 = vpop.permute.xlu2 %7301 }
 0x476   : > { %8023 = vpow2.f32 %v7161_v31  ;;  %v7018_v8 = vadd.f32 1.0, %v8020_v17  ;;  %v8022_v35 = vpop.eup %8021  ;;  %v10941_v55 = vadd.f32 2.0, %v10938_v9 }
 0x477   : > { %v7113_v2 = vsub.f32 %v6857_v1, %v7068_v15  ;;  %v7019_v5 = vadd.f32 1.0, %v8022_v35  ;;  %v5828_v60 = vpop.f32.mrf.mxu1  ;;  %v7230_v1 = vadd.f32 %v7198_v25, %v10663_v22  ;;  %v10955_v15 = vpop.f32.mrf.mxu2 }
 0x478   : > { %8025 = vlog2.f32 %v7018_v8  ;;  %v6893_v26 = vand.u32 2147483647, %v10941_v55  ;;  %v6050_v49 = vadd.f32 %v6049_v27, %v5828_v60  ;;  %v6716_v30 = vpop.f32.mrf.mxu3  ;;  %v7387_v8 = vmul.f32 %v7296_v52, %v7227_v29 }
 0x479   : > { %v7163_v11 = vmul.f32 1.442695, %v7113_v2  ;;  %v7484_v23 = vsel %vm7448_vm11, %v7113_v2, 0.0  ;;  %v7390_v22 = vmul.f32 %v7302_v6, %v7230_v1 }
 0x47a   : > { %v7485_v34 = vadd.f32 %v7484_v23, %v7483_v45  ;;  %v6925_v13 = vsub.f32 0.0, %v6893_v26  ;;  %v6762_v53 = vadd.f32 %v6716_v30, %v6050_v49  ;;  %7420 = vst.msk [vmem:[%s8287_s25 + $0x20] sm:$0xff] %vm7415_vm6, %v7387_v8 }
 0x47b   : > { %8027 = vpow2.f32 %v7163_v11  ;;  %7423 = vst.msk [vmem:[%s8287_s25 + $0x38] sm:$0xff] %vm7415_vm6, %v7390_v22 }
 0x47c   : > { %v8024_v56 = vpop.eup %8023  ;;  %8029 = vpow2.f32 %v6977_v39  ;;  %v6979_v50 = vmul.f32 1.442695, %v6925_v13  ;;  %v10953_v31 = vadd.f32 %v10935_v57, %v6762_v53  ;;  %v7197_v53 = vld [vmem:[%s8287_s25 + $0x30] sm:$0xff] }
 0x47d   : > { %7321 = vrot.lane.b32.xlu0 %v8024_v56, %s8117_s27  ;;  %8031 = vlog2.f32 %v7019_v5  ;;  %v6860_v56 = vmin.f32 %v10924_v42, 0.0  ;;  %v7200_v42 = vld [vmem:[%s8287_s25 + $0x48] sm:$0xff]  ;;  %v7229_v29 = vadd.f32 %v7197_v53, %v10645_v43 }
 0x47e   : > { %v8026_v61 = vpop.eup %8025  ;;  %v10959_v2 = vadd.f32 2.0, %v10953_v31  ;;  %v7232_v1 = vadd.f32 %v7200_v42, %v10716_v41 }
 0x47f   : > { %v7070_v7 = vmul.f32 0.6931472, %v8026_v61  ;;  %v10961_v46 = vpop.f32.mrf.mxu1  ;;  %v6054_v60 = vpop.f32.mrf.mxu2 }
 0x480   : > { %v6894_v14 = vand.u32 2147483647, %v10959_v2  ;;  %v6053_v42 = vadd.f32 %v10955_v15, %v10961_v46 }
 0x481   : > { %v8028_v28 = vpop.eup %8027  ;;  %v7114_v37 = vsub.f32 %v6858_v10, %v7070_v7 }
 0x482   : > { %7323 = vrot.lane.b32.xlu2 %v8028_v28, %s8117_s27  ;;  %v8030_v0 = vpop.eup %8029  ;;  %v6926_v62 = vsub.f32 0.0, %v6894_v14 }
 0x483   : > { %v7165_v19 = vmul.f32 1.442695, %v7114_v37  ;;  %v7486_v47 = vsel %vm7448_vm11, %v7114_v37, 0.0  ;;  %v8032_v18 = vpop.eup %8031  ;;  %v7020_v45 = vadd.f32 1.0, %v8030_v0 }
 0x484   : > { %v7487_v17 = vadd.f32 %v7486_v47, %v7485_v34  ;;  %v7072_v59 = vmul.f32 0.6931472, %v8032_v18  ;;  %v6981_v27 = vmul.f32 1.442695, %v6926_v62  ;;  %v7300_v47 = vpop.permute.xlu0 %7299 }
 0x485   : > { %8033 = vpow2.f32 %v7165_v19  ;;  %v7306_v19 = vpop.permute.xlu2 %7305  ;;  %v7389_v52 = vmul.f32 %v7300_v47, %v7229_v29 }
 0x486   : > { %8035 = vlog2.f32 %v7020_v45  ;;  %v7115_v24 = vsub.f32 %v6859_v20, %v7072_v59  ;;  %v10968_v11 = vpop.f32.mrf.mxu3  ;;  %v7392_v6 = vmul.f32 %v7306_v19, %v7232_v1 }
 0x487   : > { %8037 = vpow2.f32 %v6979_v50  ;;  %v5833_v10 = vpop.f32.mrf.mxu1  ;;  %7422 = vst.msk [vmem:[%s8287_s25 + $0x30] sm:$0xff] %vm7415_vm6, %v7389_v52  ;;  %v6057_v62 = vpop.f32.mrf.mxu2  ;;  %v6763_v1 = vadd.f32 %v10968_v11, %v6053_v42 }
 0x488   : > { %v7167_v23 = vmul.f32 1.442695, %v7115_v24  ;;  %v7488_v32 = vsel %vm7448_vm11, %v7115_v24, 0.0  ;;  %v6055_v26 = vadd.f32 %v6054_v60, %v5833_v10  ;;  %7425 = vst.msk [vmem:[%s8287_s25 + $0x48] sm:$0xff] %vm7415_vm6, %v7392_v6 }
 0x489   : > { %v7489_v54 = vadd.f32 %v7488_v32, %v7487_v17  ;;  %v6861_v17 = vmin.f32 %v10941_v55, 0.0  ;;  %v6862_v32 = vmin.f32 %v10959_v2, 0.0 }
 0x48a   : > { %8039 = vpow2.f32 %v7167_v23 }
 0x48b   : > { %v8034_v34 = vpop.eup %8033  ;;  %8041 = vpow2.f32 %v6981_v27 }
 0x48c   : > { %v8036_v35 = vpop.eup %8035  ;;  %7325 = vrot.lane.b32.xlu0 %v8034_v34, %s8117_s27 }
 0x48d   : > { %v8038_v39 = vpop.eup %8037  ;;  %v7074_v5 = vmul.f32 0.6931472, %v8036_v35 }
 0x48e   : > { %v7021_v61 = vadd.f32 1.0, %v8038_v39  ;;  %v6721_v49 = vpop.f32.mrf.mxu3 }
 0x48f   : > { %v10973_v7 = vsub.f32 %v6860_v56, %v7074_v5  ;;  %v6764_v37 = vadd.f32 %v6721_v49, %v6055_v26 }
 0x490   : > { %8043 = vlog2.f32 %v7021_v61  ;;  %v8040_v30 = vpop.eup %8039 }
 0x491   : > { %v7490_v28 = vsel %vm7448_vm11, %v10973_v7, 0.0  ;;  %7327 = vrot.lane.b32.xlu2 %v8040_v30, %s8117_s27  ;;  %v8042_v25 = vpop.eup %8041  ;;  %v10981_v36 = vadd.f32 %v10935_v57, %v6764_v37  ;;  %v5836_v24 = vpop.f32.mrf.mxu1 }
 0x492   : > { %v7491_v13 = vadd.f32 %v7490_v28, %v7489_v54  ;;  %v7022_v0 = vadd.f32 1.0, %v8042_v25  ;;  %v6058_v54 = vadd.f32 %v6057_v62, %v5836_v24  ;;  %v6059_v28 = vpop.f32.mrf.mxu2  ;;  %v7202_v25 = vld [vmem:[%s8287_s25 + $0x58] sm:$0xff] }
 0x493   : > { %v10986_v50 = vadd.f32 2.0, %v10981_v36  ;;  %v7234_v29 = vadd.f32 %v7202_v25, %v10763_v33 }
 0x494   : > { %8045 = vlog2.f32 %v7022_v0  ;;  %v7199_v0 = vld [vmem:[%s8287_s25 + $0x40] sm:$0xff] }
 0x495   : > { %v6896_v22 = vand.u32 2147483647, %v10986_v50  ;;  %v7231_v47 = vadd.f32 %v7199_v0, %v10699_v58  ;;  %v6864_v15 = vmin.f32 %v10986_v50, 0.0 }
 0x496   : > { %v8044_v18 = vpop.eup %8043 }
 0x497   : > { %v7076_v45 = vmul.f32 0.6931472, %v8044_v18  ;;  %v6928_v41 = vsub.f32 0.0, %v6896_v22 }
 0x499   : > { %v7117_v43 = vsub.f32 %v6861_v17, %v7076_v45  ;;  %v6985_v59 = vmul.f32 1.442695, %v6928_v41  ;;  %v5838_v30 = vpop.f32.mrf.mxu1  ;;  %v7304_v17 = vpop.permute.xlu0 %7303 }
 0x49a   : > { %v8046_v14 = vpop.eup %8045  ;;  %v7310_v19 = vpop.permute.xlu2 %7309  ;;  %v6060_v45 = vadd.f32 %v6059_v28, %v5838_v30  ;;  %v7391_v22 = vmul.f32 %v7304_v17, %v7231_v47 }
 0x49b   : > { %v7171_v8 = vmul.f32 1.442695, %v7117_v43  ;;  %v7492_v20 = vsel %vm7448_vm11, %v7117_v43, 0.0  ;;  %v7078_v55 = vmul.f32 0.6931472, %v8046_v14  ;;  %v7394_v18 = vmul.f32 %v7310_v19, %v7234_v29  ;;  %v6062_v58 = vpop.f32.mrf.mxu2  ;;  %v7204_v19 = vld [vmem:[%s8287_s25 + $0x68] sm:$0xff] }
 0x49c   : > { %v7493_v23 = vadd.f32 %v7492_v20, %v7491_v13  ;;  %v11014_v43 = vadd.f32 %v10935_v57, %v6763_v1  ;;  %7424 = vst.msk [vmem:[%s8287_s25 + $0x40] sm:$0xff] %vm7415_vm6, %v7391_v22  ;;  %v7236_v47 = vadd.f32 %v7204_v19, %v10807_v40 }
 0x49d   : > { %8047 = vpow2.f32 %v7171_v8  ;;  %v7118_v34 = vsub.f32 %v6862_v32, %v7078_v55  ;;  %v6724_v27 = vpop.f32.mrf.mxu3  ;;  %7427 = vst.msk [vmem:[%s8287_s25 + $0x58] sm:$0xff] %vm7415_vm6, %v7394_v18 }
 0x49e   : > { %8049 = vpow2.f32 %v6985_v59  ;;  %v6765_v35 = vadd.f32 %v6724_v27, %v6058_v54  ;;  %v11024_v50 = vadd.f32 2.0, %v11014_v43 }
 0x49f   : > { %v7173_v39 = vmul.f32 1.442695, %v7118_v34  ;;  %v7494_v56 = vsel %vm7448_vm11, %v7118_v34, 0.0 }
 0x4a0   : > { %v10997_v5 = vadd.f32 %v7494_v56, %v7493_v23  ;;  %v11000_v61 = vadd.f32 %v10935_v57, %v6765_v35  ;;  %v6895_v23 = vand.u32 2147483647, %v11024_v50 }
 0x4a1   : > { %8051 = vpow2.f32 %v7173_v39 }
 0x4a2   : > { %v6833_v2 = vadd.f32 2.0, %v11000_v61  ;;  %v6927_v39 = vsub.f32 0.0, %v6895_v23 }
 0x4a3   : > { %v8048_v60 = vpop.eup %8047  ;;  %v6064_v56 = vpop.f32.mrf.mxu2 }
 0x4a4   : > { %v8050_v10 = vpop.eup %8049  ;;  %7331 = vrot.lane.b32.xlu0 %v8048_v60, %s8117_s27  ;;  %v6897_v49 = vand.u32 2147483647, %v6833_v2  ;;  %v6865_v60 = vmin.f32 %v6833_v2, 0.0 }
 0x4a5   : > { %v7024_v26 = vadd.f32 1.0, %v8050_v10  ;;  %v6726_v52 = vpop.f32.mrf.mxu3 }
 0x4a6   : > { %v6929_v37 = vsub.f32 0.0, %v6897_v49  ;;  %v6766_v11 = vadd.f32 %v6726_v52, %v6060_v45 }
 0x4a7   : > { %8053 = vlog2.f32 %v7024_v26  ;;  %v8052_v13 = vpop.eup %8051 }
 0x4a8   : > { %v6987_v53 = vmul.f32 1.442695, %v6929_v37  ;;  %7333 = vrot.lane.b32.xlu2 %v8052_v13, %s8117_s27  ;;  %v5841_v41 = vpop.f32.mrf.mxu1  ;;  %v11027_v24 = vadd.f32 %v10935_v57, %v6766_v11  ;;  %v6983_v13 = vmul.f32 1.442695, %v6927_v39 }
 0x4a9   : > { %v6063_v14 = vadd.f32 %v6062_v58, %v5841_v41 }
 0x4aa   : > { %8055 = vpow2.f32 %v6987_v53  ;;  %v11031_v55 = vadd.f32 2.0, %v11027_v24 }
 0x4ac   : > { %v6898_v26 = vand.u32 2147483647, %v11031_v55 }
 0x4ad   : > { %v8054_v6 = vpop.eup %8053 }
 0x4ae   : > { %v7082_v46 = vmul.f32 0.6931472, %v8054_v6  ;;  %v6930_v25 = vsub.f32 0.0, %v6898_v26  ;;  %v7201_v6 = vld [vmem:[%s8287_s25 + $0x50] sm:$0xff] }
 0x4af   : > { %v6067_v45 = vpop.f32.mrf.mxu2  ;;  %v7308_v11 = vpop.permute.xlu0 %7307 }
 0x4b0   : > { %v11018_v33 = vsub.f32 %v6864_v15, %v7082_v46  ;;  %v8056_v8 = vpop.eup %8055  ;;  %v5843_v27 = vpop.f32.mrf.mxu1  ;;  %v6989_v52 = vmul.f32 1.442695, %v6930_v25  ;;  %v7233_v46 = vadd.f32 %v7201_v6, %v10746_v16 }
 0x4b1   : > { %v7025_v59 = vadd.f32 1.0, %v8056_v8  ;;  %v6065_v37 = vadd.f32 %v6064_v56, %v5843_v27  ;;  %v7314_v15 = vpop.permute.xlu2 %7313  ;;  %v7207_v27 = vld [vmem:[%s8287_s25 + $0x80] sm:$0xff] }
 0x4b2   : > { %v7177_v20 = vmul.f32 1.442695, %v11018_v33  ;;  %v7396_v22 = vmul.f32 %v7314_v15, %v7236_v47  ;;  %v7393_v58 = vmul.f32 %v7308_v11, %v7233_v46 }
 0x4b4   : > { %8057 = vpow2.f32 %v7177_v20  ;;  %7429 = vst.msk [vmem:[%s8287_s25 + $0x68] sm:$0xff] %vm7415_vm6, %v7396_v22 }
 0x4b5   : > { %8059 = vlog2.f32 %v7025_v59  ;;  %v6729_v32 = vpop.f32.mrf.mxu3  ;;  %7426 = vst.msk [vmem:[%s8287_s25 + $0x50] sm:$0xff] %vm7415_vm6, %v7393_v58 }
 0x4b6   : > { %v6767_v62 = vadd.f32 %v6729_v32, %v6063_v14 }
 0x4b7   : > { %v6069_v25 = vpop.f32.mrf.mxu2 }
 0x4b8   : > { %v11034_v34 = vadd.f32 %v10935_v57, %v6767_v62 }
 0x4ba   : > { %v8058_v54 = vpop.eup %8057  ;;  %v11039_v49 = vadd.f32 2.0, %v11034_v34 }
 0x4bb   : > { %v8060_v35 = vpop.eup %8059  ;;  %7337 = vrot.lane.b32.xlu0 %v8058_v54, %s8117_s27  ;;  %v7203_v54 = vld [vmem:[%s8287_s25 + $0x60] sm:$0xff] }
 0x4bc   : > { %v7084_v10 = vmul.f32 0.6931472, %v8060_v35  ;;  %v6899_v28 = vand.u32 2147483647, %v11039_v49  ;;  %v7235_v56 = vadd.f32 %v7203_v54, %v10790_v44 }
 0x4bd   : > { %v6731_v42 = vpop.f32.mrf.mxu3  ;;  %v5846_v17 = vpop.f32.mrf.mxu1 }
 0x4be   : > { %v11041_v30 = vsub.f32 %v6865_v60, %v7084_v10  ;;  %v6931_v1 = vsub.f32 0.0, %v6899_v28  ;;  %v6768_v2 = vadd.f32 %v6731_v42, %v6065_v37  ;;  %v6068_v20 = vadd.f32 %v6067_v45, %v5846_v17 }
 0x4bf   : > { %v7239_v60 = vadd.f32 %v7207_v27, %v10855_v48 }
 0x4c0   : > { %v7179_v53 = vmul.f32 1.442695, %v11041_v30  ;;  %v6991_v29 = vmul.f32 1.442695, %v6931_v1  ;;  %v11046_v0 = vadd.f32 %v10935_v57, %v6768_v2 }
 0x4c2   : > { %8061 = vpow2.f32 %v7179_v53  ;;  %v11052_v18 = vadd.f32 2.0, %v11046_v0 }
 0x4c3   : > { %8063 = vpow2.f32 %v6983_v13 }
 0x4c4   : > { %8065 = vpow2.f32 %v6991_v29  ;;  %v6900_v41 = vand.u32 2147483647, %v11052_v18 }
 0x4c5   : > { %8067 = vpow2.f32 %v6989_v52  ;;  %v6734_v14 = vpop.f32.mrf.mxu3  ;;  %v5848_v39 = vpop.f32.mrf.mxu1  ;;  %v6867_v52 = vmin.f32 %v11039_v49, 0.0 }
 0x4c6   : > { %v6932_v8 = vsub.f32 0.0, %v6900_v41  ;;  %v6769_v32 = vadd.f32 %v6734_v14, %v6068_v20  ;;  %v7312_v26 = vpop.permute.xlu0 %7311  ;;  %v6070_v2 = vadd.f32 %v6069_v25, %v5848_v39  ;;  %v7205_v41 = vld [vmem:[%s8287_s25 + $0x70] sm:$0xff] }
 0x4c7   : > { %v7395_v42 = vmul.f32 %v7312_v26, %v7235_v56  ;;  %v7237_v49 = vadd.f32 %v7205_v41, %v10828_v51  ;;  %v6863_v51 = vmin.f32 %v11024_v50, 0.0 }
 0x4c8   : > { %v8062_v40 = vpop.eup %8061  ;;  %v6993_v23 = vmul.f32 1.442695, %v6932_v8  ;;  %v11064_v35 = vadd.f32 %v10935_v57, %v6769_v32 }
 0x4c9   : > { %v8064_v59 = vpop.eup %8063  ;;  %7339 = vrot.lane.b32.xlu2 %v8062_v40, %s8117_s27  ;;  %7428 = vst.msk [vmem:[%s8287_s25 + $0x60] sm:$0xff] %vm7415_vm6, %v7395_v42 }
 0x4ca   : > { %v8066_v16 = vpop.eup %8065  ;;  %v7023_v10 = vadd.f32 1.0, %v8064_v59  ;;  %v11069_v13 = vadd.f32 2.0, %v11064_v35 }
 0x4cb   : > { %v7027_v62 = vadd.f32 1.0, %v8066_v16  ;;  %v8068_v37 = vpop.eup %8067  ;;  %v7209_v16 = vld [vmem:[%s8287_s25 + $0x90] sm:$0xff] }
 0x4cc   : > { %v6901_v1 = vand.u32 2147483647, %v11069_v13  ;;  %v7026_v44 = vadd.f32 1.0, %v8068_v37 }
 0x4cd   : > { %8069 = vlog2.f32 %v7027_v62  ;;  %v7320_v28 = vpop.permute.xlu2 %7319  ;;  %v6736_v48 = vpop.f32.mrf.mxu3  ;;  %v7241_v62 = vadd.f32 %v7209_v16, %v10879_v12 }
 0x4ce   : > { %8071 = vpow2.f32 %v6993_v23  ;;  %v7399_v53 = vmul.f32 %v7320_v28, %v7239_v60  ;;  %v6933_v29 = vsub.f32 0.0, %v6901_v1  ;;  %v6770_v19 = vadd.f32 %v6736_v48, %v6070_v2  ;;  %v7206_v23 = vld [vmem:[%s8287_s25 + $0x78] sm:$0xff] }
 0x4cf   : > { %8073 = vlog2.f32 %v7023_v10  ;;  %v7238_v54 = vadd.f32 %v7206_v23, %v10842_v4  ;;  %v6866_v2 = vmin.f32 %v11031_v55, 0.0 }
 0x4d0   : > { %7432 = vst.msk [vmem:[%s8287_s25 + $0x80] sm:$0xff] %vm7415_vm6, %v7399_v53  ;;  %v6995_v15 = vmul.f32 1.442695, %v6933_v29  ;;  %v11078_v46 = vadd.f32 %v10935_v57, %v6770_v19  ;;  %8075 = vlog2.f32 %v7026_v44  ;;  %v6868_v53 = vmin.f32 %v11052_v18, 0.0 }
 0x4d1   : > { %v7498_v18 = vsel %vm7448_vm11, %v11018_v33, 0.0 }
 0x4d2   : > { %8077 = vpow2.f32 %v6995_v15  ;;  %v11081_v11 = vadd.f32 2.0, %v11078_v46 }
 0x4d3   : > { %v8070_v47 = vpop.eup %8069 }
 0x4d4   : > { %v8072_v6 = vpop.eup %8071  ;;  %v7088_v17 = vmul.f32 0.6931472, %v8070_v47  ;;  %v6902_v57 = vand.u32 2147483647, %v11081_v11  ;;  %v6870_v16 = vmin.f32 %v11081_v11, 0.0 }
 0x4d5   : > { %v7028_v45 = vadd.f32 1.0, %v8072_v6  ;;  %v8074_v58 = vpop.eup %8073 }
 0x4d6   : > { %v7123_v22 = vsub.f32 %v6867_v52, %v7088_v17  ;;  %v7080_v59 = vmul.f32 0.6931472, %v8074_v58  ;;  %v6934_v14 = vsub.f32 0.0, %v6902_v57  ;;  %v8076_v32 = vpop.eup %8075  ;;  %v7500_v52 = vsel %vm7448_vm11, %v11041_v30, 0.0 }
 0x4d7   : > { %8079 = vlog2.f32 %v7028_v45  ;;  %v7316_v40 = vpop.permute.xlu1 %7315  ;;  %v7086_v12 = vmul.f32 0.6931472, %v8076_v32  ;;  %v6869_v45 = vmin.f32 %v11069_v13, 0.0  ;;  %v7208_v13 = vld [vmem:[%s8287_s25 + $0x88] sm:$0xff] }
 0x4d8   : > { %v7183_v8 = vmul.f32 1.442695, %v7123_v22  ;;  %v7397_v20 = vmul.f32 %v7316_v40, %v7237_v49  ;;  %v8078_v27 = vpop.eup %8077  ;;  %v6997_v39 = vmul.f32 1.442695, %v6934_v14  ;;  %v11093_v42 = vsub.f32 %v6863_v51, %v7080_v59  ;;  %v7211_v40 = vld [vmem:[%s8287_s25 + $0xa0] sm:$0xff] }
 0x4d9   : > { %v7029_v26 = vadd.f32 1.0, %v8078_v27  ;;  %v7122_v29 = vsub.f32 %v6866_v2, %v7086_v12  ;;  %v7504_v58 = vsel %vm7448_vm11, %v7123_v22, 0.0  ;;  %v7243_v30 = vadd.f32 %v7211_v40, %v10906_v63  ;;  %v7213_v2 = vld [vmem:[%s8287_s25 + $0xb0] sm:$0xff] }
 0x4da   : > { %8081 = vpow2.f32 %v7183_v8  ;;  %7430 = vst.msk [vmem:[%s8287_s25 + $0x70] sm:$0xff] %vm7415_vm6, %v7397_v20  ;;  %v7496_v1 = vsel %vm7448_vm11, %v11093_v42, 0.0  ;;  %v7240_v32 = vadd.f32 %v7208_v13, %v10868_v38  ;;  %v7210_v38 = vld [vmem:[%s8287_s25 + $0x98] sm:$0xff] }
 0x4db   : > { %8083 = vpow2.f32 %v6997_v39  ;;  %v7497_v47 = vadd.f32 %v7496_v1, %v10997_v5  ;;  %v7502_v55 = vsel %vm7448_vm11, %v7122_v29, 0.0 }
 0x4dc   : > { %v7324_v56 = vpop.permute.xlu2 %7323  ;;  %8085 = vlog2.f32 %v7029_v26 }
 0x4dd   : > { %v7318_v60 = vpop.permute.xlu0 %7317  ;;  %v8080_v10 = vpop.eup %8079  ;;  %v7401_v28 = vmul.f32 %v7324_v56, %v7241_v62  ;;  %v7499_v15 = vadd.f32 %v7498_v18, %v7497_v47 }
 0x4de   : > { %v7398_v37 = vmul.f32 %v7318_v60, %v7238_v54  ;;  %v7090_v25 = vmul.f32 0.6931472, %v8080_v10  ;;  %v7242_v10 = vadd.f32 %v7210_v38, %v10892_v3  ;;  %v7181_v3 = vmul.f32 1.442695, %v7122_v29  ;;  %v7217_v29 = vld [vmem:[%s8287_s25 + $0xd0] sm:$0xff] }
 0x4df   : > { %7434 = vst.msk [vmem:[%s8287_s25 + $0x90] sm:$0xff] %vm7415_vm6, %v7401_v28  ;;  %v7501_v41 = vadd.f32 %v7500_v52, %v7499_v15  ;;  %v7216_v52 = vld [vmem:[%s8287_s25 + $0xc8] sm:$0xff] }
 0x4e0   : > { %v8082_v4 = vpop.eup %8081  ;;  %v7124_v50 = vsub.f32 %v6868_v53, %v7090_v25  ;;  %7431 = vst.msk [vmem:[%s8287_s25 + $0x78] sm:$0xff] %vm7415_vm6, %v7398_v37  ;;  %v7214_v37 = vld [vmem:[%s8287_s25 + $0xb8] sm:$0xff]  ;;  %v7169_v53 = vmul.f32 1.442695, %v10973_v7  ;;  %v7245_v7 = vadd.f32 %v7213_v2, %v10938_v9  ;;  %v7249_v9 = vadd.f32 %v7217_v29, %v11000_v61 }
 0x4e1   : > { %7343 = vrot.lane.b32.xlu0 %v8082_v4, %s8117_s27  ;;  %v8084_v48 = vpop.eup %8083  ;;  %v7503_v5 = vadd.f32 %v7502_v55, %v7501_v41  ;;  %v7246_v25 = vadd.f32 %v7214_v37, %v10953_v31 }
 0x4e2   : > { %v7185_v44 = vmul.f32 1.442695, %v7124_v50  ;;  %v8086_v19 = vpop.eup %8085  ;;  %v7030_v6 = vadd.f32 1.0, %v8084_v48  ;;  %v7506_v8 = vsel %vm7448_vm11, %v7124_v50, 0.0  ;;  %v7175_v50 = vmul.f32 1.442695, %v11093_v42 }
 0x4e3   : > { %v7092_v17 = vmul.f32 0.6931472, %v8086_v19  ;;  %v7505_v59 = vadd.f32 %v7504_v58, %v7503_v5  ;;  %v7219_v58 = vld [vmem:[%s8287_s25 + $0xe0] sm:$0xff] }
 0x4e4   : > { %8087 = vpow2.f32 %v7185_v44 }
 0x4e5   : > { %8089 = vlog2.f32 %v7030_v6  ;;  %v7125_v49 = vsub.f32 %v6869_v45, %v7092_v17  ;;  %v7507_v62 = vadd.f32 %v7506_v8, %v7505_v59  ;;  %v7248_v17 = vadd.f32 %v7216_v52, %v10981_v36  ;;  %v7220_v45 = vld [vmem:[%s8287_s25 + $0xe8] sm:$0xff] }
 0x4e6   : > { %v7252_v61 = vadd.f32 %v7220_v45, %v11046_v0 }
 0x4e7   : > { %v7508_v22 = vsel %vm7448_vm11, %v7125_v49, 0.0  ;;  %v7187_v42 = vmul.f32 1.442695, %v7125_v49  ;;  %v7251_v49 = vadd.f32 %v7219_v58, %v11034_v34 }
 0x4e8   : > { %v7509_v51 = vadd.f32 %v7508_v22, %v7507_v62 }
 0x4ea   : > { %v8088_v33 = vpop.eup %8087 }
 0x4eb   : > { %7345 = vrot.lane.b32.xlu2 %v8088_v33, %s8117_s27  ;;  %v7328_v57 = vpop.permute.xlu2 %7327  ;;  %v8090_v20 = vpop.eup %8089 }
 0x4ec   : > { %v7403_v14 = vmul.f32 %v7328_v57, %v7243_v30  ;;  %v7094_v23 = vmul.f32 0.6931472, %v8090_v20  ;;  %v7222_v57 = vld [vmem:[%s8287_s25 + $0xf8] sm:$0xff] }
 0x4ed   : > { %v7254_v0 = vadd.f32 %v7222_v57, %v11078_v46  ;;  %v7215_v46 = vld [vmem:[%s8287_s25 + $0xc0] sm:$0xff] }
 0x4ee   : > { %7436 = vst.msk [vmem:[%s8287_s25 + $0xa0] sm:$0xff] %vm7415_vm6, %v7403_v14  ;;  %v7126_v54 = vsub.f32 %v6870_v16, %v7094_v23  ;;  %v7212_v23 = vld [vmem:[%s8287_s25 + $0xa8] sm:$0xff] }
 0x4ef   : > { %v7322_v63 = vpop.permute.xlu0 %7321  ;;  %v7244_v22 = vadd.f32 %v7212_v23, %v10919_v21  ;;  %v7221_v21 = vld [vmem:[%s8287_s25 + $0xf0] sm:$0xff] }
 0x4f0   : > { %v7400_v27 = vmul.f32 %v7322_v63, %v7240_v32  ;;  %v7189_v39 = vmul.f32 1.442695, %v7126_v54  ;;  %v7510_v56 = vsel %vm7448_vm11, %v7126_v54, 0.0  ;;  %v7247_v63 = vadd.f32 %v7215_v46, %v11014_v43 }
 0x4f1   : > { %v7511_v11 = vadd.f32 %v7510_v56, %v7509_v51  ;;  %v7218_v51 = vld [vmem:[%s8287_s25 + $0xd8] sm:$0xff] }
 0x4f2   : > { %7433 = vst.msk [vmem:[%s8287_s25 + $0x88] sm:$0xff] %vm7415_vm6, %v7400_v27  ;;  %8091 = vpow2.f32 %v7189_v39  ;;  %v7250_v39 = vadd.f32 %v7218_v51, %v11027_v24 }
 0x4f3   : > { %7512 = vadd.xlane.f32.xlu1 %v7511_v11  ;;  %8093 = vpow2.f32 %v7169_v53 }
 0x4f4   : > { %8095 = vpow2.f32 %v7175_v50 }
 0x4f5   : > { %8097 = vpow2.f32 %v7181_v3 }
 0x4f6   : > { %8099 = vpow2.f32 %v7187_v42 }
 0x4f8   : > { %v8092_v60 = vpop.eup %8091 }
 0x4f9   : > { %7349 = vrot.lane.b32.xlu0 %v8092_v60, %s8117_s27  ;;  %v8094_v1 = vpop.eup %8093  ;;  %v7253_v60 = vadd.f32 %v7221_v21, %v11064_v35 }
 0x4fa   : > { %v8096_v44 = vpop.eup %8095 }
 0x4fb   : > { %v8098_v18 = vpop.eup %8097 }
 0x4fc   : > { %v8100_v6 = vpop.eup %8099 }
 0x4fe   : > { %v7326_v26 = vpop.permute.xlu0 %7325 }
 0x4ff   : > { %v7402_v28 = vmul.f32 %v7326_v26, %v7242_v10 }
 0x501   : > { %7435 = vst.msk [vmem:[%s8287_s25 + $0x98] sm:$0xff] %vm7415_vm6, %v7402_v28 }
 0x502   : > { %v7334_v4 = vpop.permute.xlu2 %7333 }
 0x503   : > { %v7406_v12 = vmul.f32 %v7334_v4, %v7246_v25 }
 0x505   : > { %7439 = vst.msk [vmem:[%s8287_s25 + $0xb8] sm:$0xff] %vm7415_vm6, %v7406_v12 }
 0x50c   : > { %7329 = vrot.lane.b32.xlu1 %v8094_v1, %s8117_s27 }
 0x514   : > { %7335 = vrot.lane.b32.xlu1 %v8096_v44, %s8117_s27 }
 0x516   : > { %v7332_v31 = vpop.permute.xlu0 %7331 }
 0x517   : > { %v7405_v48 = vmul.f32 %v7332_v31, %v7245_v7 }
 0x519   : > { %7438 = vst.msk [vmem:[%s8287_s25 + $0xb0] sm:$0xff] %vm7415_vm6, %v7405_v48 }
 0x51c   : > { %7341 = vrot.lane.b32.xlu1 %v8098_v18, %s8117_s27 }
 0x523   : > { %v7340_v19 = vpop.permute.xlu2 %7339 }
 0x524   : > { %v7409_v47 = vmul.f32 %v7340_v19, %v7249_v9  ;;  %7347 = vrot.lane.b32.xlu1 %v8100_v6, %s8117_s27 }
 0x526   : > { %7442 = vst.msk [vmem:[%s8287_s25 + $0xd0] sm:$0xff] %vm7415_vm6, %v7409_v47 }
 0x52d   : > { %v7338_v15 = vpop.permute.xlu0 %7337 }
 0x52e   : > { %v7408_v55 = vmul.f32 %v7338_v15, %v7248_v17 }
 0x530   : > { %7441 = vst.msk [vmem:[%s8287_s25 + $0xc8] sm:$0xff] %vm7415_vm6, %v7408_v55 }
 0x545   : > { %v7346_v41 = vpop.permute.xlu2 %7345 }
 0x546   : > { %v7412_v33 = vmul.f32 %v7346_v41, %v7252_v61 }
 0x548   : > { %7445 = vst.msk [vmem:[%s8287_s25 + $0xe8] sm:$0xff] %vm7415_vm6, %v7412_v33 }
 0x553   : > { %v7344_v40 = vpop.permute.xlu0 %7343 }
 0x554   : > { %v7411_v5 = vmul.f32 %v7344_v40, %v7251_v49 }
 0x556   : > { %7444 = vst.msk [vmem:[%s8287_s25 + $0xe0] sm:$0xff] %vm7415_vm6, %v7411_v5 }
 0x566   : > { %v7513_v36 = vpop.xlane.xlu1 %7512 }
 0x567   : > { %v7514_v30 = vrot.slane %v7513_v36, 4 }
 0x569   : > { %v7515_v8 = vadd.f32 %v7514_v30, %v7513_v36 }
 0x56b   : > { %v7516_v20 = vrot.slane %v7515_v8, 2  ;;  %v7350_v59 = vpop.permute.xlu0 %7349 }
 0x56c   : > { %v7414_v14 = vmul.f32 %v7350_v59, %v7254_v0 }
 0x56d   : > { %v7517_v13 = vadd.f32 %v7516_v20, %v7515_v8 }
 0x56e   : > { %7447 = vst.msk [vmem:[%s8287_s25 + $0xf8] sm:$0xff] %vm7415_vm6, %v7414_v14 }
 0x56f   : > { %v7518_v34 = vrot.slane %v7517_v13, 1 }
 0x571   : > { %v7519_v16 = vadd.f32 %v7518_v34, %v7517_v13 }
 0x573   : > { %7889 = vpush %v7519_v16 }
 0x57e   : > { %v7330_v32 = vpop.permute.xlu1 %7329 }
 0x57f   : > { %v7404_v62 = vmul.f32 %v7330_v32, %v7244_v22 }
 0x581   : > { %7437 = vst.msk [vmem:[%s8287_s25 + $0xa8] sm:$0xff] %vm7415_vm6, %v7404_v62 }
 0x586   : > { %v7336_v54 = vpop.permute.xlu1 %7335 }
 0x587   : > { %v7407_v27 = vmul.f32 %v7336_v54, %v7247_v63 }
 0x589   : > { %7440 = vst.msk [vmem:[%s8287_s25 + $0xc0] sm:$0xff] %vm7415_vm6, %v7407_v27 }
 0x58e   : > { %v7342_v56 = vpop.permute.xlu1 %7341 }
 0x58f   : > { %v7410_v11 = vmul.f32 %v7342_v56, %v7250_v39 }
 0x591   : > { %7443 = vst.msk [vmem:[%s8287_s25 + $0xd8] sm:$0xff] %vm7415_vm6, %v7410_v11 }
 0x596   : > { %v7348_v38 = vpop.permute.xlu1 %7347 }
 0x597   : > { %v7413_v10 = vmul.f32 %v7348_v38, %v7253_v60 }
 0x599   : > { %7446 = vst.msk [vmem:[%s8287_s25 + $0xf0] sm:$0xff] %vm7415_vm6, %v7413_v10 }
 0x5a4   : > { %s7890_s16 = spop %7889 }
 0x5a5   : > { %v7521_v43 = vstv %s7890_s16 }
 0x5a6   : > { %7524 = vst.msk [vmem:[%s368_s11] sm:$0x1] %vm7523_vm10, %v7521_v43 }
 0x5a7 PF: > { %s21_s13 = sadd.s32 1, %s8113_s13  }
 0x5a8   : > { %p18_p4 = scmp.ge.s32.totalorder %s21_s13, 4  }
 0x5aa   :  { %20 = sbr.rel (!%p18_p4) target bundleno = 1 (0x1), region = 108 }

</bundles_post_ra>
